<compile_context>
chip_gen: v5e
topology: v5e:2x2
jax: 0.10.0
libtpu: 0.0.40
codegen_flags: <defaults>
</compile_context>

<pallas_src>
import functools

import numpy as np
import jax
import jax.numpy as jnp
from jax.experimental import pallas as pl
from jax.experimental.pallas import tpu as pltpu

LEAKY_SLOPE = 0.2
BN_EPS = 1e-5
LANE = 128
VMEM_LIMIT = 32 * 1024 * 1024   # safe default on v5e/v6e (128 MiB) and v7x (64 MiB)


def _round_up(x, m):
    return ((x + m - 1) // m) * m


def _leaky(v):
    return jnp.where(v >= 0.0, v, LEAKY_SLOPE * v)


# ----------------------------------------------------------------------------
# Static layer plan
# ----------------------------------------------------------------------------
def _make_plan(channels, image_size):
    """Per-block geometry.  Each block input/intermediate is a flat, spatially
    zero-padded slab of `alloc = (H+2)*(W+2) + 2` rows (the +2 covers the
    worst-case conv-tap over-read), so 3x3 taps are contiguous row slices."""
    blocks = []
    sz = image_size // 2          # spatial size after the head avg-pool
    cc = channels[0]
    for ch in channels[1:]:
        blocks.append(dict(H=sz, W=sz, inc=cc, outc=ch,
                           has_expand=(cc != ch), do_pool=True))
        cc, sz = ch, sz // 2
    blocks.append(dict(H=sz, W=sz, inc=cc, outc=cc,
                       has_expand=False, do_pool=False))
    for b in blocks:
        b['Wp2'] = b['W'] + 2
        b['Me'] = b['H'] * b['Wp2']
        b['alloc'] = (b['H'] + 2) * b['Wp2'] + 2
    return blocks


# ----------------------------------------------------------------------------
# Fused encoder kernel (one image per grid step)
# ----------------------------------------------------------------------------
def _conv3x3(src_ref, w_ref, Wp2, Me):
    """3x3 'same' conv as 9 contiguous row-shifted matmuls on the flat slab."""
    acc = jnp.dot(src_ref[0:Me, :], w_ref[0], preferred_element_type=jnp.float32)
    for t in range(1, 9):
        off = (t // 3) * Wp2 + (t % 3)
        acc = acc + jnp.dot(src_ref[off:off + Me, :], w_ref[t],
                            preferred_element_type=jnp.float32)
    return acc


def _encoder_kernel(*refs, plan):
    it = iter(refs)
    patches_ref = next(it)                                   # (1, H0*W0, Kpad) bf16
    w0_ref, s0_ref, b0_ref, p0_ref = next(it), next(it), next(it), next(it)
    blk_refs = []
    for blk in plan:
        d = {}
        if blk['has_expand']:
            d['wexp'] = next(it)
        d['w1'], d['s1'], d['b1'] = next(it), next(it), next(it)
        d['w2'], d['s2'], d['b2'] = next(it), next(it), next(it)
        if blk['do_pool']:
            d['pool'] = next(it)
        blk_refs.append(d)
    wfc_ref, bfc_ref = next(it), next(it)
    out_ref = next(it)                                       # (1, 1, Zp) f32
    scratch = list(it)                                       # [xpad0, hpad0, xpad1, hpad1, ...]

    # ---- head: im2col 5x5 conv + BN + LeakyReLU + AvgPool2(scatter) ---------
    xpad0 = scratch[0]
    hw = patches_ref.shape[1]
    chunk = LANE if (hw % LANE == 0 and hw > LANE) else hw   # limit f32 acc vreg pressure
    s0, b0 = s0_ref[...], b0_ref[...]
    acc_x = jnp.zeros(xpad0.shape, jnp.float32)
    for c0 in range(0, hw, chunk):
        a = jnp.dot(patches_ref[0, c0:c0 + chunk, :], w0_ref[...],
                    preferred_element_type=jnp.float32)
        y0 = _leaky(a * s0 + b0).astype(jnp.bfloat16)
        acc_x = acc_x + jnp.dot(p0_ref[:, c0:c0 + chunk], y0,
                                preferred_element_type=jnp.float32)
    xpad0[...] = acc_x.astype(xpad0.dtype)                   # single full-slab store

    # ---- residual blocks -----------------------------------------------------
    y = None
    for bi, blk in enumerate(plan):
        xpad, hpad = scratch[2 * bi], scratch[2 * bi + 1]
        d = blk_refs[bi]
        Wp2, Me, W = blk['Wp2'], blk['Me'], blk['W']
        top = Wp2 + 1
        bot = hpad.shape[0] - top - Me

        # identity path (1x1 conv expand, or passthrough)
        x_int = xpad[top:top + Me, :]
        if blk['has_expand']:
            identity = jnp.dot(x_int, d['wexp'][...],
                               preferred_element_type=jnp.float32)
        else:
            identity = x_int.astype(jnp.float32)

        # conv3x3 + BN + LeakyReLU
        acc1 = _conv3x3(xpad, d['w1'], Wp2, Me)
        h = _leaky(acc1 * d['s1'][...] + d['b1'][...])
        # zero the garbage columns (j >= W inside each W+2-wide row group) so the
        # re-padded slab has an exact zero border for the second conv.
        col = jax.lax.broadcasted_iota(jnp.int32, (Me, 1), 0) % Wp2
        h = jnp.where(col < W, h, 0.0).astype(jnp.bfloat16)
        hpad[...] = jnp.concatenate(
            [jnp.zeros((top, h.shape[1]), h.dtype), h,
             jnp.zeros((bot, h.shape[1]), h.dtype)], axis=0)  # one full-slab store

        # conv3x3 + BN + residual add + LeakyReLU
        acc2 = _conv3x3(hpad, d['w2'], Wp2, Me)
        y = _leaky(acc2 * d['s2'][...] + d['b2'][...] + identity)

        if blk['do_pool']:
            # AvgPool2(2) + zero-pad + relayout for the next block: one bf16 matmul.
            nxt = scratch[2 * (bi + 1)]
            nxt[...] = jnp.dot(d['pool'][...], y.astype(jnp.bfloat16),
                               preferred_element_type=jnp.float32).astype(nxt.dtype)

    # ---- FC (NCHW flatten folded into the permuted weight) -------------------
    last = plan[-1]
    yb = y.astype(jnp.bfloat16)
    acc = bfc_ref[...]
    for i in range(last['H']):
        for j in range(last['W']):
            r = i * last['Wp2'] + j
            acc = acc + jnp.dot(yb[r:r + 1, :], wfc_ref[i * last['W'] + j],
                                preferred_element_type=jnp.float32)
    out_ref[...] = acc.reshape(out_ref.shape)


# ----------------------------------------------------------------------------
# Parameter init (deterministic, lane-padded, bf16 MXU operands, folded BN)
# ----------------------------------------------------------------------------
def _head_weight(key, cout, cin, k=5):
    cout_p = _round_up(cout, LANE)
    kdim = k * k * cin
    kp = _round_up(kdim, LANE)
    w = jax.random.normal(key, (cout, cin, k, k), jnp.float32) / float((cin * k * k) ** 0.5)
    w = jnp.transpose(w, (2, 3, 1, 0)).reshape(kdim, cout)    # (di, dj, ci) order
    w = jnp.pad(w, ((0, kp - kdim), (0, cout_p - cout)))
    return w.astype(jnp.bfloat16)


def _conv3_weight(key, cout, cin):
    cin_p, cout_p = _round_up(cin, LANE), _round_up(cout, LANE)
    w = jax.random.normal(key, (cout, cin, 3, 3), jnp.float32) / float((cin * 9) ** 0.5)
    w = jnp.transpose(w, (2, 3, 1, 0)).reshape(9, cin, cout)
    w = jnp.pad(w, ((0, 0), (0, cin_p - cin), (0, cout_p - cout)))
    return w.astype(jnp.bfloat16)


def _expand_weight(key, cout, cin):
    cin_p, cout_p = _round_up(cin, LANE), _round_up(cout, LANE)
    w = jax.random.normal(key, (cout, cin), jnp.float32) / float(cin ** 0.5)
    w = jnp.pad(jnp.transpose(w), ((0, cin_p - cin), (0, cout_p - cout)))
    return w.astype(jnp.bfloat16)


def _bn_params(key, c):
    cp = _round_up(c, LANE)
    k1, k2, k3, k4 = jax.random.split(key, 4)
    gamma = 1.0 + 0.1 * jax.random.normal(k1, (c,), jnp.float32)
    beta = 0.1 * jax.random.normal(k2, (c,), jnp.float32)
    mean = 0.1 * jax.random.normal(k3, (c,), jnp.float32)
    var = 1.0 + 0.1 * jax.random.uniform(k4, (c,), jnp.float32)
    scale = gamma / jnp.sqrt(var + BN_EPS)
    bias = beta - mean * scale
    return (jnp.pad(scale, (0, cp - c)).reshape(1, cp),
            jnp.pad(bias, (0, cp - c)).reshape(1, cp))


def _pool_scatter(H, W, src_stride, alloc_next, Wp2_next):
    """(alloc_next, H*src_stride) constant matrix: 2x2 average pool AND write
    into the next block's flat zero-padded layout (zero rows for the border and
    the over-read slack).  src_stride = W (compact) or W+2 (expanded-M)."""
    Ho, Wo = H // 2, W // 2
    P = np.zeros((alloc_next, H * src_stride), np.float32)
    for i in range(Ho):
        for j in range(Wo):
            dst = (i + 1) * Wp2_next + (j + 1)
            for di in range(2):
                for dj in range(2):
                    P[dst, (2 * i + di) * src_stride + (2 * j + dj)] = 0.25
    return jnp.asarray(P, jnp.bfloat16)      # 0.25 is exact in bf16


def init_encoder(key, cdim=3, zdim=8, channels=(8, 16), image_size=16):
    plan = _make_plan(channels, image_size)
    n_blocks = len(plan)
    keys = jax.random.split(key, 3 + 5 * n_blocks)
    ki = iter(range(len(keys)))

    params = {'config': dict(cdim=cdim, zdim=zdim, channels=tuple(channels),
                             image_size=image_size)}
    cc = channels[0]
    params['head_w'] = _head_weight(keys[next(ki)], cc, cdim, 5)
    params['head_s'], params['head_b'] = _bn_params(keys[next(ki)], cc)

    blk0 = plan[0]
    params['p0'] = _pool_scatter(image_size, image_size, image_size,
                                 blk0['alloc'], blk0['Wp2'])

    blocks = []
    for bi, blk in enumerate(plan):
        p = {}
        if blk['has_expand']:
            p['wexp'] = _expand_weight(keys[next(ki)], blk['outc'], blk['inc'])
        p['w1'] = _conv3_weight(keys[next(ki)], blk['outc'], blk['inc'])
        p['s1'], p['b1'] = _bn_params(keys[next(ki)], blk['outc'])
        p['w2'] = _conv3_weight(keys[next(ki)], blk['outc'], blk['outc'])
        p['s2'], p['b2'] = _bn_params(keys[next(ki)], blk['outc'])
        if blk['do_pool']:
            nxt = plan[bi + 1]
            p['pool'] = _pool_scatter(blk['H'], blk['W'], blk['Wp2'],
                                      nxt['alloc'], nxt['Wp2'])
        blocks.append(p)
    params['blocks'] = blocks

    # FC weight permuted so the kernel consumes the last feature map in its
    # native (row=i*W+j, channel) layout (PyTorch flattens NCHW: c*H*W + i*W + j).
    last = plan[-1]
    cc_last, sz = last['outc'], last['H']
    cp, zp = _round_up(cc_last, LANE), _round_up(2 * zdim, LANE)
    num_fc = cc_last * sz * sz
    wk, bk = jax.random.split(keys[next(ki)])
    fc_w = jax.random.normal(wk, (2 * zdim, num_fc), jnp.float32) / float(num_fc ** 0.5)
    fc_w = fc_w.reshape(2 * zdim, cc_last, sz, sz)      # [z, c, i, j]
    fc_w = jnp.transpose(fc_w, (2, 3, 1, 0))            # [i, j, c, z]
    fc_w = fc_w.reshape(sz * sz, cc_last, 2 * zdim)
    fc_w = jnp.pad(fc_w, ((0, 0), (0, cp - cc_last), (0, zp - 2 * zdim)))
    params['fc_w'] = fc_w.astype(jnp.bfloat16)
    fc_b = 0.1 * jax.random.normal(bk, (2 * zdim,), jnp.float32)
    params['fc_b'] = jnp.pad(fc_b, (0, zp - 2 * zdim)).reshape(1, zp)
    return params


# ----------------------------------------------------------------------------
# Forward pass: one fused pallas_call over the batch
# ----------------------------------------------------------------------------
def _const_spec(arr):
    nd = arr.ndim
    return pl.BlockSpec(arr.shape, lambda n, _nd=nd: (0,) * _nd)


def encoder_forward(params, x_nchw):
    cfg = params['config']
    cdim, zdim = cfg['cdim'], cfg['zdim']
    channels, image_size = cfg['channels'], cfg['image_size']
    N, _, H, W = x_nchw.shape
    assert H == image_size and W == image_size

    plan = _make_plan(channels, image_size)
    zp = params['fc_b'].shape[-1]
    kpad = params['head_w'].shape[0]

    # im2col the 5x5 head patches in the wrapper: (N, H*W, 25*cdim -> Kpad) bf16.
    x = jnp.transpose(x_nchw, (0, 2, 3, 1))
    xp = jnp.pad(x, ((0, 0), (2, 2), (2, 2), (0, 0)))
    taps = [xp[:, di:di + H, dj:dj + W, :] for di in range(5) for dj in range(5)]
    patches = jnp.concatenate(taps, axis=-1)                   # (N, H, W, 25*cdim)
    patches = jnp.pad(patches, ((0, 0), (0, 0), (0, 0), (0, kpad - 25 * cdim)))
    patches = patches.reshape(N, H * W, kpad).astype(jnp.bfloat16)

    inputs = [patches, params['head_w'], params['head_s'], params['head_b'],
              params['p0']]
    in_specs = [pl.BlockSpec((1, H * W, kpad), lambda n: (n, 0, 0))]
    in_specs += [_const_spec(a) for a in inputs[1:]]
    for bp, blk in zip(params['blocks'], plan):
        names = ((['wexp'] if blk['has_expand'] else [])
                 + ['w1', 's1', 'b1', 'w2', 's2', 'b2']
                 + (['pool'] if blk['do_pool'] else []))
        for nm in names:
            inputs.append(bp[nm])
            in_specs.append(_const_spec(bp[nm]))
    inputs += [params['fc_w'], params['fc_b']]
    in_specs += [_const_spec(params['fc_w']), _const_spec(params['fc_b'])]

    scratch_shapes = []
    for blk in plan:
        cin_p = _round_up(blk['inc'], LANE)
        cout_p = _round_up(blk['outc'], LANE)
        scratch_shapes.append(pltpu.VMEM((blk['alloc'], cin_p), jnp.bfloat16))
        scratch_shapes.append(pltpu.VMEM((blk['alloc'], cout_p), jnp.bfloat16))

    kern = functools.partial(_encoder_kernel, plan=plan)
    out = pl.pallas_call(
        kern,
        out_shape=jax.ShapeDtypeStruct((N, 1, zp), jnp.float32),
        grid=(N,),
        in_specs=in_specs,
        out_specs=pl.BlockSpec((1, 1, zp), lambda n: (n, 0, 0)),
        scratch_shapes=scratch_shapes,
        compiler_params=pltpu.CompilerParams(
            dimension_semantics=("parallel",),
            vmem_limit_bytes=VMEM_LIMIT),
    )(*inputs)

    out = out.reshape(N, zp)
    return out[:, :zdim], out[:, zdim:2 * zdim]


# ----------------------------------------------------------------------------
if __name__ == "__main__":
    key = jax.random.PRNGKey(0)
    pkey, xkey = jax.random.split(key)

    cdim, zdim, channels, image_size, batch = 3, 8, (8, 16), 16, 2
    params = init_encoder(pkey, cdim=cdim, zdim=zdim,
                          channels=channels, image_size=image_size)
    x = jax.random.normal(xkey, (batch, cdim, image_size, image_size),
                          jnp.float32)

    mu, logvar = encoder_forward(params, x)
    mu = jax.block_until_ready(mu)
    logvar = jax.block_until_ready(logvar)

    assert mu.shape == (batch, zdim), mu.shape
    assert logvar.shape == (batch, zdim), logvar.shape
    assert jnp.all(jnp.isfinite(mu)) and jnp.all(jnp.isfinite(logvar))
    print("KERNEL_OK")
</pallas_src>

<mosaic_0001>
module attributes {stable_mosaic.version = 11 : i64} {
  func.func @_encoder_kernel(%arg0: i32, %arg1: memref<1x256x128xbf16, #tpu.memory_space<vmem>>, %arg2: memref<128x128xbf16, #tpu.memory_space<vmem>>, %arg3: memref<1x128xf32, #tpu.memory_space<vmem>>, %arg4: memref<1x128xf32, #tpu.memory_space<vmem>>, %arg5: memref<102x256xbf16, #tpu.memory_space<vmem>>, %arg6: memref<128x128xbf16, #tpu.memory_space<vmem>>, %arg7: memref<9x128x128xbf16, #tpu.memory_space<vmem>>, %arg8: memref<1x128xf32, #tpu.memory_space<vmem>>, %arg9: memref<1x128xf32, #tpu.memory_space<vmem>>, %arg10: memref<9x128x128xbf16, #tpu.memory_space<vmem>>, %arg11: memref<1x128xf32, #tpu.memory_space<vmem>>, %arg12: memref<1x128xf32, #tpu.memory_space<vmem>>, %arg13: memref<38x80xbf16, #tpu.memory_space<vmem>>, %arg14: memref<9x128x128xbf16, #tpu.memory_space<vmem>>, %arg15: memref<1x128xf32, #tpu.memory_space<vmem>>, %arg16: memref<1x128xf32, #tpu.memory_space<vmem>>, %arg17: memref<9x128x128xbf16, #tpu.memory_space<vmem>>, %arg18: memref<1x128xf32, #tpu.memory_space<vmem>>, %arg19: memref<1x128xf32, #tpu.memory_space<vmem>>, %arg20: memref<16x128x128xbf16, #tpu.memory_space<vmem>>, %arg21: memref<1x128xf32, #tpu.memory_space<vmem>>, %arg22: memref<1x1x128xf32, #tpu.memory_space<vmem>>, %arg23: memref<102x128xbf16, #tpu.memory_space<vmem>>, %arg24: memref<102x128xbf16, #tpu.memory_space<vmem>>, %arg25: memref<38x128xbf16, #tpu.memory_space<vmem>>, %arg26: memref<38x128xbf16, #tpu.memory_space<vmem>>) attributes {dimension_semantics = [#tpu.dimension_semantics<parallel>], iteration_bounds = array<i64: 2>, scalar_prefetch = 0 : i64, scratch_operands = 4 : i64, tpu.core_type = #tpu.core_type<tc>, window_params = [{transform_indices = @transform_0, window_bounds = array<i64: 1, 256, 128>}, {pipeline_mode = #tpu.pipeline_mode<synchronous>, transform_indices = @transform_1, window_bounds = array<i64: 128, 128>}, {pipeline_mode = #tpu.pipeline_mode<synchronous>, transform_indices = @transform_2, window_bounds = array<i64: 1, 128>}, {pipeline_mode = #tpu.pipeline_mode<synchronous>, transform_indices = @transform_3, window_bounds = array<i64: 1, 128>}, {pipeline_mode = #tpu.pipeline_mode<synchronous>, transform_indices = @transform_4, window_bounds = array<i64: 102, 256>}, {pipeline_mode = #tpu.pipeline_mode<synchronous>, transform_indices = @transform_5, window_bounds = array<i64: 128, 128>}, {pipeline_mode = #tpu.pipeline_mode<synchronous>, transform_indices = @transform_6, window_bounds = array<i64: 9, 128, 128>}, {pipeline_mode = #tpu.pipeline_mode<synchronous>, transform_indices = @transform_7, window_bounds = array<i64: 1, 128>}, {pipeline_mode = #tpu.pipeline_mode<synchronous>, transform_indices = @transform_8, window_bounds = array<i64: 1, 128>}, {pipeline_mode = #tpu.pipeline_mode<synchronous>, transform_indices = @transform_9, window_bounds = array<i64: 9, 128, 128>}, {pipeline_mode = #tpu.pipeline_mode<synchronous>, transform_indices = @transform_10, window_bounds = array<i64: 1, 128>}, {pipeline_mode = #tpu.pipeline_mode<synchronous>, transform_indices = @transform_11, window_bounds = array<i64: 1, 128>}, {pipeline_mode = #tpu.pipeline_mode<synchronous>, transform_indices = @transform_12, window_bounds = array<i64: 38, 80>}, {pipeline_mode = #tpu.pipeline_mode<synchronous>, transform_indices = @transform_13, window_bounds = array<i64: 9, 128, 128>}, {pipeline_mode = #tpu.pipeline_mode<synchronous>, transform_indices = @transform_14, window_bounds = array<i64: 1, 128>}, {pipeline_mode = #tpu.pipeline_mode<synchronous>, transform_indices = @transform_15, window_bounds = array<i64: 1, 128>}, {pipeline_mode = #tpu.pipeline_mode<synchronous>, transform_indices = @transform_16, window_bounds = array<i64: 9, 128, 128>}, {pipeline_mode = #tpu.pipeline_mode<synchronous>, transform_indices = @transform_17, window_bounds = array<i64: 1, 128>}, {pipeline_mode = #tpu.pipeline_mode<synchronous>, transform_indices = @transform_18, window_bounds = array<i64: 1, 128>}, {pipeline_mode = #tpu.pipeline_mode<synchronous>, transform_indices = @transform_19, window_bounds = array<i64: 16, 128, 128>}, {pipeline_mode = #tpu.pipeline_mode<synchronous>, transform_indices = @transform_20, window_bounds = array<i64: 1, 128>}, {transform_indices = @transform_21, window_bounds = array<i64: 1, 1, 128>}]} {
    %c0 = arith.constant 0 : index
    %c0_0 = arith.constant 0 : index
    %0 = vector.load %arg3[%c0, %c0_0] : memref<1x128xf32, #tpu.memory_space<vmem>>, vector<1x128xf32>
    %c0_1 = arith.constant 0 : index
    %c0_2 = arith.constant 0 : index
    %1 = vector.load %arg4[%c0_1, %c0_2] : memref<1x128xf32, #tpu.memory_space<vmem>>, vector<1x128xf32>
    %cst = arith.constant 0.000000e+00 : f32
    %2 = vector.broadcast %cst : f32 to vector<102x128xf32>
    %c0_3 = arith.constant 0 : index
    %c0_4 = arith.constant 0 : index
    %c0_5 = arith.constant 0 : index
    %3 = vector.load %arg1[%c0_3, %c0_4, %c0_5] : memref<1x256x128xbf16, #tpu.memory_space<vmem>>, vector<1x128x128xbf16>
    %4 = vector.shape_cast %3 : vector<1x128x128xbf16> to vector<128x128xbf16>
    %c0_6 = arith.constant 0 : index
    %c0_7 = arith.constant 0 : index
    %5 = vector.load %arg2[%c0_6, %c0_7] : memref<128x128xbf16, #tpu.memory_space<vmem>>, vector<128x128xbf16>
    %cst_8 = arith.constant dense<0.000000e+00> : vector<128x128xf32>
    %6 = tpu.matmul %4, %5, %cst_8 {dimension_numbers = #tpu.dot_dimension_numbers<[1], [0], [0], [1], [0, 0, 1, 1], [], []>} : vector<128x128xbf16>, vector<128x128xbf16>, vector<128x128xf32> -> vector<128x128xf32>
    %7 = vector.broadcast %0 : vector<1x128xf32> to vector<128x128xf32>
    %8 = arith.mulf %6, %7 : vector<128x128xf32>
    %9 = vector.broadcast %1 : vector<1x128xf32> to vector<128x128xf32>
    %10 = arith.addf %8, %9 : vector<128x128xf32>
    %cst_9 = arith.constant 0.000000e+00 : f32
    %11 = vector.broadcast %cst_9 : f32 to vector<128x128xf32>
    %12 = arith.cmpf oge, %10, %11 : vector<128x128xf32>
    %cst_10 = arith.constant 2.000000e-01 : f32
    %13 = vector.broadcast %cst_10 : f32 to vector<128x128xf32>
    %14 = arith.mulf %13, %10 : vector<128x128xf32>
    %15 = arith.select %12, %10, %14 : vector<128x128xi1>, vector<128x128xf32>
    %16 = arith.truncf %15 : vector<128x128xf32> to vector<128x128xbf16>
    %c0_11 = arith.constant 0 : index
    %c0_12 = arith.constant 0 : index
    %17 = vector.load %arg5[%c0_11, %c0_12] : memref<102x256xbf16, #tpu.memory_space<vmem>>, vector<102x128xbf16>
    %cst_13 = arith.constant dense<0.000000e+00> : vector<102x128xf32>
    %18 = tpu.matmul %17, %16, %cst_13 {dimension_numbers = #tpu.dot_dimension_numbers<[1], [0], [0], [1], [0, 0, 1, 1], [], []>} : vector<102x128xbf16>, vector<128x128xbf16>, vector<102x128xf32> -> vector<102x128xf32>
    %19 = arith.addf %2, %18 : vector<102x128xf32>
    %c0_14 = arith.constant 0 : index
    %c128 = arith.constant 128 : index
    %c0_15 = arith.constant 0 : index
    %20 = vector.load %arg1[%c0_14, %c128, %c0_15] : memref<1x256x128xbf16, #tpu.memory_space<vmem>>, vector<1x128x128xbf16>
    %21 = vector.shape_cast %20 : vector<1x128x128xbf16> to vector<128x128xbf16>
    %c0_16 = arith.constant 0 : index
    %c0_17 = arith.constant 0 : index
    %22 = vector.load %arg2[%c0_16, %c0_17] : memref<128x128xbf16, #tpu.memory_space<vmem>>, vector<128x128xbf16>
    %cst_18 = arith.constant dense<0.000000e+00> : vector<128x128xf32>
    %23 = tpu.matmul %21, %22, %cst_18 {dimension_numbers = #tpu.dot_dimension_numbers<[1], [0], [0], [1], [0, 0, 1, 1], [], []>} : vector<128x128xbf16>, vector<128x128xbf16>, vector<128x128xf32> -> vector<128x128xf32>
    %24 = vector.broadcast %0 : vector<1x128xf32> to vector<128x128xf32>
    %25 = arith.mulf %23, %24 : vector<128x128xf32>
    %26 = vector.broadcast %1 : vector<1x128xf32> to vector<128x128xf32>
    %27 = arith.addf %25, %26 : vector<128x128xf32>
    %cst_19 = arith.constant 0.000000e+00 : f32
    %28 = vector.broadcast %cst_19 : f32 to vector<128x128xf32>
    %29 = arith.cmpf oge, %27, %28 : vector<128x128xf32>
    %cst_20 = arith.constant 2.000000e-01 : f32
    %30 = vector.broadcast %cst_20 : f32 to vector<128x128xf32>
    %31 = arith.mulf %30, %27 : vector<128x128xf32>
    %32 = arith.select %29, %27, %31 : vector<128x128xi1>, vector<128x128xf32>
    %33 = arith.truncf %32 : vector<128x128xf32> to vector<128x128xbf16>
    %c0_21 = arith.constant 0 : index
    %c128_22 = arith.constant 128 : index
    %34 = vector.load %arg5[%c0_21, %c128_22] : memref<102x256xbf16, #tpu.memory_space<vmem>>, vector<102x128xbf16>
    %cst_23 = arith.constant dense<0.000000e+00> : vector<102x128xf32>
    %35 = tpu.matmul %34, %33, %cst_23 {dimension_numbers = #tpu.dot_dimension_numbers<[1], [0], [0], [1], [0, 0, 1, 1], [], []>} : vector<102x128xbf16>, vector<128x128xbf16>, vector<102x128xf32> -> vector<102x128xf32>
    %36 = arith.addf %19, %35 : vector<102x128xf32>
    %37 = arith.truncf %36 : vector<102x128xf32> to vector<102x128xbf16>
    %c0_24 = arith.constant 0 : index
    %c0_25 = arith.constant 0 : index
    %38 = vector.load %arg23[%c0_24, %c0_25] : memref<102x128xbf16, #tpu.memory_space<vmem>>, vector<102x128xbf16>
    tpu.vector_store %arg23[%c0_24, %c0_25], %37 {strides = array<i32>} : memref<102x128xbf16, #tpu.memory_space<vmem>>, vector<102x128xbf16>,
    %c11 = arith.constant 11 : index
    %c0_26 = arith.constant 0 : index
    %39 = vector.load %arg23[%c11, %c0_26] : memref<102x128xbf16, #tpu.memory_space<vmem>>, vector<80x128xbf16>
    %c0_27 = arith.constant 0 : index
    %c0_28 = arith.constant 0 : index
    %40 = vector.load %arg6[%c0_27, %c0_28] : memref<128x128xbf16, #tpu.memory_space<vmem>>, vector<128x128xbf16>
    %cst_29 = arith.constant dense<0.000000e+00> : vector<80x128xf32>
    %41 = tpu.matmul %39, %40, %cst_29 {dimension_numbers = #tpu.dot_dimension_numbers<[1], [0], [0], [1], [0, 0, 1, 1], [], []>} : vector<80x128xbf16>, vector<128x128xbf16>, vector<80x128xf32> -> vector<80x128xf32>
    %c0_30 = arith.constant 0 : index
    %c0_31 = arith.constant 0 : index
    %42 = vector.load %arg23[%c0_30, %c0_31] : memref<102x128xbf16, #tpu.memory_space<vmem>>, vector<80x128xbf16>
    %c0_32 = arith.constant 0 : index
    %c0_33 = arith.constant 0 : index
    %c0_34 = arith.constant 0 : index
    %43 = vector.load %arg7[%c0_32, %c0_33, %c0_34] : memref<9x128x128xbf16, #tpu.memory_space<vmem>>, vector<1x128x128xbf16>
    %44 = vector.shape_cast %43 : vector<1x128x128xbf16> to vector<128x128xbf16>
    %cst_35 = arith.constant dense<0.000000e+00> : vector<80x128xf32>
    %45 = tpu.matmul %42, %44, %cst_35 {dimension_numbers = #tpu.dot_dimension_numbers<[1], [0], [0], [1], [0, 0, 1, 1], [], []>} : vector<80x128xbf16>, vector<128x128xbf16>, vector<80x128xf32> -> vector<80x128xf32>
    %c1 = arith.constant 1 : index
    %c0_36 = arith.constant 0 : index
    %46 = vector.load %arg23[%c1, %c0_36] : memref<102x128xbf16, #tpu.memory_space<vmem>>, vector<80x128xbf16>
    %c1_37 = arith.constant 1 : index
    %c0_38 = arith.constant 0 : index
    %c0_39 = arith.constant 0 : index
    %47 = vector.load %arg7[%c1_37, %c0_38, %c0_39] : memref<9x128x128xbf16, #tpu.memory_space<vmem>>, vector<1x128x128xbf16>
    %48 = vector.shape_cast %47 : vector<1x128x128xbf16> to vector<128x128xbf16>
    %cst_40 = arith.constant dense<0.000000e+00> : vector<80x128xf32>
    %49 = tpu.matmul %46, %48, %cst_40 {dimension_numbers = #tpu.dot_dimension_numbers<[1], [0], [0], [1], [0, 0, 1, 1], [], []>} : vector<80x128xbf16>, vector<128x128xbf16>, vector<80x128xf32> -> vector<80x128xf32>
    %50 = arith.addf %45, %49 : vector<80x128xf32>
    %c2 = arith.constant 2 : index
    %c0_41 = arith.constant 0 : index
    %51 = vector.load %arg23[%c2, %c0_41] : memref<102x128xbf16, #tpu.memory_space<vmem>>, vector<80x128xbf16>
    %c2_42 = arith.constant 2 : index
    %c0_43 = arith.constant 0 : index
    %c0_44 = arith.constant 0 : index
    %52 = vector.load %arg7[%c2_42, %c0_43, %c0_44] : memref<9x128x128xbf16, #tpu.memory_space<vmem>>, vector<1x128x128xbf16>
    %53 = vector.shape_cast %52 : vector<1x128x128xbf16> to vector<128x128xbf16>
    %cst_45 = arith.constant dense<0.000000e+00> : vector<80x128xf32>
    %54 = tpu.matmul %51, %53, %cst_45 {dimension_numbers = #tpu.dot_dimension_numbers<[1], [0], [0], [1], [0, 0, 1, 1], [], []>} : vector<80x128xbf16>, vector<128x128xbf16>, vector<80x128xf32> -> vector<80x128xf32>
    %55 = arith.addf %50, %54 : vector<80x128xf32>
    %c10 = arith.constant 10 : index
    %c0_46 = arith.constant 0 : index
    %56 = vector.load %arg23[%c10, %c0_46] : memref<102x128xbf16, #tpu.memory_space<vmem>>, vector<80x128xbf16>
    %c3 = arith.constant 3 : index
    %c0_47 = arith.constant 0 : index
    %c0_48 = arith.constant 0 : index
    %57 = vector.load %arg7[%c3, %c0_47, %c0_48] : memref<9x128x128xbf16, #tpu.memory_space<vmem>>, vector<1x128x128xbf16>
    %58 = vector.shape_cast %57 : vector<1x128x128xbf16> to vector<128x128xbf16>
    %cst_49 = arith.constant dense<0.000000e+00> : vector<80x128xf32>
    %59 = tpu.matmul %56, %58, %cst_49 {dimension_numbers = #tpu.dot_dimension_numbers<[1], [0], [0], [1], [0, 0, 1, 1], [], []>} : vector<80x128xbf16>, vector<128x128xbf16>, vector<80x128xf32> -> vector<80x128xf32>
    %60 = arith.addf %55, %59 : vector<80x128xf32>
    %c11_50 = arith.constant 11 : index
    %c0_51 = arith.constant 0 : index
    %61 = vector.load %arg23[%c11_50, %c0_51] : memref<102x128xbf16, #tpu.memory_space<vmem>>, vector<80x128xbf16>
    %c4 = arith.constant 4 : index
    %c0_52 = arith.constant 0 : index
    %c0_53 = arith.constant 0 : index
    %62 = vector.load %arg7[%c4, %c0_52, %c0_53] : memref<9x128x128xbf16, #tpu.memory_space<vmem>>, vector<1x128x128xbf16>
    %63 = vector.shape_cast %62 : vector<1x128x128xbf16> to vector<128x128xbf16>
    %cst_54 = arith.constant dense<0.000000e+00> : vector<80x128xf32>
    %64 = tpu.matmul %61, %63, %cst_54 {dimension_numbers = #tpu.dot_dimension_numbers<[1], [0], [0], [1], [0, 0, 1, 1], [], []>} : vector<80x128xbf16>, vector<128x128xbf16>, vector<80x128xf32> -> vector<80x128xf32>
    %65 = arith.addf %60, %64 : vector<80x128xf32>
    %c12 = arith.constant 12 : index
    %c0_55 = arith.constant 0 : index
    %66 = vector.load %arg23[%c12, %c0_55] : memref<102x128xbf16, #tpu.memory_space<vmem>>, vector<80x128xbf16>
    %c5 = arith.constant 5 : index
    %c0_56 = arith.constant 0 : index
    %c0_57 = arith.constant 0 : index
    %67 = vector.load %arg7[%c5, %c0_56, %c0_57] : memref<9x128x128xbf16, #tpu.memory_space<vmem>>, vector<1x128x128xbf16>
    %68 = vector.shape_cast %67 : vector<1x128x128xbf16> to vector<128x128xbf16>
    %cst_58 = arith.constant dense<0.000000e+00> : vector<80x128xf32>
    %69 = tpu.matmul %66, %68, %cst_58 {dimension_numbers = #tpu.dot_dimension_numbers<[1], [0], [0], [1], [0, 0, 1, 1], [], []>} : vector<80x128xbf16>, vector<128x128xbf16>, vector<80x128xf32> -> vector<80x128xf32>
    %70 = arith.addf %65, %69 : vector<80x128xf32>
    %c20 = arith.constant 20 : index
    %c0_59 = arith.constant 0 : index
    %71 = vector.load %arg23[%c20, %c0_59] : memref<102x128xbf16, #tpu.memory_space<vmem>>, vector<80x128xbf16>
    %c6 = arith.constant 6 : index
    %c0_60 = arith.constant 0 : index
    %c0_61 = arith.constant 0 : index
    %72 = vector.load %arg7[%c6, %c0_60, %c0_61] : memref<9x128x128xbf16, #tpu.memory_space<vmem>>, vector<1x128x128xbf16>
    %73 = vector.shape_cast %72 : vector<1x128x128xbf16> to vector<128x128xbf16>
    %cst_62 = arith.constant dense<0.000000e+00> : vector<80x128xf32>
    %74 = tpu.matmul %71, %73, %cst_62 {dimension_numbers = #tpu.dot_dimension_numbers<[1], [0], [0], [1], [0, 0, 1, 1], [], []>} : vector<80x128xbf16>, vector<128x128xbf16>, vector<80x128xf32> -> vector<80x128xf32>
    %75 = arith.addf %70, %74 : vector<80x128xf32>
    %c21 = arith.constant 21 : index
    %c0_63 = arith.constant 0 : index
    %76 = vector.load %arg23[%c21, %c0_63] : memref<102x128xbf16, #tpu.memory_space<vmem>>, vector<80x128xbf16>
    %c7 = arith.constant 7 : index
    %c0_64 = arith.constant 0 : index
    %c0_65 = arith.constant 0 : index
    %77 = vector.load %arg7[%c7, %c0_64, %c0_65] : memref<9x128x128xbf16, #tpu.memory_space<vmem>>, vector<1x128x128xbf16>
    %78 = vector.shape_cast %77 : vector<1x128x128xbf16> to vector<128x128xbf16>
    %cst_66 = arith.constant dense<0.000000e+00> : vector<80x128xf32>
    %79 = tpu.matmul %76, %78, %cst_66 {dimension_numbers = #tpu.dot_dimension_numbers<[1], [0], [0], [1], [0, 0, 1, 1], [], []>} : vector<80x128xbf16>, vector<128x128xbf16>, vector<80x128xf32> -> vector<80x128xf32>
    %80 = arith.addf %75, %79 : vector<80x128xf32>
    %c22 = arith.constant 22 : index
    %c0_67 = arith.constant 0 : index
    %81 = vector.load %arg23[%c22, %c0_67] : memref<102x128xbf16, #tpu.memory_space<vmem>>, vector<80x128xbf16>
    %c8 = arith.constant 8 : index
    %c0_68 = arith.constant 0 : index
    %c0_69 = arith.constant 0 : index
    %82 = vector.load %arg7[%c8, %c0_68, %c0_69] : memref<9x128x128xbf16, #tpu.memory_space<vmem>>, vector<1x128x128xbf16>
    %83 = vector.shape_cast %82 : vector<1x128x128xbf16> to vector<128x128xbf16>
    %cst_70 = arith.constant dense<0.000000e+00> : vector<80x128xf32>
    %84 = tpu.matmul %81, %83, %cst_70 {dimension_numbers = #tpu.dot_dimension_numbers<[1], [0], [0], [1], [0, 0, 1, 1], [], []>} : vector<80x128xbf16>, vector<128x128xbf16>, vector<80x128xf32> -> vector<80x128xf32>
    %85 = arith.addf %80, %84 : vector<80x128xf32>
    %c0_71 = arith.constant 0 : index
    %c0_72 = arith.constant 0 : index
    %86 = vector.load %arg8[%c0_71, %c0_72] : memref<1x128xf32, #tpu.memory_space<vmem>>, vector<1x128xf32>
    %87 = vector.broadcast %86 : vector<1x128xf32> to vector<80x128xf32>
    %88 = arith.mulf %85, %87 : vector<80x128xf32>
    %c0_73 = arith.constant 0 : index
    %c0_74 = arith.constant 0 : index
    %89 = vector.load %arg9[%c0_73, %c0_74] : memref<1x128xf32, #tpu.memory_space<vmem>>, vector<1x128xf32>
    %90 = vector.broadcast %89 : vector<1x128xf32> to vector<80x128xf32>
    %91 = arith.addf %88, %90 : vector<80x128xf32>
    %cst_75 = arith.constant 0.000000e+00 : f32
    %92 = vector.broadcast %cst_75 : f32 to vector<80x128xf32>
    %93 = arith.cmpf oge, %91, %92 : vector<80x128xf32>
    %cst_76 = arith.constant 2.000000e-01 : f32
    %94 = vector.broadcast %cst_76 : f32 to vector<80x128xf32>
    %95 = arith.mulf %94, %91 : vector<80x128xf32>
    %96 = arith.select %93, %91, %95 : vector<80x128xi1>, vector<80x128xf32>
    %97 = tpu.iota {dimensions = array<i32: 0>} : vector<80x1xi32>
    %c10_i32 = arith.constant 10 : i32
    %c0_i32 = arith.constant 0 : i32
    %98 = arith.cmpi eq, %c10_i32, %c0_i32 : i32
    %c1_i32 = arith.constant 1 : i32
    %99 = arith.select %98, %c1_i32, %c10_i32 : i32
    %100 = vector.broadcast %99 : i32 to vector<80x1xi32>
    %101 = arith.remsi %97, %100 : vector<80x1xi32>
    %c0_i32_77 = arith.constant 0 : i32
    %102 = vector.broadcast %c0_i32_77 : i32 to vector<80x1xi32>
    %103 = arith.cmpi ne, %101, %102 : vector<80x1xi32>
    %c0_i32_78 = arith.constant 0 : i32
    %104 = vector.broadcast %c0_i32_78 : i32 to vector<80x1xi32>
    %105 = arith.cmpi slt, %101, %104 : vector<80x1xi32>
    %c0_i32_79 = arith.constant 0 : i32
    %106 = arith.cmpi slt, %99, %c0_i32_79 : i32
    %107 = vector.broadcast %106 : i1 to vector<80x1xi1>
    %108 = vector.broadcast %107 : vector<80x1xi1> to vector<80x1xi1>
    %109 = arith.xori %105, %108 : vector<80x1xi1>
    %110 = arith.andi %109, %103 : vector<80x1xi1>
    %111 = vector.broadcast %99 : i32 to vector<80x1xi32>
    %112 = arith.addi %101, %111 : vector<80x1xi32>
    %113 = arith.select %110, %112, %101 : vector<80x1xi1>, vector<80x1xi32>
    %c8_i32 = arith.constant 8 : i32
    %114 = vector.broadcast %c8_i32 : i32 to vector<80x1xi32>
    %115 = arith.cmpi slt, %113, %114 : vector<80x1xi32>
    %cst_80 = arith.constant 0.000000e+00 : f32
    %116 = vector.shape_cast %115 : vector<80x1xi1> to vector<80x1xi1>
    %117 = vector.broadcast %116 : vector<80x1xi1> to vector<80x128xi1>
    %118 = vector.broadcast %cst_80 : f32 to vector<80x128xf32>
    %119 = arith.select %117, %96, %118 : vector<80x128xi1>, vector<80x128xf32>
    %120 = arith.truncf %119 : vector<80x128xf32> to vector<80x128xbf16>
    %cst_81 = arith.constant 0.000000e+00 : bf16
    %121 = vector.broadcast %cst_81 : bf16 to vector<11x128xbf16>
    %cst_82 = arith.constant 0.000000e+00 : bf16
    %122 = vector.broadcast %cst_82 : bf16 to vector<11x128xbf16>
    %123 = tpu.concatenate %121, %120, %122 in 0 : vector<11x128xbf16>, vector<80x128xbf16>, vector<11x128xbf16> -> vector<102x128xbf16>
    %c0_83 = arith.constant 0 : index
    %c0_84 = arith.constant 0 : index
    %124 = vector.load %arg24[%c0_83, %c0_84] : memref<102x128xbf16, #tpu.memory_space<vmem>>, vector<102x128xbf16>
    tpu.vector_store %arg24[%c0_83, %c0_84], %123 {strides = array<i32>} : memref<102x128xbf16, #tpu.memory_space<vmem>>, vector<102x128xbf16>,
    %c0_85 = arith.constant 0 : index
    %c0_86 = arith.constant 0 : index
    %125 = vector.load %arg24[%c0_85, %c0_86] : memref<102x128xbf16, #tpu.memory_space<vmem>>, vector<80x128xbf16>
    %c0_87 = arith.constant 0 : index
    %c0_88 = arith.constant 0 : index
    %c0_89 = arith.constant 0 : index
    %126 = vector.load %arg10[%c0_87, %c0_88, %c0_89] : memref<9x128x128xbf16, #tpu.memory_space<vmem>>, vector<1x128x128xbf16>
    %127 = vector.shape_cast %126 : vector<1x128x128xbf16> to vector<128x128xbf16>
    %cst_90 = arith.constant dense<0.000000e+00> : vector<80x128xf32>
    %128 = tpu.matmul %125, %127, %cst_90 {dimension_numbers = #tpu.dot_dimension_numbers<[1], [0], [0], [1], [0, 0, 1, 1], [], []>} : vector<80x128xbf16>, vector<128x128xbf16>, vector<80x128xf32> -> vector<80x128xf32>
    %c1_91 = arith.constant 1 : index
    %c0_92 = arith.constant 0 : index
    %129 = vector.load %arg24[%c1_91, %c0_92] : memref<102x128xbf16, #tpu.memory_space<vmem>>, vector<80x128xbf16>
    %c1_93 = arith.constant 1 : index
    %c0_94 = arith.constant 0 : index
    %c0_95 = arith.constant 0 : index
    %130 = vector.load %arg10[%c1_93, %c0_94, %c0_95] : memref<9x128x128xbf16, #tpu.memory_space<vmem>>, vector<1x128x128xbf16>
    %131 = vector.shape_cast %130 : vector<1x128x128xbf16> to vector<128x128xbf16>
    %cst_96 = arith.constant dense<0.000000e+00> : vector<80x128xf32>
    %132 = tpu.matmul %129, %131, %cst_96 {dimension_numbers = #tpu.dot_dimension_numbers<[1], [0], [0], [1], [0, 0, 1, 1], [], []>} : vector<80x128xbf16>, vector<128x128xbf16>, vector<80x128xf32> -> vector<80x128xf32>
    %133 = arith.addf %128, %132 : vector<80x128xf32>
    %c2_97 = arith.constant 2 : index
    %c0_98 = arith.constant 0 : index
    %134 = vector.load %arg24[%c2_97, %c0_98] : memref<102x128xbf16, #tpu.memory_space<vmem>>, vector<80x128xbf16>
    %c2_99 = arith.constant 2 : index
    %c0_100 = arith.constant 0 : index
    %c0_101 = arith.constant 0 : index
    %135 = vector.load %arg10[%c2_99, %c0_100, %c0_101] : memref<9x128x128xbf16, #tpu.memory_space<vmem>>, vector<1x128x128xbf16>
    %136 = vector.shape_cast %135 : vector<1x128x128xbf16> to vector<128x128xbf16>
    %cst_102 = arith.constant dense<0.000000e+00> : vector<80x128xf32>
    %137 = tpu.matmul %134, %136, %cst_102 {dimension_numbers = #tpu.dot_dimension_numbers<[1], [0], [0], [1], [0, 0, 1, 1], [], []>} : vector<80x128xbf16>, vector<128x128xbf16>, vector<80x128xf32> -> vector<80x128xf32>
    %138 = arith.addf %133, %137 : vector<80x128xf32>
    %c10_103 = arith.constant 10 : index
    %c0_104 = arith.constant 0 : index
    %139 = vector.load %arg24[%c10_103, %c0_104] : memref<102x128xbf16, #tpu.memory_space<vmem>>, vector<80x128xbf16>
    %c3_105 = arith.constant 3 : index
    %c0_106 = arith.constant 0 : index
    %c0_107 = arith.constant 0 : index
    %140 = vector.load %arg10[%c3_105, %c0_106, %c0_107] : memref<9x128x128xbf16, #tpu.memory_space<vmem>>, vector<1x128x128xbf16>
    %141 = vector.shape_cast %140 : vector<1x128x128xbf16> to vector<128x128xbf16>
    %cst_108 = arith.constant dense<0.000000e+00> : vector<80x128xf32>
    %142 = tpu.matmul %139, %141, %cst_108 {dimension_numbers = #tpu.dot_dimension_numbers<[1], [0], [0], [1], [0, 0, 1, 1], [], []>} : vector<80x128xbf16>, vector<128x128xbf16>, vector<80x128xf32> -> vector<80x128xf32>
    %143 = arith.addf %138, %142 : vector<80x128xf32>
    %c11_109 = arith.constant 11 : index
    %c0_110 = arith.constant 0 : index
    %144 = vector.load %arg24[%c11_109, %c0_110] : memref<102x128xbf16, #tpu.memory_space<vmem>>, vector<80x128xbf16>
    %c4_111 = arith.constant 4 : index
    %c0_112 = arith.constant 0 : index
    %c0_113 = arith.constant 0 : index
    %145 = vector.load %arg10[%c4_111, %c0_112, %c0_113] : memref<9x128x128xbf16, #tpu.memory_space<vmem>>, vector<1x128x128xbf16>
    %146 = vector.shape_cast %145 : vector<1x128x128xbf16> to vector<128x128xbf16>
    %cst_114 = arith.constant dense<0.000000e+00> : vector<80x128xf32>
    %147 = tpu.matmul %144, %146, %cst_114 {dimension_numbers = #tpu.dot_dimension_numbers<[1], [0], [0], [1], [0, 0, 1, 1], [], []>} : vector<80x128xbf16>, vector<128x128xbf16>, vector<80x128xf32> -> vector<80x128xf32>
    %148 = arith.addf %143, %147 : vector<80x128xf32>
    %c12_115 = arith.constant 12 : index
    %c0_116 = arith.constant 0 : index
    %149 = vector.load %arg24[%c12_115, %c0_116] : memref<102x128xbf16, #tpu.memory_space<vmem>>, vector<80x128xbf16>
    %c5_117 = arith.constant 5 : index
    %c0_118 = arith.constant 0 : index
    %c0_119 = arith.constant 0 : index
    %150 = vector.load %arg10[%c5_117, %c0_118, %c0_119] : memref<9x128x128xbf16, #tpu.memory_space<vmem>>, vector<1x128x128xbf16>
    %151 = vector.shape_cast %150 : vector<1x128x128xbf16> to vector<128x128xbf16>
    %cst_120 = arith.constant dense<0.000000e+00> : vector<80x128xf32>
    %152 = tpu.matmul %149, %151, %cst_120 {dimension_numbers = #tpu.dot_dimension_numbers<[1], [0], [0], [1], [0, 0, 1, 1], [], []>} : vector<80x128xbf16>, vector<128x128xbf16>, vector<80x128xf32> -> vector<80x128xf32>
    %153 = arith.addf %148, %152 : vector<80x128xf32>
    %c20_121 = arith.constant 20 : index
    %c0_122 = arith.constant 0 : index
    %154 = vector.load %arg24[%c20_121, %c0_122] : memref<102x128xbf16, #tpu.memory_space<vmem>>, vector<80x128xbf16>
    %c6_123 = arith.constant 6 : index
    %c0_124 = arith.constant 0 : index
    %c0_125 = arith.constant 0 : index
    %155 = vector.load %arg10[%c6_123, %c0_124, %c0_125] : memref<9x128x128xbf16, #tpu.memory_space<vmem>>, vector<1x128x128xbf16>
    %156 = vector.shape_cast %155 : vector<1x128x128xbf16> to vector<128x128xbf16>
    %cst_126 = arith.constant dense<0.000000e+00> : vector<80x128xf32>
    %157 = tpu.matmul %154, %156, %cst_126 {dimension_numbers = #tpu.dot_dimension_numbers<[1], [0], [0], [1], [0, 0, 1, 1], [], []>} : vector<80x128xbf16>, vector<128x128xbf16>, vector<80x128xf32> -> vector<80x128xf32>
    %158 = arith.addf %153, %157 : vector<80x128xf32>
    %c21_127 = arith.constant 21 : index
    %c0_128 = arith.constant 0 : index
    %159 = vector.load %arg24[%c21_127, %c0_128] : memref<102x128xbf16, #tpu.memory_space<vmem>>, vector<80x128xbf16>
    %c7_129 = arith.constant 7 : index
    %c0_130 = arith.constant 0 : index
    %c0_131 = arith.constant 0 : index
    %160 = vector.load %arg10[%c7_129, %c0_130, %c0_131] : memref<9x128x128xbf16, #tpu.memory_space<vmem>>, vector<1x128x128xbf16>
    %161 = vector.shape_cast %160 : vector<1x128x128xbf16> to vector<128x128xbf16>
    %cst_132 = arith.constant dense<0.000000e+00> : vector<80x128xf32>
    %162 = tpu.matmul %159, %161, %cst_132 {dimension_numbers = #tpu.dot_dimension_numbers<[1], [0], [0], [1], [0, 0, 1, 1], [], []>} : vector<80x128xbf16>, vector<128x128xbf16>, vector<80x128xf32> -> vector<80x128xf32>
    %163 = arith.addf %158, %162 : vector<80x128xf32>
    %c22_133 = arith.constant 22 : index
    %c0_134 = arith.constant 0 : index
    %164 = vector.load %arg24[%c22_133, %c0_134] : memref<102x128xbf16, #tpu.memory_space<vmem>>, vector<80x128xbf16>
    %c8_135 = arith.constant 8 : index
    %c0_136 = arith.constant 0 : index
    %c0_137 = arith.constant 0 : index
    %165 = vector.load %arg10[%c8_135, %c0_136, %c0_137] : memref<9x128x128xbf16, #tpu.memory_space<vmem>>, vector<1x128x128xbf16>
    %166 = vector.shape_cast %165 : vector<1x128x128xbf16> to vector<128x128xbf16>
    %cst_138 = arith.constant dense<0.000000e+00> : vector<80x128xf32>
    %167 = tpu.matmul %164, %166, %cst_138 {dimension_numbers = #tpu.dot_dimension_numbers<[1], [0], [0], [1], [0, 0, 1, 1], [], []>} : vector<80x128xbf16>, vector<128x128xbf16>, vector<80x128xf32> -> vector<80x128xf32>
    %168 = arith.addf %163, %167 : vector<80x128xf32>
    %c0_139 = arith.constant 0 : index
    %c0_140 = arith.constant 0 : index
    %169 = vector.load %arg11[%c0_139, %c0_140] : memref<1x128xf32, #tpu.memory_space<vmem>>, vector<1x128xf32>
    %170 = vector.broadcast %169 : vector<1x128xf32> to vector<80x128xf32>
    %171 = arith.mulf %168, %170 : vector<80x128xf32>
    %c0_141 = arith.constant 0 : index
    %c0_142 = arith.constant 0 : index
    %172 = vector.load %arg12[%c0_141, %c0_142] : memref<1x128xf32, #tpu.memory_space<vmem>>, vector<1x128xf32>
    %173 = vector.broadcast %172 : vector<1x128xf32> to vector<80x128xf32>
    %174 = arith.addf %171, %173 : vector<80x128xf32>
    %175 = arith.addf %174, %41 : vector<80x128xf32>
    %cst_143 = arith.constant 0.000000e+00 : f32
    %176 = vector.broadcast %cst_143 : f32 to vector<80x128xf32>
    %177 = arith.cmpf oge, %175, %176 : vector<80x128xf32>
    %cst_144 = arith.constant 2.000000e-01 : f32
    %178 = vector.broadcast %cst_144 : f32 to vector<80x128xf32>
    %179 = arith.mulf %178, %175 : vector<80x128xf32>
    %180 = arith.select %177, %175, %179 : vector<80x128xi1>, vector<80x128xf32>
    %c0_145 = arith.constant 0 : index
    %c0_146 = arith.constant 0 : index
    %181 = vector.load %arg13[%c0_145, %c0_146] : memref<38x80xbf16, #tpu.memory_space<vmem>>, vector<38x80xbf16>
    %182 = arith.truncf %180 : vector<80x128xf32> to vector<80x128xbf16>
    %cst_147 = arith.constant dense<0.000000e+00> : vector<38x128xf32>
    %183 = tpu.matmul %181, %182, %cst_147 {dimension_numbers = #tpu.dot_dimension_numbers<[1], [0], [0], [1], [0, 0, 1, 1], [], []>} : vector<38x80xbf16>, vector<80x128xbf16>, vector<38x128xf32> -> vector<38x128xf32>
    %184 = arith.truncf %183 : vector<38x128xf32> to vector<38x128xbf16>
    %c0_148 = arith.constant 0 : index
    %c0_149 = arith.constant 0 : index
    %185 = vector.load %arg25[%c0_148, %c0_149] : memref<38x128xbf16, #tpu.memory_space<vmem>>, vector<38x128xbf16>
    tpu.vector_store %arg25[%c0_148, %c0_149], %184 {strides = array<i32>} : memref<38x128xbf16, #tpu.memory_space<vmem>>, vector<38x128xbf16>,
    %c7_150 = arith.constant 7 : index
    %c0_151 = arith.constant 0 : index
    %186 = vector.load %arg25[%c7_150, %c0_151] : memref<38x128xbf16, #tpu.memory_space<vmem>>, vector<24x128xbf16>
    %187 = arith.extf %186 : vector<24x128xbf16> to vector<24x128xf32>
    %c0_152 = arith.constant 0 : index
    %c0_153 = arith.constant 0 : index
    %188 = vector.load %arg25[%c0_152, %c0_153] : memref<38x128xbf16, #tpu.memory_space<vmem>>, vector<24x128xbf16>
    %c0_154 = arith.constant 0 : index
    %c0_155 = arith.constant 0 : index
    %c0_156 = arith.constant 0 : index
    %189 = vector.load %arg14[%c0_154, %c0_155, %c0_156] : memref<9x128x128xbf16, #tpu.memory_space<vmem>>, vector<1x128x128xbf16>
    %190 = vector.shape_cast %189 : vector<1x128x128xbf16> to vector<128x128xbf16>
    %cst_157 = arith.constant dense<0.000000e+00> : vector<24x128xf32>
    %191 = tpu.matmul %188, %190, %cst_157 {dimension_numbers = #tpu.dot_dimension_numbers<[1], [0], [0], [1], [0, 0, 1, 1], [], []>} : vector<24x128xbf16>, vector<128x128xbf16>, vector<24x128xf32> -> vector<24x128xf32>
    %c1_158 = arith.constant 1 : index
    %c0_159 = arith.constant 0 : index
    %192 = vector.load %arg25[%c1_158, %c0_159] : memref<38x128xbf16, #tpu.memory_space<vmem>>, vector<24x128xbf16>
    %c1_160 = arith.constant 1 : index
    %c0_161 = arith.constant 0 : index
    %c0_162 = arith.constant 0 : index
    %193 = vector.load %arg14[%c1_160, %c0_161, %c0_162] : memref<9x128x128xbf16, #tpu.memory_space<vmem>>, vector<1x128x128xbf16>
    %194 = vector.shape_cast %193 : vector<1x128x128xbf16> to vector<128x128xbf16>
    %cst_163 = arith.constant dense<0.000000e+00> : vector<24x128xf32>
    %195 = tpu.matmul %192, %194, %cst_163 {dimension_numbers = #tpu.dot_dimension_numbers<[1], [0], [0], [1], [0, 0, 1, 1], [], []>} : vector<24x128xbf16>, vector<128x128xbf16>, vector<24x128xf32> -> vector<24x128xf32>
    %196 = arith.addf %191, %195 : vector<24x128xf32>
    %c2_164 = arith.constant 2 : index
    %c0_165 = arith.constant 0 : index
    %197 = vector.load %arg25[%c2_164, %c0_165] : memref<38x128xbf16, #tpu.memory_space<vmem>>, vector<24x128xbf16>
    %c2_166 = arith.constant 2 : index
    %c0_167 = arith.constant 0 : index
    %c0_168 = arith.constant 0 : index
    %198 = vector.load %arg14[%c2_166, %c0_167, %c0_168] : memref<9x128x128xbf16, #tpu.memory_space<vmem>>, vector<1x128x128xbf16>
    %199 = vector.shape_cast %198 : vector<1x128x128xbf16> to vector<128x128xbf16>
    %cst_169 = arith.constant dense<0.000000e+00> : vector<24x128xf32>
    %200 = tpu.matmul %197, %199, %cst_169 {dimension_numbers = #tpu.dot_dimension_numbers<[1], [0], [0], [1], [0, 0, 1, 1], [], []>} : vector<24x128xbf16>, vector<128x128xbf16>, vector<24x128xf32> -> vector<24x128xf32>
    %201 = arith.addf %196, %200 : vector<24x128xf32>
    %c6_170 = arith.constant 6 : index
    %c0_171 = arith.constant 0 : index
    %202 = vector.load %arg25[%c6_170, %c0_171] : memref<38x128xbf16, #tpu.memory_space<vmem>>, vector<24x128xbf16>
    %c3_172 = arith.constant 3 : index
    %c0_173 = arith.constant 0 : index
    %c0_174 = arith.constant 0 : index
    %203 = vector.load %arg14[%c3_172, %c0_173, %c0_174] : memref<9x128x128xbf16, #tpu.memory_space<vmem>>, vector<1x128x128xbf16>
    %204 = vector.shape_cast %203 : vector<1x128x128xbf16> to vector<128x128xbf16>
    %cst_175 = arith.constant dense<0.000000e+00> : vector<24x128xf32>
    %205 = tpu.matmul %202, %204, %cst_175 {dimension_numbers = #tpu.dot_dimension_numbers<[1], [0], [0], [1], [0, 0, 1, 1], [], []>} : vector<24x128xbf16>, vector<128x128xbf16>, vector<24x128xf32> -> vector<24x128xf32>
    %206 = arith.addf %201, %205 : vector<24x128xf32>
    %c7_176 = arith.constant 7 : index
    %c0_177 = arith.constant 0 : index
    %207 = vector.load %arg25[%c7_176, %c0_177] : memref<38x128xbf16, #tpu.memory_space<vmem>>, vector<24x128xbf16>
    %c4_178 = arith.constant 4 : index
    %c0_179 = arith.constant 0 : index
    %c0_180 = arith.constant 0 : index
    %208 = vector.load %arg14[%c4_178, %c0_179, %c0_180] : memref<9x128x128xbf16, #tpu.memory_space<vmem>>, vector<1x128x128xbf16>
    %209 = vector.shape_cast %208 : vector<1x128x128xbf16> to vector<128x128xbf16>
    %cst_181 = arith.constant dense<0.000000e+00> : vector<24x128xf32>
    %210 = tpu.matmul %207, %209, %cst_181 {dimension_numbers = #tpu.dot_dimension_numbers<[1], [0], [0], [1], [0, 0, 1, 1], [], []>} : vector<24x128xbf16>, vector<128x128xbf16>, vector<24x128xf32> -> vector<24x128xf32>
    %211 = arith.addf %206, %210 : vector<24x128xf32>
    %c8_182 = arith.constant 8 : index
    %c0_183 = arith.constant 0 : index
    %212 = vector.load %arg25[%c8_182, %c0_183] : memref<38x128xbf16, #tpu.memory_space<vmem>>, vector<24x128xbf16>
    %c5_184 = arith.constant 5 : index
    %c0_185 = arith.constant 0 : index
    %c0_186 = arith.constant 0 : index
    %213 = vector.load %arg14[%c5_184, %c0_185, %c0_186] : memref<9x128x128xbf16, #tpu.memory_space<vmem>>, vector<1x128x128xbf16>
    %214 = vector.shape_cast %213 : vector<1x128x128xbf16> to vector<128x128xbf16>
    %cst_187 = arith.constant dense<0.000000e+00> : vector<24x128xf32>
    %215 = tpu.matmul %212, %214, %cst_187 {dimension_numbers = #tpu.dot_dimension_numbers<[1], [0], [0], [1], [0, 0, 1, 1], [], []>} : vector<24x128xbf16>, vector<128x128xbf16>, vector<24x128xf32> -> vector<24x128xf32>
    %216 = arith.addf %211, %215 : vector<24x128xf32>
    %c12_188 = arith.constant 12 : index
    %c0_189 = arith.constant 0 : index
    %217 = vector.load %arg25[%c12_188, %c0_189] : memref<38x128xbf16, #tpu.memory_space<vmem>>, vector<24x128xbf16>
    %c6_190 = arith.constant 6 : index
    %c0_191 = arith.constant 0 : index
    %c0_192 = arith.constant 0 : index
    %218 = vector.load %arg14[%c6_190, %c0_191, %c0_192] : memref<9x128x128xbf16, #tpu.memory_space<vmem>>, vector<1x128x128xbf16>
    %219 = vector.shape_cast %218 : vector<1x128x128xbf16> to vector<128x128xbf16>
    %cst_193 = arith.constant dense<0.000000e+00> : vector<24x128xf32>
    %220 = tpu.matmul %217, %219, %cst_193 {dimension_numbers = #tpu.dot_dimension_numbers<[1], [0], [0], [1], [0, 0, 1, 1], [], []>} : vector<24x128xbf16>, vector<128x128xbf16>, vector<24x128xf32> -> vector<24x128xf32>
    %221 = arith.addf %216, %220 : vector<24x128xf32>
    %c13 = arith.constant 13 : index
    %c0_194 = arith.constant 0 : index
    %222 = vector.load %arg25[%c13, %c0_194] : memref<38x128xbf16, #tpu.memory_space<vmem>>, vector<24x128xbf16>
    %c7_195 = arith.constant 7 : index
    %c0_196 = arith.constant 0 : index
    %c0_197 = arith.constant 0 : index
    %223 = vector.load %arg14[%c7_195, %c0_196, %c0_197] : memref<9x128x128xbf16, #tpu.memory_space<vmem>>, vector<1x128x128xbf16>
    %224 = vector.shape_cast %223 : vector<1x128x128xbf16> to vector<128x128xbf16>
    %cst_198 = arith.constant dense<0.000000e+00> : vector<24x128xf32>
    %225 = tpu.matmul %222, %224, %cst_198 {dimension_numbers = #tpu.dot_dimension_numbers<[1], [0], [0], [1], [0, 0, 1, 1], [], []>} : vector<24x128xbf16>, vector<128x128xbf16>, vector<24x128xf32> -> vector<24x128xf32>
    %226 = arith.addf %221, %225 : vector<24x128xf32>
    %c14 = arith.constant 14 : index
    %c0_199 = arith.constant 0 : index
    %227 = vector.load %arg25[%c14, %c0_199] : memref<38x128xbf16, #tpu.memory_space<vmem>>, vector<24x128xbf16>
    %c8_200 = arith.constant 8 : index
    %c0_201 = arith.constant 0 : index
    %c0_202 = arith.constant 0 : index
    %228 = vector.load %arg14[%c8_200, %c0_201, %c0_202] : memref<9x128x128xbf16, #tpu.memory_space<vmem>>, vector<1x128x128xbf16>
    %229 = vector.shape_cast %228 : vector<1x128x128xbf16> to vector<128x128xbf16>
    %cst_203 = arith.constant dense<0.000000e+00> : vector<24x128xf32>
    %230 = tpu.matmul %227, %229, %cst_203 {dimension_numbers = #tpu.dot_dimension_numbers<[1], [0], [0], [1], [0, 0, 1, 1], [], []>} : vector<24x128xbf16>, vector<128x128xbf16>, vector<24x128xf32> -> vector<24x128xf32>
    %231 = arith.addf %226, %230 : vector<24x128xf32>
    %c0_204 = arith.constant 0 : index
    %c0_205 = arith.constant 0 : index
    %232 = vector.load %arg15[%c0_204, %c0_205] : memref<1x128xf32, #tpu.memory_space<vmem>>, vector<1x128xf32>
    %233 = vector.broadcast %232 : vector<1x128xf32> to vector<24x128xf32>
    %234 = arith.mulf %231, %233 : vector<24x128xf32>
    %c0_206 = arith.constant 0 : index
    %c0_207 = arith.constant 0 : index
    %235 = vector.load %arg16[%c0_206, %c0_207] : memref<1x128xf32, #tpu.memory_space<vmem>>, vector<1x128xf32>
    %236 = vector.broadcast %235 : vector<1x128xf32> to vector<24x128xf32>
    %237 = arith.addf %234, %236 : vector<24x128xf32>
    %cst_208 = arith.constant 0.000000e+00 : f32
    %238 = vector.broadcast %cst_208 : f32 to vector<24x128xf32>
    %239 = arith.cmpf oge, %237, %238 : vector<24x128xf32>
    %cst_209 = arith.constant 2.000000e-01 : f32
    %240 = vector.broadcast %cst_209 : f32 to vector<24x128xf32>
    %241 = arith.mulf %240, %237 : vector<24x128xf32>
    %242 = arith.select %239, %237, %241 : vector<24x128xi1>, vector<24x128xf32>
    %243 = tpu.iota {dimensions = array<i32: 0>} : vector<24x1xi32>
    %c6_i32 = arith.constant 6 : i32
    %c0_i32_210 = arith.constant 0 : i32
    %244 = arith.cmpi eq, %c6_i32, %c0_i32_210 : i32
    %c1_i32_211 = arith.constant 1 : i32
    %245 = arith.select %244, %c1_i32_211, %c6_i32 : i32
    %246 = vector.broadcast %245 : i32 to vector<24x1xi32>
    %247 = arith.remsi %243, %246 : vector<24x1xi32>
    %c0_i32_212 = arith.constant 0 : i32
    %248 = vector.broadcast %c0_i32_212 : i32 to vector<24x1xi32>
    %249 = arith.cmpi ne, %247, %248 : vector<24x1xi32>
    %c0_i32_213 = arith.constant 0 : i32
    %250 = vector.broadcast %c0_i32_213 : i32 to vector<24x1xi32>
    %251 = arith.cmpi slt, %247, %250 : vector<24x1xi32>
    %c0_i32_214 = arith.constant 0 : i32
    %252 = arith.cmpi slt, %245, %c0_i32_214 : i32
    %253 = vector.broadcast %252 : i1 to vector<24x1xi1>
    %254 = vector.broadcast %253 : vector<24x1xi1> to vector<24x1xi1>
    %255 = arith.xori %251, %254 : vector<24x1xi1>
    %256 = arith.andi %255, %249 : vector<24x1xi1>
    %257 = vector.broadcast %245 : i32 to vector<24x1xi32>
    %258 = arith.addi %247, %257 : vector<24x1xi32>
    %259 = arith.select %256, %258, %247 : vector<24x1xi1>, vector<24x1xi32>
    %c4_i32 = arith.constant 4 : i32
    %260 = vector.broadcast %c4_i32 : i32 to vector<24x1xi32>
    %261 = arith.cmpi slt, %259, %260 : vector<24x1xi32>
    %cst_215 = arith.constant 0.000000e+00 : f32
    %262 = vector.shape_cast %261 : vector<24x1xi1> to vector<24x1xi1>
    %263 = vector.broadcast %262 : vector<24x1xi1> to vector<24x128xi1>
    %264 = vector.broadcast %cst_215 : f32 to vector<24x128xf32>
    %265 = arith.select %263, %242, %264 : vector<24x128xi1>, vector<24x128xf32>
    %266 = arith.truncf %265 : vector<24x128xf32> to vector<24x128xbf16>
    %cst_216 = arith.constant 0.000000e+00 : bf16
    %267 = vector.broadcast %cst_216 : bf16 to vector<7x128xbf16>
    %cst_217 = arith.constant 0.000000e+00 : bf16
    %268 = vector.broadcast %cst_217 : bf16 to vector<7x128xbf16>
    %269 = tpu.concatenate %267, %266, %268 in 0 : vector<7x128xbf16>, vector<24x128xbf16>, vector<7x128xbf16> -> vector<38x128xbf16>
    %c0_218 = arith.constant 0 : index
    %c0_219 = arith.constant 0 : index
    %270 = vector.load %arg26[%c0_218, %c0_219] : memref<38x128xbf16, #tpu.memory_space<vmem>>, vector<38x128xbf16>
    tpu.vector_store %arg26[%c0_218, %c0_219], %269 {strides = array<i32>} : memref<38x128xbf16, #tpu.memory_space<vmem>>, vector<38x128xbf16>,
    %c0_220 = arith.constant 0 : index
    %c0_221 = arith.constant 0 : index
    %271 = vector.load %arg26[%c0_220, %c0_221] : memref<38x128xbf16, #tpu.memory_space<vmem>>, vector<24x128xbf16>
    %c0_222 = arith.constant 0 : index
    %c0_223 = arith.constant 0 : index
    %c0_224 = arith.constant 0 : index
    %272 = vector.load %arg17[%c0_222, %c0_223, %c0_224] : memref<9x128x128xbf16, #tpu.memory_space<vmem>>, vector<1x128x128xbf16>
    %273 = vector.shape_cast %272 : vector<1x128x128xbf16> to vector<128x128xbf16>
    %cst_225 = arith.constant dense<0.000000e+00> : vector<24x128xf32>
    %274 = tpu.matmul %271, %273, %cst_225 {dimension_numbers = #tpu.dot_dimension_numbers<[1], [0], [0], [1], [0, 0, 1, 1], [], []>} : vector<24x128xbf16>, vector<128x128xbf16>, vector<24x128xf32> -> vector<24x128xf32>
    %c1_226 = arith.constant 1 : index
    %c0_227 = arith.constant 0 : index
    %275 = vector.load %arg26[%c1_226, %c0_227] : memref<38x128xbf16, #tpu.memory_space<vmem>>, vector<24x128xbf16>
    %c1_228 = arith.constant 1 : index
    %c0_229 = arith.constant 0 : index
    %c0_230 = arith.constant 0 : index
    %276 = vector.load %arg17[%c1_228, %c0_229, %c0_230] : memref<9x128x128xbf16, #tpu.memory_space<vmem>>, vector<1x128x128xbf16>
    %277 = vector.shape_cast %276 : vector<1x128x128xbf16> to vector<128x128xbf16>
    %cst_231 = arith.constant dense<0.000000e+00> : vector<24x128xf32>
    %278 = tpu.matmul %275, %277, %cst_231 {dimension_numbers = #tpu.dot_dimension_numbers<[1], [0], [0], [1], [0, 0, 1, 1], [], []>} : vector<24x128xbf16>, vector<128x128xbf16>, vector<24x128xf32> -> vector<24x128xf32>
    %279 = arith.addf %274, %278 : vector<24x128xf32>
    %c2_232 = arith.constant 2 : index
    %c0_233 = arith.constant 0 : index
    %280 = vector.load %arg26[%c2_232, %c0_233] : memref<38x128xbf16, #tpu.memory_space<vmem>>, vector<24x128xbf16>
    %c2_234 = arith.constant 2 : index
    %c0_235 = arith.constant 0 : index
    %c0_236 = arith.constant 0 : index
    %281 = vector.load %arg17[%c2_234, %c0_235, %c0_236] : memref<9x128x128xbf16, #tpu.memory_space<vmem>>, vector<1x128x128xbf16>
    %282 = vector.shape_cast %281 : vector<1x128x128xbf16> to vector<128x128xbf16>
    %cst_237 = arith.constant dense<0.000000e+00> : vector<24x128xf32>
    %283 = tpu.matmul %280, %282, %cst_237 {dimension_numbers = #tpu.dot_dimension_numbers<[1], [0], [0], [1], [0, 0, 1, 1], [], []>} : vector<24x128xbf16>, vector<128x128xbf16>, vector<24x128xf32> -> vector<24x128xf32>
    %284 = arith.addf %279, %283 : vector<24x128xf32>
    %c6_238 = arith.constant 6 : index
    %c0_239 = arith.constant 0 : index
    %285 = vector.load %arg26[%c6_238, %c0_239] : memref<38x128xbf16, #tpu.memory_space<vmem>>, vector<24x128xbf16>
    %c3_240 = arith.constant 3 : index
    %c0_241 = arith.constant 0 : index
    %c0_242 = arith.constant 0 : index
    %286 = vector.load %arg17[%c3_240, %c0_241, %c0_242] : memref<9x128x128xbf16, #tpu.memory_space<vmem>>, vector<1x128x128xbf16>
    %287 = vector.shape_cast %286 : vector<1x128x128xbf16> to vector<128x128xbf16>
    %cst_243 = arith.constant dense<0.000000e+00> : vector<24x128xf32>
    %288 = tpu.matmul %285, %287, %cst_243 {dimension_numbers = #tpu.dot_dimension_numbers<[1], [0], [0], [1], [0, 0, 1, 1], [], []>} : vector<24x128xbf16>, vector<128x128xbf16>, vector<24x128xf32> -> vector<24x128xf32>
    %289 = arith.addf %284, %288 : vector<24x128xf32>
    %c7_244 = arith.constant 7 : index
    %c0_245 = arith.constant 0 : index
    %290 = vector.load %arg26[%c7_244, %c0_245] : memref<38x128xbf16, #tpu.memory_space<vmem>>, vector<24x128xbf16>
    %c4_246 = arith.constant 4 : index
    %c0_247 = arith.constant 0 : index
    %c0_248 = arith.constant 0 : index
    %291 = vector.load %arg17[%c4_246, %c0_247, %c0_248] : memref<9x128x128xbf16, #tpu.memory_space<vmem>>, vector<1x128x128xbf16>
    %292 = vector.shape_cast %291 : vector<1x128x128xbf16> to vector<128x128xbf16>
    %cst_249 = arith.constant dense<0.000000e+00> : vector<24x128xf32>
    %293 = tpu.matmul %290, %292, %cst_249 {dimension_numbers = #tpu.dot_dimension_numbers<[1], [0], [0], [1], [0, 0, 1, 1], [], []>} : vector<24x128xbf16>, vector<128x128xbf16>, vector<24x128xf32> -> vector<24x128xf32>
    %294 = arith.addf %289, %293 : vector<24x128xf32>
    %c8_250 = arith.constant 8 : index
    %c0_251 = arith.constant 0 : index
    %295 = vector.load %arg26[%c8_250, %c0_251] : memref<38x128xbf16, #tpu.memory_space<vmem>>, vector<24x128xbf16>
    %c5_252 = arith.constant 5 : index
    %c0_253 = arith.constant 0 : index
    %c0_254 = arith.constant 0 : index
    %296 = vector.load %arg17[%c5_252, %c0_253, %c0_254] : memref<9x128x128xbf16, #tpu.memory_space<vmem>>, vector<1x128x128xbf16>
    %297 = vector.shape_cast %296 : vector<1x128x128xbf16> to vector<128x128xbf16>
    %cst_255 = arith.constant dense<0.000000e+00> : vector<24x128xf32>
    %298 = tpu.matmul %295, %297, %cst_255 {dimension_numbers = #tpu.dot_dimension_numbers<[1], [0], [0], [1], [0, 0, 1, 1], [], []>} : vector<24x128xbf16>, vector<128x128xbf16>, vector<24x128xf32> -> vector<24x128xf32>
    %299 = arith.addf %294, %298 : vector<24x128xf32>
    %c12_256 = arith.constant 12 : index
    %c0_257 = arith.constant 0 : index
    %300 = vector.load %arg26[%c12_256, %c0_257] : memref<38x128xbf16, #tpu.memory_space<vmem>>, vector<24x128xbf16>
    %c6_258 = arith.constant 6 : index
    %c0_259 = arith.constant 0 : index
    %c0_260 = arith.constant 0 : index
    %301 = vector.load %arg17[%c6_258, %c0_259, %c0_260] : memref<9x128x128xbf16, #tpu.memory_space<vmem>>, vector<1x128x128xbf16>
    %302 = vector.shape_cast %301 : vector<1x128x128xbf16> to vector<128x128xbf16>
    %cst_261 = arith.constant dense<0.000000e+00> : vector<24x128xf32>
    %303 = tpu.matmul %300, %302, %cst_261 {dimension_numbers = #tpu.dot_dimension_numbers<[1], [0], [0], [1], [0, 0, 1, 1], [], []>} : vector<24x128xbf16>, vector<128x128xbf16>, vector<24x128xf32> -> vector<24x128xf32>
    %304 = arith.addf %299, %303 : vector<24x128xf32>
    %c13_262 = arith.constant 13 : index
    %c0_263 = arith.constant 0 : index
    %305 = vector.load %arg26[%c13_262, %c0_263] : memref<38x128xbf16, #tpu.memory_space<vmem>>, vector<24x128xbf16>
    %c7_264 = arith.constant 7 : index
    %c0_265 = arith.constant 0 : index
    %c0_266 = arith.constant 0 : index
    %306 = vector.load %arg17[%c7_264, %c0_265, %c0_266] : memref<9x128x128xbf16, #tpu.memory_space<vmem>>, vector<1x128x128xbf16>
    %307 = vector.shape_cast %306 : vector<1x128x128xbf16> to vector<128x128xbf16>
    %cst_267 = arith.constant dense<0.000000e+00> : vector<24x128xf32>
    %308 = tpu.matmul %305, %307, %cst_267 {dimension_numbers = #tpu.dot_dimension_numbers<[1], [0], [0], [1], [0, 0, 1, 1], [], []>} : vector<24x128xbf16>, vector<128x128xbf16>, vector<24x128xf32> -> vector<24x128xf32>
    %309 = arith.addf %304, %308 : vector<24x128xf32>
    %c14_268 = arith.constant 14 : index
    %c0_269 = arith.constant 0 : index
    %310 = vector.load %arg26[%c14_268, %c0_269] : memref<38x128xbf16, #tpu.memory_space<vmem>>, vector<24x128xbf16>
    %c8_270 = arith.constant 8 : index
    %c0_271 = arith.constant 0 : index
    %c0_272 = arith.constant 0 : index
    %311 = vector.load %arg17[%c8_270, %c0_271, %c0_272] : memref<9x128x128xbf16, #tpu.memory_space<vmem>>, vector<1x128x128xbf16>
    %312 = vector.shape_cast %311 : vector<1x128x128xbf16> to vector<128x128xbf16>
    %cst_273 = arith.constant dense<0.000000e+00> : vector<24x128xf32>
    %313 = tpu.matmul %310, %312, %cst_273 {dimension_numbers = #tpu.dot_dimension_numbers<[1], [0], [0], [1], [0, 0, 1, 1], [], []>} : vector<24x128xbf16>, vector<128x128xbf16>, vector<24x128xf32> -> vector<24x128xf32>
    %314 = arith.addf %309, %313 : vector<24x128xf32>
    %c0_274 = arith.constant 0 : index
    %c0_275 = arith.constant 0 : index
    %315 = vector.load %arg18[%c0_274, %c0_275] : memref<1x128xf32, #tpu.memory_space<vmem>>, vector<1x128xf32>
    %316 = vector.broadcast %315 : vector<1x128xf32> to vector<24x128xf32>
    %317 = arith.mulf %314, %316 : vector<24x128xf32>
    %c0_276 = arith.constant 0 : index
    %c0_277 = arith.constant 0 : index
    %318 = vector.load %arg19[%c0_276, %c0_277] : memref<1x128xf32, #tpu.memory_space<vmem>>, vector<1x128xf32>
    %319 = vector.broadcast %318 : vector<1x128xf32> to vector<24x128xf32>
    %320 = arith.addf %317, %319 : vector<24x128xf32>
    %321 = arith.addf %320, %187 : vector<24x128xf32>
    %cst_278 = arith.constant 0.000000e+00 : f32
    %322 = vector.broadcast %cst_278 : f32 to vector<24x128xf32>
    %323 = arith.cmpf oge, %321, %322 : vector<24x128xf32>
    %cst_279 = arith.constant 2.000000e-01 : f32
    %324 = vector.broadcast %cst_279 : f32 to vector<24x128xf32>
    %325 = arith.mulf %324, %321 : vector<24x128xf32>
    %326 = arith.select %323, %321, %325 : vector<24x128xi1>, vector<24x128xf32>
    %327 = arith.truncf %326 : vector<24x128xf32> to vector<24x128xbf16>
    %c0_280 = arith.constant 0 : index
    %c0_281 = arith.constant 0 : index
    %328 = vector.load %arg21[%c0_280, %c0_281] : memref<1x128xf32, #tpu.memory_space<vmem>>, vector<1x128xf32>
    %329 = vector.extract_strided_slice %327 {offsets = [0, 0], sizes = [1, 128], strides = [1, 1]} : vector<24x128xbf16> to vector<1x128xbf16>
    %c0_282 = arith.constant 0 : index
    %c0_283 = arith.constant 0 : index
    %c0_284 = arith.constant 0 : index
    %330 = vector.load %arg20[%c0_282, %c0_283, %c0_284] : memref<16x128x128xbf16, #tpu.memory_space<vmem>>, vector<1x128x128xbf16>
    %331 = vector.shape_cast %330 : vector<1x128x128xbf16> to vector<128x128xbf16>
    %cst_285 = arith.constant dense<0.000000e+00> : vector<1x128xf32>
    %332 = tpu.matmul %329, %331, %cst_285 {dimension_numbers = #tpu.dot_dimension_numbers<[1], [0], [0], [1], [0, 0, 1, 1], [], []>} : vector<1x128xbf16>, vector<128x128xbf16>, vector<1x128xf32> -> vector<1x128xf32>
    %333 = arith.addf %328, %332 : vector<1x128xf32>
    %334 = vector.extract_strided_slice %327 {offsets = [1, 0], sizes = [1, 128], strides = [1, 1]} : vector<24x128xbf16> to vector<1x128xbf16>
    %c1_286 = arith.constant 1 : index
    %c0_287 = arith.constant 0 : index
    %c0_288 = arith.constant 0 : index
    %335 = vector.load %arg20[%c1_286, %c0_287, %c0_288] : memref<16x128x128xbf16, #tpu.memory_space<vmem>>, vector<1x128x128xbf16>
    %336 = vector.shape_cast %335 : vector<1x128x128xbf16> to vector<128x128xbf16>
    %cst_289 = arith.constant dense<0.000000e+00> : vector<1x128xf32>
    %337 = tpu.matmul %334, %336, %cst_289 {dimension_numbers = #tpu.dot_dimension_numbers<[1], [0], [0], [1], [0, 0, 1, 1], [], []>} : vector<1x128xbf16>, vector<128x128xbf16>, vector<1x128xf32> -> vector<1x128xf32>
    %338 = arith.addf %333, %337 : vector<1x128xf32>
    %339 = vector.extract_strided_slice %327 {offsets = [2, 0], sizes = [1, 128], strides = [1, 1]} : vector<24x128xbf16> to vector<1x128xbf16>
    %c2_290 = arith.constant 2 : index
    %c0_291 = arith.constant 0 : index
    %c0_292 = arith.constant 0 : index
    %340 = vector.load %arg20[%c2_290, %c0_291, %c0_292] : memref<16x128x128xbf16, #tpu.memory_space<vmem>>, vector<1x128x128xbf16>
    %341 = vector.shape_cast %340 : vector<1x128x128xbf16> to vector<128x128xbf16>
    %cst_293 = arith.constant dense<0.000000e+00> : vector<1x128xf32>
    %342 = tpu.matmul %339, %341, %cst_293 {dimension_numbers = #tpu.dot_dimension_numbers<[1], [0], [0], [1], [0, 0, 1, 1], [], []>} : vector<1x128xbf16>, vector<128x128xbf16>, vector<1x128xf32> -> vector<1x128xf32>
    %343 = arith.addf %338, %342 : vector<1x128xf32>
    %344 = vector.extract_strided_slice %327 {offsets = [3, 0], sizes = [1, 128], strides = [1, 1]} : vector<24x128xbf16> to vector<1x128xbf16>
    %c3_294 = arith.constant 3 : index
    %c0_295 = arith.constant 0 : index
    %c0_296 = arith.constant 0 : index
    %345 = vector.load %arg20[%c3_294, %c0_295, %c0_296] : memref<16x128x128xbf16, #tpu.memory_space<vmem>>, vector<1x128x128xbf16>
    %346 = vector.shape_cast %345 : vector<1x128x128xbf16> to vector<128x128xbf16>
    %cst_297 = arith.constant dense<0.000000e+00> : vector<1x128xf32>
    %347 = tpu.matmul %344, %346, %cst_297 {dimension_numbers = #tpu.dot_dimension_numbers<[1], [0], [0], [1], [0, 0, 1, 1], [], []>} : vector<1x128xbf16>, vector<128x128xbf16>, vector<1x128xf32> -> vector<1x128xf32>
    %348 = arith.addf %343, %347 : vector<1x128xf32>
    %349 = vector.extract_strided_slice %327 {offsets = [6, 0], sizes = [1, 128], strides = [1, 1]} : vector<24x128xbf16> to vector<1x128xbf16>
    %c4_298 = arith.constant 4 : index
    %c0_299 = arith.constant 0 : index
    %c0_300 = arith.constant 0 : index
    %350 = vector.load %arg20[%c4_298, %c0_299, %c0_300] : memref<16x128x128xbf16, #tpu.memory_space<vmem>>, vector<1x128x128xbf16>
    %351 = vector.shape_cast %350 : vector<1x128x128xbf16> to vector<128x128xbf16>
    %cst_301 = arith.constant dense<0.000000e+00> : vector<1x128xf32>
    %352 = tpu.matmul %349, %351, %cst_301 {dimension_numbers = #tpu.dot_dimension_numbers<[1], [0], [0], [1], [0, 0, 1, 1], [], []>} : vector<1x128xbf16>, vector<128x128xbf16>, vector<1x128xf32> -> vector<1x128xf32>
    %353 = arith.addf %348, %352 : vector<1x128xf32>
    %354 = vector.extract_strided_slice %327 {offsets = [7, 0], sizes = [1, 128], strides = [1, 1]} : vector<24x128xbf16> to vector<1x128xbf16>
    %c5_302 = arith.constant 5 : index
    %c0_303 = arith.constant 0 : index
    %c0_304 = arith.constant 0 : index
    %355 = vector.load %arg20[%c5_302, %c0_303, %c0_304] : memref<16x128x128xbf16, #tpu.memory_space<vmem>>, vector<1x128x128xbf16>
    %356 = vector.shape_cast %355 : vector<1x128x128xbf16> to vector<128x128xbf16>
    %cst_305 = arith.constant dense<0.000000e+00> : vector<1x128xf32>
    %357 = tpu.matmul %354, %356, %cst_305 {dimension_numbers = #tpu.dot_dimension_numbers<[1], [0], [0], [1], [0, 0, 1, 1], [], []>} : vector<1x128xbf16>, vector<128x128xbf16>, vector<1x128xf32> -> vector<1x128xf32>
    %358 = arith.addf %353, %357 : vector<1x128xf32>
    %359 = vector.extract_strided_slice %327 {offsets = [8, 0], sizes = [1, 128], strides = [1, 1]} : vector<24x128xbf16> to vector<1x128xbf16>
    %c6_306 = arith.constant 6 : index
    %c0_307 = arith.constant 0 : index
    %c0_308 = arith.constant 0 : index
    %360 = vector.load %arg20[%c6_306, %c0_307, %c0_308] : memref<16x128x128xbf16, #tpu.memory_space<vmem>>, vector<1x128x128xbf16>
    %361 = vector.shape_cast %360 : vector<1x128x128xbf16> to vector<128x128xbf16>
    %cst_309 = arith.constant dense<0.000000e+00> : vector<1x128xf32>
    %362 = tpu.matmul %359, %361, %cst_309 {dimension_numbers = #tpu.dot_dimension_numbers<[1], [0], [0], [1], [0, 0, 1, 1], [], []>} : vector<1x128xbf16>, vector<128x128xbf16>, vector<1x128xf32> -> vector<1x128xf32>
    %363 = arith.addf %358, %362 : vector<1x128xf32>
    %364 = vector.extract_strided_slice %327 {offsets = [9, 0], sizes = [1, 128], strides = [1, 1]} : vector<24x128xbf16> to vector<1x128xbf16>
    %c7_310 = arith.constant 7 : index
    %c0_311 = arith.constant 0 : index
    %c0_312 = arith.constant 0 : index
    %365 = vector.load %arg20[%c7_310, %c0_311, %c0_312] : memref<16x128x128xbf16, #tpu.memory_space<vmem>>, vector<1x128x128xbf16>
    %366 = vector.shape_cast %365 : vector<1x128x128xbf16> to vector<128x128xbf16>
    %cst_313 = arith.constant dense<0.000000e+00> : vector<1x128xf32>
    %367 = tpu.matmul %364, %366, %cst_313 {dimension_numbers = #tpu.dot_dimension_numbers<[1], [0], [0], [1], [0, 0, 1, 1], [], []>} : vector<1x128xbf16>, vector<128x128xbf16>, vector<1x128xf32> -> vector<1x128xf32>
    %368 = arith.addf %363, %367 : vector<1x128xf32>
    %369 = vector.extract_strided_slice %327 {offsets = [12, 0], sizes = [1, 128], strides = [1, 1]} : vector<24x128xbf16> to vector<1x128xbf16>
    %c8_314 = arith.constant 8 : index
    %c0_315 = arith.constant 0 : index
    %c0_316 = arith.constant 0 : index
    %370 = vector.load %arg20[%c8_314, %c0_315, %c0_316] : memref<16x128x128xbf16, #tpu.memory_space<vmem>>, vector<1x128x128xbf16>
    %371 = vector.shape_cast %370 : vector<1x128x128xbf16> to vector<128x128xbf16>
    %cst_317 = arith.constant dense<0.000000e+00> : vector<1x128xf32>
    %372 = tpu.matmul %369, %371, %cst_317 {dimension_numbers = #tpu.dot_dimension_numbers<[1], [0], [0], [1], [0, 0, 1, 1], [], []>} : vector<1x128xbf16>, vector<128x128xbf16>, vector<1x128xf32> -> vector<1x128xf32>
    %373 = arith.addf %368, %372 : vector<1x128xf32>
    %374 = vector.extract_strided_slice %327 {offsets = [13, 0], sizes = [1, 128], strides = [1, 1]} : vector<24x128xbf16> to vector<1x128xbf16>
    %c9 = arith.constant 9 : index
    %c0_318 = arith.constant 0 : index
    %c0_319 = arith.constant 0 : index
    %375 = vector.load %arg20[%c9, %c0_318, %c0_319] : memref<16x128x128xbf16, #tpu.memory_space<vmem>>, vector<1x128x128xbf16>
    %376 = vector.shape_cast %375 : vector<1x128x128xbf16> to vector<128x128xbf16>
    %cst_320 = arith.constant dense<0.000000e+00> : vector<1x128xf32>
    %377 = tpu.matmul %374, %376, %cst_320 {dimension_numbers = #tpu.dot_dimension_numbers<[1], [0], [0], [1], [0, 0, 1, 1], [], []>} : vector<1x128xbf16>, vector<128x128xbf16>, vector<1x128xf32> -> vector<1x128xf32>
    %378 = arith.addf %373, %377 : vector<1x128xf32>
    %379 = vector.extract_strided_slice %327 {offsets = [14, 0], sizes = [1, 128], strides = [1, 1]} : vector<24x128xbf16> to vector<1x128xbf16>
    %c10_321 = arith.constant 10 : index
    %c0_322 = arith.constant 0 : index
    %c0_323 = arith.constant 0 : index
    %380 = vector.load %arg20[%c10_321, %c0_322, %c0_323] : memref<16x128x128xbf16, #tpu.memory_space<vmem>>, vector<1x128x128xbf16>
    %381 = vector.shape_cast %380 : vector<1x128x128xbf16> to vector<128x128xbf16>
    %cst_324 = arith.constant dense<0.000000e+00> : vector<1x128xf32>
    %382 = tpu.matmul %379, %381, %cst_324 {dimension_numbers = #tpu.dot_dimension_numbers<[1], [0], [0], [1], [0, 0, 1, 1], [], []>} : vector<1x128xbf16>, vector<128x128xbf16>, vector<1x128xf32> -> vector<1x128xf32>
    %383 = arith.addf %378, %382 : vector<1x128xf32>
    %384 = vector.extract_strided_slice %327 {offsets = [15, 0], sizes = [1, 128], strides = [1, 1]} : vector<24x128xbf16> to vector<1x128xbf16>
    %c11_325 = arith.constant 11 : index
    %c0_326 = arith.constant 0 : index
    %c0_327 = arith.constant 0 : index
    %385 = vector.load %arg20[%c11_325, %c0_326, %c0_327] : memref<16x128x128xbf16, #tpu.memory_space<vmem>>, vector<1x128x128xbf16>
    %386 = vector.shape_cast %385 : vector<1x128x128xbf16> to vector<128x128xbf16>
    %cst_328 = arith.constant dense<0.000000e+00> : vector<1x128xf32>
    %387 = tpu.matmul %384, %386, %cst_328 {dimension_numbers = #tpu.dot_dimension_numbers<[1], [0], [0], [1], [0, 0, 1, 1], [], []>} : vector<1x128xbf16>, vector<128x128xbf16>, vector<1x128xf32> -> vector<1x128xf32>
    %388 = arith.addf %383, %387 : vector<1x128xf32>
    %389 = vector.extract_strided_slice %327 {offsets = [18, 0], sizes = [1, 128], strides = [1, 1]} : vector<24x128xbf16> to vector<1x128xbf16>
    %c12_329 = arith.constant 12 : index
    %c0_330 = arith.constant 0 : index
    %c0_331 = arith.constant 0 : index
    %390 = vector.load %arg20[%c12_329, %c0_330, %c0_331] : memref<16x128x128xbf16, #tpu.memory_space<vmem>>, vector<1x128x128xbf16>
    %391 = vector.shape_cast %390 : vector<1x128x128xbf16> to vector<128x128xbf16>
    %cst_332 = arith.constant dense<0.000000e+00> : vector<1x128xf32>
    %392 = tpu.matmul %389, %391, %cst_332 {dimension_numbers = #tpu.dot_dimension_numbers<[1], [0], [0], [1], [0, 0, 1, 1], [], []>} : vector<1x128xbf16>, vector<128x128xbf16>, vector<1x128xf32> -> vector<1x128xf32>
    %393 = arith.addf %388, %392 : vector<1x128xf32>
    %394 = vector.extract_strided_slice %327 {offsets = [19, 0], sizes = [1, 128], strides = [1, 1]} : vector<24x128xbf16> to vector<1x128xbf16>
    %c13_333 = arith.constant 13 : index
    %c0_334 = arith.constant 0 : index
    %c0_335 = arith.constant 0 : index
    %395 = vector.load %arg20[%c13_333, %c0_334, %c0_335] : memref<16x128x128xbf16, #tpu.memory_space<vmem>>, vector<1x128x128xbf16>
    %396 = vector.shape_cast %395 : vector<1x128x128xbf16> to vector<128x128xbf16>
    %cst_336 = arith.constant dense<0.000000e+00> : vector<1x128xf32>
    %397 = tpu.matmul %394, %396, %cst_336 {dimension_numbers = #tpu.dot_dimension_numbers<[1], [0], [0], [1], [0, 0, 1, 1], [], []>} : vector<1x128xbf16>, vector<128x128xbf16>, vector<1x128xf32> -> vector<1x128xf32>
    %398 = arith.addf %393, %397 : vector<1x128xf32>
    %399 = vector.extract_strided_slice %327 {offsets = [20, 0], sizes = [1, 128], strides = [1, 1]} : vector<24x128xbf16> to vector<1x128xbf16>
    %c14_337 = arith.constant 14 : index
    %c0_338 = arith.constant 0 : index
    %c0_339 = arith.constant 0 : index
    %400 = vector.load %arg20[%c14_337, %c0_338, %c0_339] : memref<16x128x128xbf16, #tpu.memory_space<vmem>>, vector<1x128x128xbf16>
    %401 = vector.shape_cast %400 : vector<1x128x128xbf16> to vector<128x128xbf16>
    %cst_340 = arith.constant dense<0.000000e+00> : vector<1x128xf32>
    %402 = tpu.matmul %399, %401, %cst_340 {dimension_numbers = #tpu.dot_dimension_numbers<[1], [0], [0], [1], [0, 0, 1, 1], [], []>} : vector<1x128xbf16>, vector<128x128xbf16>, vector<1x128xf32> -> vector<1x128xf32>
    %403 = arith.addf %398, %402 : vector<1x128xf32>
    %404 = vector.extract_strided_slice %327 {offsets = [21, 0], sizes = [1, 128], strides = [1, 1]} : vector<24x128xbf16> to vector<1x128xbf16>
    %c15 = arith.constant 15 : index
    %c0_341 = arith.constant 0 : index
    %c0_342 = arith.constant 0 : index
    %405 = vector.load %arg20[%c15, %c0_341, %c0_342] : memref<16x128x128xbf16, #tpu.memory_space<vmem>>, vector<1x128x128xbf16>
    %406 = vector.shape_cast %405 : vector<1x128x128xbf16> to vector<128x128xbf16>
    %cst_343 = arith.constant dense<0.000000e+00> : vector<1x128xf32>
    %407 = tpu.matmul %404, %406, %cst_343 {dimension_numbers = #tpu.dot_dimension_numbers<[1], [0], [0], [1], [0, 0, 1, 1], [], []>} : vector<1x128xbf16>, vector<128x128xbf16>, vector<1x128xf32> -> vector<1x128xf32>
    %408 = arith.addf %403, %407 : vector<1x128xf32>
    %409 = vector.shape_cast %408 : vector<1x128xf32> to vector<1x1x128xf32>
    %c0_344 = arith.constant 0 : index
    %c0_345 = arith.constant 0 : index
    %c0_346 = arith.constant 0 : index
    %410 = vector.load %arg22[%c0_344, %c0_345, %c0_346] : memref<1x1x128xf32, #tpu.memory_space<vmem>>, vector<1x1x128xf32>
    tpu.vector_store %arg22[%c0_344, %c0_345, %c0_346], %409 {strides = array<i32>} : memref<1x1x128xf32, #tpu.memory_space<vmem>>, vector<1x1x128xf32>,
    return
  }
  func.func @transform_0(%arg0: i32) -> (i32, i32, i32) {
    %c0_i32 = arith.constant 0 : i32
    %c0_i32_0 = arith.constant 0 : i32
    %c0_i32_1 = arith.constant 0 : i32
    return %arg0, %c0_i32, %c0_i32_0 : i32, i32, i32
  }
  func.func @transform_1(%arg0: i32) -> (i32, i32) {
    %c0_i32 = arith.constant 0 : i32
    %c0_i32_0 = arith.constant 0 : i32
    %c0_i32_1 = arith.constant 0 : i32
    return %c0_i32, %c0_i32_0 : i32, i32
  }
  func.func @transform_2(%arg0: i32) -> (i32, i32) {
    %c0_i32 = arith.constant 0 : i32
    %c0_i32_0 = arith.constant 0 : i32
    %c0_i32_1 = arith.constant 0 : i32
    return %c0_i32, %c0_i32_0 : i32, i32
  }
  func.func @transform_3(%arg0: i32) -> (i32, i32) {
    %c0_i32 = arith.constant 0 : i32
    %c0_i32_0 = arith.constant 0 : i32
    %c0_i32_1 = arith.constant 0 : i32
    return %c0_i32, %c0_i32_0 : i32, i32
  }
  func.func @transform_4(%arg0: i32) -> (i32, i32) {
    %c0_i32 = arith.constant 0 : i32
    %c0_i32_0 = arith.constant 0 : i32
    %c0_i32_1 = arith.constant 0 : i32
    return %c0_i32, %c0_i32_0 : i32, i32
  }
  func.func @transform_5(%arg0: i32) -> (i32, i32) {
    %c0_i32 = arith.constant 0 : i32
    %c0_i32_0 = arith.constant 0 : i32
    %c0_i32_1 = arith.constant 0 : i32
    return %c0_i32, %c0_i32_0 : i32, i32
  }
  func.func @transform_6(%arg0: i32) -> (i32, i32, i32) {
    %c0_i32 = arith.constant 0 : i32
    %c0_i32_0 = arith.constant 0 : i32
    %c0_i32_1 = arith.constant 0 : i32
    %c0_i32_2 = arith.constant 0 : i32
    return %c0_i32, %c0_i32_0, %c0_i32_1 : i32, i32, i32
  }
  func.func @transform_7(%arg0: i32) -> (i32, i32) {
    %c0_i32 = arith.constant 0 : i32
    %c0_i32_0 = arith.constant 0 : i32
    %c0_i32_1 = arith.constant 0 : i32
    return %c0_i32, %c0_i32_0 : i32, i32
  }
  func.func @transform_8(%arg0: i32) -> (i32, i32) {
    %c0_i32 = arith.constant 0 : i32
    %c0_i32_0 = arith.constant 0 : i32
    %c0_i32_1 = arith.constant 0 : i32
    return %c0_i32, %c0_i32_0 : i32, i32
  }
  func.func @transform_9(%arg0: i32) -> (i32, i32, i32) {
    %c0_i32 = arith.constant 0 : i32
    %c0_i32_0 = arith.constant 0 : i32
    %c0_i32_1 = arith.constant 0 : i32
    %c0_i32_2 = arith.constant 0 : i32
    return %c0_i32, %c0_i32_0, %c0_i32_1 : i32, i32, i32
  }
  func.func @transform_10(%arg0: i32) -> (i32, i32) {
    %c0_i32 = arith.constant 0 : i32
    %c0_i32_0 = arith.constant 0 : i32
    %c0_i32_1 = arith.constant 0 : i32
    return %c0_i32, %c0_i32_0 : i32, i32
  }
  func.func @transform_11(%arg0: i32) -> (i32, i32) {
    %c0_i32 = arith.constant 0 : i32
    %c0_i32_0 = arith.constant 0 : i32
    %c0_i32_1 = arith.constant 0 : i32
    return %c0_i32, %c0_i32_0 : i32, i32
  }
  func.func @transform_12(%arg0: i32) -> (i32, i32) {
    %c0_i32 = arith.constant 0 : i32
    %c0_i32_0 = arith.constant 0 : i32
    %c0_i32_1 = arith.constant 0 : i32
    return %c0_i32, %c0_i32_0 : i32, i32
  }
  func.func @transform_13(%arg0: i32) -> (i32, i32, i32) {
    %c0_i32 = arith.constant 0 : i32
    %c0_i32_0 = arith.constant 0 : i32
    %c0_i32_1 = arith.constant 0 : i32
    %c0_i32_2 = arith.constant 0 : i32
    return %c0_i32, %c0_i32_0, %c0_i32_1 : i32, i32, i32
  }
  func.func @transform_14(%arg0: i32) -> (i32, i32) {
    %c0_i32 = arith.constant 0 : i32
    %c0_i32_0 = arith.constant 0 : i32
    %c0_i32_1 = arith.constant 0 : i32
    return %c0_i32, %c0_i32_0 : i32, i32
  }
  func.func @transform_15(%arg0: i32) -> (i32, i32) {
    %c0_i32 = arith.constant 0 : i32
    %c0_i32_0 = arith.constant 0 : i32
    %c0_i32_1 = arith.constant 0 : i32
    return %c0_i32, %c0_i32_0 : i32, i32
  }
  func.func @transform_16(%arg0: i32) -> (i32, i32, i32) {
    %c0_i32 = arith.constant 0 : i32
    %c0_i32_0 = arith.constant 0 : i32
    %c0_i32_1 = arith.constant 0 : i32
    %c0_i32_2 = arith.constant 0 : i32
    return %c0_i32, %c0_i32_0, %c0_i32_1 : i32, i32, i32
  }
  func.func @transform_17(%arg0: i32) -> (i32, i32) {
    %c0_i32 = arith.constant 0 : i32
    %c0_i32_0 = arith.constant 0 : i32
    %c0_i32_1 = arith.constant 0 : i32
    return %c0_i32, %c0_i32_0 : i32, i32
  }
  func.func @transform_18(%arg0: i32) -> (i32, i32) {
    %c0_i32 = arith.constant 0 : i32
    %c0_i32_0 = arith.constant 0 : i32
    %c0_i32_1 = arith.constant 0 : i32
    return %c0_i32, %c0_i32_0 : i32, i32
  }
  func.func @transform_19(%arg0: i32) -> (i32, i32, i32) {
    %c0_i32 = arith.constant 0 : i32
    %c0_i32_0 = arith.constant 0 : i32
    %c0_i32_1 = arith.constant 0 : i32
    %c0_i32_2 = arith.constant 0 : i32
    return %c0_i32, %c0_i32_0, %c0_i32_1 : i32, i32, i32
  }
  func.func @transform_20(%arg0: i32) -> (i32, i32) {
    %c0_i32 = arith.constant 0 : i32
    %c0_i32_0 = arith.constant 0 : i32
    %c0_i32_1 = arith.constant 0 : i32
    return %c0_i32, %c0_i32_0 : i32, i32
  }
  func.func @transform_21(%arg0: i32) -> (i32, i32, i32) {
    %c0_i32 = arith.constant 0 : i32
    %c0_i32_0 = arith.constant 0 : i32
    %c0_i32_1 = arith.constant 0 : i32
    return %arg0, %c0_i32, %c0_i32_0 : i32, i32, i32
  }
}

</mosaic_0001>

<bundles_post_ra>
// kernel: tpu_custom_call.1
= control target key start
LH: loop header
LB: loop body
LE: loop exit
PB: predicated region body
PF: predicated region fallthrough
CT: control target
= control target key end

     0   :  { %s13492_s0 = inlined_call_operand.hbm [shape: bf16[2,256,128], index: 0, kind: input, shape index: {}]   ;;  %s13493_s1 = inlined_call_operand.hbm [shape: bf16[128,128], index: 1, kind: input, shape index: {}]   ;;  %s13494_s2 = inlined_call_operand.vmem [shape: f32[1,128], index: 2, kind: input, shape index: {}]   ;;  %s13495_s3 = inlined_call_operand.vmem [shape: f32[1,128], index: 3, kind: input, shape index: {}]   ;;  %s13496_s4 = inlined_call_operand.hbm [shape: bf16[102,256], index: 4, kind: input, shape index: {}]   ;;  %s13497_s5 = inlined_call_operand.hbm [shape: bf16[128,128], index: 5, kind: input, shape index: {}]   ;;  %s13498_s6 = inlined_call_operand.hbm [shape: bf16[9,128,128], index: 6, kind: input, shape index: {}]   ;;  %s13499_s7 = inlined_call_operand.vmem [shape: f32[1,128], index: 7, kind: input, shape index: {}]   ;;  %s13500_s8 = inlined_call_operand.vmem [shape: f32[1,128], index: 8, kind: input, shape index: {}]   ;;  %s13501_s9 = inlined_call_operand.hbm [shape: bf16[9,128,128], index: 9, kind: input, shape index: {}]   ;;  %s13502_s10 = inlined_call_operand.vmem [shape: f32[1,128], index: 10, kind: input, shape index: {}]   ;;  %s13503_s11 = inlined_call_operand.vmem [shape: f32[1,128], index: 11, kind: input, shape index: {}]   ;;  %s13504_s12 = inlined_call_operand.hbm [shape: bf16[38,80], index: 12, kind: input, shape index: {}]   ;;  %s13505_s13 = inlined_call_operand.hbm [shape: bf16[9,128,128], index: 13, kind: input, shape index: {}]   ;;  %s13506_s14 = inlined_call_operand.vmem [shape: f32[1,128], index: 14, kind: input, shape index: {}]   ;;  %s13507_s15 = inlined_call_operand.vmem [shape: f32[1,128], index: 15, kind: input, shape index: {}]   ;;  %s13508_s16 = inlined_call_operand.hbm [shape: bf16[9,128,128], index: 16, kind: input, shape index: {}]   ;;  %s13509_s17 = inlined_call_operand.vmem [shape: f32[1,128], index: 17, kind: input, shape index: {}]   ;;  %s13510_s18 = inlined_call_operand.vmem [shape: f32[1,128], index: 18, kind: input, shape index: {}]   ;;  %s13511_s19 = inlined_call_operand.hbm [shape: bf16[16,128,128], index: 19, kind: input, shape index: {}]   ;;  %s13512_s20 = inlined_call_operand.vmem [shape: f32[1,128], index: 20, kind: input, shape index: {}]   ;;  %s13513_s21 = inlined_call_operand.hbm [shape: f32[2,1,128], index: 21, kind: output, shape index: {}]  }
   0x1   :  { %13535 = sst [smem:[#allocation49_spill]] %s13492_s0 }
   0x2   :  { %13536 = sst [smem:[#allocation50_spill]] %s13493_s1 }
   0x3   :  { %13537 = sst [smem:[#allocation51_spill]] %s13494_s2 }
   0x4   :  { %13538 = sst [smem:[#allocation52_spill]] %s13495_s3 }
   0x5   :  { %13539 = sst [smem:[#allocation53_spill]] %s13496_s4 }
   0x6   :  { %13540 = sst [smem:[#allocation54_spill]] %s13497_s5 }
   0x7   :  { %13541 = sst [smem:[#allocation55_spill]] %s13498_s6 }
   0x8   :  { %13542 = sst [smem:[#allocation56_spill]] %s13501_s9 }
   0x9   :  { %13543 = sst [smem:[#allocation57_spill]] %s13504_s12 }
   0xa   :  { %13544 = sst [smem:[#allocation58_spill]] %s13505_s13 }
   0xb   :  { %13545 = sst [smem:[#allocation59_spill]] %s13506_s14 }
   0xc   :  { %13546 = sst [smem:[#allocation60_spill]] %s13507_s15 }
   0xd   :  { %13547 = sst [smem:[#allocation61_spill]] %s13509_s17 }
   0xe   :  { %13548 = sst [smem:[#allocation62_spill]] %s13510_s18 }
   0xf   :  { %13549 = sst [smem:[#allocation63_spill]] %s13512_s20 }
  0x10   :  { %13550 = sst [smem:[#allocation64_spill]] %s13513_s21 }
  0x11   :  { %26 = vsyncpa [#allocation7], 0 }
  0x12   :  { %28 = vsyncpa [#allocation7 + $0x1], 0 }
  0x13   :  { %29 = vsyncpa [#allocation10], 0 }
  0x14   :  { %30 = vsyncpa [#allocation13], 0 }
  0x15   :  { %31 = vsyncpa [#allocation16], 0 }
  0x16   :  { %32 = vsyncpa [#allocation19], 0 }
  0x17   :  { %33 = vsyncpa [#allocation22], 0 }
  0x18   :  { %34 = vsyncpa [#allocation8], 0 }
  0x19   :  { %36 = vsyncpa [#allocation8 + $0x1], 0  ;;  %s11756_s2 = smov 0   ;;  %s11758_s25 = smov 0  }
  0x1a   :  { %s11760_s26 = smov 0   ;;  %s11762_s27 = smov 0  }
  0x1b LB: > { %s13551_s29 = sld [smem:[#allocation50_spill]]  ;;  %s11780_s4 = sadd.s32 4294967295, %s11630_s27   ;;  %s11630_s27 = sphi %s11762_s27, %s13656_s27   ;;  %s11626_s26 = sphi %s11760_s26, %s13655_s26   ;;  %s11622_s25 = sphi %s11758_s25, %s13654_s25   ;;  %s11618_s2 = sphi %s11756_s2, %s13653_s2  }
  0x1c   : > { %p8557_p0 = scmp.ge.s32.totalorder %s11630_s27, 1  ;;  %p63_p1 = scmp.eq.s32.totalorder %s11780_s4, 0 }
  0x1d   : > { %p519_p2 = scmp.lt.s32.totalorder %s11630_s27, 3  ;;  %s11632_s5 = smov [#allocation9]  }
  0x1e   : > { %s532_s22 = sshll.u32 %s11632_s5, 4  ;;  %s13553_s24 = sld [smem:[#allocation54_spill]]  ;;  %s533_s22 = int_to_ptr.vmem [resolvable:$true] %s532_s22 }
  0x1f   : > { %p11785_p3 = pnand %p8557_p0, %p519_p2  ;;  %s13555_s9 = sld [smem:[#allocation56_spill]] }
  0x20   : > { %s11633_s20 = smov [#allocation12]   ;;  %s13516_s17 = smov 64  }
  0x21   : > { %s530_s0 = sshll.u32 %s13551_s29, 4  ;;  %p11132_p4 = pneg %p11785_p3  ;;  %s531_s0 = int_to_ptr.hbm [resolvable:$true] %s530_s0 }
  0x22   : > { %s566_s18 = sshll.u32 %s11633_s20, 4  ;;  %s13517_s15 = smov 4   ;;  %s567_s18 = int_to_ptr.vmem [resolvable:$true] %s566_s18 }
  0x23   : > { %p11797_p6 = pnand %p11132_p4, %p63_p1  ;;  %s13556_s13 = sld [smem:[#allocation58_spill]] }
  0x24   : > { %s564_s3 = sshll.u32 %s13553_s24, 4  ;;  %s11636_s20 = smov [#allocation15]   ;;  %s565_s3 = int_to_ptr.hbm [resolvable:$true] %s564_s3 }
  0x25   : > { %s598_s5 = sshll.u32 %s13555_s9, 4  ;;  %s600_s24 = sshll.u32 %s11636_s20, 4  ;;  %s599_s5 = int_to_ptr.hbm [resolvable:$true] %s598_s5  ;;  %s601_s24 = int_to_ptr.vmem [resolvable:$true] %s600_s24 }
  0x26   : > { %11135 = dma.hbm_to_vmem [thread:$0]  (!%p11797_p6), %s531_s0, 1024, %s533_s22, [#allocation10], %s13516_s17, %s13516_s17, %s13517_s15  }
  0x27   : > { %11141 = dma.hbm_to_vmem [thread:$0]  (!%p11797_p6), %s565_s3, 1024, %s567_s18, [#allocation13], %s13516_s17, %s13516_s17, %s13517_s15  }
  0x28   : > { %11147 = dma.hbm_to_vmem [thread:$0]  (!%p11797_p6), %s599_s5, 9216, %s601_s24, [#allocation16], %s13516_s17, %s13516_s17, %s13517_s15  }
  0x29   : > { %s632_s1 = sshll.u32 %s13556_s13, 4  ;;  %s11637_s0 = smov [#allocation18]   ;;  %s633_s1 = int_to_ptr.hbm [resolvable:$true] %s632_s1 }
  0x2a   : > { %s634_s22 = sshll.u32 %s11637_s0, 4  ;;  %s13557_s14 = sld [smem:[#allocation53_spill]]  ;;  %s635_s22 = int_to_ptr.vmem [resolvable:$true] %s634_s22 }
  0x2b   : > { %11153 = dma.hbm_to_vmem [thread:$0]  (!%p11797_p6), %s633_s1, 9216, %s635_s22, [#allocation19], %s13516_s17, %s13516_s17, %s13517_s15  }
  0x2c   : > { %s11638_s3 = smov [#allocation11]   ;;  %s13558_s6 = sld [smem:[#allocation55_spill]] }
  0x2d   : > { %s552_s23 = sshll.u32 %s11638_s3, 4  ;;  %s11639_s24 = smov 128   ;;  %s553_s23 = int_to_ptr.vmem [resolvable:$true] %s552_s23 }
  0x2e   : > { %s11640_s0 = smov 8   ;;  %s11641_s9 = smov [#allocation14]  }
  0x2f   : > { %s13559_s12 = sld [smem:[#allocation57_spill]]  ;;  %s11643_s13 = smov [#allocation20]  }
  0x30   : > { %s550_s18 = sshll.u32 %s13557_s14, 4  ;;  %s580_s14 = sshll.u32 %s11641_s9, 4  ;;  %s551_s18 = int_to_ptr.hbm [resolvable:$true] %s550_s18  ;;  %s581_s14 = int_to_ptr.vmem [resolvable:$true] %s580_s14 }
  0x31   : > { %11138 = dma.hbm_to_vmem [thread:$0]  (!%p11797_p6), %s551_s18, 1664, %s553_s23, [#allocation10], %s11639_s24, %s11639_s24, %s11640_s0  }
  0x32   : > { %s578_s5 = sshll.u32 %s13558_s6, 4  ;;  %s652_s18 = sshll.u32 %s13508_s16, 4  ;;  %s579_s5 = int_to_ptr.hbm [resolvable:$true] %s578_s5  ;;  %s653_s18 = int_to_ptr.hbm [resolvable:$true] %s652_s18 }
  0x33   : > { %11144 = dma.hbm_to_vmem [thread:$0]  (!%p11797_p6), %s579_s5, 9216, %s581_s14, [#allocation13], %s13516_s17, %s13516_s17, %s13517_s15  }
  0x34   : > { %s11642_s23 = smov [#allocation17]   ;;  %s654_s20 = sshll.u32 %s11643_s13, 4  ;;  %s655_s20 = int_to_ptr.vmem [resolvable:$true] %s654_s20 }
  0x35   : > { %s618_s1 = sshll.u32 %s13559_s12, 4  ;;  %s620_s21 = sshll.u32 %s11642_s23, 4  ;;  %s619_s1 = int_to_ptr.hbm [resolvable:$true] %s618_s1  ;;  %s621_s21 = int_to_ptr.vmem [resolvable:$true] %s620_s21 }
  0x36   : > { %11150 = dma.hbm_to_vmem [thread:$0]  (!%p11797_p6), %s619_s1, 320, %s621_s21, [#allocation16], %s13516_s17, %s13516_s17, %s13517_s15  }
  0x37   : > { %s672_s0 = sshll.u32 %s13511_s19, 4  ;;  %s11644_s9 = smov [#allocation21]   ;;  %s673_s0 = int_to_ptr.hbm [resolvable:$true] %s672_s0 }
  0x38   : > { %11156 = dma.hbm_to_vmem [thread:$0]  (!%p11797_p6), %s653_s18, 9216, %s655_s20, [#allocation19], %s13516_s17, %s13516_s17, %s13517_s15  }
  0x39   : > { %s674_s14 = sshll.u32 %s11644_s9, 4  ;;  %s8556_s29 = sadd.s32 4294967294, %s11630_s27   ;;  %s675_s14 = int_to_ptr.vmem [resolvable:$true] %s674_s14 }
  0x3a   : > { %11159 = dma.hbm_to_vmem [thread:$0]  (!%p11797_p6), %s673_s0, 16384, %s675_s14, [#allocation22], %s13516_s17, %s13516_s17, %s13517_s15  }
  0x3b   : > { %s11866_s1 = sadd.s32 1, %s11630_s27   ;;  %s49_s22 = sadd.s32 1, %s11626_s26 }
  0x3c   : > { %s46_s3 = ssub.s32 %s11630_s27, %s11866_s1  ;;  %p56_p7 = scmp.ne.s32.totalorder %s11626_s26, %s11622_s25 }
  0x3d   : > { %p47_p8 = scmp.eq.s32.totalorder %s46_s3, 0  ;;  %p57_p9 = scmp.eq.s32.totalorder %s11630_s27, 0 }
  0x3e   : > { %p62_p10 = scmp.ne.s32.totalorder %s11622_s25, %s11618_s2  ;;  %p506_p11 = scmp.eq.s32.totalorder %s11780_s4, 1 }
  0x3f   : > { %s11878_s18 = scalar_select %p47_p8, %s11626_s26, %s49_s22  }
  0x40   : > { %p11882_p12 = por %p63_p1, %p62_p10  ;;  %p11886_p13 = por %p506_p11, %p56_p7 }
  0x41   : > { %p512_p0 = scmp.eq.s32.totalorder %s8556_s29, 1  ;;  %p58_p2 = por %p57_p9, %p56_p7 }
  0x42   : > { %s691_s21 = sand.u32 1, %s11626_s26   ;;  %p11177_p6 = scmp.lt.s32.totalorder %s11630_s27, 2 }
  0x43   : > { %p11891_p4 = por %p512_p0, %p62_p10  ;;  %s8568_s20 = sshll.u32 %s691_s21, 7 }
  0x44   : > { %s10531_s5 = sshll.u32 %s11630_s27, 7  ;;  %s13563_s9 = sld [smem:[#allocation49_spill]] }
  0x45   : > { %s695_s3 = scalar_lea.vmem [#allocation6], %s8568_s20  ;;  %p11900_p8 = pnand %p11177_p6, %p58_p2 }
  0x46   : > { %s703_s17 = sshll.u32 %s695_s3, 4  ;;  %s692_s15 = scalar_lea.sflag [#allocation7], %s691_s21  ;;  %s704_s17 = int_to_ptr.vmem [resolvable:$true] %s703_s17 }
  0x47   : > { %p11518_p9 = pneg %p11900_p8 }
  0x4a   : > { %s700_s14 = scalar_lea.hbm %s13563_s9, %s10531_s5  ;;  %s11521_s20 = scalar_lea.hbm %s13563_s9, 256 }
  0x4b   : > { %s701_s22 = sshll.u32 %s700_s14, 4  ;;  %s702_s22 = int_to_ptr.hbm [resolvable:$true] %s701_s22 }
  0x4c   : > { %s11514_s6 = sshra.s32 %s702_s22, 4  ;;  %s11515_s6 = int_to_ptr.hbm [resolvable:$true] %s11514_s6 }
  0x4d   : > { %s11516_s12 = scalar_lea.hbm %s11515_s6, 128  ;;  %p11522_p0 = scmp.lt.s32.totalorder %s11515_s6, %s13563_s9 }
  0x4e   : > { %p11517_p7 = scmp.ne.s32.totalorder %s11515_s6, %s11516_s12  ;;  %p11523_p2 = scmp.lt.s32.totalorder %s11521_s20, %s11516_s12 }
  0x50   : > { %p11519_p10 = pnand %p11518_p9, %p11517_p7  ;;  %p11524_p6 = por %p11523_p2, %p11522_p0 }
  0x52   : > { %p11520_p11 = pneg %p11519_p10 }
  0x54   : > { %p11525_p5 = pnand %p11524_p6, %p11520_p11 }
  0x56   : > { %11528 = shalt.err (!%p11525_p5)
}
  0x57   : > { %s13565_s21 = smov 4   ;;  %s13566_s3 = smov 64  }
  0x58   : > { %11163 = dma.hbm_to_vmem [thread:$0]  (!%p11900_p8), %s702_s22, 2048, %s704_s17, %s692_s15, %s13566_s3, %s13566_s3, %s13565_s21  }
  0x59   : > { %715 = sbr.rel (%p11785_p3) target bundleno = 2217 (0x8a9), region = 104 }
  0x5e   : > { %s11920_s5 = sand.u32 1, %s11622_s25  }
  0x5f   : > { %s8572_s6 = sshll.u32 %s11920_s5, 7  ;;  %s718_s12 = scalar_lea.sflag [#allocation7], %s11920_s5 }
  0x60   : > { %s11924_s24 = scalar_lea.vmem [#allocation6], %s8572_s6 }
  0x61   : > { %11589 = dma.done.wait (%p11882_p12), %s718_s12, 2048  }
  0x62   : > { %11591 = vsyncadd (%p11882_p12), %s718_s12, 4294965248 }
  0x63   : > { %11593 = dma.done.wait (%p63_p1), [#allocation10], 2688  }
  0x64   : > { %11595 = vsyncadd (%p63_p1), [#allocation10], 4294964608 }
  0x65   : > { %11597 = dma.done.wait (%p63_p1), [#allocation13], 10240  }
  0x66   : > { %11599 = vsyncadd (%p63_p1), [#allocation13], 4294957056 }
  0x67   : > { %11601 = dma.done.wait (%p63_p1), [#allocation16], 9536  }
  0x68   : > { %11603 = vsyncadd (%p63_p1), [#allocation16], 4294957760 }
  0x69   : > { %11605 = dma.done.wait (%p63_p1), [#allocation19], 18432  }
  0x6a   : > { %11607 = vsyncadd (%p63_p1), [#allocation19], 4294948864 }
  0x6b   : > { %11609 = dma.done.wait (%p63_p1), [#allocation22], 16384  }
  0x6c   : > { %11611 = vsyncadd (%p63_p1), [#allocation22], 4294950912  ;;  %v10547_v0 = vld [vmem:[#allocation9 + $0x38] sm:$0xff]  ;;  %v10546_v1 = vld [vmem:[#allocation9 + $0x30] sm:$0xff]  ;;  %s13567_s30 = sld [smem:[#allocation51_spill]] }
  0x6d   : > { %956 = vmatpush.bf16.msra.mxu0 %v10547_v0  ;;  %1176 = vmatpush.bf16.msra.mxu1 %v10547_v0  ;;  %v10545_v2 = vld [vmem:[#allocation9 + $0x28] sm:$0xff]  ;;  %v10544_v3 = vld [vmem:[#allocation9 + $0x20] sm:$0xff]  ;;  %v10543_v4 = vld [vmem:[#allocation9 + $0x18] sm:$0xff]  ;;  %s13568_s29 = sld [smem:[#allocation52_spill]] }
  0x6e   : > { %v10542_v5 = vld [vmem:[#allocation9 + $0x10] sm:$0xff]  ;;  %v10541_v6 = vld [vmem:[#allocation9 + $0x8] sm:$0xff]  ;;  %v10540_v7 = vld [vmem:[#allocation9] sm:$0xff]  ;;  %s13648_s14 = sld [smem:[#allocation61_spill]] }
  0x6f   : > { %v10532_v8 = vld [vmem:[%s11924_s24] sm:$0xff]  ;;  %v10533_v10 = vld [vmem:[%s11924_s24 + $0x8] sm:$0xff]  ;;  %v10534_v12 = vld [vmem:[%s11924_s24 + $0x10] sm:$0xff]  ;;  %s13649_s6 = sld [smem:[#allocation62_spill]] }
  0x70   : > { %v10554_v9 = vld [vmem:[%s11924_s24 + $0x40] sm:$0xff]  ;;  %v10555_v11 = vld [vmem:[%s11924_s24 + $0x48] sm:$0xff]  ;;  %v10556_v13 = vld [vmem:[%s11924_s24 + $0x50] sm:$0xff]  ;;  %s13650_s15 = sld [smem:[#allocation63_spill]] }
  0x71   : > { %957 = vmatpush.bf16.msra.mxu0 %v10546_v1  ;;  %1177 = vmatpush.bf16.msra.mxu1 %v10546_v1  ;;  %v10535_v14 = vld [vmem:[%s11924_s24 + $0x18] sm:$0xff]  ;;  %v10536_v16 = vld [vmem:[%s11924_s24 + $0x20] sm:$0xff]  ;;  %v10537_v18 = vld [vmem:[%s11924_s24 + $0x28] sm:$0xff]  ;;  %s13651_s28 = sld [smem:[#allocation64_spill]] }
  0x72   : > { %v10557_v15 = vld [vmem:[%s11924_s24 + $0x58] sm:$0xff]  ;;  %v10558_v17 = vld [vmem:[%s11924_s24 + $0x60] sm:$0xff]  ;;  %v10559_v19 = vld [vmem:[%s11924_s24 + $0x68] sm:$0xff] }
  0x73   : > { %v10538_v20 = vld [vmem:[%s11924_s24 + $0x30] sm:$0xff]  ;;  %v10539_v22 = vld [vmem:[%s11924_s24 + $0x38] sm:$0xff] }
  0x74   : > { %v10560_v21 = vld [vmem:[%s11924_s24 + $0x70] sm:$0xff]  ;;  %v10561_v23 = vld [vmem:[%s11924_s24 + $0x78] sm:$0xff] }
  0x75   : > { %958 = vmatpush.bf16.msra.mxu0 %v10545_v2  ;;  %1178 = vmatpush.bf16.msra.mxu1 %v10545_v2  ;;  %v11234_v52 = vld [vmem:[%s13567_s30] ss:$0 sm:$0xff]  ;;  %s13637_s30 = sld [smem:[#allocation59_spill]] }
  0x76   : > { %v11972_v57 = vld [vmem:[%s13568_s29] ss:$0 sm:$0xff]  ;;  %s13639_s29 = sld [smem:[#allocation60_spill]] }
  0x77   : > { %s8400_s22 = scalar_lea.hbm %s13651_s28, %s11780_s4  ;;  %s11564_s12 = scalar_lea.hbm %s13651_s28, 2 }
  0x78   : > { %s8404_s0 = sshll.u32 %s8400_s22, 4  ;;  %s8405_s0 = int_to_ptr.hbm [resolvable:$true] %s8404_s0 }
  0x79   : > { %959 = vmatpush.bf16.msra.mxu0 %v10544_v3  ;;  %1179 = vmatpush.bf16.msra.mxu1 %v10544_v3  ;;  %s11558_s21 = sshra.s32 %s8405_s0, 4  ;;  %s11559_s21 = int_to_ptr.hbm [resolvable:$true] %s11558_s21 }
  0x7a   : > { %s11560_s3 = scalar_lea.hbm %s11559_s21, 1  ;;  %p11565_p12 = scmp.lt.s32.totalorder %s11559_s21, %s13651_s28 }
  0x7b   : > { %p11561_p1 = scmp.ne.s32.totalorder %s11559_s21, %s11560_s3  ;;  %p11566_p8 = scmp.lt.s32.totalorder %s11564_s12, %s11560_s3 }
  0x7d   : > { %960 = vmatpush.bf16.msra.mxu0 %v10543_v4  ;;  %1180 = vmatpush.bf16.msra.mxu1 %v10543_v4  ;;  %p11562_p3 = pnand %p11561_p1, %p11886_p13  ;;  %p11567_p7 = por %p11566_p8, %p11565_p12 }
  0x7f   : > { %p11563_p5 = pneg %p11562_p3 }
  0x81   : > { %961 = vmatpush.bf16.msra.mxu0 %v10542_v5  ;;  %1181 = vmatpush.bf16.msra.mxu1 %v10542_v5  ;;  %p11568_p9 = pnand %p11567_p7, %p11563_p5 }
  0x85   : > { %962 = vmatpush.bf16.msra.mxu0 %v10541_v6  ;;  %1182 = vmatpush.bf16.msra.mxu1 %v10541_v6 }
  0x89   : > { %963 = vmatpush.bf16.msra.mxu0 %v10540_v7  ;;  %1183 = vmatpush.bf16.msra.mxu1 %v10540_v7 }
  0x8c   : > { %964 = vmatmul.bf16.vlgmr.msra.gmra.mxu0 %v10532_v8  ;;  %1184 = vmatmul.bf16.vlgmr.msra.gmra.mxu1 %v10554_v9 }
  0x9c   : > { %969 = vmatmul.bf16.gmra.mxu0 %v10533_v10  ;;  %1189 = vmatmul.bf16.gmra.mxu1 %v10555_v11 }
  0xac   : > { %974 = vmatmul.bf16.gmra.mxu0 %v10534_v12  ;;  %1194 = vmatmul.bf16.gmra.mxu1 %v10556_v13 }
  0xbc   : > { %979 = vmatmul.bf16.gmra.mxu0 %v10535_v14  ;;  %1199 = vmatmul.bf16.gmra.mxu1 %v10557_v15 }
  0xcc   : > { %984 = vmatmul.bf16.gmra.mxu0 %v10536_v16  ;;  %1204 = vmatmul.bf16.gmra.mxu1 %v10558_v17 }
  0xdc   : > { %989 = vmatmul.bf16.gmra.mxu0 %v10537_v18  ;;  %1209 = vmatmul.bf16.gmra.mxu1 %v10559_v19 }
  0xec   : > { %994 = vmatmul.bf16.gmra.mxu0 %v10538_v20  ;;  %1214 = vmatmul.bf16.gmra.mxu1 %v10560_v21 }
  0xfc   : > { %999 = vmatmul.bf16.gmra.mxu0 %v10539_v22  ;;  %1219 = vmatmul.bf16.gmra.mxu1 %v10561_v23 }
 0x109   : > { %v965_v24 = vpop.f32.mrf.mxu0  ;;  %v1185_v25 = vpop.f32.mrf.mxu1 }
 0x10a   : > { %v11974_v60 = vmul.f32 %v11234_v52, %v965_v24  ;;  %v11976_v61 = vmul.f32 %v11234_v52, %v1185_v25 }
 0x111   : > { %v967_v26 = vpop.f32.mrf.mxu0  ;;  %v1187_v27 = vpop.f32.mrf.mxu1 }
 0x112   : > { %v1009_v53 = vmul.f32 %v11234_v52, %v967_v26  ;;  %v1226_v54 = vmul.f32 %v11234_v52, %v1187_v27 }
 0x114   : > { %v11979_v62 = vadd.f32 %v11972_v57, %v1009_v53  ;;  %v11982_v63 = vadd.f32 %v11972_v57, %v1226_v54 }
 0x119   : > { %v970_v28 = vpop.f32.mrf.mxu0  ;;  %v1190_v29 = vpop.f32.mrf.mxu1 }
 0x11a   : > { %v11984_v0 = vmul.f32 %v11234_v52, %v970_v28  ;;  %v11986_v1 = vmul.f32 %v11234_v52, %v1190_v29 }
 0x121   : > { %v972_v30 = vpop.f32.mrf.mxu0  ;;  %v1192_v31 = vpop.f32.mrf.mxu1 }
 0x122   : > { %v1011_v55 = vmul.f32 %v11234_v52, %v972_v30  ;;  %v1228_v56 = vmul.f32 %v11234_v52, %v1192_v31 }
 0x124   : > { %v11989_v4 = vadd.f32 %v11972_v57, %v1011_v55  ;;  %v11992_v5 = vadd.f32 %v11972_v57, %v1228_v56 }
 0x129   : > { %v975_v32 = vpop.f32.mrf.mxu0  ;;  %v1195_v33 = vpop.f32.mrf.mxu1 }
 0x12a   : > { %v11994_v8 = vmul.f32 %v11234_v52, %v975_v32  ;;  %v11996_v9 = vmul.f32 %v11234_v52, %v1195_v33 }
 0x131   : > { %v977_v34 = vpop.f32.mrf.mxu0  ;;  %v1197_v35 = vpop.f32.mrf.mxu1 }
 0x132   : > { %v1013_v58 = vmul.f32 %v11234_v52, %v977_v34  ;;  %v1230_v59 = vmul.f32 %v11234_v52, %v1197_v35 }
 0x134   : > { %v11999_v10 = vadd.f32 %v11972_v57, %v1013_v58  ;;  %v12002_v11 = vadd.f32 %v11972_v57, %v1230_v59 }
 0x139   : > { %v980_v36 = vpop.f32.mrf.mxu0  ;;  %v1200_v37 = vpop.f32.mrf.mxu1 }
 0x13a   : > { %v12004_v12 = vmul.f32 %v11234_v52, %v980_v36  ;;  %v12006_v13 = vmul.f32 %v11234_v52, %v1200_v37 }
 0x141   : > { %v982_v38 = vpop.f32.mrf.mxu0  ;;  %v1202_v39 = vpop.f32.mrf.mxu1 }
 0x142   : > { %v1015_v6 = vmul.f32 %v11234_v52, %v982_v38  ;;  %v1232_v7 = vmul.f32 %v11234_v52, %v1202_v39 }
 0x144   : > { %v12009_v20 = vadd.f32 %v11972_v57, %v1015_v6  ;;  %v12012_v21 = vadd.f32 %v11972_v57, %v1232_v7 }
 0x149   : > { %v985_v40 = vpop.f32.mrf.mxu0  ;;  %v1205_v41 = vpop.f32.mrf.mxu1 }
 0x14a   : > { %v1016_v28 = vmul.f32 %v11234_v52, %v985_v40  ;;  %v1233_v29 = vmul.f32 %v11234_v52, %v1205_v41 }
 0x151   : > { %v987_v42 = vpop.f32.mrf.mxu0  ;;  %v1207_v43 = vpop.f32.mrf.mxu1 }
 0x152   : > { %v1017_v16 = vmul.f32 %v11234_v52, %v987_v42  ;;  %v1234_v17 = vmul.f32 %v11234_v52, %v1207_v43 }
 0x154   : > { %v12017_v32 = vadd.f32 %v11972_v57, %v1017_v16  ;;  %v12020_v33 = vadd.f32 %v11972_v57, %v1234_v17  ;;  %v1035_v17 = vadd.f32 %v11972_v57, %v1016_v28 }
 0x156   : > { %v1068_v28 = vmul.f32 0.2, %v12017_v32  ;;  %vm1266_vm12 = vcmp.ge.f32.partialorder %v12020_v33, 0.0  ;;  %vm1052_vm13 = vcmp.ge.f32.partialorder %v12017_v32, 0.0  ;;  %vm1051_vm15 = vcmp.ge.f32.partialorder %v1035_v17, 0.0 }
 0x159   : > { %v990_v44 = vpop.f32.mrf.mxu0  ;;  %v1210_v45 = vpop.f32.mrf.mxu1 }
 0x15a   : > { %v1018_v22 = vmul.f32 %v11234_v52, %v990_v44  ;;  %v1235_v23 = vmul.f32 %v11234_v52, %v1210_v45 }
 0x15c   : > { %v1037_v38 = vadd.f32 %v11972_v57, %v1018_v22  ;;  %v1251_v39 = vadd.f32 %v11972_v57, %v1235_v23 }
 0x15e   : > { %v1283_v23 = vmul.f32 0.2, %v1251_v39  ;;  %vm1267_vm10 = vcmp.ge.f32.partialorder %v1251_v39, 0.0  ;;  %vm1053_vm11 = vcmp.ge.f32.partialorder %v1037_v38, 0.0 }
 0x161   : > { %v992_v46 = vpop.f32.mrf.mxu0  ;;  %v1212_v47 = vpop.f32.mrf.mxu1 }
 0x162   : > { %v1019_v24 = vmul.f32 %v11234_v52, %v992_v46  ;;  %v1236_v25 = vmul.f32 %v11234_v52, %v1212_v47 }
 0x164   : > { %v1038_v42 = vadd.f32 %v11972_v57, %v1019_v24  ;;  %v1252_v43 = vadd.f32 %v11972_v57, %v1236_v25  ;;  %v1069_v24 = vmul.f32 0.2, %v1037_v38 }
 0x166   : > { %v1070_v16 = vmul.f32 0.2, %v1038_v42  ;;  %vm1268_vm8 = vcmp.ge.f32.partialorder %v1252_v43, 0.0  ;;  %vm1054_vm9 = vcmp.ge.f32.partialorder %v1038_v42, 0.0 }
 0x169   : > { %v995_v48 = vpop.f32.mrf.mxu0  ;;  %v1215_v49 = vpop.f32.mrf.mxu1 }
 0x16a   : > { %v1020_v26 = vmul.f32 %v11234_v52, %v995_v48  ;;  %v1237_v27 = vmul.f32 %v11234_v52, %v1215_v49 }
 0x16c   : > { %v1039_v44 = vadd.f32 %v11972_v57, %v1020_v26  ;;  %v1253_v45 = vadd.f32 %v11972_v57, %v1237_v27 }
 0x16e   : > { %v1285_v54 = vmul.f32 0.2, %v1253_v45  ;;  %v1071_v55 = vmul.f32 0.2, %v1039_v44  ;;  %vm1269_vm6 = vcmp.ge.f32.partialorder %v1253_v45, 0.0  ;;  %vm1055_vm7 = vcmp.ge.f32.partialorder %v1039_v44, 0.0 }
 0x170   : > { %v1087_v22 = vsel %vm1055_vm7, %v1039_v44, %v1071_v55  ;;  %v1066_v44 = vmul.f32 0.2, %v12009_v20 }
 0x171   : > { %v997_v50 = vpop.f32.mrf.mxu0  ;;  %v1217_v51 = vpop.f32.mrf.mxu1 }
 0x172   : > { %v1021_v18 = vmul.f32 %v11234_v52, %v997_v50  ;;  %v1238_v19 = vmul.f32 %v11234_v52, %v1217_v51 }
 0x174   : > { %v1040_v34 = vadd.f32 %v11972_v57, %v1021_v18  ;;  %v1254_v35 = vadd.f32 %v11972_v57, %v1238_v19  ;;  %v1249_v18 = vadd.f32 %v11972_v57, %v1233_v29  ;;  %v1301_v19 = vsel %vm1269_vm6, %v1253_v45, %v1285_v54 }
 0x175   : > { %v1033_v29 = vadd.f32 %v11972_v57, %v12004_v12  ;;  %v1084_v12 = vsel %vm1052_vm13, %v12017_v32, %v1068_v28  ;;  %v1031_v45 = vadd.f32 %v11972_v57, %v11994_v8  ;;  %vm1044_vm13 = vcmp.ge.f32.partialorder %v11979_v62, 0.0 }
 0x176   : > { %v1286_v50 = vmul.f32 0.2, %v1254_v35  ;;  %v1072_v51 = vmul.f32 0.2, %v1040_v34  ;;  %vm1270_vm4 = vcmp.ge.f32.partialorder %v1254_v35, 0.0  ;;  %vm1056_vm5 = vcmp.ge.f32.partialorder %v1040_v34, 0.0 }
 0x177   : > { %vm1265_vm14 = vcmp.ge.f32.partialorder %v1249_v18, 0.0  ;;  %v1065_v32 = vmul.f32 0.2, %v1033_v29  ;;  %vm1047_vm7 = vcmp.ge.f32.partialorder %v1031_v45, 0.0 }
 0x178   : > { %v1302_v7 = vsel %vm1270_vm4, %v1254_v35, %v1286_v50  ;;  %v1299_v35 = vsel %vm1267_vm10, %v1251_v39, %v1283_v23  ;;  %v1064_v50 = vmul.f32 0.2, %v11999_v10  ;;  %vm1262_vm4 = vcmp.ge.f32.partialorder %v12002_v11, 0.0 }
 0x179   : > { %v1000_v2 = vpop.f32.mrf.mxu0  ;;  %v1220_v3 = vpop.f32.mrf.mxu1  ;;  %v1311_v25 = vpack.c.bf16 %v1302_v7, %v1301_v19 }
 0x17a   : > { %v1022_v14 = vmul.f32 %v11234_v52, %v1000_v2  ;;  %v1239_v15 = vmul.f32 %v11234_v52, %v1220_v3 }
 0x17c   : > { %v1041_v30 = vadd.f32 %v11972_v57, %v1022_v14  ;;  %v1255_v31 = vadd.f32 %v11972_v57, %v1239_v15  ;;  %v1088_v14 = vsel %vm1056_vm5, %v1040_v34, %v1072_v51  ;;  %v1284_v15 = vmul.f32 0.2, %v1252_v43 }
 0x17d   : > { %v1097_v26 = vpack.c.bf16 %v1088_v14, %v1087_v22  ;;  %v1247_v34 = vadd.f32 %v11972_v57, %v12006_v13  ;;  %v1280_v13 = vmul.f32 0.2, %v12012_v21  ;;  %v1029_v51 = vadd.f32 %v11972_v57, %v11984_v0 }
 0x17e   : > { %v1287_v48 = vmul.f32 0.2, %v1255_v31  ;;  %v1073_v49 = vmul.f32 0.2, %v1041_v30  ;;  %vm1271_vm0 = vcmp.ge.f32.partialorder %v1255_v31, 0.0  ;;  %vm1057_vm1 = vcmp.ge.f32.partialorder %v1041_v30, 0.0 }
 0x17f   : > { %v1300_v27 = vsel %vm1268_vm8, %v1252_v43, %v1284_v15  ;;  %vm1048_vm5 = vcmp.ge.f32.partialorder %v11999_v10, 0.0  ;;  %vm1260_vm8 = vcmp.ge.f32.partialorder %v11992_v5, 0.0 }
 0x180   : > { %v1303_v56 = vsel %vm1271_vm0, %v1255_v31, %v1287_v48  ;;  %v1089_v59 = vsel %vm1057_vm1, %v1041_v30, %v1073_v49  ;;  %v1086_v30 = vsel %vm1054_vm9, %v1038_v42, %v1070_v16  ;;  %v1282_v31 = vmul.f32 0.2, %v12020_v33 }
 0x181   : > { %v1002_v36 = vpop.f32.mrf.mxu0  ;;  %v1222_v37 = vpop.f32.mrf.mxu1  ;;  %vm1264_vm0 = vcmp.ge.f32.partialorder %v12012_v21, 0.0  ;;  %vm1050_vm1 = vcmp.ge.f32.partialorder %v12009_v20, 0.0  ;;  %v1080_v0 = vsel %vm1048_vm5, %v11999_v10, %v1064_v50  ;;  %vm1046_vm9 = vcmp.ge.f32.partialorder %v11989_v4, 0.0  ;;  %v10552_v50 = vld [vmem:[#allocation11 + $0x44] sm:$0xf0] }
 0x182   : > { %v1023_v40 = vmul.f32 %v11234_v52, %v1002_v36  ;;  %v1240_v41 = vmul.f32 %v11234_v52, %v1222_v37  ;;  %v1085_v36 = vsel %vm1053_vm11, %v1037_v38, %v1069_v24  ;;  %v1281_v37 = vmul.f32 0.2, %v1249_v18 }
 0x183   : > { %v1096_v42 = vpack.c.bf16 %v1086_v30, %v1085_v36  ;;  %v1298_v43 = vsel %vm1266_vm12, %v12020_v33, %v1282_v31  ;;  %v1245_v38 = vadd.f32 %v11972_v57, %v11996_v9  ;;  %v1296_v49 = vsel %vm1264_vm0, %v12012_v21, %v1280_v13  ;;  %v10548_v30 = vld [vmem:[#allocation11 + $0x4] sm:$0xf0]  ;;  %v8712_v13 = vld [vmem:[#allocation11 + $0x20] sm:$0xf] }
 0x184   : > { %v1042_v46 = vadd.f32 %v11972_v57, %v1023_v40  ;;  %v1256_v47 = vadd.f32 %v11972_v57, %v1240_v41  ;;  %v1067_v40 = vmul.f32 0.2, %v1035_v17  ;;  %v1310_v41 = vpack.c.bf16 %v1300_v27, %v1299_v35  ;;  %v8704_v27 = vld [vmem:[#allocation11] sm:$0xf] }
 0x185   : > { %v1297_v39 = vsel %vm1265_vm14, %v1249_v18, %v1281_v37  ;;  %v1082_v8 = vsel %vm1050_vm1, %v12009_v20, %v1066_v44  ;;  %v1278_v9 = vmul.f32 0.2, %v12002_v11  ;;  %v1277_v54 = vmul.f32 0.2, %v1245_v38  ;;  %v8684_v37 = vld [vmem:[#allocation11 + $0x14] sm:$0xf] }
 0x186   : > { %vm1272_vm2 = vcmp.ge.f32.partialorder %v1256_v47, 0.0  ;;  %v1288_v52 = vmul.f32 0.2, %v1256_v47  ;;  %vm1058_vm3 = vcmp.ge.f32.partialorder %v1042_v46, 0.0  ;;  %v1074_v53 = vmul.f32 0.2, %v1042_v46 }
 0x187   : > { %v1083_v33 = vsel %vm1051_vm15, %v1035_v17, %v1067_v40  ;;  %v1063_v20 = vmul.f32 0.2, %v1031_v45  ;;  %vm1261_vm6 = vcmp.ge.f32.partialorder %v1245_v38, 0.0  ;;  %v1061_v10 = vmul.f32 0.2, %v1029_v51 }
 0x188   : > { %v1304_v58 = vsel %vm1272_vm2, %v1256_v47, %v1288_v52  ;;  %v1090_v2 = vsel %vm1058_vm3, %v1042_v46, %v1074_v53  ;;  %v1279_v46 = vmul.f32 0.2, %v1247_v34  ;;  %v1309_v47 = vpack.c.bf16 %v1298_v43, %v1297_v39  ;;  %v8708_v40 = vld [vmem:[#allocation11 + $0x10] sm:$0xf]  ;;  %v8688_v43 = vld [vmem:[#allocation11 + $0x24] sm:$0xf] }
 0x189   : > { %v1312_v3 = vpack.c.bf16 %v1304_v58, %v1303_v56  ;;  %v1098_v6 = vpack.c.bf16 %v1090_v2, %v1089_v59  ;;  %v1095_v48 = vpack.c.bf16 %v1084_v12, %v1083_v33  ;;  %vm1263_vm2 = vcmp.ge.f32.partialorder %v1247_v34, 0.0  ;;  %v10564_v12 = vld [vmem:[#allocation11 + $0x28] sm:$0xf0]  ;;  %v10550_v44 = vld [vmem:[#allocation11 + $0x24] sm:$0xf0] }
 0x18a   : > { %vm1049_vm3 = vcmp.ge.f32.partialorder %v1033_v29, 0.0  ;;  %v1243_v52 = vadd.f32 %v11972_v57, %v11986_v1  ;;  %v1295_v53 = vsel %vm1263_vm2, %v1247_v34, %v1279_v46  ;;  %v1294_v58 = vsel %vm1262_vm4, %v12002_v11, %v1278_v9  ;;  %v8692_v39 = vld [vmem:[#allocation11 + $0x34] sm:$0xf]  ;;  %v10565_v33 = vld [vmem:[#allocation11 + $0x38] sm:$0xf0] }
 0x18b   : > { %1366 = vmatpush.bf16.msra.mxu2 %v1312_v3  ;;  %1449 = vmatpush.bf16.msra.mxu3 %v1098_v6  ;;  %v1081_v21 = vsel %vm1049_vm3, %v1033_v29, %v1065_v32  ;;  %v1308_v55 = vpack.c.bf16 %v1296_v49, %v1295_v53  ;;  %v1276_v1 = vmul.f32 0.2, %v11992_v5  ;;  %v1062_v59 = vmul.f32 0.2, %v11989_v4  ;;  %v8716_v46 = vld [vmem:[#allocation11 + $0x30] sm:$0xf] }
 0x18c   : > { %v1094_v56 = vpack.c.bf16 %v1082_v8, %v1081_v21  ;;  %v1027_v2 = vadd.f32 %v11972_v57, %v11974_v60  ;;  %v1241_v3 = vadd.f32 %v11972_v57, %v11976_v61  ;;  %v1293_v6 = vsel %vm1261_vm6, %v1245_v38, %v1277_v54  ;;  %v10551_v32 = vld [vmem:[#allocation11 + $0x34] sm:$0xf0]  ;;  %v8696_v49 = vld [vmem:[#allocation11 + $0x44] sm:$0xf]  ;;  %v10566_v8 = vld [vmem:[#allocation11 + $0x48] sm:$0xf0] }
 0x18d   : > { %v1079_v11 = vsel %vm1047_vm7, %v1031_v45, %v1063_v20  ;;  %v1275_v7 = vmul.f32 0.2, %v1243_v52  ;;  %v1307_v14 = vpack.c.bf16 %v1294_v58, %v1293_v6  ;;  %vm1259_vm10 = vcmp.ge.f32.partialorder %v1243_v52, 0.0  ;;  %v8720_v9 = vld [vmem:[#allocation11 + $0x40] sm:$0xf]  ;;  %v10590_v21 = vld [vmem:[#allocation14 + $0x30] sm:$0xff] }
 0x18e   : > { %v1093_v15 = vpack.c.bf16 %v1080_v0, %v1079_v11  ;;  %vm1045_vm11 = vcmp.ge.f32.partialorder %v1029_v51, 0.0  ;;  %v1292_v16 = vsel %vm1260_vm8, %v11992_v5, %v1276_v1  ;;  %v1078_v60 = vsel %vm1046_vm9, %v11989_v4, %v1062_v59  ;;  %v10591_v53 = vld [vmem:[#allocation14 + $0x38] sm:$0xff]  ;;  %v10589_v54 = vld [vmem:[#allocation14 + $0x28] sm:$0xff]  ;;  %v10553_v58 = vld [vmem:[#allocation11 + $0x54] sm:$0xf0] }
 0x18f   : > { %1367 = vmatpush.bf16.msra.mxu2 %v1311_v25  ;;  %1450 = vmatpush.bf16.msra.mxu3 %v1097_v26  ;;  %v1274_v57 = vmul.f32 0.2, %v11982_v63  ;;  %v1060_v61 = vmul.f32 0.2, %v11979_v62  ;;  %vm1258_vm12 = vcmp.ge.f32.partialorder %v11982_v63, 0.0  ;;  %v1291_v17 = vsel %vm1259_vm10, %v1243_v52, %v1275_v7  ;;  %v10588_v11 = vld [vmem:[#allocation14 + $0x20] sm:$0xff] }
 0x190   : > { %v1077_v18 = vsel %vm1045_vm11, %v1029_v51, %v1061_v10  ;;  %v1273_v19 = vmul.f32 0.2, %v1241_v3  ;;  %v1059_v22 = vmul.f32 0.2, %v1027_v2  ;;  %v1306_v23 = vpack.c.bf16 %v1292_v16, %v1291_v17  ;;  %v8680_v25 = vld [vmem:[#allocation11 + $0x4] sm:$0xf]  ;;  %1971 = vmatpush.bf16.msrb.mxu0 %v10591_v53 }
 0x191   : > { %v1092_v24 = vpack.c.bf16 %v1078_v60, %v1077_v18  ;;  %vm1257_vm14 = vcmp.ge.f32.partialorder %v1241_v3, 0.0  ;;  %vm1043_vm15 = vcmp.ge.f32.partialorder %v1027_v2, 0.0  ;;  %v1290_v4 = vsel %vm1258_vm12, %v11982_v63, %v1274_v57  ;;  %v10562_v26 = vld [vmem:[#allocation11 + $0x8] sm:$0xf0]  ;;  %v10563_v63 = vld [vmem:[#allocation11 + $0x18] sm:$0xf0] }
 0x192   : > { %v1076_v5 = vsel %vm1044_vm13, %v11979_v62, %v1060_v61  ;;  %v1289_v31 = vsel %vm1257_vm14, %v1241_v3, %v1273_v19  ;;  %v1075_v28 = vsel %vm1043_vm15, %v1027_v2, %v1059_v22  ;;  %v8681_v35 = vor.u32 %v10562_v26, %v8680_v25  ;;  %v10549_v62 = vld [vmem:[#allocation11 + $0x14] sm:$0xf0]  ;;  %v8700_v20 = vld [vmem:[#allocation11 + $0x54] sm:$0xf]  ;;  %v1325_v59 = vld [vmem:[#allocation11 + $0x64] sm:$0x7] }
 0x193   : > { %1368 = vmatpush.bf16.msra.mxu2 %v1310_v41  ;;  %1451 = vmatpush.bf16.msra.mxu3 %v1096_v42  ;;  %v1305_v29 = vpack.c.bf16 %v1290_v4, %v1289_v31  ;;  %v1091_v34 = vpack.c.bf16 %v1076_v5, %v1075_v28  ;;  %v8705_v36 = vor.u32 %v10548_v30, %v8704_v27  ;;  %v1111_v2 = vld [vmem:[#allocation11 + $0x60] sm:$0x7]  ;;  %v1351_v3 = vunpack.c.l.b16 %v1325_v59  ;;  %v10585_v16 = vld [vmem:[#allocation14 + $0x8] sm:$0xff]  ;;  %v10584_v57 = vld [vmem:[#allocation14] sm:$0xff] }
 0x194   : > { %v8685_v41 = vor.u32 %v10563_v63, %v8684_v37  ;;  %v8709_v42 = vor.u32 %v10549_v62, %v8708_v40  ;;  %v8689_v45 = vor.u32 %v10564_v12, %v8688_v43  ;;  %v8713_v38 = vor.u32 %v10550_v44, %v8712_v13  ;;  %1972 = vmatpush.bf16.msrb.mxu0 %v10590_v21  ;;  %v10607_v60 = vld [vmem:[#allocation14 + $0xb8] sm:$0xff]  ;;  %v10606_v17 = vld [vmem:[#allocation14 + $0xb0] sm:$0xff]  ;;  %v10605_v22 = vld [vmem:[#allocation14 + $0xa8] sm:$0xff] }
 0x195   : > { %v8697_v51 = vor.u32 %v10566_v8, %v8696_v49  ;;  %v8721_v52 = vor.u32 %v10552_v50, %v8720_v9  ;;  %v1434_v6 = vunpack.c.l.b16 %v1111_v2  ;;  %v1358_v7 = vpack.c.b16 %v1351_v3, %v1351_v3  ;;  %2091 = vmatpush.bf16.msrb.mxu1 %v10607_v60  ;;  %v10599_v61 = vld [vmem:[#allocation14 + $0x78] sm:$0xff]  ;;  %v10598_v19 = vld [vmem:[#allocation14 + $0x70] sm:$0xff]  ;;  %v10596_v4 = vld [vmem:[#allocation14 + $0x60] sm:$0xff] }
 0x196   : > { %v10579_v18 = vld [vmem:[#allocation12 + $0x38] sm:$0xff]  ;;  %v10602_v26 = vld [vmem:[#allocation14 + $0x90] sm:$0xff]  ;;  %v10592_v37 = vld [vmem:[#allocation14 + $0x40] sm:$0xff]  ;;  %vm2026_vm0 = vcmask 1046528   ;;  %vm1786_vm1 = vsmask.f32 7424 }
 0x197   : > { %1369 = vmatpush.bf16.msra.mxu2 %v1309_v47  ;;  %1452 = vmatpush.bf16.msra.mxu3 %v1095_v48  ;;  %v8693_v47 = vor.u32 %v10565_v33, %v8692_v39  ;;  %v8717_v48 = vor.u32 %v10551_v32, %v8716_v46  ;;  %v1441_v10 = vpack.c.b16 %v1434_v6, %v1434_v6  ;;  %v10603_v5 = vld [vmem:[#allocation14 + $0x98] sm:$0xff]  ;;  %v10578_v27 = vld [vmem:[#allocation12 + $0x30] sm:$0xff]  ;;  %v10576_v62 = vld [vmem:[#allocation12 + $0x20] sm:$0xff]  ;;  %vm1573_vm2 = vsmask.f32 6400 }
 0x198   : > { %1973 = vmatpush.bf16.msrb.mxu0 %v10589_v54  ;;  %v10595_v25 = vld [vmem:[#allocation14 + $0x58] sm:$0xff]  ;;  %v10594_v30 = vld [vmem:[#allocation14 + $0x50] sm:$0xff]  ;;  %v10572_v46 = vld [vmem:[#allocation12] sm:$0xff]  ;;  %vm2860_vm3 = vcmask 1044480   ;;  %vm2688_vm4 = vsmask.f32 5376 }
 0x199   : > { %2092 = vmatpush.bf16.msrb.mxu1 %v10606_v17  ;;  %v10575_v12 = vld [vmem:[#allocation12 + $0x18] sm:$0xff]  ;;  %vm2394_vm5 = vcmask 1045504  }
 0x19a   : > { %v10631_v54 = vld [vmem:[#allocation14 + $0x178] sm:$0xff] }
 0x19b   : > { %1370 = vmatpush.bf16.msra.mxu2 %v1308_v55  ;;  %1453 = vmatpush.bf16.msra.mxu3 %v1094_v56  ;;  %v10567_v55 = vld [vmem:[#allocation11 + $0x58] sm:$0xf0]  ;;  %v8724_v56 = vld [vmem:[#allocation11 + $0x50] sm:$0xf] }
 0x19c   : > { %v8701_v0 = vor.u32 %v10567_v55, %v8700_v20  ;;  %v8725_v1 = vor.u32 %v10553_v58, %v8724_v56  ;;  %1974 = vmatpush.bf16.msrb.mxu0 %v10588_v11 }
 0x19d   : > { %2093 = vmatpush.bf16.msrb.mxu1 %v10605_v22 }
 0x19f   : > { %1371 = vmatpush.bf16.msra.mxu2 %v1307_v14  ;;  %1454 = vmatpush.bf16.msra.mxu3 %v1093_v15  ;;  %v10587_v14 = vld [vmem:[#allocation14 + $0x18] sm:$0xff]  ;;  %v10586_v15 = vld [vmem:[#allocation14 + $0x10] sm:$0xff] }
 0x1a0   : > { %1975 = vmatpush.bf16.msrb.mxu0 %v10587_v14 }
 0x1a3   : > { %1372 = vmatpush.bf16.msra.mxu2 %v1306_v23  ;;  %1455 = vmatpush.bf16.msra.mxu3 %v1092_v24  ;;  %v10597_v23 = vld [vmem:[#allocation14 + $0x68] sm:$0xff]  ;;  %v10604_v24 = vld [vmem:[#allocation14 + $0xa0] sm:$0xff] }
 0x1a4   : > { %1976 = vmatpush.bf16.msrb.mxu0 %v10586_v15  ;;  %2094 = vmatpush.bf16.msrb.mxu1 %v10604_v24 }
 0x1a7   : > { %1373 = vmatpush.bf16.msra.mxu2 %v1305_v29  ;;  %1456 = vmatpush.bf16.msra.mxu3 %v1091_v34  ;;  %v10601_v29 = vld [vmem:[#allocation14 + $0x88] sm:$0xff] }
 0x1a8   : > { %1977 = vmatpush.bf16.msrb.mxu0 %v10585_v16  ;;  %2095 = vmatpush.bf16.msrb.mxu1 %v10603_v5  ;;  %v10593_v34 = vld [vmem:[#allocation14 + $0x48] sm:$0xff]  ;;  %v10630_v16 = vld [vmem:[#allocation14 + $0x170] sm:$0xff] }
 0x1aa   : > { %1374 = vmatmul.bf16.vlgmr.msra.gmra.mxu2 %v8681_v35  ;;  %1457 = vmatmul.bf16.vlgmr.msra.gmra.mxu3 %v8705_v36  ;;  %v10577_v35 = vld [vmem:[#allocation12 + $0x28] sm:$0xff]  ;;  %v10600_v36 = vld [vmem:[#allocation14 + $0x80] sm:$0xff] }
 0x1ab   : > { %1884 = vmatpush.bf16.msrb.mxu3 %v10599_v61  ;;  %1680 = vmatpush.bf16.msrb.mxu2 %v10579_v18 }
 0x1ac   : > { %1978 = vmatpush.bf16.msrb.mxu0 %v10584_v57  ;;  %2096 = vmatpush.bf16.msrb.mxu1 %v10602_v26 }
 0x1af   : > { %1885 = vmatpush.bf16.msrb.mxu3 %v10598_v19  ;;  %1681 = vmatpush.bf16.msrb.mxu2 %v10578_v27  ;;  %v10628_v27 = vld [vmem:[#allocation14 + $0x160] sm:$0xff] }
 0x1b0   : > { %2097 = vmatpush.bf16.msrb.mxu1 %v10601_v29  ;;  %2459 = vmatpush.bf16.msra.mxu0 %v10631_v54 }
 0x1b3   : > { %1886 = vmatpush.bf16.msrb.mxu3 %v10597_v23  ;;  %1682 = vmatpush.bf16.msrb.mxu2 %v10577_v35  ;;  %v10629_v23 = vld [vmem:[#allocation14 + $0x168] sm:$0xff] }
 0x1b4   : > { %2098 = vmatpush.bf16.msrb.mxu1 %v10600_v36  ;;  %2460 = vmatpush.bf16.msra.mxu0 %v10630_v16 }
 0x1b7   : > { %1887 = vmatpush.bf16.msrb.mxu3 %v10596_v4  ;;  %1683 = vmatpush.bf16.msrb.mxu2 %v10576_v62 }
 0x1b8   : > { %2461 = vmatpush.bf16.msra.mxu0 %v10629_v23  ;;  %v10641_v23 = vld [vmem:[#allocation14 + $0x1a8] sm:$0xff] }
 0x1ba   : > { %1379 = vmatmul.bf16.gmra.mxu2 %v8685_v41  ;;  %1462 = vmatmul.bf16.gmra.mxu3 %v8709_v42 }
 0x1bb   : > { %1888 = vmatpush.bf16.msrb.mxu3 %v10595_v25  ;;  %1684 = vmatpush.bf16.msrb.mxu2 %v10575_v12 }
 0x1bc   : > { %2462 = vmatpush.bf16.msra.mxu0 %v10628_v27 }
 0x1bf   : > { %1889 = vmatpush.bf16.msrb.mxu3 %v10594_v30 }
 0x1c3   : > { %1890 = vmatpush.bf16.msrb.mxu3 %v10593_v34 }
 0x1c7   : > { %1891 = vmatpush.bf16.msrb.mxu3 %v10592_v37 }
 0x1ca   : > { %1384 = vmatmul.bf16.gmra.mxu2 %v8689_v45  ;;  %1467 = vmatmul.bf16.gmra.mxu3 %v8713_v38  ;;  %v10574_v45 = vld [vmem:[#allocation12 + $0x10] sm:$0xff]  ;;  %v10573_v38 = vld [vmem:[#allocation12 + $0x8] sm:$0xff] }
 0x1cb   : > { %1685 = vmatpush.bf16.msrb.mxu2 %v10574_v45 }
 0x1cf   : > { %1686 = vmatpush.bf16.msrb.mxu2 %v10573_v38 }
 0x1d3   : > { %1687 = vmatpush.bf16.msrb.mxu2 %v10572_v46 }
 0x1da   : > { %1389 = vmatmul.bf16.gmra.mxu2 %v8693_v47  ;;  %1472 = vmatmul.bf16.gmra.mxu3 %v8717_v48 }
 0x1ea   : > { %1394 = vmatmul.bf16.gmra.mxu2 %v8697_v51  ;;  %1477 = vmatmul.bf16.gmra.mxu3 %v8721_v52 }
 0x1fa   : > { %1399 = vmatmul.bf16.gmra.mxu2 %v8701_v0  ;;  %1482 = vmatmul.bf16.gmra.mxu3 %v8725_v1 }
 0x20a   : > { %1404 = vmatmul.bf16.gmra.mxu2 %v1358_v7  ;;  %1487 = vmatmul.bf16.gmra.mxu3 %v1441_v10 }
 0x22d   : > { %v1375_v31 = vpop.f32.mrf.mxu2  ;;  %v1458_v28 = vpop.f32.mrf.mxu3 }
 0x22e   : > { %v1459_v41 = vadd.f32 %v1458_v28, %v1375_v31 }
 0x235   : > { %v1377_v63 = vpop.f32.mrf.mxu2  ;;  %v1460_v40 = vpop.f32.mrf.mxu3 }
 0x236   : > { %v1461_v42 = vadd.f32 %v1460_v40, %v1377_v63 }
 0x238   : > { %v11021_v43 = vpack.c.bf16 %v1461_v42, %v1459_v41 }
 0x23a   : > { %11022 = vst [vmem:[#allocation2] sm:$0xff] %v11021_v43   ;;  %1979 = vmatmul.bf16.vlgmr.msrb.gmra.mxu0 %v11021_v43  ;;  %v1790_v9 = vshll.u32 %v11021_v43, 16  ;;  %v1788_v20 = vshrl.u32 %v11021_v43, 16  ;;  %v10627_v43 = vld [vmem:[#allocation14 + $0x158] sm:$0xff] }
 0x23b   : > { %2463 = vmatpush.bf16.msra.mxu0 %v10627_v43 }
 0x23c   : > { %v1792_v53 = vrot.slane %v1790_v9, 1 }
 0x23d   : > { %v1380_v13 = vpop.f32.mrf.mxu2  ;;  %v1463_v44 = vpop.f32.mrf.mxu3 }
 0x23e   : > { %v1464_v32 = vadd.f32 %v1463_v44, %v1380_v13  ;;  %v1793_v1 = vor.u32 %v1792_v53, %v1788_v20  ;;  %v10626_v53 = vld [vmem:[#allocation14 + $0x150] sm:$0xff] }
 0x23f   : > { %2464 = vmatpush.bf16.msra.mxu0 %v10626_v53  ;;  %v10619_v53 = vld [vmem:[#allocation14 + $0x118] sm:$0xff] }
 0x241   : > { %v11083_v49 = vld [vmem:[#allocation2] sm:$0xf0]  ;;  %v11084_v8 = vld [vmem:[#allocation2] sm:$0xe] }
 0x242   : > { %v11085_v52 = vor.u32 %v11084_v8, %v11083_v49  ;;  %v1518_v11 = vld [vmem:[#allocation2 + $0x4] sm:$0xe] }
 0x243   : > { %v1556_v61 = vunpack.c.l.b16 %v1518_v11 }
 0x244   : > { %v2027_v55 = vrot.slane %v11085_v52, 1 }
 0x245   : > { %v1382_v39 = vpop.f32.mrf.mxu2  ;;  %v1465_v33 = vpop.f32.mrf.mxu3 }
 0x246   : > { %v1466_v47 = vadd.f32 %v1465_v33, %v1382_v39 }
 0x248   : > { %v11026_v48 = vpack.c.bf16 %v1466_v47, %v1464_v32 }
 0x24a   : > { %11078 = vst [vmem:[#allocation2 + $0x8] sm:$0xff] %v11026_v48  }
 0x24d   : > { %v1385_v50 = vpop.f32.mrf.mxu2  ;;  %v1468_v51 = vpop.f32.mrf.mxu3 }
 0x24e   : > { %v1469_v7 = vadd.f32 %v1468_v51, %v1385_v50 }
 0x251   : > { %v12080_v21 = vld [vmem:[#allocation2 + $0x8] sm:$0xff] }
 0x252   : > { %1984 = vmatmul.bf16.gmra.mxu0 %v12080_v21  ;;  %v2028_v56 = vrot.slane %v12080_v21, 1  ;;  %v1795_v58 = vshll.u32 %v12080_v21, 16  ;;  %v12085_v0 = vld [vmem:[#allocation2 + $0x8] sm:$0xff]   ;;  %v1799_v31 = vshrl.u32 %v12080_v21, 16 }
 0x253   : > { %v1557_v14 = vunpack.c.l.b16 %v12085_v0  ;;  %v2503_v60 = vld [vmem:[#allocation2 + $0x8] sm:$0xc]  ;;  %v2543_v22 = vunpack.c.h.b16 %v12085_v0 }
 0x254   : > { %v2029_v3 = vsel %vm2026_vm0, %v2027_v55, %v2028_v56  ;;  %v1797_v6 = vrot.slane %v1795_v58, 1  ;;  %v2839_v17 = vld [vmem:[#allocation2 + $0x8] sm:$0x8]  ;;  %v2542_v19 = vunpack.c.l.b16 %v2503_v60 }
 0x255   : > { %v1387_v59 = vpop.f32.mrf.mxu2  ;;  %v1470_v2 = vpop.f32.mrf.mxu3  ;;  %2099 = vmatmul.bf16.vlgmr.msrb.gmra.mxu1 %v2029_v3  ;;  %v1567_v18 = vpack.c.b16 %v1557_v14, %v1556_v61  ;;  %v2858_v24 = vunpack.c.l.b16 %v2839_v17  ;;  %v10623_v3 = vld [vmem:[#allocation14 + $0x138] sm:$0xff]  ;;  %v10622_v17 = vld [vmem:[#allocation14 + $0x130] sm:$0xff] }
 0x256   : > { %v1471_v10 = vadd.f32 %v1470_v2, %v1387_v59  ;;  %v1798_v15 = vsel %vm1786_vm1, %v1793_v1, %v1797_v6  ;;  %v12093_v30 = vpack.c.b16 %v2543_v22, %v2542_v19  ;;  %v1801_v35 = vor.u32 %v1799_v31, %v1797_v6  ;;  %v10643_v59 = vld [vmem:[#allocation14 + $0x1b8] sm:$0xff]  ;;  %2329 = vmatpush.bf16.msra.mxu3 %v10623_v3  ;;  %v10640_v31 = vld [vmem:[#allocation14 + $0x1a0] sm:$0xff]  ;;  %v10613_v3 = vld [vmem:[#allocation14 + $0xe8] sm:$0xff] }
 0x257   : > { %1892 = vmatmul.bf16.vlgmr.msrb.gmra.mxu3 %v1798_v15  ;;  %v1575_v25 = vshrl.u32 %v1567_v18, 16  ;;  %v1578_v26 = vshll.u32 %v1567_v18, 16  ;;  %v2859_v28 = vpack.c.b16 %v2543_v22, %v2858_v24  ;;  %v2156_v13 = vrot.slane %v1567_v18, 1  ;;  %2623 = vmatpush.bf16.msra.mxu1 %v10643_v59  ;;  %v10624_v18 = vld [vmem:[#allocation14 + $0x140] sm:$0xff]  ;;  %v10637_v59 = vld [vmem:[#allocation14 + $0x188] sm:$0xff] }
 0x258   : > { %v11031_v57 = vpack.c.bf16 %v1471_v10, %v1469_v7  ;;  %v2690_v63 = vshrl.u32 %v12093_v30, 16  ;;  %v2693_v38 = vshll.u32 %v12093_v30, 16  ;;  %v10625_v7 = vld [vmem:[#allocation14 + $0x148] sm:$0xff] }
 0x259   : > { %v1577_v36 = vrot.slane %v1575_v25, 1  ;;  %v1580_v37 = vrot.slane %v1578_v26, 2  ;;  %v2861_v45 = vrot.slane %v2859_v28, 3  ;;  %2465 = vmatpush.bf16.msra.mxu0 %v10625_v7  ;;  %v10617_v7 = vld [vmem:[#allocation14 + $0x108] sm:$0xff] }
 0x25a   : > { %11079 = vst [vmem:[#allocation2 + $0x10] sm:$0xff] %v11031_v57   ;;  %v2692_v54 = vrot.slane %v2690_v63, 2  ;;  %v2695_v55 = vrot.slane %v2693_v38, 3  ;;  %v10642_v57 = vld [vmem:[#allocation14 + $0x1b0] sm:$0xff]  ;;  %2330 = vmatpush.bf16.msra.mxu3 %v10622_v17  ;;  %v10636_v17 = vld [vmem:[#allocation14 + $0x180] sm:$0xff] }
 0x25b   : > { %v1581_v9 = vor.u32 %v1580_v37, %v1577_v36  ;;  %2624 = vmatpush.bf16.msra.mxu1 %v10642_v57 }
 0x25c   : > { %v2696_v10 = vor.u32 %v2695_v55, %v2692_v54  ;;  %v10638_v54 = vld [vmem:[#allocation14 + $0x190] sm:$0xff] }
 0x25d   : > { %v1390_v4 = vpop.f32.mrf.mxu2  ;;  %v1473_v5 = vpop.f32.mrf.mxu3  ;;  %2466 = vmatpush.bf16.msra.mxu0 %v10624_v18 }
 0x25e   : > { %v1474_v49 = vadd.f32 %v1473_v5, %v1390_v4  ;;  %v10621_v4 = vld [vmem:[#allocation14 + $0x128] sm:$0xff] }
 0x25f   : > { %2625 = vmatpush.bf16.msra.mxu1 %v10641_v23  ;;  %2331 = vmatpush.bf16.msra.mxu3 %v10621_v4 }
 0x261   : > { %v12096_v29 = vld [vmem:[#allocation2 + $0x10] sm:$0xff] }
 0x262   : > { %v12098_v34 = vld [vmem:[#allocation2 + $0xc] sm:$0xff]  ;;  %1989 = vmatmul.bf16.gmra.mxu0 %v12096_v29  ;;  %v2030_v40 = vrot.slane %v12096_v29, 1  ;;  %v1803_v62 = vshll.u32 %v12096_v29, 16  ;;  %v1807_v24 = vshrl.u32 %v12096_v29, 16 }
 0x263   : > { %v1583_v41 = vshrl.u32 %v12098_v34, 16  ;;  %v1586_v42 = vshll.u32 %v12098_v34, 16  ;;  %v12106_v12 = vld [vmem:[#allocation2 + $0x10] sm:$0xff]  ;;  %v2157_v44 = vrot.slane %v12098_v34, 1  ;;  %2626 = vmatpush.bf16.msra.mxu1 %v10640_v31 }
 0x264   : > { %v2031_v46 = vsel %vm2026_vm0, %v2028_v56, %v2030_v40  ;;  %v1805_v32 = vrot.slane %v1803_v62, 1  ;;  %v2862_v21 = vrot.slane %v12106_v12, 3  ;;  %v2698_v56 = vshrl.u32 %v12106_v12, 16 }
 0x265   : > { %v1392_v39 = vpop.f32.mrf.mxu2  ;;  %v1475_v33 = vpop.f32.mrf.mxu3  ;;  %v1585_v47 = vrot.slane %v1583_v41, 1  ;;  %v1588_v48 = vrot.slane %v1586_v42, 2  ;;  %2104 = vmatmul.bf16.gmra.mxu1 %v2031_v46  ;;  %v12116_v50 = vsel %vm2026_vm0, %v2156_v13, %v2157_v44  ;;  %v2701_v58 = vshll.u32 %v12106_v12, 16  ;;  %v10620_v13 = vld [vmem:[#allocation14 + $0x120] sm:$0xff] }
 0x266   : > { %v1476_v8 = vadd.f32 %v1475_v33, %v1392_v39  ;;  %v1806_v51 = vsel %vm1786_vm1, %v1801_v35, %v1805_v32  ;;  %v12131_v2 = vsel %vm2860_vm3, %v2861_v45, %v2862_v21  ;;  %v2700_v6 = vrot.slane %v2698_v56, 2  ;;  %2332 = vmatpush.bf16.msra.mxu3 %v10620_v13 }
 0x267   : > { %v12119_v52 = vor.u32 %v1588_v48, %v1585_v47  ;;  %1897 = vmatmul.bf16.gmra.mxu3 %v1806_v51  ;;  %v2703_v11 = vrot.slane %v2701_v58, 3  ;;  %v1809_v35 = vor.u32 %v1807_v24, %v1805_v32  ;;  %v10618_v58 = vld [vmem:[#allocation14 + $0x110] sm:$0xff]  ;;  %v10612_v24 = vld [vmem:[#allocation14 + $0xe0] sm:$0xff] }
 0x268   : > { %v11036_v20 = vpack.c.bf16 %v1476_v8, %v1474_v49  ;;  %v10615_v8 = vld [vmem:[#allocation14 + $0xf8] sm:$0xff] }
 0x269   : > { %v12126_v1 = vsel %vm1573_vm2, %v1581_v9, %v12119_v52  ;;  %v12134_v15 = vor.u32 %v2703_v11, %v2700_v6  ;;  %2220 = vmatpush.bf16.msra.mxu2 %v10615_v8 }
 0x26a   : > { %11080 = vst [vmem:[#allocation2 + $0x18] sm:$0xff] %v11036_v20   ;;  %1688 = vmatmul.bf16.vlgmr.msrb.gmra.mxu2 %v12126_v1  ;;  %2333 = vmatpush.bf16.msra.mxu3 %v10619_v53 }
 0x26b   : > { %v12138_v61 = vsel %vm2688_vm4, %v2696_v10, %v12134_v15 }
 0x26d   : > { %v1395_v16 = vpop.f32.mrf.mxu2  ;;  %v1478_v60 = vpop.f32.mrf.mxu3 }
 0x26e   : > { %v1479_v45 = vadd.f32 %v1478_v60, %v1395_v16  ;;  %2334 = vmatpush.bf16.msra.mxu3 %v10618_v58 }
 0x271   : > { %v12140_v19 = vld [vmem:[#allocation2 + $0x18] sm:$0xff] }
 0x272   : > { %v12142_v22 = vld [vmem:[#allocation2 + $0x14] sm:$0xff]  ;;  %1994 = vmatmul.bf16.gmra.mxu0 %v12140_v19  ;;  %v2032_v5 = vrot.slane %v12140_v19, 1  ;;  %v1811_v25 = vshll.u32 %v12140_v19, 16  ;;  %v1815_v10 = vshrl.u32 %v12140_v19, 16  ;;  %2335 = vmatpush.bf16.msra.mxu3 %v10617_v7 }
 0x273   : > { %v1592_v26 = vshrl.u32 %v12142_v22, 16  ;;  %v1595_v27 = vshll.u32 %v12142_v22, 16  ;;  %v12150_v28 = vld [vmem:[#allocation2 + $0x18] sm:$0xff]  ;;  %v2159_v36 = vrot.slane %v12142_v22, 1 }
 0x274   : > { %v2033_v62 = vsel %vm2026_vm0, %v2030_v40, %v2032_v5  ;;  %v1813_v41 = vrot.slane %v1811_v25, 1  ;;  %v2864_v40 = vrot.slane %v12150_v28, 3  ;;  %v2707_v32 = vshrl.u32 %v12150_v28, 16 }
 0x275   : > { %v1397_v37 = vpop.f32.mrf.mxu2  ;;  %v1480_v63 = vpop.f32.mrf.mxu3  ;;  %v1594_v42 = vrot.slane %v1592_v26, 1  ;;  %v1597_v43 = vrot.slane %v1595_v27, 2  ;;  %2109 = vmatmul.bf16.gmra.mxu1 %v2033_v62  ;;  %v12163_v39 = vsel %vm2026_vm0, %v2157_v44, %v2159_v36  ;;  %v2710_v47 = vshll.u32 %v12150_v28, 16  ;;  %v10639_v44 = vld [vmem:[#allocation14 + $0x198] sm:$0xff] }
 0x276   : > { %v1481_v38 = vadd.f32 %v1480_v63, %v1397_v37  ;;  %v1814_v33 = vsel %vm1786_vm1, %v1809_v35, %v1813_v41  ;;  %v12181_v49 = vsel %vm2860_vm3, %v2862_v21, %v2864_v40  ;;  %v2709_v9 = vrot.slane %v2707_v32, 2  ;;  %2627 = vmatpush.bf16.msra.mxu1 %v10639_v44  ;;  %v10616_v63 = vld [vmem:[#allocation14 + $0x100] sm:$0xff] }
 0x277   : > { %v12166_v29 = vor.u32 %v1597_v43, %v1594_v42  ;;  %1902 = vmatmul.bf16.gmra.mxu3 %v1814_v33  ;;  %v2712_v51 = vrot.slane %v2710_v47, 3  ;;  %v1817_v23 = vor.u32 %v1815_v10, %v1813_v41  ;;  %v2373_v43 = vld [vmem:[#allocation2 + $0x4] sm:$0xc]  ;;  %v10611_v47 = vld [vmem:[#allocation14 + $0xd8] sm:$0xff] }
 0x278   : > { %v11041_v46 = vpack.c.bf16 %v1481_v38, %v1479_v45  ;;  %2336 = vmatpush.bf16.msra.mxu3 %v10616_v63  ;;  %v2392_v32 = vunpack.c.l.b16 %v2373_v43 }
 0x279   : > { %v12174_v48 = vsel %vm1573_vm2, %v12119_v52, %v12166_v29  ;;  %v10614_v52 = vld [vmem:[#allocation14 + $0xf0] sm:$0xff]  ;;  %v12184_v20 = vor.u32 %v2712_v51, %v2709_v9 }
 0x27a   : > { %11081 = vst [vmem:[#allocation2 + $0x20] sm:$0xff] %v11041_v46   ;;  %1693 = vmatmul.bf16.gmra.mxu2 %v12174_v48  ;;  %2628 = vmatpush.bf16.msra.mxu1 %v10638_v54  ;;  %v2393_v9 = vpack.c.b16 %v1557_v14, %v2392_v32 }
 0x27b   : > { %v12189_v21 = vsel %vm2688_vm4, %v12134_v15, %v12184_v20  ;;  %2221 = vmatpush.bf16.msra.mxu2 %v10614_v52 }
 0x27c   : > { %v2395_v58 = vrot.slane %v2393_v9, 2  ;;  %v2398_v9 = vrot.slane %v12142_v22, 2 }
 0x27d   : > { %v1400_v55 = vpop.f32.mrf.mxu2  ;;  %v1483_v56 = vpop.f32.mrf.mxu3 }
 0x27e   : > { %2629 = vmatpush.bf16.msra.mxu1 %v10637_v59  ;;  %v1484_v62 = vadd.f32 %v1483_v56, %v1400_v55  ;;  %v2396_v55 = vrot.slane %v12098_v34, 2  ;;  %v10609_v59 = vld [vmem:[#allocation14 + $0xc8] sm:$0xff] }
 0x27f   : > { %2222 = vmatpush.bf16.msra.mxu2 %v10613_v3 }
 0x280   : > { %v2397_v14 = vsel %vm2394_vm5, %v2395_v58, %v2396_v55 }
 0x281   : > { %v12191_v6 = vld [vmem:[#allocation2 + $0x20] sm:$0xff] }
 0x282   : > { %v12193_v11 = vld [vmem:[#allocation2 + $0x1c] sm:$0xff]  ;;  %1999 = vmatmul.bf16.gmra.mxu0 %v12191_v6  ;;  %v2034_v16 = vrot.slane %v12191_v6, 1  ;;  %v1819_v60 = vshll.u32 %v12191_v6, 16  ;;  %2630 = vmatpush.bf16.msra.mxu1 %v10636_v17  ;;  %v1823_v63 = vshrl.u32 %v12191_v6, 16 }
 0x283   : > { %v1601_v15 = vshrl.u32 %v12193_v11, 16  ;;  %v1604_v57 = vshll.u32 %v12193_v11, 16  ;;  %v12201_v18 = vld [vmem:[#allocation2 + $0x20] sm:$0xff]  ;;  %v2161_v4 = vrot.slane %v12193_v11, 1  ;;  %2223 = vmatpush.bf16.msra.mxu2 %v10612_v24 }
 0x284   : > { %v2035_v27 = vsel %vm2026_vm0, %v2032_v5, %v2034_v16  ;;  %v12209_v31 = vrot.slane %v1819_v60, 1  ;;  %v2866_v13 = vrot.slane %v12201_v18, 3  ;;  %v2716_v38 = vshrl.u32 %v12201_v18, 16 }
 0x285   : > { %v1402_v25 = vpop.f32.mrf.mxu2  ;;  %v1485_v26 = vpop.f32.mrf.mxu3  ;;  %v1603_v35 = vrot.slane %v1601_v15, 1  ;;  %v1606_v37 = vrot.slane %v1604_v57, 2  ;;  %2114 = vmatmul.bf16.gmra.mxu1 %v2035_v27  ;;  %v12216_v42 = vsel %vm2026_vm0, %v2159_v36, %v2161_v4  ;;  %v2719_v33 = vshll.u32 %v12201_v18, 16  ;;  %v10608_v57 = vld [vmem:[#allocation14 + $0xc0] sm:$0xff] }
 0x286   : > { %v1486_v41 = vadd.f32 %v1485_v26, %v1402_v25  ;;  %v1822_v19 = vsel %vm1786_vm1, %v1817_v23, %v12209_v31  ;;  %v12232_v36 = vsel %vm2860_vm3, %v2864_v40, %v2866_v13  ;;  %v2718_v44 = vrot.slane %v2716_v38, 2 }
 0x287   : > { %v1607_v5 = vor.u32 %v1606_v37, %v1603_v35  ;;  %1907 = vmatmul.bf16.gmra.mxu3 %v1822_v19  ;;  %v2721_v8 = vrot.slane %v2719_v33, 3  ;;  %2224 = vmatpush.bf16.msra.mxu2 %v10611_v47  ;;  %v1825_v43 = vor.u32 %v1823_v63, %v12209_v31 }
 0x288   : > { %v11046_v45 = vpack.c.bf16 %v1486_v41, %v1484_v62 }
 0x289   : > { %v12225_v46 = vsel %vm1573_vm2, %v12166_v29, %v1607_v5  ;;  %v10610_v29 = vld [vmem:[#allocation14 + $0xd0] sm:$0xff]  ;;  %v2722_v51 = vor.u32 %v2721_v8, %v2718_v44 }
 0x28a   : > { %11082 = vst [vmem:[#allocation2 + $0x28] sm:$0xff] %v11046_v45   ;;  %1698 = vmatmul.bf16.gmra.mxu2 %v12225_v46 }
 0x28b   : > { %v12240_v40 = vsel %vm2688_vm4, %v12184_v20, %v2722_v51  ;;  %2225 = vmatpush.bf16.msra.mxu2 %v10610_v29 }
 0x28d   : > { %v1405_v53 = vpop.f32.mrf.mxu2  ;;  %v1488_v54 = vpop.f32.mrf.mxu3 }
 0x28e   : > { %v1489_v52 = vadd.f32 %v1488_v54, %v1405_v53 }
 0x28f   : > { %2226 = vmatpush.bf16.msra.mxu2 %v10609_v59  ;;  %v2559_v59 = vrot.slane %v12093_v30, 2  ;;  %v10659_v30 = vld [vmem:[#allocation14 + $0x238] sm:$0xff] }
 0x290   : > { %v1504_v56 = vpack.c.bf16 %v1489_v52, %v1489_v52  ;;  %2925 = vmatpush.bf16.msrb.mxu3 %v10659_v30 }
 0x291   : > { %v1740_v3 = vld [vmem:[#allocation2 + $0x28] sm:$0x1]  ;;  %v1528_v10 = vld [vmem:[#allocation2 + $0x2c] sm:$0x3] }
 0x292   : > { %v12242_v0 = vld [vmem:[#allocation2 + $0x24] sm:$0xff]  ;;  %1517 = vst [vmem:[#allocation2 + $0x30] sm:$0x7] %v1504_v56  ;;  %v1779_v7 = vunpack.c.l.b16 %v1740_v3  ;;  %2467 = vmatmul.bf16.vlgmr.msra.gmra.mxu0 %v2397_v14  ;;  %v1566_v24 = vunpack.c.l.b16 %v1528_v10  ;;  %v2399_v56 = vsel %vm2394_vm5, %v2396_v55, %v2398_v9 }
 0x293   : > { %v1610_v34 = vshrl.u32 %v12242_v0, 16  ;;  %v1613_v60 = vshll.u32 %v12242_v0, 16  ;;  %v2163_v20 = vrot.slane %v12242_v0, 1  ;;  %v12248_v26 = vld [vmem:[#allocation2 + $0x28] sm:$0xff]  ;;  %2227 = vmatpush.bf16.msra.mxu2 %v10608_v57 }
 0x294   : > { %v1785_v15 = vpack.c.b16 %v1779_v7, %v1779_v7  ;;  %v1572_v33 = vpack.c.b16 %v1566_v24, %v1566_v24  ;;  %v2725_v47 = vshrl.u32 %v12248_v26, 16  ;;  %v2402_v7 = vrot.slane %v12242_v0, 2  ;;  %v10658_v10 = vld [vmem:[#allocation14 + $0x230] sm:$0xff] }
 0x295   : > { %v1612_v17 = vrot.slane %v1610_v34, 1  ;;  %v1615_v23 = vrot.slane %v1613_v60, 2  ;;  %v1490_v25 = vpop.f32.mrf.mxu3  ;;  %v1407_v27 = vpop.f32.mrf.mxu2  ;;  %v12255_v35 = vsel %vm2026_vm0, %v2161_v4, %v2163_v20  ;;  %v2868_v4 = vrot.slane %v12248_v26, 3  ;;  %2926 = vmatpush.bf16.msrb.mxu3 %v10658_v10  ;;  %v10657_v34 = vld [vmem:[#allocation14 + $0x228] sm:$0xff] }
 0x296   : > { %v2036_v37 = vrot.slane %v1785_v15, 1  ;;  %v1827_v62 = vshll.u32 %v1785_v15, 16  ;;  %v2727_v31 = vrot.slane %v2725_v47, 2  ;;  %v1622_v44 = vshll.u32 %v1572_v33, 16  ;;  %v10650_v15 = vld [vmem:[#allocation14 + $0x1f0] sm:$0xff]  ;;  %v10649_v25 = vld [vmem:[#allocation14 + $0x1e8] sm:$0xff] }
 0x297   : > { %v1616_v41 = vor.u32 %v1615_v23, %v1612_v17  ;;  %v12274_v6 = vsel %vm2860_vm3, %v2866_v13, %v2868_v4  ;;  %v2560_v13 = vrot.slane %v12106_v12, 2  ;;  %v2562_v12 = vrot.slane %v12150_v28, 2  ;;  %v10656_v28 = vld [vmem:[#allocation14 + $0x220] sm:$0xff]  ;;  %v10654_v17 = vld [vmem:[#allocation14 + $0x210] sm:$0xff]  ;;  %v10653_v27 = vld [vmem:[#allocation14 + $0x208] sm:$0xff] }
 0x298   : > { %v2037_v19 = vsel %vm2026_vm0, %v2034_v16, %v2036_v37  ;;  %v1829_v45 = vrot.slane %v1827_v62, 1  ;;  %v2728_v16 = vshll.u32 %v12248_v26, 16  ;;  %v1624_v54 = vrot.slane %v1622_v44, 2  ;;  %v10652_v37 = vld [vmem:[#allocation14 + $0x200] sm:$0xff]  ;;  %v10646_v47 = vld [vmem:[#allocation14 + $0x1d0] sm:$0xff] }
 0x299   : > { %2119 = vmatmul.bf16.gmra.mxu1 %v2037_v19  ;;  %v12263_v38 = vsel %vm1573_vm2, %v1607_v5, %v1616_v41  ;;  %v1619_v5 = vshrl.u32 %v1572_v33, 16  ;;  %v2561_v3 = vsel %vm2394_vm5, %v2559_v59, %v2560_v13  ;;  %v2563_v14 = vsel %vm2394_vm5, %v2560_v13, %v2562_v12  ;;  %2927 = vmatpush.bf16.msrb.mxu3 %v10657_v34  ;;  %v2513_v62 = vld [vmem:[#allocation2 + $0x30] sm:$0x3] }
 0x29a   : > { %1703 = vmatmul.bf16.gmra.mxu2 %v12263_v38  ;;  %v1830_v32 = vsel %vm1786_vm1, %v1825_v43, %v1829_v45  ;;  %v2730_v8 = vrot.slane %v2728_v16, 3  ;;  %v2404_v57 = vrot.slane %v1572_v33, 2  ;;  %v2552_v33 = vunpack.c.l.b16 %v2513_v62 }
 0x29b   : > { %1912 = vmatmul.bf16.gmra.mxu3 %v1830_v32  ;;  %v1621_v53 = vrot.slane %v1619_v5, 1  ;;  %v10647_v32 = vld [vmem:[#allocation14 + $0x1d8] sm:$0xff] }
 0x29c   : > { %v12278_v29 = vor.u32 %v2730_v8, %v2727_v31  ;;  %v2558_v31 = vpack.c.b16 %v2552_v33, %v2552_v33 }
 0x29d   : > { %v1625_v58 = vor.u32 %v1624_v54, %v1621_v53  ;;  %2928 = vmatpush.bf16.msrb.mxu3 %v10656_v28  ;;  %v2135_v54 = vld [vmem:[#allocation2 + $0x2c] sm:$0x1] }
 0x29e   : > { %v12282_v52 = vsel %vm2688_vm4, %v2722_v51, %v12278_v29  ;;  %v2400_v51 = vrot.slane %v12193_v11, 2  ;;  %v2564_v11 = vrot.slane %v12201_v18, 2  ;;  %v2405_v18 = vsel %vm2394_vm5, %v2402_v7, %v2404_v57 }
 0x29f   : > { %v12289_v22 = vsel %vm1573_vm2, %v1616_v41, %v1625_v58  ;;  %v2568_v8 = vrot.slane %v2558_v31, 2 }
 0x2a0   : > { %v2401_v55 = vsel %vm2394_vm5, %v2398_v9, %v2400_v51  ;;  %v2565_v60 = vsel %vm2394_vm5, %v2562_v12, %v2564_v11 }
 0x2a2   : > { %2472 = vmatmul.bf16.gmra.mxu0 %v2399_v56 }
 0x2a9   : > { %2631 = vmatmul.bf16.vlgmr.msra.gmra.mxu1 %v2561_v3  ;;  %v2154_v3 = vunpack.c.l.b16 %v2135_v54 }
 0x2aa   : > { %1708 = vmatmul.bf16.gmra.mxu2 %v12289_v22 }
 0x2ab   : > { %2337 = vmatmul.bf16.vlgmr.msra.gmra.mxu3 %v12126_v1  ;;  %v2403_v1 = vsel %vm2394_vm5, %v2400_v51, %v2402_v7  ;;  %v2155_v12 = vpack.c.b16 %v2154_v3, %v2154_v3 }
 0x2b2   : > { %2477 = vmatmul.bf16.gmra.mxu0 %v2401_v55 }
 0x2b7   : > { %v1980_v23 = vpop.f32.mrf.mxu0 }
 0x2b9   : > { %2636 = vmatmul.bf16.gmra.mxu1 %v2563_v14 }
 0x2ba   : > { %2228 = vmatmul.bf16.vlgmr.msra.gmra.mxu2 %v12116_v50  ;;  %v10651_v50 = vld [vmem:[#allocation14 + $0x1f8] sm:$0xff] }
 0x2bb   : > { %2342 = vmatmul.bf16.gmra.mxu3 %v12174_v48  ;;  %v10655_v48 = vld [vmem:[#allocation14 + $0x218] sm:$0xff]  ;;  %2795 = vmatpush.bf16.msrb.mxu2 %v10651_v50 }
 0x2bc   : > { %2929 = vmatpush.bf16.msrb.mxu3 %v10655_v48 }
 0x2bf   : > { %2796 = vmatpush.bf16.msrb.mxu2 %v10650_v15  ;;  %v12308_v41 = vpop.f32.mrf.mxu0 }
 0x2c0   : > { %2930 = vmatpush.bf16.msrb.mxu3 %v10654_v17 }
 0x2c2   : > { %2482 = vmatmul.bf16.gmra.mxu0 %v2403_v1 }
 0x2c3   : > { %2797 = vmatpush.bf16.msrb.mxu2 %v10649_v25 }
 0x2c4   : > { %2931 = vmatpush.bf16.msrb.mxu3 %v10653_v27 }
 0x2c8   : > { %2932 = vmatpush.bf16.msrb.mxu3 %v10652_v37 }
 0x2c9   : > { %2641 = vmatmul.bf16.gmra.mxu1 %v2565_v60 }
 0x2ca   : > { %2233 = vmatmul.bf16.gmra.mxu2 %v12163_v39  ;;  %v2566_v39 = vrot.slane %v12248_v26, 2 }
 0x2cb   : > { %2347 = vmatmul.bf16.gmra.mxu3 %v12225_v46  ;;  %v10648_v46 = vld [vmem:[#allocation14 + $0x1e0] sm:$0xff] }
 0x2cc   : > { %v2567_v63 = vsel %vm2394_vm5, %v2564_v11, %v2566_v39  ;;  %2798 = vmatpush.bf16.msrb.mxu2 %v10648_v46  ;;  %v2569_v53 = vsel %vm2394_vm5, %v2566_v39, %v2568_v8 }
 0x2cf   : > { %v1985_v5 = vpop.f32.mrf.mxu0 }
 0x2d0   : > { %2799 = vmatpush.bf16.msrb.mxu2 %v10647_v32 }
 0x2d2   : > { %v2100_v24 = vpop.f32.mrf.mxu1  ;;  %2487 = vmatmul.bf16.gmra.mxu0 %v2405_v18 }
 0x2d4   : > { %2800 = vmatpush.bf16.msrb.mxu2 %v10646_v47 }
 0x2d7   : > { %v12321_v13 = vpop.f32.mrf.mxu0 }
 0x2d9   : > { %2646 = vmatmul.bf16.gmra.mxu1 %v2567_v63 }
 0x2da   : > { %2238 = vmatmul.bf16.gmra.mxu2 %v12216_v42  ;;  %v1893_v19 = vpop.f32.mrf.mxu3  ;;  %v12312_v43 = vpop.f32.mrf.mxu1  ;;  %v10645_v42 = vld [vmem:[#allocation14 + $0x1c8] sm:$0xff] }
 0x2db   : > { %2352 = vmatmul.bf16.gmra.mxu3 %v12263_v38  ;;  %v1981_v45 = vadd.f32 %v1980_v23, %v1893_v19  ;;  %2801 = vmatpush.bf16.msrb.mxu2 %v10645_v42  ;;  %v10644_v38 = vld [vmem:[#allocation14 + $0x1c0] sm:$0xff] }
 0x2dd   : > { %v12314_v16 = vadd.f32 %v2100_v24, %v1981_v45  ;;  %v2667_v45 = vld [vmem:[#allocation2 + $0x30] sm:$0x7] }
 0x2de   : > { %v2686_v33 = vunpack.c.l.b16 %v2667_v45 }
 0x2df   : > { %2802 = vmatpush.bf16.msrb.mxu2 %v10644_v38  ;;  %v1990_v7 = vpop.f32.mrf.mxu0 }
 0x2e0   : > { %v2687_v47 = vpack.c.b16 %v2686_v33, %v2686_v33 }
 0x2e2   : > { %v12316_v44 = vpop.f32.mrf.mxu3  ;;  %v2105_v9 = vpop.f32.mrf.mxu1  ;;  %v2870_v42 = vrot.slane %v2687_v47, 3  ;;  %v2734_v38 = vshrl.u32 %v2687_v47, 16 }
 0x2e7   : > { %v12341_v60 = vpop.f32.mrf.mxu0 }
 0x2e9   : > { %2651 = vmatmul.bf16.gmra.mxu1 %v2569_v53  ;;  %v2737_v53 = vshll.u32 %v2687_v47, 16 }
 0x2ea   : > { %2243 = vmatmul.bf16.gmra.mxu2 %v12255_v35  ;;  %v1898_v56 = vpop.f32.mrf.mxu3  ;;  %v12327_v55 = vpop.f32.mrf.mxu1  ;;  %v2165_v35 = vrot.slane %v2155_v12, 1  ;;  %v2736_v12 = vrot.slane %v2734_v38, 2 }
 0x2eb   : > { %2357 = vmatmul.bf16.gmra.mxu3 %v12289_v22  ;;  %v1986_v58 = vadd.f32 %v1985_v5, %v1898_v56 }
 0x2ec   : > { %v2166_v10 = vsel %vm2026_vm0, %v2163_v20, %v2165_v35  ;;  %v2739_v35 = vrot.slane %v2737_v53, 3 }
 0x2ed   : > { %v12323_v59 = vpop.f32.mrf.mxu2  ;;  %v12325_v51 = vadd.f32 %v2105_v9, %v1986_v58 }
 0x2ee   : > { %13569 = vst [vmem:[#allocation31_spill] sm:$0xff] %v12323_v59 }
 0x2ef   : > { %v1995_v0 = vpop.f32.mrf.mxu0 }
 0x2f2   : > { %v12329_v14 = vpop.f32.mrf.mxu3  ;;  %v2110_v22 = vpop.f32.mrf.mxu1 }
 0x2f5   : > { %v12331_v30 = vpop.f32.mrf.mxu2 }
 0x2f6   : > { %13570 = vst [vmem:[#allocation32_spill] sm:$0xff] %v12331_v30 }
 0x2f7   : > { %v12355_v18 = vpop.f32.mrf.mxu0 }
 0x2fa   : > { %2248 = vmatmul.bf16.gmra.mxu2 %v2166_v10  ;;  %v1903_v1 = vpop.f32.mrf.mxu3  ;;  %v12343_v50 = vpop.f32.mrf.mxu1 }
 0x2fb   : > { %2933 = vmatmul.bf16.vlgmr.msrb.gmra.mxu3 %v12131_v2  ;;  %v1991_v11 = vadd.f32 %v1990_v7, %v1903_v1 }
 0x2fd   : > { %v12337_v34 = vpop.f32.mrf.mxu2  ;;  %v12339_v28 = vadd.f32 %v2110_v22, %v1991_v11  ;;  %v2740_v22 = vor.u32 %v2739_v35, %v2736_v12  ;;  %v1988_v12 = vadd.f32 %v12321_v13, %v12329_v14  ;;  %v13522_v13 = vmov 0  }
 0x2fe   : > { %13571 = vst [vmem:[#allocation33_spill] sm:$0xff] %v12337_v34 }
 0x302   : > { %v12345_v48 = vpop.f32.mrf.mxu3  ;;  %v2115_v57 = vpop.f32.mrf.mxu1 }
 0x305   : > { %v12347_v15 = vpop.f32.mrf.mxu2 }
 0x306   : > { %13572 = vst [vmem:[#allocation34_spill] sm:$0xff] %v12347_v15 }
 0x30a   : > { %2803 = vmatmul.bf16.vlgmr.msrb.gmra.mxu2 %v12138_v61  ;;  %v1908_v2 = vpop.f32.mrf.mxu3  ;;  %v12361_v39 = vpop.f32.mrf.mxu1 }
 0x30b   : > { %2938 = vmatmul.bf16.gmra.mxu3 %v12181_v49  ;;  %v1996_v20 = vadd.f32 %v1995_v0, %v1908_v2  ;;  %v2000_v49 = vpop.f32.mrf.mxu0 }
 0x30d   : > { %v12351_v17 = vpop.f32.mrf.mxu2  ;;  %v12353_v23 = vadd.f32 %v2115_v57, %v1996_v20 }
 0x30e   : > { %13573 = vst [vmem:[#allocation35_spill] sm:$0xff] %v12351_v17 }
 0x312   : > { %v12359_v25 = vpop.f32.mrf.mxu3 }
 0x313   : > { %v12377_v32 = vpop.f32.mrf.mxu0 }
 0x315   : > { %v12357_v24 = vpop.f32.mrf.mxu2 }
 0x316   : > { %13574 = vst [vmem:[#allocation36_spill] sm:$0xff] %v12357_v24  ;;  %v2120_v37 = vpop.f32.mrf.mxu1 }
 0x31a   : > { %2808 = vmatmul.bf16.gmra.mxu2 %v12189_v21 }
 0x31b   : > { %2943 = vmatmul.bf16.gmra.mxu3 %v12232_v36  ;;  %v12385_v9 = vpop.f32.mrf.mxu0 }
 0x31d   : > { %v12365_v61 = vpop.f32.mrf.mxu2 }
 0x31e   : > { %13575 = vst [vmem:[#allocation37_spill] sm:$0xff] %v12365_v61  ;;  %v1913_v27 = vpop.f32.mrf.mxu3  ;;  %v12381_v5 = vpop.f32.mrf.mxu1 }
 0x31f   : > { %v2001_v46 = vadd.f32 %v2000_v49, %v1913_v27 }
 0x321   : > { %v12367_v63 = vadd.f32 %v2120_v37, %v2001_v46 }
 0x323   : > { %v12396_v7 = vpop.f32.mrf.mxu0 }
 0x325   : > { %v12369_v62 = vpop.f32.mrf.mxu2 }
 0x326   : > { %v12371_v19 = vpop.f32.mrf.mxu3  ;;  %v12392_v58 = vpop.f32.mrf.mxu1 }
 0x32a   : > { %2813 = vmatmul.bf16.gmra.mxu2 %v12240_v40  ;;  %v2871_v40 = vsel %vm2860_vm3, %v2868_v4, %v2870_v42  ;;  %v2741_v4 = vsel %vm2688_vm4, %v12278_v29, %v2740_v22  ;;  %v1993_v22 = vadd.f32 %v12341_v60, %v12345_v48  ;;  %v1998_v60 = vadd.f32 %v12355_v18, %v12359_v25 }
 0x32b   : > { %2948 = vmatmul.bf16.gmra.mxu3 %v12274_v6  ;;  %v12404_v1 = vpop.f32.mrf.mxu0  ;;  %v2128_v48 = vadd.f32 %v12327_v55, %v1988_v12 }
 0x32c   : > { %v2130_v55 = vadd.f32 %v12343_v50, %v1993_v22 }
 0x32d   : > { %v12375_v21 = vpop.f32.mrf.mxu2 }
 0x32e   : > { %v2338_v36 = vpop.f32.mrf.mxu3  ;;  %v12402_v10 = vpop.f32.mrf.mxu1 }
 0x333   : > { %v12413_v27 = vpop.f32.mrf.mxu0 }
 0x335   : > { %v12379_v31 = vpop.f32.mrf.mxu2 }
 0x336   : > { %13576 = vst [vmem:[#allocation38_spill] sm:$0xff] %v12379_v31  ;;  %v12383_v8 = vpop.f32.mrf.mxu3  ;;  %v12409_v20 = vpop.f32.mrf.mxu1 }
 0x33a   : > { %2818 = vmatmul.bf16.gmra.mxu2 %v12282_v52 }
 0x33b   : > { %2953 = vmatmul.bf16.gmra.mxu3 %v2871_v40  ;;  %v12420_v33 = vpop.f32.mrf.mxu0  ;;  %v1983_v40 = vadd.f32 %v12308_v41, %v12316_v44 }
 0x33d   : > { %v2229_v6 = vpop.f32.mrf.mxu2 }
 0x33e   : > { %v2254_v54 = vadd.f32 %v2229_v6, %v12314_v16  ;;  %v2343_v56 = vpop.f32.mrf.mxu3  ;;  %v12415_v29 = vpop.f32.mrf.mxu1 }
 0x340   : > { %v12394_v3 = vadd.f32 %v2338_v36, %v2254_v54 }
 0x342   : > { %v2493_v25 = vadd.f32 %v12385_v9, %v12394_v3 }
 0x345   : > { %v2231_v52 = vpop.f32.mrf.mxu2 }
 0x346   : > { %v12398_v26 = vpop.f32.mrf.mxu3  ;;  %v12431_v53 = vpop.f32.mrf.mxu1 }
 0x34a   : > { %2823 = vmatmul.bf16.gmra.mxu2 %v2741_v4  ;;  %v12444_v4 = vpop.f32.mrf.mxu0 }
 0x34d   : > { %v2234_v16 = vpop.f32.mrf.mxu2 }
 0x34e   : > { %v2256_v11 = vadd.f32 %v2234_v16, %v12325_v51  ;;  %v2348_v0 = vpop.f32.mrf.mxu3  ;;  %v3027_v51 = vlaneseq  ;;  %v12469_v18 = vpop.f32.mrf.mxu1 }
 0x350   : > { %v12407_v2 = vadd.f32 %v2343_v56, %v2256_v11  ;;  %v12422_v42 = vshrl.u32 %v3027_v51, 7  ;;  %v2126_v56 = vadd.f32 %v12312_v43, %v1983_v40 }
 0x352   : > { %13577 = vst [vmem:[#allocation39_spill] sm:$0xff] %v12422_v42  ;;  %v12429_v38 = vand.u32 65535, %v12422_v42  ;;  %v2255_v16 = vadd.f32 %v2231_v52, %v2126_v56  ;;  %v12452_v40 = vadd.s32 8, %v12422_v42  ;;  %v2003_v56 = vadd.f32 %v12377_v32, %v12371_v19 }
 0x354   : > { %13578 = vst [vmem:[#allocation40_spill] sm:$0xff] %v12429_v38  ;;  %v3045_v54 = vmul.u32 52428, %v12429_v38  ;;  %v3044_v35 = vmul.u32 52429, %v12429_v38  ;;  %v12467_v38 = vshrl.u32 %v12452_v40, 16 }
 0x355   : > { %v2236_v57 = vpop.f32.mrf.mxu2  ;;  %13580 = vst [vmem:[#allocation42_spill] sm:$0xff] %v12452_v40 }
 0x356   : > { %v12411_v49 = vpop.f32.mrf.mxu3  ;;  %v3048_v44 = vshll.u32 %v3045_v54, 16  ;;  %13582 = vst [vmem:[#allocation44_spill] sm:$0xff] %v12467_v38  ;;  %v3076_v9 = vmul.u32 52428, %v12467_v38 }
 0x358   : > { %vm3052_vm6 = vc.u32 %v3044_v35, %v3048_v44  ;;  %v3054_v51 = vadd.s32 %v3048_v44, %v3044_v35  ;;  %v2364_v35 = vadd.f32 %v12383_v8, %v2255_v16  ;;  %v3049_v44 = vshrl.u32 %v3045_v54, 16 }
 0x359   : > { %v3053_v14 = vsel %vm3052_vm6, 1, %v13522_v13  ;;  %v3075_v54 = vmul.u32 52429, %v12467_v38  ;;  %v2132_v16 = vadd.f32 %v12361_v39, %v1998_v60  ;;  %v12490_v60 = vadd.f32 %v12392_v58, %v2493_v25 }
 0x35a   : > { %v2494_v22 = vadd.f32 %v12396_v7, %v2364_v35 }
 0x35b   : > { %v3079_v3 = vshll.u32 %v3075_v54, 16 }
 0x35d   : > { %v2239_v46 = vpop.f32.mrf.mxu2 }
 0x35e   : > { %v2258_v37 = vadd.f32 %v2239_v46, %v12339_v28  ;;  %v2353_v45 = vpop.f32.mrf.mxu3  ;;  %v12434_v28 = vshrl.u32 %v12422_v42, 16 }
 0x360   : > { %v12418_v36 = vadd.f32 %v2348_v0, %v2258_v37  ;;  %13579 = vst [vmem:[#allocation41_spill] sm:$0xff] %v12434_v28  ;;  %v3046_v41 = vmul.u32 52429, %v12434_v28  ;;  %v3047_v0 = vmul.u32 52428, %v12434_v28 }
 0x362   : > { %v3050_v46 = vshll.u32 %v3046_v41, 16  ;;  %v3055_v52 = vadd.s32 %v3053_v14, %v3047_v0  ;;  %v3051_v12 = vshrl.u32 %v3046_v41, 16  ;;  %v12479_v0 = vadd.f32 %v12381_v5, %v2003_v56  ;;  %v2483_v41 = vpop.f32.mrf.mxu0 }
 0x364   : > { %vm3056_vm7 = vc.u32 %v3054_v51, %v3050_v46 }
 0x365   : > { %v2241_v47 = vpop.f32.mrf.mxu2 }
 0x366   : > { %v12426_v6 = vpop.f32.mrf.mxu3  ;;  %v2259_v14 = vadd.f32 %v2241_v47, %v2130_v55 }
 0x368   : > { %v2368_v58 = vadd.f32 %v12411_v49, %v2259_v14 }
 0x36d   : > { %v2244_v11 = vpop.f32.mrf.mxu2 }
 0x36e   : > { %v2260_v43 = vadd.f32 %v2244_v11, %v12353_v23  ;;  %v12448_v37 = vpop.f32.mrf.mxu3  ;;  %v12462_v23 = vand.u32 65535, %v12452_v40  ;;  %v3057_v11 = vsel %vm3056_vm7, 1, %v13522_v13 }
 0x36f   : > { %v3059_v19 = vadd.s32 %v3057_v11, %v3055_v52 }
 0x370   : > { %v12459_v28 = vadd.f32 %v2353_v45, %v2260_v43  ;;  %13581 = vst [vmem:[#allocation43_spill] sm:$0xff] %v12462_v23  ;;  %v3074_v32 = vmul.u32 52428, %v12462_v23  ;;  %v2257_v45 = vadd.f32 %v2236_v57, %v2128_v48  ;;  %v3073_v8 = vmul.u32 52429, %v12462_v23 }
 0x371   : > { %v3060_v46 = vadd.s32 %v3059_v19, %v3049_v44  ;;  %v12484_v57 = vadd.s32 16, %v12422_v42  ;;  %v12503_v19 = vadd.f32 %v12402_v10, %v2494_v22 }
 0x372   : > { %v3077_v43 = vshll.u32 %v3074_v32, 16  ;;  %v2366_v5 = vadd.f32 %v12398_v26, %v2257_v45  ;;  %v3078_v47 = vshrl.u32 %v3074_v32, 16 }
 0x373   : > { %13583 = vst [vmem:[#allocation45_spill] sm:$0xff] %v12484_v57  ;;  %v3061_v48 = vadd.s32 %v3060_v46, %v3051_v12  ;;  %v12494_v52 = vand.u32 65535, %v12484_v57  ;;  %v12498_v55 = vshrl.u32 %v12484_v57, 16  ;;  %v3080_v12 = vshrl.u32 %v3075_v54, 16  ;;  %v2647_v46 = vpop.f32.mrf.mxu1 }
 0x374   : > { %vm3081_vm8 = vc.u32 %v3073_v8, %v3077_v43  ;;  %v3083_v39 = vadd.s32 %v3077_v43, %v3073_v8  ;;  %v2496_v49 = vadd.f32 %v12413_v27, %v2366_v5  ;;  %v12523_v5 = vadd.s32 24, %v12422_v42 }
 0x375   : > { %v2246_v50 = vpop.f32.mrf.mxu2  ;;  %v3082_v7 = vsel %vm3081_vm8, 1, %v13522_v13  ;;  %13584 = vst [vmem:[#allocation46_spill] sm:$0xff] %v12494_v52  ;;  %v3062_v35 = vshrl.u32 %v3061_v48, 3  ;;  %v3103_v26 = vmul.u32 52428, %v12494_v52  ;;  %v3102_v8 = vmul.u32 52429, %v12494_v52 }
 0x376   : > { %v12486_v51 = vpop.f32.mrf.mxu3  ;;  %v2261_v56 = vadd.f32 %v2246_v50, %v2132_v16  ;;  %v3084_v44 = vadd.s32 %v3082_v7, %v3076_v9  ;;  %vm3085_vm9 = vc.u32 %v3083_v39, %v3079_v3  ;;  %13585 = vst [vmem:[#allocation47_spill] sm:$0xff] %v12498_v55  ;;  %v3104_v16 = vmul.u32 52429, %v12498_v55  ;;  %v2485_v7 = vpop.f32.mrf.mxu0 }
 0x377   : > { %v3086_v11 = vsel %vm3085_vm9, 1, %v13522_v13  ;;  %v3063_v25 = vmul.u32 10, %v3062_v35  ;;  %v3106_v32 = vshll.u32 %v3103_v26, 16  ;;  %v2495_v9 = vadd.f32 %v12404_v1, %v12407_v2 }
 0x378   : > { %v3088_v45 = vadd.s32 %v3086_v11, %v3084_v44  ;;  %v2370_v43 = vadd.f32 %v12426_v6, %v2261_v56  ;;  %v3105_v10 = vmul.u32 52428, %v12498_v55  ;;  %v3108_v22 = vshll.u32 %v3104_v16, 16  ;;  %v10671_v11 = vld [vmem:[#allocation15 + $0x38] sm:$0xff] }
 0x379   : > { %vm3110_vm10 = vc.u32 %v3102_v8, %v3106_v32  ;;  %v3112_v54 = vadd.s32 %v3106_v32, %v3102_v8  ;;  %v12516_v39 = vsub.s32 %v12422_v42, %v3063_v25  ;;  %v2497_v6 = vadd.f32 %v12420_v33, %v12418_v36  ;;  %3813 = vmatpush.bf16.msrb.mxu1 %v10671_v11 }
 0x37a   : > { %v3089_v50 = vadd.s32 %v3088_v45, %v3078_v47  ;;  %v2498_v1 = vadd.f32 %v12444_v4, %v2368_v58  ;;  %v3111_v27 = vsel %vm3110_vm10, 1, %v13522_v13  ;;  %v2499_v44 = vadd.f32 %v2483_v41, %v12459_v28 }
 0x37b   : > { %vm3114_vm11 = vc.u32 %v3112_v54, %v3108_v22  ;;  %v3113_v56 = vadd.s32 %v3111_v27, %v3105_v10  ;;  %v3107_v36 = vshrl.u32 %v3103_v26, 16  ;;  %v3128_v33 = vand.u32 65535, %v12523_v5  ;;  %v10670_v54 = vld [vmem:[#allocation15 + $0x30] sm:$0xff] }
 0x37c   : > { %v3090_v2 = vadd.s32 %v3089_v50, %v3080_v12  ;;  %v3115_v35 = vsel %vm3114_vm11, 1, %v13522_v13  ;;  %v2500_v4 = vadd.f32 %v2485_v7, %v2370_v43  ;;  %vm3328_vm12 = vcmp.ne.s32.totalorder %v12516_v39, 0 }
 0x37d   : > { %v2249_v3 = vpop.f32.mrf.mxu2  ;;  %vm3338_vm13 = vcmp.lt.s32.totalorder %v12516_v39, 0  ;;  %v3117_v58 = vadd.s32 %v3115_v35, %v3113_v56  ;;  %v3129_v25 = vshrl.u32 %v12523_v5, 16  ;;  %v3109_v45 = vshrl.u32 %v3104_v16, 16  ;;  %3814 = vmatpush.bf16.msrb.mxu1 %v10670_v54  ;;  %v10668_v54 = vld [vmem:[#allocation15 + $0x20] sm:$0xff] }
 0x37e   : > { %v2262_v14 = vadd.f32 %v2249_v3, %v12367_v63  ;;  %v12513_v48 = vpop.f32.mrf.mxu3  ;;  %v3091_v47 = vshrl.u32 %v3090_v2, 3  ;;  %v3131_v12 = vmul.u32 52429, %v3128_v33  ;;  %v3132_v8 = vmul.u32 52428, %v3128_v33  ;;  %vm12542_vm14 = vmand %vm3338_vm13, %vm3328_vm12 }
 0x37f   : > { %v3358_v32 = vadd.s32 10, %v12516_v39  ;;  %v12536_v28 = vadd.f32 %v12409_v20, %v2495_v9  ;;  %v3118_v41 = vadd.s32 %v3117_v58, %v3107_v36  ;;  %v12538_v26 = vmul.u32 52429, %v3129_v25  ;;  %v2649_v20 = vpop.f32.mrf.mxu1 }
 0x380   : > { %v12526_v63 = vadd.f32 %v12448_v37, %v2262_v14  ;;  %v3092_v37 = vmul.u32 10, %v3091_v47  ;;  %v3134_v3 = vmul.u32 52428, %v3129_v25  ;;  %v3135_v10 = vshll.u32 %v3132_v8, 16 }
 0x381   : > { %v12550_v22 = vadd.s32 32, %v12422_v42  ;;  %v3119_v9 = vadd.s32 %v3118_v41, %v3109_v45  ;;  %v12553_v14 = vadd.f32 %v12415_v29, %v2496_v49  ;;  %v3137_v2 = vshll.u32 %v12538_v26, 16 }
 0x382   : > { %v12547_v16 = vsub.s32 %v12452_v40, %v3092_v37  ;;  %v12557_v27 = vadd.f32 %v12431_v53, %v2497_v6  ;;  %vm3139_vm15 = vc.u32 %v3131_v12, %v3135_v10  ;;  %v12560_v7 = vadd.f32 %v12469_v18, %v2498_v1 }
 0x383   : > { %v12562_v56 = vadd.f32 %v2647_v46, %v2499_v44  ;;  %v12564_v35 = vadd.f32 %v2649_v20, %v2500_v4  ;;  %v3368_v29 = vsel %vm12542_vm14, %v3358_v32, %v12516_v39  ;;  %v3120_v49 = vshrl.u32 %v3119_v9, 3  ;;  %v10669_v44 = vld [vmem:[#allocation15 + $0x28] sm:$0xff] }
 0x384   : > { %v3140_v36 = vsel %vm3139_vm15, 1, %v13522_v13  ;;  %v3141_v53 = vadd.s32 %v3135_v10, %v3131_v12  ;;  %vm3329_vm6 = vcmp.ne.s32.totalorder %v12547_v16, 0  ;;  %v3157_v46 = vand.u32 65535, %v12550_v22  ;;  %3815 = vmatpush.bf16.msrb.mxu1 %v10669_v44  ;;  %v2488_v12 = vpop.f32.mrf.mxu0  ;;  %v12605_v20 = vld [vmem:[%s13499_s7] ss:$0 sm:$0xff] }
 0x385   : > { %v2251_v43 = vpop.f32.mrf.mxu2  ;;  %v3142_v18 = vadd.s32 %v3140_v36, %v3134_v3  ;;  %vm3339_vm7 = vcmp.lt.s32.totalorder %v12547_v16, 0  ;;  %v3121_v1 = vmul.u32 10, %v3120_v49  ;;  %v3158_v33 = vshrl.u32 %v12550_v22, 16  ;;  %v10665_v9 = vld [vmem:[#allocation15 + $0x8] sm:$0xff] }
 0x386   : > { %v12566_v47 = vpop.f32.mrf.mxu3  ;;  %v2263_v6 = vadd.f32 %v2251_v43, %v12479_v0  ;;  %vm3143_vm8 = vc.u32 %v3141_v53, %v3137_v2  ;;  %v3136_v39 = vshrl.u32 %v3132_v8, 16  ;;  %v3160_v11 = vmul.u32 52429, %v3157_v46  ;;  %vm12588_vm9 = vmand %vm3339_vm7, %vm3329_vm6 }
 0x387   : > { %v3144_v4 = vsel %vm3143_vm8, 1, %v13522_v13  ;;  %v3161_v58 = vmul.u32 52428, %v3157_v46  ;;  %v12579_v25 = vadd.s32 10, %v12547_v16  ;;  %v3138_v0 = vshrl.u32 %v12538_v26, 16 }
 0x388   : > { %v3146_v37 = vadd.s32 %v3144_v4, %v3142_v18  ;;  %v12582_v45 = vmul.u32 52429, %v3158_v33  ;;  %v12593_v41 = vsub.s32 %v12484_v57, %v3121_v1  ;;  %v3163_v43 = vmul.u32 52428, %v3158_v33  ;;  %3816 = vmatpush.bf16.msrb.mxu1 %v10668_v54  ;;  %v10667_v33 = vld [vmem:[#allocation15 + $0x18] sm:$0xff] }
 0x389   : > { %v3164_v50 = vshll.u32 %v3161_v58, 16  ;;  %v12596_v26 = vadd.s32 40, %v12422_v42  ;;  %v12599_v3 = vadd.f32 %v12486_v51, %v2263_v6  ;;  %vm12607_vm10 = vcmp.lt.s32.totalorder %v3368_v29, 8 }
 0x38a   : > { %v2501_v2 = vadd.f32 %v2488_v12, %v12526_v63  ;;  %v3147_v49 = vadd.s32 %v3146_v37, %v3136_v39  ;;  %v3166_v36 = vshll.u32 %v12582_v45, 16  ;;  %v3369_v29 = vsel %vm12588_vm9, %v12579_v25, %v12547_v16 }
 0x38b   : > { %vm3168_vm11 = vc.u32 %v3160_v11, %v3164_v50  ;;  %v3170_v51 = vadd.s32 %v3164_v50, %v3160_v11  ;;  %v3186_v6 = vand.u32 65535, %v12596_v26  ;;  %vm3330_vm12 = vcmp.ne.s32.totalorder %v12593_v41, 0 }
 0x38c   : > { %v3169_v63 = vsel %vm3168_vm11, 1, %v13522_v13  ;;  %v3148_v18 = vadd.s32 %v3147_v49, %v3138_v0  ;;  %v3165_v46 = vshrl.u32 %v3161_v58, 16  ;;  %v3187_v39 = vshrl.u32 %v12596_v26, 16  ;;  %3817 = vmatpush.bf16.msrb.mxu1 %v10667_v33 }
 0x38d   : > { %v2804_v32 = vpop.f32.mrf.mxu2  ;;  %vm3172_vm13 = vc.u32 %v3170_v51, %v3166_v36  ;;  %v12630_v4 = vmul.u32 52428, %v3186_v6  ;;  %v3167_v11 = vshrl.u32 %v12582_v45, 16  ;;  %v3189_v37 = vmul.u32 52429, %v3186_v6  ;;  %v10666_v36 = vld [vmem:[#allocation15 + $0x10] sm:$0xff]  ;;  %v10687_v51 = vld [vmem:[#allocation15 + $0xb8] sm:$0xff] }
 0x38e   : > { %v2829_v10 = vadd.f32 %v2804_v32, %v12490_v60  ;;  %v12617_v60 = vld [vmem:[%s13500_s8] ss:$0 sm:$0xff]  ;;  %v12627_v44 = vpop.f32.mrf.mxu3  ;;  %v3149_v16 = vshrl.u32 %v3148_v18, 3  ;;  %v3173_v25 = vsel %vm3172_vm13, 1, %v13522_v13  ;;  %v12635_v12 = vmul.u32 52429, %v3187_v39  ;;  %v2652_v18 = vpop.f32.mrf.mxu1  ;;  %3932 = vmatpush.bf16.msra.mxu2 %v10687_v51 }
 0x38f   : > { %v3193_v32 = vshll.u32 %v12630_v4, 16  ;;  %vm3340_vm14 = vcmp.lt.s32.totalorder %v12593_v41, 0  ;;  %vm12657_vm8 = vcmp.lt.s32.totalorder %v3369_v29, 8 }
 0x390   : > { %v2959_v53 = vadd.f32 %v12513_v48, %v2829_v10  ;;  %v3171_v48 = vadd.s32 %v3169_v63, %v3163_v43  ;;  %v3360_v43 = vadd.s32 10, %v12593_v41  ;;  %v3150_v50 = vmul.u32 10, %v3149_v16  ;;  %vm12650_vm7 = vmand %vm3340_vm14, %vm3330_vm12  ;;  %3818 = vmatpush.bf16.msrb.mxu1 %v10666_v36  ;;  %v10678_v36 = vld [vmem:[#allocation15 + $0x70] sm:$0xff] }
 0x391   : > { %v3192_v10 = vmul.u32 52428, %v3187_v39  ;;  %v3195_v63 = vshll.u32 %v12635_v12, 16  ;;  %vm3197_vm6 = vc.u32 %v3189_v37, %v3193_v32  ;;  %v3199_v6 = vadd.s32 %v3193_v32, %v3189_v37  ;;  %v2490_v37 = vpop.f32.mrf.mxu0 }
 0x392   : > { %v2973_v1 = vmul.f32 %v12605_v20, %v2959_v53  ;;  %v3175_v58 = vadd.s32 %v3173_v25, %v3171_v48  ;;  %v12642_v53 = vsub.s32 %v12523_v5, %v3150_v50  ;;  %v10679_v5 = vld [vmem:[#allocation15 + $0x78] sm:$0xff]  ;;  %v3198_v33 = vsel %vm3197_vm6, 1, %v13522_v13 }
 0x393   : > { %v12664_v25 = vadd.f32 %v2652_v18, %v2501_v2  ;;  %3726 = vmatpush.bf16.msrb.mxu0 %v10679_v5  ;;  %v3370_v29 = vsel %vm12650_vm7, %v3360_v43, %v12593_v41  ;;  %v3200_v32 = vadd.s32 %v3198_v33, %v3192_v10  ;;  %v12673_v2 = vadd.f32 %v2490_v37, %v12599_v3  ;;  %v10676_v41 = vld [vmem:[#allocation15 + $0x60] sm:$0xff] }
 0x394   : > { %v2987_v0 = vadd.f32 %v12617_v60, %v2973_v1  ;;  %v3176_v49 = vadd.s32 %v3175_v58, %v3165_v46  ;;  %vm3331_vm9 = vcmp.ne.s32.totalorder %v12642_v53, 0  ;;  %vm3341_vm11 = vcmp.lt.s32.totalorder %v12642_v53, 0  ;;  %v10686_v58 = vld [vmem:[#allocation15 + $0xb0] sm:$0xff]  ;;  %3819 = vmatpush.bf16.msrb.mxu1 %v10665_v9 }
 0x395   : > { %v2806_v8 = vpop.f32.mrf.mxu2  ;;  %3933 = vmatpush.bf16.msra.mxu2 %v10686_v58  ;;  %vm12683_vm12 = vmand %vm3341_vm11, %vm3331_vm9  ;;  %v3194_v3 = vshrl.u32 %v12630_v4, 16  ;;  %vm12692_vm14 = vcmp.lt.s32.totalorder %v3370_v29, 8  ;;  %v10685_v4 = vld [vmem:[#allocation15 + $0xa8] sm:$0xff]  ;;  %v12711_v29 = vadd.s32 56, %v12422_v42 }
 0x396   : > { %vm2997_vm15 = vcmp.ge.f32.partialorder %v2987_v0, 0.0  ;;  %v3007_v45 = vmul.f32 0.2, %v2987_v0  ;;  %v2830_v54 = vadd.f32 %v2806_v8, %v12503_v19  ;;  %v3177_v46 = vadd.s32 %v3176_v49, %v3167_v11  ;;  %v10664_v19 = vld [vmem:[#allocation15] sm:$0xff] }
 0x397   : > { %3727 = vmatpush.bf16.msrb.mxu0 %v10678_v36 }
 0x398   : > { %v3017_v48 = vsel %vm2997_vm15, %v2987_v0, %v3007_v45  ;;  %v2960_v1 = vadd.f32 %v12566_v47, %v2830_v54  ;;  %v12662_v47 = vadd.s32 48, %v12422_v42  ;;  %v3178_v0 = vshrl.u32 %v3177_v46, 3  ;;  %v12676_v45 = vpop.f32.mrf.mxu3  ;;  %3820 = vmatpush.bf16.msrb.mxu1 %v10664_v19 }
 0x399   : > { %v3408_v39 = vsel %vm12607_vm10, %v3017_v48, 0.0  ;;  %vm3201_vm10 = vc.u32 %v3199_v6, %v3195_v63  ;;  %v3361_v54 = vadd.s32 10, %v12642_v53  ;;  %v3196_v46 = vshrl.u32 %v12635_v12, 16  ;;  %3934 = vmatpush.bf16.msra.mxu2 %v10685_v4 }
 0x39a   : > { %v2974_v11 = vmul.f32 %v12605_v20, %v2960_v1  ;;  %v3418_v8 = vpack.c.bf16 %v3408_v39, %v3408_v39  ;;  %v3179_v49 = vmul.u32 10, %v3178_v0  ;;  %v3202_v43 = vsel %vm3201_vm10, 1, %v13522_v13 }
 0x39b   : > { %v3215_v10 = vand.u32 65535, %v12662_v47  ;;  %v3216_v63 = vshrl.u32 %v12662_v47, 16  ;;  %v3204_v5 = vadd.s32 %v3202_v43, %v3200_v32 }
 0x39c   : > { %v2988_v50 = vadd.f32 %v12617_v60, %v2974_v11  ;;  %v12697_v1 = vsub.s32 %v12550_v22, %v3179_v49  ;;  %v3371_v11 = vsel %vm12683_vm12, %v3361_v54, %v12642_v53  ;;  %v10677_v22 = vld [vmem:[#allocation15 + $0x68] sm:$0xff]  ;;  %v3438_v9 = vunpack.c.l.b16 %v3418_v8  ;;  %v10684_v53 = vld [vmem:[#allocation15 + $0xa0] sm:$0xff]  ;;  %vm12750_vm12 = vmand %vm2394_vm5, %vm2688_vm4 }
 0x39d   : > { %v2809_v51 = vpop.f32.mrf.mxu2  ;;  %v12700_v33 = vmul.u32 52428, %v3215_v10  ;;  %v12702_v39 = vmul.u32 52429, %v3216_v63  ;;  %v3218_v0 = vmul.u32 52429, %v3215_v10  ;;  %v3205_v58 = vadd.s32 %v3204_v5, %v3194_v3  ;;  %3728 = vmatpush.bf16.msrb.mxu0 %v10677_v22  ;;  %3935 = vmatpush.bf16.msra.mxu2 %v10684_v53 }
 0x39e   : > { %vm2998_vm13 = vcmp.ge.f32.partialorder %v2988_v50, 0.0  ;;  %v3008_v6 = vmul.f32 0.2, %v2988_v50  ;;  %v2831_v18 = vadd.f32 %v2809_v51, %v12536_v28  ;;  %vm3332_vm15 = vcmp.ne.s32.totalorder %v12697_v1, 0 }
 0x39f   : > { %vm3342_vm6 = vcmp.lt.s32.totalorder %v12697_v1, 0  ;;  %v3206_v54 = vadd.s32 %v3205_v58, %v3196_v46  ;;  %v3221_v8 = vmul.u32 52428, %v3216_v63  ;;  %v3224_v16 = vshll.u32 %v12702_v39, 16 }
 0x3a0   : > { %v3018_v37 = vsel %vm2998_vm13, %v2988_v50, %v3008_v6  ;;  %v2961_v28 = vadd.f32 %v12627_v44, %v2831_v18  ;;  %v3222_v44 = vshll.u32 %v12700_v33, 16  ;;  %v3362_v51 = vadd.s32 10, %v12697_v1  ;;  %v2944_v4 = vpop.f32.mrf.mxu3  ;;  %vm12731_vm11 = vmand %vm3342_vm6, %vm3332_vm15 }
 0x3a1   : > { %v3409_v12 = vsel %vm12657_vm8, %v3018_v37, 0.0  ;;  %v3207_v43 = vshrl.u32 %v3206_v54, 3  ;;  %v3223_v10 = vshrl.u32 %v12700_v33, 16  ;;  %vm12723_vm9 = vcmp.lt.s32.totalorder %v3371_v11, 8  ;;  %3729 = vmatpush.bf16.msrb.mxu0 %v10676_v41  ;;  %v10683_v37 = vld [vmem:[#allocation15 + $0x98] sm:$0xff]  ;;  %v10698_v41 = vld [vmem:[#allocation15 + $0xf0] sm:$0xff] }
 0x3a2   : > { %v3419_v32 = vpack.c.bf16 %v3409_v12, %v3409_v12  ;;  %v2975_v50 = vmul.f32 %v12605_v20, %v2961_v28  ;;  %vm3226_vm7 = vc.u32 %v3218_v0, %v3222_v44  ;;  %v3228_v18 = vadd.s32 %v3222_v44, %v3218_v0  ;;  %v10699_v28 = vld [vmem:[#allocation15 + $0xf8] sm:$0xff]  ;;  %3936 = vmatpush.bf16.msra.mxu2 %v10683_v37 }
 0x3a3   : > { %v3227_v6 = vsel %vm3226_vm7, 1, %v13522_v13  ;;  %v3208_v22 = vmul.u32 10, %v3207_v43  ;;  %4096 = vmatpush.bf16.msra.mxu3 %v10699_v28  ;;  %v3245_v54 = vshrl.u32 %v12711_v29, 16  ;;  %v12793_v5 = vadd.s32 64, %v12422_v42 }
 0x3a4   : > { %v3439_v49 = vunpack.c.l.b16 %v3419_v32  ;;  %v2989_v36 = vadd.f32 %v12617_v60, %v2975_v50  ;;  %v3229_v0 = vadd.s32 %v3227_v6, %v3221_v8  ;;  %vm3230_vm10 = vc.u32 %v3228_v18, %v3224_v16  ;;  %v10675_v32 = vld [vmem:[#allocation15 + $0x58] sm:$0xff] }
 0x3a5   : > { %v2811_v3 = vpop.f32.mrf.mxu2  ;;  %v12740_v44 = vsub.s32 %v12596_v26, %v3208_v22  ;;  %v3231_v53 = vsel %vm3230_vm10, 1, %v13522_v13  ;;  %3730 = vmatpush.bf16.msrb.mxu0 %v10675_v32  ;;  %v12765_v28 = vmul.u32 52429, %v3245_v54 }
 0x3a6   : > { %v3448_v19 = vpack.c.b16 %v3439_v49, %v3438_v9  ;;  %vm2999_vm8 = vcmp.ge.f32.partialorder %v2989_v36, 0.0  ;;  %v3009_v63 = vmul.f32 0.2, %v2989_v36  ;;  %v2832_v46 = vadd.f32 %v2811_v3, %v12553_v14 }
 0x3a7   : > { %v3244_v14 = vand.u32 65535, %v12711_v29  ;;  %vm3333_vm13 = vcmp.ne.s32.totalorder %v12740_v44, 0  ;;  %v3225_v3 = vshrl.u32 %v12702_v39, 16  ;;  %v3233_v43 = vadd.s32 %v3231_v53, %v3229_v0  ;;  %4097 = vmatpush.bf16.msra.mxu3 %v10698_v41 }
 0x3a8   : > { %v3454_v11 = vshrl.u32 %v3448_v19, 16  ;;  %v3457_v9 = vshll.u32 %v3448_v19, 16  ;;  %v3019_v12 = vsel %vm2999_vm8, %v2989_v36, %v3009_v63  ;;  %v2962_v58 = vadd.f32 %v12676_v45, %v2832_v46  ;;  %v10682_v36 = vld [vmem:[#allocation15 + $0x90] sm:$0xff] }
 0x3a9   : > { %v3410_v50 = vsel %vm12692_vm14, %v3019_v12, 0.0  ;;  %v3372_v45 = vsel %vm12731_vm11, %v3362_v51, %v12697_v1  ;;  %vm3343_vm14 = vcmp.lt.s32.totalorder %v12740_v44, 0  ;;  %v12760_v1 = vmul.u32 52428, %v3244_v14  ;;  %3937 = vmatpush.bf16.msra.mxu2 %v10682_v36  ;;  %v10674_v51 = vld [vmem:[#allocation15 + $0x50] sm:$0xff] }
 0x3aa   : > { %v3456_v8 = vrot.slane %v3454_v11, 2  ;;  %v3459_v16 = vrot.slane %v3457_v9, 3  ;;  %v2976_v49 = vmul.f32 %v12605_v20, %v2962_v58  ;;  %v3420_v48 = vpack.c.bf16 %v3410_v50, %v3410_v50  ;;  %3731 = vmatpush.bf16.msrb.mxu0 %v10674_v51  ;;  %v10681_v11 = vld [vmem:[#allocation15 + $0x88] sm:$0xff]  ;;  %vm12779_vm7 = vmand %vm3343_vm14, %vm3333_vm13  ;;  %v2946_v50 = vpop.f32.mrf.mxu3 }
 0x3ab   : > { %v12763_v63 = vadd.s32 10, %v12740_v44  ;;  %v3234_v46 = vadd.s32 %v3233_v43, %v3223_v10  ;;  %v3247_v37 = vmul.u32 52429, %v3244_v14  ;;  %vm12771_vm6 = vcmp.lt.s32.totalorder %v3372_v45, 8  ;;  %v10697_v9 = vld [vmem:[#allocation15 + $0xe8] sm:$0xff] }
 0x3ac   : > { %v12756_v6 = vor.u32 %v3459_v16, %v3456_v8  ;;  %v2990_v18 = vadd.f32 %v12617_v60, %v2976_v49  ;;  %v3440_v14 = vunpack.c.l.b16 %v3420_v48  ;;  %v3250_v8 = vmul.u32 52428, %v3245_v54  ;;  %4098 = vmatpush.bf16.msra.mxu3 %v10697_v9  ;;  %v10673_v49 = vld [vmem:[#allocation15 + $0x48] sm:$0xff] }
 0x3ad   : > { %v2814_v19 = vpop.f32.mrf.mxu2  ;;  %v3235_v32 = vadd.s32 %v3234_v46, %v3225_v3  ;;  %v3251_v16 = vshll.u32 %v12760_v1, 16  ;;  %3938 = vmatpush.bf16.msra.mxu2 %v10681_v11  ;;  %v3253_v54 = vshll.u32 %v12765_v28, 16  ;;  %v10680_v3 = vld [vmem:[#allocation15 + $0x80] sm:$0xff] }
 0x3ae   : > { %v3500_v39 = vsel %vm12750_vm12, 0, %v12756_v6  ;;  %vm3000_vm15 = vcmp.ge.f32.partialorder %v2990_v18, 0.0  ;;  %v3010_v33 = vmul.f32 0.2, %v2990_v18  ;;  %v2833_v22 = vadd.f32 %v2814_v19, %v12557_v27  ;;  %3732 = vmatpush.bf16.msrb.mxu0 %v10673_v49 }
 0x3af   : > { %v3505_v12 = vunpack.c.l.b16 %v3500_v39  ;;  %v3506_v10 = vunpack.c.h.b16 %v3500_v39  ;;  %v3236_v48 = vshrl.u32 %v3235_v32, 3  ;;  %vm3255_vm8 = vc.u32 %v3247_v37, %v3251_v16 }
 0x3b0   : > { %v3020_v27 = vsel %vm3000_vm15, %v2990_v18, %v3010_v33  ;;  %v2963_v53 = vadd.f32 %v2944_v4, %v2833_v22  ;;  %v3373_v4 = vsel %vm12779_vm7, %v12763_v63, %v12740_v44  ;;  %v10696_v18 = vld [vmem:[#allocation15 + $0xe0] sm:$0xff]  ;;  %v3257_v46 = vadd.s32 %v3251_v16, %v3247_v37 }
 0x3b1   : > { %v3518_v45 = vpack.c.b16 %v3505_v12, %v3505_v12  ;;  %v3519_v36 = vpack.c.b16 %v3506_v10, %v3506_v10  ;;  %v3411_v41 = vsel %vm12723_vm9, %v3020_v27, 0.0  ;;  %v3237_v19 = vmul.u32 10, %v3236_v48  ;;  %3939 = vmatpush.bf16.msra.mxu2 %v10680_v3  ;;  %4099 = vmatpush.bf16.msra.mxu3 %v10696_v18  ;;  %v10672_v63 = vld [vmem:[#allocation15 + $0x40] sm:$0xff]  ;;  %v10695_v27 = vld [vmem:[#allocation15 + $0xd8] sm:$0xff] }
 0x3b2   : > { %v3421_v43 = vpack.c.bf16 %v3411_v41, %v3411_v41  ;;  %v2977_v51 = vmul.f32 %v12605_v20, %v2963_v53  ;;  %v3252_v22 = vshrl.u32 %v12760_v1, 16  ;;  %v3256_v44 = vsel %vm3255_vm8, 1, %v13522_v13  ;;  %3733 = vmatpush.bf16.msrb.mxu0 %v10672_v63 }
 0x3b3   : > { %3544 = vst [vmem:[#allocation3] sm:$0xf] %v3518_v45  ;;  %v3238_v9 = vsub.s32 %v12662_v47, %v3237_v19  ;;  %v3258_v12 = vadd.s32 %v3256_v44, %v3250_v8  ;;  %vm3259_vm9 = vc.u32 %v3257_v46, %v3253_v54  ;;  %v3273_v37 = vand.u32 65535, %v12793_v5  ;;  %v2949_v54 = vpop.f32.mrf.mxu3 }
 0x3b4   : > { %3545 = vst [vmem:[#allocation3 + $0x4] sm:$0xf] %v3519_v36  ;;  %v3441_v39 = vunpack.c.l.b16 %v3421_v43  ;;  %v2991_v33 = vadd.f32 %v12617_v60, %v2977_v51  ;;  %v3260_v53 = vsel %vm3259_vm9, 1, %v13522_v13  ;;  %v3274_v41 = vshrl.u32 %v12793_v5, 16 }
 0x3b5   : > { %v2816_v11 = vpop.f32.mrf.mxu2  ;;  %vm3334_vm10 = vcmp.ne.s32.totalorder %v3238_v9, 0  ;;  %vm3344_vm13 = vcmp.lt.s32.totalorder %v3238_v9, 0  ;;  %v3364_v1 = vadd.s32 10, %v3238_v9  ;;  %4100 = vmatpush.bf16.msra.mxu3 %v10695_v27  ;;  %v3262_v36 = vadd.s32 %v3260_v53, %v3258_v12 }
 0x3b6   : > { %v3449_v10 = vpack.c.b16 %v3441_v39, %v3440_v14  ;;  %vm3001_vm11 = vcmp.ge.f32.partialorder %v2991_v33, 0.0  ;;  %v3011_v58 = vmul.f32 0.2, %v2991_v33  ;;  %v2834_v32 = vadd.f32 %v2816_v11, %v12560_v7  ;;  %vm12802_vm14 = vmand %vm3344_vm13, %vm3334_vm10 }
 0x3b7   : > { %v3254_v7 = vshrl.u32 %v12765_v28, 16  ;;  %vm12811_vm15 = vcmp.lt.s32.totalorder %v3373_v4, 8  ;;  %v3374_v0 = vsel %vm12802_vm14, %v3364_v1, %v3238_v9  ;;  %v3263_v19 = vadd.s32 %v3262_v36, %v3252_v22 }
 0x3b8   : > { %v3462_v16 = vshrl.u32 %v3449_v10, 16  ;;  %v3465_v49 = vshll.u32 %v3449_v10, 16  ;;  %v3021_v45 = vsel %vm3001_vm11, %v2991_v33, %v3011_v58  ;;  %v2964_v47 = vadd.f32 %v2946_v50, %v2834_v32 }
 0x3b9   : > { %v3412_v14 = vsel %vm12771_vm6, %v3021_v45, 0.0  ;;  %v12820_v28 = vadd.s32 72, %v12422_v42  ;;  %v3276_v33 = vmul.u32 52429, %v3273_v37  ;;  %v12826_v4 = vmul.u32 52428, %v3273_v37  ;;  %v10694_v37 = vld [vmem:[#allocation15 + $0xd0] sm:$0xff] }
 0x3ba   : > { %v3464_v48 = vrot.slane %v3462_v16, 2  ;;  %v3467_v43 = vrot.slane %v3465_v49, 3  ;;  %v3422_v51 = vpack.c.bf16 %v3412_v14, %v3412_v14  ;;  %v2978_v3 = vmul.f32 %v12605_v20, %v2964_v47  ;;  %4101 = vmatpush.bf16.msra.mxu3 %v10694_v37  ;;  %v11087_v36 = vld [vmem:[#allocation3] sm:$0xe] }
 0x3bb   : > { %v12815_v18 = vld [vmem:[#allocation3] sm:$0xff]   ;;  %v3264_v12 = vadd.s32 %v3263_v19, %v3254_v7  ;;  %v12829_v10 = vmul.u32 52429, %v3274_v41  ;;  %vm12835_vm7 = vcmp.lt.s32.totalorder %v3374_v0, 8  ;;  %v3279_v47 = vmul.u32 52428, %v3274_v41  ;;  %v10693_v0 = vld [vmem:[#allocation15 + $0xc8] sm:$0xff] }
 0x3bc   : > { %v12822_v46 = vor.u32 %v3467_v43, %v3464_v48  ;;  %v2992_v39 = vadd.f32 %v12617_v60, %v2978_v3  ;;  %3821 = vmatmul.bf16.vlgmr.msrb.gmra.mxu1 %v12815_v18  ;;  %v3442_v44 = vunpack.c.l.b16 %v3422_v51  ;;  %v3632_v63 = vshll.u32 %v12815_v18, 16 }
 0x3bd   : > { %v2819_v11 = vpop.f32.mrf.mxu2  ;;  %v3630_v53 = vshrl.u32 %v12815_v18, 16  ;;  %v3265_v16 = vshrl.u32 %v3264_v12, 3  ;;  %v3280_v8 = vshll.u32 %v12826_v4, 16  ;;  %v3282_v3 = vshll.u32 %v12829_v10, 16  ;;  %v11086_v18 = vld [vmem:[#allocation3] sm:$0xf0] }
 0x3be   : > { %v3469_v22 = vsel %vm2688_vm4, %v12756_v6, %v12822_v46  ;;  %vm3002_vm6 = vcmp.ge.f32.partialorder %v2992_v39, 0.0  ;;  %v3012_v9 = vmul.f32 0.2, %v2992_v39  ;;  %v2835_v58 = vadd.f32 %v2819_v11, %v12562_v56  ;;  %4102 = vmatpush.bf16.msra.mxu3 %v10693_v0 }
 0x3bf   : > { %v3507_v27 = vunpack.c.l.b16 %v3469_v22  ;;  %v3508_v1 = vunpack.c.h.b16 %v3469_v22  ;;  %v3634_v7 = vrot.slane %v3632_v63, 1  ;;  %v3266_v51 = vmul.u32 10, %v3265_v16 }
 0x3c0   : > { %v3022_v49 = vsel %vm3002_vm6, %v2992_v39, %v3012_v9  ;;  %v2965_v45 = vadd.f32 %v2949_v54, %v2835_v58  ;;  %v3281_v41 = vshrl.u32 %v12826_v4, 16  ;;  %v3283_v54 = vshrl.u32 %v12829_v10, 16  ;;  %v2951_v39 = vpop.f32.mrf.mxu3 }
 0x3c1   : > { %v3520_v6 = vpack.c.b16 %v3507_v27, %v3507_v27  ;;  %v3521_v14 = vpack.c.b16 %v3508_v1, %v3508_v1  ;;  %v3413_v56 = vsel %vm12811_vm15, %v3022_v49, 0.0  ;;  %vm3284_vm8 = vc.u32 %v3276_v33, %v3280_v8  ;;  %v10692_v27 = vld [vmem:[#allocation15 + $0xc0] sm:$0xff] }
 0x3c2   : > { %v3423_v48 = vpack.c.bf16 %v3413_v56, %v3413_v56  ;;  %v2979_v43 = vmul.f32 %v12605_v20, %v2965_v45  ;;  %v3286_v19 = vadd.s32 %v3280_v8, %v3276_v33  ;;  %v3267_v11 = vsub.s32 %v12711_v29, %v3266_v51  ;;  %4103 = vmatpush.bf16.msra.mxu3 %v10692_v27 }
 0x3c3   : > { %3546 = vst [vmem:[#allocation3 + $0x8] sm:$0xf] %v3520_v6  ;;  %v3285_v12 = vsel %vm3284_vm8, 1, %v13522_v13  ;;  %v11088_v58 = vor.u32 %v11087_v36, %v11086_v18  ;;  %v3302_v4 = vand.u32 65535, %v12820_v28  ;;  %v3635_v36 = vor.u32 %v3634_v7, %v3630_v53 }
 0x3c4   : > { %3547 = vst [vmem:[#allocation3 + $0xc] sm:$0xf] %v3521_v14  ;;  %v3443_v50 = vunpack.c.l.b16 %v3423_v48  ;;  %v2993_v63 = vadd.f32 %v12617_v60, %v2979_v43  ;;  %v3287_v9 = vadd.s32 %v3285_v12, %v3279_v47  ;;  %vm3288_vm9 = vc.u32 %v3286_v19, %v3282_v3 }
 0x3c5   : > { %v2821_v22 = vpop.f32.mrf.mxu2  ;;  %vm3335_vm10 = vcmp.ne.s32.totalorder %v3267_v11, 0  ;;  %vm3345_vm13 = vcmp.lt.s32.totalorder %v3267_v11, 0  ;;  %v3365_v1 = vadd.s32 10, %v3267_v11  ;;  %v3289_v29 = vsel %vm3288_vm9, 1, %v13522_v13 }
 0x3c6   : > { %v3450_v37 = vpack.c.b16 %v3443_v50, %v3442_v44  ;;  %vm3003_vm11 = vcmp.ge.f32.partialorder %v2993_v63, 0.0  ;;  %v3013_v10 = vmul.f32 0.2, %v2993_v63  ;;  %v2836_v33 = vadd.f32 %v2821_v22, %v12564_v35  ;;  %vm3355_vm14 = vmand %vm3345_vm13, %vm3335_vm10 }
 0x3c7   : > { %v3375_v44 = vsel %vm3355_vm14, %v3365_v1, %v3267_v11  ;;  %v3291_v6 = vadd.s32 %v3289_v29, %v3287_v9  ;;  %v3303_v14 = vshrl.u32 %v12820_v28, 16  ;;  %v3868_v0 = vrot.slane %v11088_v58, 1 }
 0x3c8   : > { %v3471_v16 = vshrl.u32 %v3450_v37, 16  ;;  %v3474_v49 = vshll.u32 %v3450_v37, 16  ;;  %v3023_v45 = vsel %vm3003_vm11, %v2993_v63, %v3013_v10  ;;  %v2966_v8 = vadd.f32 %v2951_v39, %v2836_v33  ;;  %v2954_v22 = vpop.f32.mrf.mxu3 }
 0x3c9   : > { %v3414_v47 = vsel %vm12835_vm7, %v3023_v45, 0.0  ;;  %vm12857_vm15 = vcmp.lt.s32.totalorder %v3375_v44, 8  ;;  %v3292_v3 = vadd.s32 %v3291_v6, %v3281_v41  ;;  %v3305_v50 = vmul.u32 52429, %v3302_v4 }
 0x3ca   : > { %v3473_v35 = vrot.slane %v3471_v16, 2  ;;  %v3476_v56 = vrot.slane %v3474_v49, 3  ;;  %v2980_v48 = vmul.f32 %v12605_v20, %v2966_v8  ;;  %v3424_v43 = vpack.c.bf16 %v3414_v47, %v3414_v47 }
 0x3cb   : > { %v12861_v18 = vld [vmem:[#allocation3 + $0x8] sm:$0xff]  ;;  %v12866_v39 = vmul.u32 52428, %v3302_v4  ;;  %v3293_v53 = vadd.s32 %v3292_v3, %v3283_v54  ;;  %v12871_v12 = vmul.u32 52429, %v3303_v14  ;;  %v3308_v6 = vmul.u32 52428, %v3303_v14 }
 0x3cc   : > { %v12863_v32 = vor.u32 %v3476_v56, %v3473_v35  ;;  %v2994_v19 = vadd.f32 %v12617_v60, %v2980_v48  ;;  %3826 = vmatmul.bf16.gmra.mxu1 %v12861_v18  ;;  %v3869_v7 = vrot.slane %v12861_v18, 1  ;;  %v3637_v11 = vshll.u32 %v12861_v18, 16 }
 0x3cd   : > { %v2824_v63 = vpop.f32.mrf.mxu2  ;;  %v3294_v54 = vshrl.u32 %v3293_v53, 3  ;;  %v3309_v29 = vshll.u32 %v12866_v39, 16  ;;  %v3444_v35 = vunpack.c.l.b16 %v3424_v43  ;;  %v3311_v48 = vshll.u32 %v12871_v12, 16 }
 0x3ce   : > { %v3478_v41 = vsel %vm2688_vm4, %v12822_v46, %v12863_v32  ;;  %vm3004_vm6 = vcmp.ge.f32.partialorder %v2994_v19, 0.0  ;;  %v3014_v9 = vmul.f32 0.2, %v2994_v19  ;;  %v2837_v58 = vadd.f32 %v2824_v63, %v12664_v25  ;;  %v2654_v46 = vpop.f32.mrf.mxu1  ;;  %v3976_v63 = vld [vmem:[#allocation3 + $0x4] sm:$0xe] }
 0x3cf   : > { %v3509_v4 = vunpack.c.l.b16 %v3478_v41  ;;  %v3510_v37 = vunpack.c.h.b16 %v3478_v41  ;;  %v3870_v10 = vsel %vm2026_vm0, %v3868_v0, %v3869_v7  ;;  %v12880_v1 = vrot.slane %v3637_v11, 1 }
 0x3d0   : > { %v3024_v33 = vsel %vm3004_vm6, %v2994_v19, %v3014_v9  ;;  %v2967_v27 = vadd.f32 %v2954_v22, %v2837_v58  ;;  %3940 = vmatmul.bf16.vlgmr.msra.gmra.mxu2 %v3870_v10  ;;  %v3295_v45 = vmul.u32 10, %v3294_v54  ;;  %v2666_v44 = vadd.f32 %v2654_v46, %v12673_v2 }
 0x3d1   : > { %v3522_v16 = vpack.c.b16 %v3509_v4, %v3509_v4  ;;  %v3523_v49 = vpack.c.b16 %v3510_v37, %v3510_v37  ;;  %v3415_v25 = vsel %vm12857_vm15, %v3024_v33, 0.0  ;;  %v3640_v47 = vsel %vm1786_vm1, %v3635_v36, %v12880_v1  ;;  %v12892_v36 = vld [vmem:[#allocation3 + $0x8] sm:$0xff]   ;;  %v2956_v4 = vpop.f32.mrf.mxu3 }
 0x3d2   : > { %v3425_v8 = vpack.c.bf16 %v3415_v25, %v3415_v25  ;;  %v2981_v56 = vmul.f32 %v12605_v20, %v2967_v27  ;;  %3734 = vmatmul.bf16.vlgmr.msrb.gmra.mxu0 %v3640_v47  ;;  %vm3313_vm7 = vc.u32 %v3305_v50, %v3309_v29  ;;  %v3296_v51 = vsub.s32 %v12793_v5, %v3295_v45 }
 0x3d3   : > { %3548 = vst [vmem:[#allocation3 + $0x10] sm:$0xf] %v3522_v16  ;;  %v3314_v0 = vsel %vm3313_vm7, 1, %v13522_v13  ;;  %v3315_v19 = vadd.s32 %v3309_v29, %v3305_v50  ;;  %v3310_v11 = vshrl.u32 %v12866_v39, 16  ;;  %v4015_v41 = vunpack.c.l.b16 %v3976_v63 }
 0x3d4   : > { %3549 = vst [vmem:[#allocation3 + $0x14] sm:$0xf] %v3523_v49  ;;  %v3445_v3 = vunpack.c.l.b16 %v3425_v8  ;;  %v3316_v43 = vadd.s32 %v3314_v0, %v3308_v6  ;;  %v4016_v22 = vunpack.c.l.b16 %v12892_v36  ;;  %v2995_v5 = vadd.f32 %v12617_v60, %v2981_v56 }
 0x3d5   : > { %v2826_v2 = vpop.f32.mrf.mxu2  ;;  %vm3317_vm8 = vc.u32 %v3315_v19, %v3311_v48  ;;  %vm3336_vm9 = vcmp.ne.s32.totalorder %v3296_v51, 0  ;;  %vm3346_vm11 = vcmp.lt.s32.totalorder %v3296_v51, 0  ;;  %v3312_v39 = vshrl.u32 %v12871_v12, 16 }
 0x3d6   : > { %v3451_v14 = vpack.c.b16 %v3445_v3, %v3444_v35  ;;  %v2838_v53 = vadd.f32 %v2826_v2, %v2666_v44  ;;  %v3318_v37 = vsel %vm3317_vm8, 1, %v13522_v13  ;;  %v4026_v54 = vpack.c.b16 %v4016_v22, %v4015_v41  ;;  %vm12908_vm10 = vmand %vm3346_vm11, %vm3336_vm9 }
 0x3d7   : > { %v3320_v27 = vadd.s32 %v3318_v37, %v3316_v43  ;;  %v3366_v46 = vadd.s32 10, %v3296_v51  ;;  %vm3005_vm13 = vcmp.ge.f32.partialorder %v2995_v5, 0.0  ;;  %v3015_v12 = vmul.f32 0.2, %v2995_v5 }
 0x3d8   : > { %v3480_v9 = vshrl.u32 %v3451_v14, 16  ;;  %v3483_v58 = vshll.u32 %v3451_v14, 16  ;;  %v2968_v50 = vadd.f32 %v2956_v4, %v2838_v53  ;;  %v4032_v47 = vrot.slane %v4026_v54, 1  ;;  %v10715_v14 = vld [vmem:[#allocation15 + $0x178] sm:$0xff] }
 0x3d9   : > { %v3321_v8 = vadd.s32 %v3320_v27, %v3310_v11  ;;  %v3641_v3 = vshrl.u32 %v12861_v18, 16  ;;  %v3376_v63 = vsel %vm12908_vm10, %v3366_v46, %v3296_v51  ;;  %4396 = vmatpush.bf16.msra.mxu1 %v10715_v14  ;;  %v3025_v51 = vsel %vm3005_vm13, %v2995_v5, %v3015_v12  ;;  %v4775_v14 = vld [vmem:[#allocation3 + $0x8] sm:$0x8] }
 0x3da   : > { %v3482_v10 = vrot.slane %v3480_v9, 2  ;;  %v3485_v33 = vrot.slane %v3483_v58, 3  ;;  %v12901_v29 = vld [vmem:[#allocation3 + $0xc] sm:$0xff]  ;;  %v2982_v16 = vmul.f32 %v12605_v20, %v2968_v50  ;;  %v10714_v58 = vld [vmem:[#allocation15 + $0x170] sm:$0xff]  ;;  %vm3386_vm14 = vcmp.lt.s32.totalorder %v3376_v63, 8  ;;  %v10707_v63 = vld [vmem:[#allocation15 + $0x138] sm:$0xff] }
 0x3db   : > { %v12904_v49 = vld [vmem:[#allocation3 + $0x10] sm:$0xff]  ;;  %v4033_v44 = vrot.slane %v12901_v29, 1  ;;  %v3322_v56 = vadd.s32 %v3321_v8, %v3312_v39  ;;  %v3643_v43 = vor.u32 %v3641_v3, %v12880_v1  ;;  %v4162_v18 = vshrl.u32 %v4026_v54, 16  ;;  %4267 = vmatpush.bf16.msra.mxu0 %v10707_v63 }
 0x3dc   : > { %v12906_v25 = vor.u32 %v3485_v33, %v3482_v10  ;;  %3831 = vmatmul.bf16.gmra.mxu1 %v12904_v49  ;;  %v3871_v6 = vrot.slane %v12904_v49, 1  ;;  %v3645_v20 = vshll.u32 %v12904_v49, 16  ;;  %v2996_v2 = vadd.f32 %v12617_v60, %v2982_v16  ;;  %v10713_v33 = vld [vmem:[#allocation15 + $0x168] sm:$0xff] }
 0x3dd   : > { %v4034_v48 = vsel %vm2026_vm0, %v4032_v47, %v4033_v44  ;;  %v3323_v53 = vshrl.u32 %v3322_v56, 3  ;;  %v4165_v1 = vshll.u32 %v4026_v54, 16  ;;  %v4170_v37 = vshrl.u32 %v12901_v29, 16  ;;  %4397 = vmatpush.bf16.msra.mxu1 %v10714_v58 }
 0x3de   : > { %v3487_v35 = vsel %vm2688_vm4, %v12863_v32, %v12906_v25  ;;  %4104 = vmatmul.bf16.vlgmr.msra.gmra.mxu3 %v4034_v48  ;;  %v3872_v32 = vsel %vm2026_vm0, %v3869_v7, %v3871_v6  ;;  %v3647_v11 = vrot.slane %v3645_v20, 1  ;;  %v3016_v50 = vmul.f32 0.2, %v2996_v2  ;;  %v10712_v48 = vld [vmem:[#allocation15 + $0x160] sm:$0xff] }
 0x3df   : > { %v3511_v0 = vunpack.c.l.b16 %v3487_v35  ;;  %v3512_v19 = vunpack.c.h.b16 %v3487_v35  ;;  %v3324_v60 = vmul.u32 10, %v3323_v53  ;;  %vm3006_vm15 = vcmp.ge.f32.partialorder %v2996_v2, 0.0 }
 0x3e0   : > { %3945 = vmatmul.bf16.gmra.mxu2 %v3872_v32  ;;  %v3648_v4 = vsel %vm1786_vm1, %v3643_v43, %v3647_v11  ;;  %v3416_v10 = vsel %vm3386_vm14, %v3025_v51, 0.0  ;;  %v4164_v39 = vrot.slane %v4162_v18, 1  ;;  %v4173_v5 = vshll.u32 %v12901_v29, 16  ;;  %v10726_v43 = vld [vmem:[#allocation15 + $0x1b0] sm:$0xff] }
 0x3e1   : > { %v3524_v41 = vpack.c.b16 %v3511_v0, %v3511_v0  ;;  %v3525_v9 = vpack.c.b16 %v3512_v19, %v3512_v19  ;;  %v3325_v7 = vsub.s32 %v12820_v28, %v3324_v60  ;;  %v4167_v46 = vrot.slane %v4165_v1, 2  ;;  %4398 = vmatpush.bf16.msra.mxu1 %v10713_v33  ;;  %v10727_v28 = vld [vmem:[#allocation15 + $0x1b8] sm:$0xff]  ;;  %v10706_v60 = vld [vmem:[#allocation15 + $0x130] sm:$0xff] }
 0x3e2   : > { %3739 = vmatmul.bf16.gmra.mxu0 %v3648_v4  ;;  %v3026_v16 = vsel %vm3006_vm15, %v2996_v2, %v3016_v50  ;;  %v4172_v45 = vrot.slane %v4170_v37, 1  ;;  %v4175_v8 = vrot.slane %v4173_v5, 2  ;;  %v3426_v47 = vpack.c.bf16 %v3416_v10, %v3416_v10  ;;  %4560 = vmatpush.bf16.msrb.mxu2 %v10727_v28  ;;  %v10711_v50 = vld [vmem:[#allocation15 + $0x158] sm:$0xff]  ;;  %v12957_v18 = vld [vmem:[#allocation3 + $0x10] sm:$0xff] }
 0x3e3   : > { %3550 = vst [vmem:[#allocation3 + $0x18] sm:$0xf] %v3524_v41  ;;  %vm3337_vm6 = vcmp.ne.s32.totalorder %v3325_v7, 0  ;;  %vm3347_vm7 = vcmp.lt.s32.totalorder %v3325_v7, 0  ;;  %v3367_v27 = vadd.s32 10, %v3325_v7  ;;  %v4168_v54 = vor.u32 %v4167_v46, %v4164_v39  ;;  %4268 = vmatpush.bf16.msra.mxu0 %v10706_v60 }
 0x3e4   : > { %3551 = vst [vmem:[#allocation3 + $0x1c] sm:$0xf] %v3525_v9  ;;  %vm3357_vm8 = vmand %vm3347_vm7, %vm3337_vm6  ;;  %v12937_v20 = vor.u32 %v4175_v8, %v4172_v45  ;;  %v3649_v19 = vshrl.u32 %v12904_v49, 16  ;;  %v3446_v53 = vunpack.c.l.b16 %v3426_v47  ;;  %v4794_v37 = vunpack.c.l.b16 %v4775_v14  ;;  %v10705_v49 = vld [vmem:[#allocation15 + $0x128] sm:$0xff] }
 0x3e5   : > { %v3377_v12 = vsel %vm3357_vm8, %v3367_v27, %v3325_v7  ;;  %4399 = vmatpush.bf16.msra.mxu1 %v10712_v48  ;;  %v4480_v7 = vunpack.c.h.b16 %v12892_v36  ;;  %v4797_v47 = vrot.slane %v12957_v18, 3  ;;  %v4637_v36 = vshll.u32 %v12957_v18, 16 }
 0x3e6   : > { %vm3387_vm9 = vcmp.lt.s32.totalorder %v3377_v12, 8  ;;  %v12946_v2 = vsel %vm1573_vm2, %v4168_v54, %v12937_v20  ;;  %v3651_v58 = vor.u32 %v3649_v19, %v3647_v11  ;;  %4561 = vmatpush.bf16.msrb.mxu2 %v10726_v43  ;;  %v3517_v54 = vunpack.c.l.b16 %v13522_v13  ;;  %v10724_v43 = vld [vmem:[#allocation15 + $0x1a0] sm:$0xff] }
 0x3e7   : > { %v3417_v35 = vsel %vm3387_vm9, %v3026_v16, 0.0  ;;  %4269 = vmatpush.bf16.msra.mxu0 %v10705_v49  ;;  %v10722_v49 = vld [vmem:[#allocation15 + $0x190] sm:$0xff]  ;;  %vm4995_vm9 = vcmask 654336  }
 0x3e8   : > { %v3427_v3 = vpack.c.bf16 %v3417_v35, %v3417_v35  ;;  %v4795_v35 = vpack.c.b16 %v4480_v7, %v4794_v37  ;;  %v3530_v63 = vpack.c.b16 %v3517_v54, %v3517_v54 }
 0x3e9   : > { %4400 = vmatpush.bf16.msra.mxu1 %v10711_v50 }
 0x3ea   : > { %v12939_v56 = vld [vmem:[#allocation3 + $0x14] sm:$0xff]  ;;  %v3447_v41 = vunpack.c.l.b16 %v3427_v3  ;;  %v4796_v14 = vrot.slane %v4795_v35, 3  ;;  %3556 = vst [vmem:[#allocation3 + $0x30] sm:$0x7] %v3530_v63 }
 0x3eb   : > { %v12941_v0 = vld [vmem:[#allocation3 + $0x18] sm:$0xff]  ;;  %v4035_v32 = vrot.slane %v12939_v56, 1  ;;  %v4179_v1 = vshrl.u32 %v12939_v56, 16  ;;  %v4182_v39 = vshll.u32 %v12939_v56, 16  ;;  %6136 = vst [vmem:[#allocation5 + $0x10] sm:$0x7] %v3530_v63 }
 0x3ec   : > { %3836 = vmatmul.bf16.gmra.mxu1 %v12941_v0  ;;  %v3873_v9 = vrot.slane %v12941_v0, 1  ;;  %v3653_v51 = vshll.u32 %v12941_v0, 16  ;;  %v3452_v11 = vpack.c.b16 %v3447_v41, %v3446_v53  ;;  %v12969_v5 = vld [vmem:[#allocation3 + $0x18] sm:$0xff]  ;;  %v10709_v53 = vld [vmem:[#allocation15 + $0x148] sm:$0xff]  ;;  %v10704_v41 = vld [vmem:[#allocation15 + $0x120] sm:$0xff]  ;;  %v12995_v50 = vsel %vm2860_vm3, %v4796_v14, %v4797_v47 }
 0x3ed   : > { %v4036_v4 = vsel %vm2026_vm0, %v4033_v44, %v4035_v32  ;;  %v10725_v44 = vld [vmem:[#allocation15 + $0x1a8] sm:$0xff]  ;;  %v4181_v27 = vrot.slane %v4179_v1, 1  ;;  %v4184_v8 = vrot.slane %v4182_v39, 2  ;;  %v4799_v3 = vrot.slane %v12969_v5, 3  ;;  %4270 = vmatpush.bf16.msra.mxu0 %v10704_v41  ;;  %v10700_v41 = vld [vmem:[#allocation15 + $0x100] sm:$0xff] }
 0x3ee   : > { %v3874_v10 = vsel %vm2026_vm0, %v3871_v6, %v3873_v9  ;;  %4109 = vmatmul.bf16.gmra.mxu3 %v4036_v4  ;;  %v12966_v33 = vrot.slane %v3653_v51, 1  ;;  %v3489_v46 = vshrl.u32 %v3452_v11, 16  ;;  %v3492_v16 = vshll.u32 %v3452_v11, 16  ;;  %v10710_v6 = vld [vmem:[#allocation15 + $0x150] sm:$0xff]  ;;  %4562 = vmatpush.bf16.msrb.mxu2 %v10725_v44  ;;  %v10735_v44 = vld [vmem:[#allocation15 + $0x1f8] sm:$0xff] }
 0x3ef   : > { %v12977_v48 = vor.u32 %v4184_v8, %v4181_v27  ;;  %4401 = vmatpush.bf16.msra.mxu1 %v10710_v6  ;;  %v12988_v51 = vsel %vm2860_vm3, %v4797_v47, %v4799_v3  ;;  %4731 = vmatpush.bf16.msrb.mxu3 %v10735_v44  ;;  %v10702_v6 = vld [vmem:[#allocation15 + $0x110] sm:$0xff]  ;;  %v10733_v8 = vld [vmem:[#allocation15 + $0x1e8] sm:$0xff]  ;;  %v3657_v63 = vshrl.u32 %v12941_v0, 16  ;;  %v10731_v44 = vld [vmem:[#allocation15 + $0x1d8] sm:$0xff] }
 0x3f0   : > { %3950 = vmatmul.bf16.gmra.mxu2 %v3874_v10  ;;  %v3656_v45 = vsel %vm1786_vm1, %v3651_v58, %v12966_v33  ;;  %v3491_v12 = vrot.slane %v3489_v46, 2  ;;  %v3494_v28 = vrot.slane %v3492_v16, 3  ;;  %v10723_v10 = vld [vmem:[#allocation15 + $0x198] sm:$0xff]  ;;  %v10721_v47 = vld [vmem:[#allocation15 + $0x188] sm:$0xff] }
 0x3f1   : > { %v12983_v58 = vsel %vm1573_vm2, %v12937_v20, %v12977_v48  ;;  %v10703_v16 = vld [vmem:[#allocation15 + $0x118] sm:$0xff] }
 0x3f2   : > { %3744 = vmatmul.bf16.gmra.mxu0 %v3656_v45  ;;  %v3495_v19 = vor.u32 %v3494_v28, %v3491_v12  ;;  %4563 = vmatpush.bf16.msrb.mxu2 %v10724_v43  ;;  %v10734_v45 = vld [vmem:[#allocation15 + $0x1f0] sm:$0xff]  ;;  %v10701_v12 = vld [vmem:[#allocation15 + $0x108] sm:$0xff]  ;;  %v10732_v43 = vld [vmem:[#allocation15 + $0x1e0] sm:$0xff] }
 0x3f3   : > { %4402 = vmatpush.bf16.msra.mxu1 %v10709_v53  ;;  %4271 = vmatpush.bf16.msra.mxu0 %v10703_v16  ;;  %v10720_v53 = vld [vmem:[#allocation15 + $0x180] sm:$0xff] }
 0x3f4   : > { %v3496_v60 = vsel %vm2688_vm4, %v12906_v25, %v3495_v19  ;;  %v3501_v4 = vsel %vm12750_vm12, %v3495_v19, 0  ;;  %v10708_v25 = vld [vmem:[#allocation15 + $0x140] sm:$0xff]  ;;  %4732 = vmatpush.bf16.msrb.mxu3 %v10734_v45 }
 0x3f5   : > { %v3513_v1 = vunpack.c.l.b16 %v3496_v60  ;;  %v3514_v37 = vunpack.c.h.b16 %v3496_v60  ;;  %v3515_v11 = vunpack.c.l.b16 %v3501_v4  ;;  %v3516_v20 = vunpack.c.h.b16 %v3501_v4 }
 0x3f6   : > { %4564 = vmatpush.bf16.msrb.mxu2 %v10723_v10  ;;  %v4604_v10 = vld [vmem:[#allocation3 + $0x30] sm:$0x7] }
 0x3f7   : > { %v3526_v39 = vpack.c.b16 %v3513_v1, %v3513_v1  ;;  %v3527_v27 = vpack.c.b16 %v3514_v37, %v3514_v37  ;;  %v3528_v46 = vpack.c.b16 %v3515_v11, %v3515_v11  ;;  %v3529_v26 = vpack.c.b16 %v3516_v20, %v3516_v20  ;;  %4403 = vmatpush.bf16.msra.mxu1 %v10708_v25 }
 0x3f8   : > { %4272 = vmatpush.bf16.msra.mxu0 %v10702_v6  ;;  %4733 = vmatpush.bf16.msrb.mxu3 %v10733_v8  ;;  %v3659_v11 = vor.u32 %v3657_v63, %v12966_v33  ;;  %v4623_v25 = vunpack.c.l.b16 %v4604_v10  ;;  %v10730_v33 = vld [vmem:[#allocation15 + $0x1d0] sm:$0xff] }
 0x3f9   : > { %3552 = vst [vmem:[#allocation3 + $0x20] sm:$0xf] %v3526_v39  ;;  %v4311_v39 = vld [vmem:[#allocation3 + $0x4] sm:$0xc] }
 0x3fa   : > { %3553 = vst [vmem:[#allocation3 + $0x24] sm:$0xf] %v3527_v27  ;;  %4565 = vmatpush.bf16.msrb.mxu2 %v10722_v49 }
 0x3fb   : > { %3554 = vst [vmem:[#allocation3 + $0x28] sm:$0xf] %v3528_v46 }
 0x3fc   : > { %3555 = vst [vmem:[#allocation3 + $0x2c] sm:$0xf] %v3529_v26  ;;  %4273 = vmatpush.bf16.msra.mxu0 %v10701_v12  ;;  %4734 = vmatpush.bf16.msrb.mxu3 %v10732_v43  ;;  %v4330_v26 = vunpack.c.l.b16 %v4311_v39  ;;  %v10729_v43 = vld [vmem:[#allocation15 + $0x1c8] sm:$0xff] }
 0x3fe   : > { %4566 = vmatpush.bf16.msrb.mxu2 %v10721_v47  ;;  %v4331_v6 = vpack.c.b16 %v4016_v22, %v4330_v26  ;;  %v13025_v47 = vpack.c.b16 %v4623_v25, %v4623_v25 }
 0x400   : > { %v12997_v28 = vld [vmem:[#allocation3 + $0x1c] sm:$0xff]  ;;  %4274 = vmatpush.bf16.msra.mxu0 %v10700_v41  ;;  %4735 = vmatpush.bf16.msrb.mxu3 %v10731_v44 }
 0x401   : > { %v12999_v54 = vld [vmem:[#allocation3 + $0x20] sm:$0xff]  ;;  %v4037_v35 = vrot.slane %v12997_v28, 1  ;;  %v4188_v1 = vshrl.u32 %v12997_v28, 16 }
 0x402   : > { %3841 = vmatmul.bf16.gmra.mxu1 %v12999_v54  ;;  %v3875_v19 = vrot.slane %v12999_v54, 1  ;;  %v3661_v14 = vshll.u32 %v12999_v54, 16  ;;  %v3583_v4 = vld [vmem:[#allocation3 + $0x28] sm:$0x1]  ;;  %4567 = vmatpush.bf16.msrb.mxu2 %v10720_v53  ;;  %v13027_v12 = vld [vmem:[#allocation3 + $0x20] sm:$0xff]  ;;  %v4333_v53 = vrot.slane %v12901_v29, 2 }
 0x403   : > { %v4038_v60 = vsel %vm2026_vm0, %v4035_v32, %v4037_v35  ;;  %v3622_v27 = vunpack.c.l.b16 %v3583_v4  ;;  %v13019_v46 = vld [vmem:[#allocation3 + $0x24] sm:$0xff]  ;;  %v4190_v0 = vrot.slane %v4188_v1, 1  ;;  %v4332_v1 = vrot.slane %v4331_v6, 2 }
 0x404   : > { %v3876_v37 = vsel %vm2026_vm0, %v3873_v9, %v3875_v19  ;;  %4114 = vmatmul.bf16.gmra.mxu3 %v4038_v60  ;;  %v3663_v20 = vrot.slane %v3661_v14, 1  ;;  %v4191_v9 = vshll.u32 %v12997_v28, 16  ;;  %v4197_v49 = vshrl.u32 %v13019_v46, 16  ;;  %v13035_v60 = vld [vmem:[#allocation3 + $0x28] sm:$0xff] }
 0x405   : > { %3955 = vmatmul.bf16.gmra.mxu2 %v3876_v37  ;;  %v3628_v45 = vpack.c.b16 %v3622_v27, %v3622_v27  ;;  %v4200_v14 = vshll.u32 %v13019_v46, 16  ;;  %4736 = vmatpush.bf16.msrb.mxu3 %v10730_v33  ;;  %v4039_v37 = vrot.slane %v13019_v46, 1  ;;  %v3665_v44 = vshrl.u32 %v12999_v54, 16 }
 0x406   : > { %v3664_v32 = vsel %vm1786_vm1, %v3659_v11, %v3663_v20  ;;  %v4193_v16 = vrot.slane %v4191_v9, 2  ;;  %v4199_v63 = vrot.slane %v4197_v49, 1  ;;  %v4805_v11 = vrot.slane %v13025_v47, 3  ;;  %v10728_v9 = vld [vmem:[#allocation15 + $0x1c0] sm:$0xff]  ;;  %v3986_v49 = vld [vmem:[#allocation3 + $0x2c] sm:$0x1] }
 0x407   : > { %3749 = vmatmul.bf16.gmra.mxu0 %v3664_v32  ;;  %v3669_v4 = vshll.u32 %v3628_v45, 16  ;;  %v4202_v22 = vrot.slane %v4200_v14, 2  ;;  %v3877_v10 = vrot.slane %v3628_v45, 1  ;;  %v4801_v29 = vrot.slane %v13027_v12, 3 }
 0x408   : > { %v4194_v8 = vor.u32 %v4193_v16, %v4190_v0  ;;  %v4334_v39 = vsel %vm2394_vm5, %v4332_v1, %v4333_v53  ;;  %v3667_v27 = vor.u32 %v3665_v44, %v3663_v20  ;;  %v4040_v33 = vsel %vm2026_vm0, %v4037_v35, %v4039_v37 }
 0x409   : > { %v13040_v32 = vor.u32 %v4202_v22, %v4199_v63  ;;  %4737 = vmatpush.bf16.msrb.mxu3 %v10729_v43  ;;  %v3671_v0 = vrot.slane %v3669_v4, 1  ;;  %v13052_v26 = vsel %vm2860_vm3, %v4799_v3, %v4801_v29  ;;  %v3878_v45 = vsel %vm2026_vm0, %v3875_v19, %v3877_v10 }
 0x40a   : > { %v13033_v41 = vsel %vm1573_vm2, %v12977_v48, %v4194_v8  ;;  %v4803_v48 = vrot.slane %v13035_v60, 3  ;;  %v4025_v6 = vunpack.c.l.b16 %v3986_v49  ;;  %v4335_v14 = vrot.slane %v12939_v56, 2  ;;  %v10742_v49 = vld [vmem:[#allocation15 + $0x230] sm:$0xff] }
 0x40b   : > { %v13047_v25 = vsel %vm1573_vm2, %v4194_v8, %v13040_v32  ;;  %v3672_v3 = vsel %vm1786_vm1, %v3667_v27, %v3671_v0  ;;  %v4440_v8 = vld [vmem:[#allocation3 + $0x8] sm:$0xc]  ;;  %v4497_v54 = vrot.slane %v12957_v18, 2  ;;  %v4634_v56 = vshrl.u32 %v12957_v18, 16 }
 0x40c   : > { %v13058_v16 = vsel %vm2860_vm3, %v4801_v29, %v4803_v48  ;;  %v13061_v20 = vsel %vm2860_vm3, %v4803_v48, %v4805_v11  ;;  %v4479_v35 = vunpack.c.l.b16 %v4440_v8  ;;  %v4031_v63 = vpack.c.b16 %v4025_v6, %v4025_v6 }
 0x40d   : > { %4738 = vmatpush.bf16.msrb.mxu3 %v10728_v9  ;;  %v4336_v19 = vsel %vm2394_vm5, %v4333_v53, %v4335_v14  ;;  %v4636_v44 = vrot.slane %v4634_v56, 2  ;;  %v4639_v29 = vrot.slane %v4637_v36, 3  ;;  %v4337_v53 = vrot.slane %v12997_v28, 2 }
 0x40e   : > { %v4490_v43 = vpack.c.b16 %v4480_v7, %v4479_v35  ;;  %v4041_v4 = vrot.slane %v4031_v63, 1  ;;  %v4643_v18 = vshrl.u32 %v12969_v5, 16  ;;  %v4646_v28 = vshll.u32 %v12969_v5, 16  ;;  %v10741_v35 = vld [vmem:[#allocation15 + $0x228] sm:$0xff] }
 0x40f   : > { %v4640_v27 = vor.u32 %v4639_v29, %v4636_v44  ;;  %v4338_v0 = vsel %vm2394_vm5, %v4335_v14, %v4337_v53  ;;  %v4339_v8 = vrot.slane %v13019_v46, 2  ;;  %v4652_v46 = vshrl.u32 %v13027_v12, 16 }
 0x410   : > { %v4496_v22 = vrot.slane %v4490_v43, 2  ;;  %v4042_v1 = vsel %vm2026_vm0, %v4039_v37, %v4041_v4  ;;  %v4626_v7 = vshrl.u32 %v4490_v43, 16  ;;  %v4629_v10 = vshll.u32 %v4490_v43, 16 }
 0x411   : > { %v4499_v37 = vrot.slane %v12969_v5, 2  ;;  %v4648_v6 = vrot.slane %v4646_v28, 3  ;;  %v4501_v43 = vrot.slane %v13027_v12, 2  ;;  %v4340_v4 = vsel %vm2394_vm5, %v4337_v53, %v4339_v8 }
 0x412   : > { %4404 = vmatmul.bf16.vlgmr.msra.gmra.mxu1 %v4334_v39  ;;  %v4498_v11 = vsel %vm2394_vm5, %v4496_v22, %v4497_v54  ;;  %v4628_v39 = vrot.slane %v4626_v7, 2  ;;  %v4631_v48 = vrot.slane %v4629_v10, 3  ;;  %v10738_v7 = vld [vmem:[#allocation15 + $0x210] sm:$0xff]  ;;  %v4654_v10 = vrot.slane %v4652_v46, 2 }
 0x414   : > { %4119 = vmatmul.bf16.gmra.mxu3 %v4040_v33  ;;  %v4632_v9 = vor.u32 %v4631_v48, %v4628_v39  ;;  %v4500_v33 = vsel %vm2394_vm5, %v4497_v54, %v4499_v37  ;;  %v4140_v54 = vld [vmem:[#allocation3 + $0x2c] sm:$0x3] }
 0x415   : > { %3960 = vmatmul.bf16.gmra.mxu2 %v3878_v45  ;;  %v10743_v45 = vld [vmem:[#allocation15 + $0x238] sm:$0xff]  ;;  %v4159_v22 = vunpack.c.l.b16 %v4140_v54  ;;  %v10737_v48 = vld [vmem:[#allocation15 + $0x208] sm:$0xff] }
 0x416   : > { %4860 = vmatpush.bf16.msrb.mxu0 %v10743_v45  ;;  %v4450_v45 = vld [vmem:[#allocation3 + $0x30] sm:$0x3] }
 0x417   : > { %3754 = vmatmul.bf16.gmra.mxu0 %v3672_v3  ;;  %v4645_v3 = vrot.slane %v4643_v18, 2  ;;  %v4160_v36 = vpack.c.b16 %v4159_v22, %v4159_v22 }
 0x419   : > { %v4649_v14 = vor.u32 %v4648_v6, %v4645_v3  ;;  %v4341_v53 = vrot.slane %v4160_v36, 2  ;;  %v4661_v3 = vshrl.u32 %v13035_v60, 16  ;;  %v4664_v6 = vshll.u32 %v13035_v60, 16 }
 0x41a   : > { %4861 = vmatpush.bf16.msrb.mxu0 %v10742_v49 }
 0x41b   : > { %v4650_v5 = vsel %vm2688_vm4, %v4640_v27, %v4649_v14 }
 0x41e   : > { %4862 = vmatpush.bf16.msrb.mxu0 %v10741_v35  ;;  %v4206_v35 = vshrl.u32 %v4160_v36, 16 }
 0x422   : > { %4409 = vmatmul.bf16.gmra.mxu1 %v4336_v19  ;;  %v4502_v19 = vsel %vm2394_vm5, %v4499_v37, %v4501_v43 }
 0x424   : > { %4124 = vmatmul.bf16.gmra.mxu3 %v4042_v1  ;;  %v4655_v1 = vshll.u32 %v13027_v12, 16  ;;  %v4342_v12 = vsel %vm2394_vm5, %v4339_v8, %v4341_v53  ;;  %v4489_v8 = vunpack.c.l.b16 %v4450_v45 }
 0x425   : > { %4568 = vmatmul.bf16.vlgmr.msrb.gmra.mxu2 %v4498_v11  ;;  %v10739_v11 = vld [vmem:[#allocation15 + $0x218] sm:$0xff] }
 0x426   : > { %v4657_v44 = vrot.slane %v4655_v1, 3  ;;  %v4495_v54 = vpack.c.b16 %v4489_v8, %v4489_v8 }
 0x427   : > { %4275 = vmatmul.bf16.vlgmr.msra.gmra.mxu0 %v12946_v2  ;;  %v4641_v2 = vsel %vm2688_vm4, %v4632_v9, %v4640_v27  ;;  %v10736_v9 = vld [vmem:[#allocation15 + $0x200] sm:$0xff] }
 0x428   : > { %v4658_v27 = vor.u32 %v4657_v44, %v4654_v10 }
 0x432   : > { %4414 = vmatmul.bf16.gmra.mxu1 %v4338_v0 }
 0x434   : > { %4739 = vmatmul.bf16.vlgmr.msrb.gmra.mxu3 %v4641_v2 }
 0x435   : > { %4573 = vmatmul.bf16.gmra.mxu2 %v4500_v33  ;;  %v4659_v33 = vsel %vm2688_vm4, %v4649_v14, %v4658_v27  ;;  %v4663_v14 = vrot.slane %v4661_v3, 2 }
 0x437   : > { %4280 = vmatmul.bf16.gmra.mxu0 %v12983_v58  ;;  %v10740_v58 = vld [vmem:[#allocation15 + $0x220] sm:$0xff] }
 0x438   : > { %4863 = vmatpush.bf16.msrb.mxu0 %v10740_v58 }
 0x439   : > { %v3822_v63 = vpop.f32.mrf.mxu1 }
 0x43c   : > { %4864 = vmatpush.bf16.msrb.mxu0 %v10739_v11  ;;  %v4505_v11 = vrot.slane %v4495_v54, 2 }
 0x440   : > { %4865 = vmatpush.bf16.msrb.mxu0 %v10738_v7 }
 0x441   : > { %v13093_v56 = vpop.f32.mrf.mxu1 }
 0x442   : > { %4419 = vmatmul.bf16.gmra.mxu1 %v4340_v4  ;;  %v4666_v4 = vrot.slane %v4664_v6, 3 }
 0x444   : > { %4744 = vmatmul.bf16.gmra.mxu3 %v4650_v5  ;;  %4866 = vmatpush.bf16.msrb.mxu0 %v10737_v48 }
 0x445   : > { %4578 = vmatmul.bf16.gmra.mxu2 %v4502_v19  ;;  %v4208_v19 = vrot.slane %v4206_v35, 1 }
 0x447   : > { %4285 = vmatmul.bf16.gmra.mxu0 %v13033_v41  ;;  %v4503_v41 = vrot.slane %v13035_v60, 2 }
 0x448   : > { %4867 = vmatpush.bf16.msrb.mxu0 %v10736_v9 }
 0x449   : > { %v3827_v2 = vpop.f32.mrf.mxu1  ;;  %v4504_v18 = vsel %vm2394_vm5, %v4501_v43, %v4503_v41 }
 0x44f   : > { %v3735_v29 = vpop.f32.mrf.mxu0 }
 0x450   : > { %v3823_v39 = vadd.f32 %v3822_v63, %v3735_v29  ;;  %v4209_v63 = vshll.u32 %v4160_v36, 16  ;;  %v4506_v36 = vsel %vm2394_vm5, %v4503_v41, %v4505_v11 }
 0x451   : > { %v13106_v43 = vpop.f32.mrf.mxu1 }
 0x452   : > { %4424 = vmatmul.bf16.gmra.mxu1 %v4342_v12  ;;  %v4211_v22 = vrot.slane %v4209_v63, 2 }
 0x453   : > { %v3941_v37 = vpop.f32.mrf.mxu2 }
 0x454   : > { %v3966_v0 = vadd.f32 %v3941_v37, %v3823_v39  ;;  %4749 = vmatmul.bf16.gmra.mxu3 %v4659_v33  ;;  %v4212_v44 = vor.u32 %v4211_v22, %v4208_v19  ;;  %v4670_v37 = vshrl.u32 %v13025_v47, 16 }
 0x455   : > { %4583 = vmatmul.bf16.gmra.mxu2 %v4504_v18 }
 0x456   : > { %v4213_v39 = vsel %vm1573_vm2, %v13040_v32, %v4212_v44 }
 0x457   : > { %v13099_v28 = vpop.f32.mrf.mxu0  ;;  %4290 = vmatmul.bf16.gmra.mxu0 %v13047_v25  ;;  %v4667_v25 = vor.u32 %v4666_v4, %v4663_v14 }
 0x459   : > { %v4668_v60 = vsel %vm2688_vm4, %v4658_v27, %v4667_v25  ;;  %v3832_v53 = vpop.f32.mrf.mxu1  ;;  %v4672_v27 = vrot.slane %v4670_v37, 2 }
 0x45b   : > { %v13102_v49 = vpop.f32.mrf.mxu2 }
 0x45f   : > { %v3740_v58 = vpop.f32.mrf.mxu0 }
 0x460   : > { %v3828_v5 = vadd.f32 %v3827_v2, %v3740_v58 }
 0x461   : > { %v4105_v46 = vpop.f32.mrf.mxu3  ;;  %v13120_v3 = vpop.f32.mrf.mxu1 }
 0x462   : > { %v4130_v1 = vadd.f32 %v4105_v46, %v3966_v0  ;;  %v4673_v0 = vshll.u32 %v13025_v47, 16 }
 0x463   : > { %v3946_v7 = vpop.f32.mrf.mxu2 }
 0x464   : > { %v3968_v10 = vadd.f32 %v3946_v7, %v3828_v5  ;;  %4754 = vmatmul.bf16.gmra.mxu3 %v4668_v60  ;;  %v4675_v9 = vrot.slane %v4673_v0, 3 }
 0x465   : > { %4588 = vmatmul.bf16.gmra.mxu2 %v4506_v36 }
 0x466   : > { %v4676_v18 = vor.u32 %v4675_v9, %v4672_v27 }
 0x467   : > { %v13110_v29 = vpop.f32.mrf.mxu0  ;;  %4295 = vmatmul.bf16.gmra.mxu0 %v4213_v39 }
 0x468   : > { %v4677_v8 = vsel %vm2688_vm4, %v4667_v25, %v4676_v18 }
 0x469   : > { %v13114_v48 = vpop.f32.mrf.mxu3  ;;  %v3837_v35 = vpop.f32.mrf.mxu1 }
 0x46b   : > { %v13118_v12 = vpop.f32.mrf.mxu2 }
 0x46f   : > { %v3745_v41 = vpop.f32.mrf.mxu0 }
 0x470   : > { %v3833_v2 = vadd.f32 %v3832_v53, %v3745_v41 }
 0x471   : > { %v4110_v33 = vpop.f32.mrf.mxu3  ;;  %v13130_v4 = vpop.f32.mrf.mxu1 }
 0x472   : > { %v4132_v45 = vadd.f32 %v4110_v33, %v3968_v10 }
 0x473   : > { %v3951_v6 = vpop.f32.mrf.mxu2 }
 0x474   : > { %v3970_v32 = vadd.f32 %v3951_v6, %v3833_v2  ;;  %4759 = vmatmul.bf16.gmra.mxu3 %v4677_v8 }
 0x477   : > { %4868 = vmatmul.bf16.vlgmr.msrb.gmra.mxu0 %v12995_v50  ;;  %v13124_v47 = vpop.f32.mrf.mxu0 }
 0x478   : > { %v3835_v30 = vadd.f32 %v13120_v3, %v13124_v47 }
 0x479   : > { %v13126_v63 = vpop.f32.mrf.mxu3 }
 0x47b   : > { %v13128_v14 = vpop.f32.mrf.mxu2 }
 0x47c   : > { %v3971_v15 = vadd.f32 %v13128_v14, %v3835_v30  ;;  %v3825_v30 = vadd.f32 %v13093_v56, %v13099_v28 }
 0x47e   : > { %v3967_v14 = vadd.f32 %v13102_v49, %v3825_v30 }
 0x47f   : > { %v3842_v50 = vpop.f32.mrf.mxu1 }
 0x484   : > { %v3750_v58 = vpop.f32.mrf.mxu0 }
 0x485   : > { %v3838_v54 = vadd.f32 %v3837_v35, %v3750_v58 }
 0x487   : > { %4873 = vmatmul.bf16.gmra.mxu0 %v12988_v51  ;;  %v4115_v5 = vpop.f32.mrf.mxu3  ;;  %v13140_v36 = vpop.f32.mrf.mxu1 }
 0x488   : > { %v3956_v19 = vpop.f32.mrf.mxu2  ;;  %v4134_v22 = vadd.f32 %v4115_v5, %v3970_v32 }
 0x489   : > { %v3972_v46 = vadd.f32 %v3956_v19, %v3838_v54 }
 0x48c   : > { %v13133_v25 = vpop.f32.mrf.mxu0 }
 0x48d   : > { %v3840_v23 = vadd.f32 %v13130_v4, %v13133_v25 }
 0x48f   : > { %v13135_v11 = vpop.f32.mrf.mxu3  ;;  %v4405_v9 = vpop.f32.mrf.mxu1 }
 0x490   : > { %v13137_v7 = vpop.f32.mrf.mxu2  ;;  %v4135_v24 = vadd.f32 %v13135_v11, %v3971_v15 }
 0x491   : > { %v3973_v59 = vadd.f32 %v13137_v7, %v3840_v23 }
 0x494   : > { %v3755_v10 = vpop.f32.mrf.mxu0 }
 0x495   : > { %v3843_v44 = vadd.f32 %v3842_v50, %v3755_v10 }
 0x497   : > { %4878 = vmatmul.bf16.gmra.mxu0 %v13052_v26  ;;  %v4120_v60 = vpop.f32.mrf.mxu3  ;;  %v13149_v8 = vpop.f32.mrf.mxu1 }
 0x498   : > { %v3961_v53 = vpop.f32.mrf.mxu2  ;;  %v4136_v51 = vadd.f32 %v4120_v60, %v3972_v46 }
 0x499   : > { %v3974_v39 = vadd.f32 %v3961_v53, %v3843_v44 }
 0x49c   : > { %v13142_v37 = vpop.f32.mrf.mxu0 }
 0x49d   : > { %v3845_v4 = vadd.f32 %v13140_v36, %v13142_v37 }
 0x49f   : > { %v13144_v0 = vpop.f32.mrf.mxu3  ;;  %v4410_v46 = vpop.f32.mrf.mxu1 }
 0x4a0   : > { %v13146_v27 = vpop.f32.mrf.mxu2  ;;  %v4137_v34 = vadd.f32 %v13144_v0, %v3973_v59  ;;  %v4131_v0 = vadd.f32 %v13114_v48, %v3967_v14 }
 0x4a1   : > { %v3975_v3 = vadd.f32 %v13146_v27, %v3845_v4 }
 0x4a4   : > { %v4276_v41 = vpop.f32.mrf.mxu0 }
 0x4a5   : > { %v4301_v2 = vadd.f32 %v4276_v41, %v4130_v1 }
 0x4a7   : > { %4883 = vmatmul.bf16.gmra.mxu0 %v13058_v16  ;;  %v4125_v33 = vpop.f32.mrf.mxu3  ;;  %v4430_v18 = vadd.f32 %v4405_v9, %v4301_v2 }
 0x4a8   : > { %v4138_v26 = vadd.f32 %v4125_v33, %v3974_v39  ;;  %v4569_v6 = vpop.f32.mrf.mxu2 }
 0x4a9   : > { %v4594_v32 = vadd.f32 %v4569_v6, %v4430_v18 }
 0x4ac   : > { %v13151_v35 = vpop.f32.mrf.mxu0 }
 0x4ad   : > { %v4302_v56 = vadd.f32 %v13151_v35, %v4131_v0 }
 0x4af   : > { %v13153_v58 = vpop.f32.mrf.mxu3 }
 0x4b0   : > { %v13155_v54 = vpop.f32.mrf.mxu2  ;;  %v4139_v15 = vadd.f32 %v13153_v58, %v3975_v3 }
 0x4b4   : > { %v4281_v5 = vpop.f32.mrf.mxu0 }
 0x4b5   : > { %v4303_v19 = vadd.f32 %v4281_v5, %v4132_v45 }
 0x4b7   : > { %4888 = vmatmul.bf16.gmra.mxu0 %v13061_v20  ;;  %v4432_v1 = vadd.f32 %v4410_v46, %v4303_v19  ;;  %v4740_v16 = vpop.f32.mrf.mxu3 }
 0x4b8   : > { %v4574_v50 = vpop.f32.mrf.mxu2  ;;  %v4765_v10 = vadd.f32 %v4740_v16, %v4594_v32  ;;  %v4412_v32 = vpop.f32.mrf.mxu1 }
 0x4b9   : > { %v4596_v44 = vadd.f32 %v4574_v50, %v4432_v1 }
 0x4bc   : > { %v4283_v60 = vpop.f32.mrf.mxu0 }
 0x4bf   : > { %v13158_v53 = vpop.f32.mrf.mxu3 }
 0x4c0   : > { %v13164_v1 = vpop.f32.mrf.mxu2 }
 0x4c4   : > { %v4286_v39 = vpop.f32.mrf.mxu0 }
 0x4c5   : > { %v13160_v9 = vadd.f32 %v4286_v39, %v4134_v22  ;;  %v4415_v22 = vpop.f32.mrf.mxu1 }
 0x4c7   : > { %v4745_v41 = vpop.f32.mrf.mxu3 }
 0x4c8   : > { %v4767_v2 = vadd.f32 %v4745_v41, %v4596_v44  ;;  %v4579_v39 = vpop.f32.mrf.mxu2 }
 0x4cc   : > { %v4288_v33 = vpop.f32.mrf.mxu0 }
 0x4cd   : > { %v4306_v23 = vadd.f32 %v4288_v33, %v4135_v24 }
 0x4cf   : > { %v13166_v16 = vpop.f32.mrf.mxu3 }
 0x4d4   : > { %v4291_v18 = vpop.f32.mrf.mxu0 }
 0x4d5   : > { %v4307_v6 = vadd.f32 %v4291_v18, %v4136_v51  ;;  %v4417_v18 = vpop.f32.mrf.mxu1 }
 0x4d7   : > { %v13172_v51 = vpop.f32.mrf.mxu3 }
 0x4dc   : > { %v4293_v45 = vpop.f32.mrf.mxu0 }
 0x4dd   : > { %v4420_v57 = vpop.f32.mrf.mxu1  ;;  %v4308_v17 = vadd.f32 %v4293_v45, %v4137_v34 }
 0x4e4   : > { %v4296_v5 = vpop.f32.mrf.mxu0 }
 0x4e5   : > { %v4309_v13 = vadd.f32 %v4296_v5, %v4138_v26  ;;  %v4581_v5 = vpop.f32.mrf.mxu2  ;;  %v4422_v42 = vpop.f32.mrf.mxu1 }
 0x4e6   : > { %v4437_v59 = vadd.f32 %v4422_v42, %v4308_v17  ;;  %v4434_v17 = vadd.f32 %v4415_v22, %v13160_v9  ;;  %v11239_v22 = vld [vmem:[%s13503_s11] ss:$0 sm:$0xff] }
 0x4ec   : > { %v4298_v20 = vpop.f32.mrf.mxu0 }
 0x4ed   : > { %v4584_v40 = vpop.f32.mrf.mxu2  ;;  %v4425_v31 = vpop.f32.mrf.mxu1  ;;  %v4310_v37 = vadd.f32 %v4298_v20, %v4139_v15  ;;  %v4431_v20 = vadd.f32 %v13149_v8, %v4302_v56  ;;  %v13621_v15 = vld [vmem:[#allocation37_spill] sm:$0xff] }
 0x4ee   : > { %v4438_v47 = vadd.f32 %v4425_v31, %v4309_v13 }
 0x4ef   : > { %v4595_v8 = vadd.f32 %v13155_v54, %v4431_v20 }
 0x4f4   : > { %v4869_v19 = vpop.f32.mrf.mxu0 }
 0x4f5   : > { %v13162_v46 = vadd.f32 %v4869_v19, %v4765_v10  ;;  %v4752_v10 = vpop.f32.mrf.mxu3  ;;  %v4586_v38 = vpop.f32.mrf.mxu2 }
 0x4f6   : > { %v4601_v24 = vadd.f32 %v4586_v38, %v4437_v59  ;;  %v4427_v27 = vpop.f32.mrf.mxu1  ;;  %v11238_v38 = vld [vmem:[%s13502_s10] ss:$0 sm:$0xff] }
 0x4f7   : > { %13620 = vst [vmem:[#allocation48_spill] sm:$0xff] %v13162_v46  ;;  %v3830_v46 = vadd.f32 %v13106_v43, %v13110_v29  ;;  %v4436_v29 = vadd.f32 %v4420_v57, %v4307_v6  ;;  %v4439_v49 = vadd.f32 %v4427_v27, %v4310_v37  ;;  %v4598_v6 = vadd.f32 %v4579_v39, %v4434_v17  ;;  %v13626_v27 = vld [vmem:[#allocation34_spill] sm:$0xff] }
 0x4f9   : > { %v3969_v25 = vadd.f32 %v13118_v12, %v3830_v46  ;;  %v4435_v12 = vadd.f32 %v4417_v18, %v4306_v23  ;;  %v4600_v31 = vadd.f32 %v4584_v40, %v4436_v29 }
 0x4fb   : > { %v4133_v34 = vadd.f32 %v13126_v63, %v3969_v25  ;;  %v4599_v63 = vadd.f32 %v4581_v5, %v4435_v12 }
 0x4fc   : > { %v13168_v50 = vpop.f32.mrf.mxu0 }
 0x4fd   : > { %v4755_v55 = vpop.f32.mrf.mxu3  ;;  %v4589_v7 = vpop.f32.mrf.mxu2  ;;  %v4304_v11 = vadd.f32 %v4283_v60, %v4133_v34  ;;  %v4770_v9 = vadd.f32 %v4752_v10, %v4599_v63 }
 0x4fe   : > { %v4602_v36 = vadd.f32 %v4589_v7, %v4438_v47  ;;  %v4771_v58 = vadd.f32 %v4755_v55, %v4600_v31  ;;  %v4766_v7 = vadd.f32 %v13158_v53, %v4595_v8  ;;  %v13624_v0 = vld [vmem:[#allocation48_spill] sm:$0xff]  ;;  %v13625_v31 = vld [vmem:[#allocation35_spill] sm:$0xff] }
 0x4ff   : > { %v4433_v28 = vadd.f32 %v4412_v32, %v4304_v11  ;;  %v4769_v32 = vadd.f32 %v13172_v51, %v4598_v6  ;;  %v13622_v11 = vld [vmem:[#allocation38_spill] sm:$0xff]  ;;  %v4908_v17 = vmul.f32 %v11238_v38, %v13624_v0 }
 0x500   : > { %v4895_v47 = vadd.f32 %v13168_v50, %v4766_v7  ;;  %v4976_v7 = vld [vmem:[#allocation17 + $0x10] sm:$0x7] }
 0x501   : > { %v4597_v35 = vadd.f32 %v13164_v1, %v4433_v28  ;;  %v10773_v0 = vld [vmem:[#allocation18 + $0xd8] sm:$0xff] }
 0x502   : > { %v4909_v12 = vmul.f32 %v11238_v38, %v4895_v47  ;;  %v10749_v47 = vld [vmem:[#allocation18 + $0x18] sm:$0xff] }
 0x503   : > { %v4768_v5 = vadd.f32 %v13166_v16, %v4597_v35 }
 0x504   : > { %v4874_v44 = vpop.f32.mrf.mxu0  ;;  %v4923_v63 = vadd.f32 %v11239_v22, %v4909_v12  ;;  %v10746_v12 = vld [vmem:[#allocation18] sm:$0xff] }
 0x505   : > { %v13170_v41 = vadd.f32 %v4874_v44, %v4767_v2  ;;  %v4757_v2 = vpop.f32.mrf.mxu3  ;;  %v4591_v48 = vpop.f32.mrf.mxu2 }
 0x506   : > { %v4772_v42 = vadd.f32 %v4757_v2, %v4601_v24  ;;  %v4603_v55 = vadd.f32 %v4591_v48, %v4439_v49 }
 0x50c   : > { %v13174_v26 = vpop.f32.mrf.mxu0 }
 0x50d   : > { %v4760_v43 = vpop.f32.mrf.mxu3  ;;  %v4897_v1 = vadd.f32 %v13174_v26, %v4768_v5  ;;  %v4910_v26 = vmul.f32 %v11238_v38, %v13170_v41 }
 0x50e   : > { %v4773_v13 = vadd.f32 %v4760_v43, %v4602_v36 }
 0x514   : > { %v13176_v19 = vpop.f32.mrf.mxu0 }
 0x515   : > { %v4762_v46 = vpop.f32.mrf.mxu3  ;;  %v4898_v10 = vadd.f32 %v13176_v19, %v4769_v32  ;;  %v4911_v19 = vmul.f32 %v11238_v38, %v4897_v1 }
 0x516   : > { %v4774_v39 = vadd.f32 %v4762_v46, %v4603_v55  ;;  %v13629_v46 = vld [vmem:[#allocation31_spill] sm:$0xff] }
 0x517   : > { %v4912_v3 = vmul.f32 %v11238_v38, %v4898_v10  ;;  %v4925_v24 = vadd.f32 %v11239_v22, %v4911_v19  ;;  %v10769_v19 = vld [vmem:[#allocation18 + $0xb8] sm:$0xff] }
 0x518   : > { %5317 = vmatpush.bf16.msra.mxu3 %v10769_v19  ;;  %v10797_v19 = vld [vmem:[#allocation18 + $0x198] sm:$0xff] }
 0x519   : > { %v4926_v43 = vadd.f32 %v11239_v22, %v4912_v3  ;;  %v4991_v3 = vunpack.c.l.b16 %v4976_v7 }
 0x51b   : > { %v4936_v41 = vadd.f32 %v4926_v43, %v13625_v31  ;;  %v10776_v43 = vld [vmem:[#allocation18 + $0xf0] sm:$0xff] }
 0x51c   : > { %v4881_v52 = vpop.f32.mrf.mxu0  ;;  %v10764_v31 = vld [vmem:[#allocation18 + $0x90] sm:$0xff] }
 0x51d   : > { %v4899_v18 = vadd.f32 %v4881_v52, %v4770_v9  ;;  %v4956_v6 = vmul.f32 0.2, %v4936_v41  ;;  %vm4946_vm14 = vcmp.ge.f32.partialorder %v4936_v41, 0.0 }
 0x51f   : > { %v4913_v51 = vmul.f32 %v11238_v38, %v4899_v18  ;;  %v4966_v55 = vsel %vm4946_vm14, %v4936_v41, %v4956_v6  ;;  %v10772_v41 = vld [vmem:[#allocation18 + $0xd0] sm:$0xff]  ;;  %v10801_v6 = vld [vmem:[#allocation18 + $0x1b8] sm:$0xff] }
 0x521   : > { %v4927_v30 = vadd.f32 %v11239_v22, %v4913_v51  ;;  %v10753_v51 = vld [vmem:[#allocation18 + $0x38] sm:$0xff] }
 0x522   : > { %5225 = vmatpush.bf16.msra.mxu2 %v10753_v51 }
 0x524   : > { %v4884_v44 = vpop.f32.mrf.mxu0 }
 0x525   : > { %v4900_v40 = vadd.f32 %v4884_v44, %v4771_v58 }
 0x527   : > { %v4914_v2 = vmul.f32 %v11238_v38, %v4900_v40  ;;  %v13628_v40 = vld [vmem:[#allocation32_spill] sm:$0xff] }
 0x529   : > { %v4928_v52 = vadd.f32 %v11239_v22, %v4914_v2 }
 0x52b   : > { %v4938_v29 = vadd.f32 %v4928_v52, %v13621_v15  ;;  %v4994_v52 = vpack.c.b16 %v4991_v3, %v4991_v3  ;;  %v10760_v15 = vld [vmem:[#allocation18 + $0x70] sm:$0xff] }
 0x52c   : > { %v4886_v61 = vpop.f32.mrf.mxu0 }
 0x52d   : > { %v4901_v60 = vadd.f32 %v4886_v61, %v4772_v42  ;;  %v4958_v56 = vmul.f32 0.2, %v4938_v29  ;;  %vm4948_vm10 = vcmp.ge.f32.partialorder %v4938_v29, 0.0 }
 0x52f   : > { %v4915_v61 = vmul.f32 %v11238_v38, %v4901_v60  ;;  %v4922_v60 = vadd.f32 %v11239_v22, %v4908_v17  ;;  %v10757_v17 = vld [vmem:[#allocation18 + $0x58] sm:$0xff] }
 0x531   : > { %v4929_v25 = vadd.f32 %v11239_v22, %v4915_v61  ;;  %v4932_v32 = vadd.f32 %v4922_v60, %v13629_v46  ;;  %v10784_v46 = vld [vmem:[#allocation18 + $0x130] sm:$0xff] }
 0x533   : > { %v4939_v34 = vadd.f32 %v4929_v25, %v12369_v62  ;;  %v4924_v62 = vadd.f32 %v11239_v22, %v4910_v26  ;;  %v4952_v10 = vmul.f32 0.2, %v4932_v32  ;;  %vm4942_vm8 = vcmp.ge.f32.partialorder %v4932_v32, 0.0  ;;  %v10752_v25 = vld [vmem:[#allocation18 + $0x30] sm:$0xff] }
 0x534   : > { %v4889_v57 = vpop.f32.mrf.mxu0  ;;  %5226 = vmatpush.bf16.msra.mxu2 %v10752_v25  ;;  %v10768_v26 = vld [vmem:[#allocation18 + $0xb0] sm:$0xff] }
 0x535   : > { %v4902_v33 = vadd.f32 %v4889_v57, %v4773_v13  ;;  %v4959_v50 = vmul.f32 0.2, %v4939_v34  ;;  %vm4949_vm11 = vcmp.ge.f32.partialorder %v4939_v34, 0.0  ;;  %v4935_v57 = vadd.f32 %v4925_v24, %v13626_v27  ;;  %5318 = vmatpush.bf16.msra.mxu3 %v10768_v26  ;;  %v10766_v24 = vld [vmem:[#allocation18 + $0xa0] sm:$0xff]  ;;  %v10755_v27 = vld [vmem:[#allocation18 + $0x48] sm:$0xff]  ;;  %v10796_v26 = vld [vmem:[#allocation18 + $0x190] sm:$0xff] }
 0x536   : > { %v4962_v8 = vsel %vm4942_vm8, %v4932_v32, %v4952_v10 }
 0x537   : > { %v4916_v45 = vmul.f32 %v11238_v38, %v4902_v33  ;;  %v4969_v58 = vsel %vm4949_vm11, %v4939_v34, %v4959_v50  ;;  %v13627_v33 = vld [vmem:[#allocation33_spill] sm:$0xff]  ;;  %v4955_v35 = vmul.f32 0.2, %v4935_v57  ;;  %vm4945_vm15 = vcmp.ge.f32.partialorder %v4935_v57, 0.0 }
 0x538   : > { %v4934_v48 = vadd.f32 %v4924_v62, %v13627_v33  ;;  %v10761_v34 = vld [vmem:[#allocation18 + $0x78] sm:$0xff]  ;;  %v10792_v62 = vld [vmem:[#allocation18 + $0x170] sm:$0xff] }
 0x539   : > { %v4930_v44 = vadd.f32 %v11239_v22, %v4916_v45  ;;  %v4933_v45 = vadd.f32 %v4923_v63, %v13628_v40  ;;  %v4965_v5 = vsel %vm4945_vm15, %v4935_v57, %v4955_v35  ;;  %v10765_v50 = vld [vmem:[#allocation18 + $0x98] sm:$0xff]  ;;  %v10771_v63 = vld [vmem:[#allocation18 + $0xc8] sm:$0xff]  ;;  %v10790_v57 = vld [vmem:[#allocation18 + $0x160] sm:$0xff] }
 0x53a   : > { %v4954_v18 = vmul.f32 0.2, %v4934_v48  ;;  %vm4944_vm6 = vcmp.ge.f32.partialorder %v4934_v48, 0.0  ;;  %v10785_v40 = vld [vmem:[#allocation18 + $0x138] sm:$0xff]  ;;  %v10808_v35 = vld [vmem:[#allocation18 + $0x1f0] sm:$0xff] }
 0x53b   : > { %v4940_v59 = vadd.f32 %v4930_v44, %v12375_v21  ;;  %v13623_v21 = vld [vmem:[#allocation36_spill] sm:$0xff]  ;;  %vm4943_vm7 = vcmp.ge.f32.partialorder %v4933_v45, 0.0 }
 0x53c   : > { %v4891_v4 = vpop.f32.mrf.mxu0  ;;  %v4937_v36 = vadd.f32 %v4927_v30, %v13623_v21  ;;  %v10777_v30 = vld [vmem:[#allocation18 + $0xf8] sm:$0xff]  ;;  %v10774_v21 = vld [vmem:[#allocation18 + $0xe0] sm:$0xff] }
 0x53d   : > { %v4903_v23 = vadd.f32 %v4891_v4, %v4774_v39  ;;  %v4960_v14 = vmul.f32 0.2, %v4940_v59  ;;  %vm4950_vm2 = vcmp.ge.f32.partialorder %v4940_v59, 0.0  ;;  %v4964_v39 = vsel %vm4944_vm6, %v4934_v48, %v4954_v18  ;;  %v10744_v4 = vld [vmem:[#allocation17] sm:$0xff]  ;;  %5415 = vmatpush.bf16.msra.mxu0 %v10777_v30  ;;  %v10754_v48 = vld [vmem:[#allocation18 + $0x40] sm:$0xff]  ;;  %v10805_v30 = vld [vmem:[#allocation18 + $0x1d8] sm:$0xff] }
 0x53e   : > { %v4957_v49 = vmul.f32 0.2, %v4937_v36  ;;  %vm4947_vm13 = vcmp.ge.f32.partialorder %v4937_v36, 0.0  ;;  %v4978_v2 = vpack.c.bf16 %v4965_v5, %v4964_v39  ;;  %v10807_v18 = vld [vmem:[#allocation18 + $0x1e8] sm:$0xff] }
 0x53f   : > { %v4917_v16 = vmul.f32 %v11238_v38, %v4903_v23  ;;  %v4970_v42 = vsel %vm4950_vm2, %v4940_v59, %v4960_v14  ;;  %v4968_v38 = vsel %vm4948_vm10, %v4938_v29, %v4958_v56  ;;  %v10745_v23 = vld [vmem:[#allocation17 + $0x8] sm:$0xff]  ;;  %v10751_v59 = vld [vmem:[#allocation18 + $0x28] sm:$0xff]  ;;  %vm7056_vm2 = vcmask 1040384  }
 0x540   : > { %v4980_v9 = vpack.c.bf16 %v4969_v58, %v4968_v38  ;;  %v4967_v20 = vsel %vm4947_vm13, %v4937_v36, %v4957_v49  ;;  %5227 = vmatpush.bf16.msra.mxu2 %v10751_v59  ;;  %v10747_v29 = vld [vmem:[#allocation18 + $0x8] sm:$0xff]  ;;  %v10758_v36 = vld [vmem:[#allocation18 + $0x60] sm:$0xff]  ;;  %v10789_v38 = vld [vmem:[#allocation18 + $0x158] sm:$0xff] }
 0x541   : > { %v4931_v54 = vadd.f32 %v11239_v22, %v4917_v16  ;;  %v4979_v61 = vpack.c.bf16 %v4967_v20, %v4966_v55  ;;  %v4953_v22 = vmul.f32 0.2, %v4933_v45  ;;  %v10750_v16 = vld [vmem:[#allocation18 + $0x20] sm:$0xff]  ;;  %v10767_v14 = vld [vmem:[#allocation18 + $0xa8] sm:$0xff]  ;;  %5416 = vmatpush.bf16.msra.mxu0 %v10776_v43  ;;  %v10788_v20 = vld [vmem:[#allocation18 + $0x150] sm:$0xff] }
 0x542   : > { %5319 = vmatpush.bf16.msra.mxu3 %v10767_v14  ;;  %v10791_v56 = vld [vmem:[#allocation18 + $0x168] sm:$0xff]  ;;  %v10762_v58 = vld [vmem:[#allocation18 + $0x80] sm:$0xff]  ;;  %v10804_v43 = vld [vmem:[#allocation18 + $0x1d0] sm:$0xff] }
 0x543   : > { %v4941_v53 = vadd.f32 %v4931_v54, %v13622_v11  ;;  %v4963_v44 = vsel %vm4943_vm7, %v4933_v45, %v4953_v22  ;;  %v10748_v54 = vld [vmem:[#allocation18 + $0x10] sm:$0xff]  ;;  %v10775_v11 = vld [vmem:[#allocation18 + $0xe8] sm:$0xff]  ;;  %v10770_v49 = vld [vmem:[#allocation18 + $0xc0] sm:$0xff] }
 0x544   : > { %v4977_v1 = vpack.c.bf16 %v4963_v44, %v4962_v8  ;;  %5228 = vmatpush.bf16.msra.mxu2 %v10750_v16  ;;  %v10800_v45 = vld [vmem:[#allocation18 + $0x1b0] sm:$0xff]  ;;  %v10799_v55 = vld [vmem:[#allocation18 + $0x1a8] sm:$0xff] }
 0x545   : > { %v4961_v37 = vmul.f32 0.2, %v4941_v53  ;;  %vm4951_vm12 = vcmp.ge.f32.partialorder %v4941_v53, 0.0  ;;  %5417 = vmatpush.bf16.msra.mxu0 %v10775_v11  ;;  %v10783_v39 = vld [vmem:[#allocation18 + $0x128] sm:$0xff] }
 0x546   : > { %5320 = vmatpush.bf16.msra.mxu3 %v10766_v24  ;;  %v10803_v24 = vld [vmem:[#allocation18 + $0x1c8] sm:$0xff] }
 0x547   : > { %v4971_v13 = vsel %vm4951_vm12, %v4941_v53, %v4961_v37  ;;  %v10759_v53 = vld [vmem:[#allocation18 + $0x68] sm:$0xff]  ;;  %v10793_v37 = vld [vmem:[#allocation18 + $0x178] sm:$0xff]  ;;  %vm5456_vm12 = vsmask.f32 4352 }
 0x548   : > { %v4981_v28 = vpack.c.bf16 %v4971_v13, %v4970_v42  ;;  %5229 = vmatpush.bf16.msra.mxu2 %v10749_v47  ;;  %v10756_v13 = vld [vmem:[#allocation18 + $0x50] sm:$0xff] }
 0x549   : > { %5418 = vmatpush.bf16.msra.mxu0 %v10774_v21 }
 0x54a   : > { %5008 = vmatpush.bf16.msrb.mxu1 %v4981_v28  ;;  %5321 = vmatpush.bf16.msra.mxu3 %v10765_v50  ;;  %v10763_v28 = vld [vmem:[#allocation18 + $0x88] sm:$0xff] }
 0x54c   : > { %5230 = vmatpush.bf16.msra.mxu2 %v10748_v54  ;;  %v10781_v54 = vld [vmem:[#allocation18 + $0x118] sm:$0xff] }
 0x54d   : > { %5419 = vmatpush.bf16.msra.mxu0 %v10773_v0 }
 0x54e   : > { %5009 = vmatpush.bf16.msrb.mxu1 %v4980_v9  ;;  %5322 = vmatpush.bf16.msra.mxu3 %v10764_v31  ;;  %v10809_v9 = vld [vmem:[#allocation18 + $0x1f8] sm:$0xff] }
 0x550   : > { %5231 = vmatpush.bf16.msra.mxu2 %v10747_v29  ;;  %v10780_v29 = vld [vmem:[#allocation18 + $0x110] sm:$0xff] }
 0x551   : > { %5420 = vmatpush.bf16.msra.mxu0 %v10772_v41 }
 0x552   : > { %5010 = vmatpush.bf16.msrb.mxu1 %v4979_v61  ;;  %5323 = vmatpush.bf16.msra.mxu3 %v10763_v28  ;;  %v10787_v61 = vld [vmem:[#allocation18 + $0x148] sm:$0xff]  ;;  %v10794_v28 = vld [vmem:[#allocation18 + $0x180] sm:$0xff] }
 0x554   : > { %5232 = vmatpush.bf16.msra.mxu2 %v10746_v12  ;;  %v10795_v12 = vld [vmem:[#allocation18 + $0x188] sm:$0xff] }
 0x555   : > { %5421 = vmatpush.bf16.msra.mxu0 %v10771_v63  ;;  %v10802_v63 = vld [vmem:[#allocation18 + $0x1c0] sm:$0xff] }
 0x556   : > { %5011 = vmatpush.bf16.msrb.mxu1 %v4978_v2  ;;  %5324 = vmatpush.bf16.msra.mxu3 %v10762_v58 }
 0x558   : > { %5614 = vmatpush.bf16.msrb.mxu2 %v10793_v37 }
 0x559   : > { %5422 = vmatpush.bf16.msra.mxu0 %v10770_v49 }
 0x55a   : > { %5012 = vmatpush.bf16.msrb.mxu1 %v4977_v1  ;;  %5719 = vmatpush.bf16.msrb.mxu3 %v10801_v6  ;;  %v10798_v1 = vld [vmem:[#allocation18 + $0x1a0] sm:$0xff] }
 0x55c   : > { %5615 = vmatpush.bf16.msrb.mxu2 %v10792_v62 }
 0x55d   : > { %9438 = vmatmul.msk.bf16.vlgmr.msrb.gmra.mxu1 %vm4995_vm9, %v10744_v4  ;;  %5828 = vmatpush.bf16.msrb.mxu0 %v10809_v9  ;;  %v10806_v4 = vld [vmem:[#allocation18 + $0x1e0] sm:$0xff] }
 0x55e   : > { %5156 = vmatpush.bf16.msra.mxu1 %v10761_v34  ;;  %5720 = vmatpush.bf16.msrb.mxu3 %v10800_v45 }
 0x560   : > { %5616 = vmatpush.bf16.msrb.mxu2 %v10791_v56 }
 0x561   : > { %5829 = vmatpush.bf16.msrb.mxu0 %v10808_v35  ;;  %v10778_v35 = vld [vmem:[#allocation18 + $0x100] sm:$0xff] }
 0x562   : > { %5157 = vmatpush.bf16.msra.mxu1 %v10760_v15  ;;  %5721 = vmatpush.bf16.msrb.mxu3 %v10799_v55 }
 0x564   : > { %5617 = vmatpush.bf16.msrb.mxu2 %v10790_v57 }
 0x565   : > { %5830 = vmatpush.bf16.msrb.mxu0 %v10807_v18 }
 0x566   : > { %5158 = vmatpush.bf16.msra.mxu1 %v10759_v53  ;;  %5722 = vmatpush.bf16.msrb.mxu3 %v10798_v1  ;;  %v10815_v1 = vld [vmem:[#allocation18 + $0x228] sm:$0xff] }
 0x568   : > { %5618 = vmatpush.bf16.msrb.mxu2 %v10789_v38 }
 0x569   : > { %5831 = vmatpush.bf16.msrb.mxu0 %v10806_v4 }
 0x56a   : > { %5159 = vmatpush.bf16.msra.mxu1 %v10758_v36  ;;  %5723 = vmatpush.bf16.msrb.mxu3 %v10797_v19  ;;  %v10779_v36 = vld [vmem:[#allocation18 + $0x108] sm:$0xff] }
 0x56c   : > { %5619 = vmatpush.bf16.msrb.mxu2 %v10788_v20 }
 0x56d   : > { %9439 = vmatmul.msk.bf16.gmra.mxu1 %vm4995_vm9, %v10745_v23  ;;  %v10786_v23 = vld [vmem:[#allocation18 + $0x140] sm:$0xff]  ;;  %5832 = vmatpush.bf16.msrb.mxu0 %v10805_v30 }
 0x56e   : > { %5160 = vmatpush.bf16.msra.mxu1 %v10757_v17  ;;  %5724 = vmatpush.bf16.msrb.mxu3 %v10796_v26 }
 0x570   : > { %5620 = vmatpush.bf16.msrb.mxu2 %v10787_v61 }
 0x571   : > { %5833 = vmatpush.bf16.msrb.mxu0 %v10804_v43  ;;  %v10813_v43 = vld [vmem:[#allocation18 + $0x218] sm:$0xff] }
 0x572   : > { %5161 = vmatpush.bf16.msra.mxu1 %v10756_v13  ;;  %5725 = vmatpush.bf16.msrb.mxu3 %v10795_v12 }
 0x574   : > { %5621 = vmatpush.bf16.msrb.mxu2 %v10786_v23 }
 0x575   : > { %5834 = vmatpush.bf16.msrb.mxu0 %v10803_v24  ;;  %v10812_v24 = vld [vmem:[#allocation18 + $0x210] sm:$0xff] }
 0x576   : > { %5162 = vmatpush.bf16.msra.mxu1 %v10755_v27  ;;  %5726 = vmatpush.bf16.msrb.mxu3 %v10794_v28 }
 0x579   : > { %5835 = vmatpush.bf16.msrb.mxu0 %v10802_v63 }
 0x57a   : > { %5163 = vmatpush.bf16.msra.mxu1 %v10754_v48 }
 0x57d   : > { %9440 = vmatmul.msk.bf16.gmra.mxu1 %vm4995_vm9, %v4994_v52  ;;  %v10782_v52 = vld [vmem:[#allocation18 + $0x120] sm:$0xff] }
 0x57e   : > { %5524 = vmatpush.bf16.msrb.mxu1 %v10785_v40 }
 0x582   : > { %5525 = vmatpush.bf16.msrb.mxu1 %v10784_v46 }
 0x586   : > { %5526 = vmatpush.bf16.msrb.mxu1 %v10783_v39 }
 0x58a   : > { %5527 = vmatpush.bf16.msrb.mxu1 %v10782_v52  ;;  %v10814_v52 = vld [vmem:[#allocation18 + $0x220] sm:$0xff] }
 0x58e   : > { %5528 = vmatpush.bf16.msrb.mxu1 %v10781_v54 }
 0x592   : > { %5529 = vmatpush.bf16.msrb.mxu1 %v10780_v29 }
 0x596   : > { %5530 = vmatpush.bf16.msrb.mxu1 %v10779_v36 }
 0x59a   : > { %5531 = vmatpush.bf16.msrb.mxu1 %v10778_v35 }
 0x5da   : > { %v5014_v42 = vpop.f32.mrf.mxu1 }
 0x5e2   : > { %v5016_v60 = vpop.f32.mrf.mxu1 }
 0x5e3   : > { %v11059_v33 = vpack.c.bf16 %v5016_v60, %v5014_v42 }
 0x5e5   : > { %11060 = vst [vmem:[#allocation4] sm:$0xff] %v11059_v33  }
 0x5ea   : > { %v5019_v32 = vpop.f32.mrf.mxu1 }
 0x5ec   : > { %v5039_v5 = vld [vmem:[#allocation4 + $0x4] sm:$0xf]  ;;  %v5046_v22 = vld [vmem:[#allocation4] sm:$0xf] }
 0x5ed   : > { %v5085_v10 = vunpack.c.l.b16 %v5046_v22  ;;  %v13227_v2 = vunpack.c.l.b16 %v5039_v5  ;;  %v5038_v44 = vld [vmem:[#allocation4] sm:$0x8]  ;;  %v5043_v8 = vunpack.c.l.bf16 %v5039_v5 }
 0x5ee   : > { %v5042_v51 = vunpack.c.l.bf16 %v5038_v44  ;;  %v5243_v34 = vld [vmem:[#allocation4] sm:$0xe]  ;;  %v5358_v14 = vunpack.c.l.b16 %v5038_v44  ;;  %v10816_v44 = vld [vmem:[#allocation18 + $0x230] sm:$0xff] }
 0x5ef   : > { %v13230_v25 = vpack.c.b16 %v13227_v2, %v5085_v10  ;;  %v13232_v7 = vrot.slane %v5043_v8, 7  ;;  %v5262_v15 = vunpack.c.l.b16 %v5243_v34  ;;  %v10817_v10 = vld [vmem:[#allocation18 + $0x238] sm:$0xff] }
 0x5f0   : > { %v7057_v3 = vrot.slane %v5042_v51, 7  ;;  %v13247_v42 = vpack.c.b16 %v13227_v2, %v5358_v14 }
 0x5f1   : > { %5233 = vmatmul.bf16.vlgmr.msra.gmra.mxu2 %v13230_v25  ;;  %v5094_v11 = vshll.u32 %v13230_v25, 16  ;;  %v5263_v0 = vpack.c.b16 %v13227_v2, %v5262_v15  ;;  %v5092_v48 = vshrl.u32 %v13230_v25, 16  ;;  %v5635_v25 = vld [vmem:[#allocation4 + $0x4] sm:$0xc] }
 0x5f2   : > { %v5021_v59 = vpop.f32.mrf.mxu1  ;;  %v13237_v16 = vsel %vm7056_vm2, %v7057_v3, %v13232_v7  ;;  %v5362_v40 = vrot.slane %v13247_v42, 3  ;;  %v5660_v19 = vunpack.c.l.b16 %v5635_v25 }
 0x5f3   : > { %v13239_v47 = vpack.c.bf16 %v5021_v59, %v5019_v32  ;;  %v5096_v56 = vrot.slane %v5094_v11, 1  ;;  %v5264_v33 = vrot.slane %v5263_v0, 1  ;;  %v5461_v0 = vshll.u32 %v13247_v42, 16 }
 0x5f5   : > { %11089 = vst [vmem:[#allocation4 + $0x8] sm:$0xff] %v13239_v47   ;;  %v5097_v46 = vor.u32 %v5096_v56, %v5092_v48  ;;  %v11069_v3 = vunpack.c.h.b16 %v13239_v47 }
 0x5fa   : > { %v5024_v53 = vpop.f32.mrf.mxu1 }
 0x5fb   : > { %v5032_v21 = vpack.c.bf16 %v5024_v53, %v5024_v53 }
 0x5fc   : > { %v5040_v37 = vld [vmem:[#allocation4 + $0x8] sm:$0xf]  ;;  %v5063_v50 = vld [vmem:[#allocation4 + $0xc] sm:$0x1] }
 0x5fd   : > { %v5338_v17 = vld [vmem:[#allocation4 + $0xc] sm:$0x7]  ;;  %v13244_v62 = vunpack.c.l.b16 %v5040_v37  ;;  %v5088_v31 = vunpack.c.l.b16 %v5063_v50  ;;  %5037 = vst [vmem:[#allocation4 + $0x10] sm:$0x7] %v5032_v21  ;;  %v5044_v57 = vunpack.c.l.bf16 %v5040_v37  ;;  %v5458_v21 = vshrl.u32 %v13247_v42, 16 }
 0x5fe   : > { %v5359_v41 = vunpack.c.l.b16 %v5338_v17  ;;  %v5041_v13 = vld [vmem:[#allocation4 + $0xc] sm:$0xf] }
 0x5ff   : > { %v5045_v27 = vunpack.c.l.bf16 %v5041_v13  ;;  %v5174_v58 = vpack.c.b16 %v13244_v62, %v13244_v62  ;;  %v5090_v49 = vpack.c.b16 %v5088_v31, %v13244_v62  ;;  %v7060_v6 = vrot.slane %v5044_v57, 7 }
 0x600   : > { %v5361_v60 = vpack.c.b16 %v5359_v41, %v13244_v62  ;;  %v5562_v4 = vpack.c.b16 %v13244_v62, %v13227_v2  ;;  %v5454_v23 = vunpack.c.l.b16 %v5041_v13  ;;  %v10811_v13 = vld [vmem:[#allocation18 + $0x208] sm:$0xff]  ;;  %v5460_v56 = vrot.slane %v5458_v21, 3 }
 0x601   : > { %v7062_v38 = vrot.slane %v5045_v27, 7  ;;  %5238 = vmatmul.bf16.gmra.mxu2 %v5174_v58  ;;  %v5265_v9 = vrot.slane %v5090_v49, 1  ;;  %v5099_v20 = vshll.u32 %v5090_v49, 16  ;;  %v13257_v55 = vsel %vm7056_vm2, %v13232_v7, %v7060_v6 }
 0x602   : > { %v5363_v45 = vrot.slane %v5361_v60, 3  ;;  %v5026_v32 = vpop.f32.mrf.mxu1  ;;  %v11068_v7 = vunpack.c.l.b16 %v13239_v47  ;;  %v5103_v59 = vshrl.u32 %v5090_v49, 16  ;;  %v5455_v26 = vpack.c.b16 %v5454_v23, %v13244_v62 }
 0x603   : > { %v5266_v18 = vsel %vm2026_vm0, %v5264_v33, %v5265_v9  ;;  %v5101_v5 = vrot.slane %v5099_v20, 1  ;;  %v13262_v22 = vsel %vm7056_vm2, %v7060_v6, %v7062_v38  ;;  %v5563_v28 = vpack.c.b16 %v5454_v23, %v5454_v23  ;;  %v10810_v33 = vld [vmem:[#allocation18 + $0x200] sm:$0xff] }
 0x604   : > { %v5364_v61 = vsel %vm2860_vm3, %v5362_v40, %v5363_v45  ;;  %5325 = vmatmul.bf16.vlgmr.msra.gmra.mxu3 %v5266_v18  ;;  %v5740_v8 = vld [vmem:[#allocation4 + $0x10] sm:$0x7]  ;;  %v5664_v2 = vpack.c.b16 %v11068_v7, %v5660_v19  ;;  %v5466_v11 = vshrl.u32 %v5455_v26, 16  ;;  %v5469_v53 = vshll.u32 %v5455_v26, 16 }
 0x605   : > { %5423 = vmatmul.bf16.vlgmr.msra.gmra.mxu0 %v5364_v61  ;;  %v5102_v39 = vsel %vm1786_vm1, %v5097_v46, %v5101_v5  ;;  %v5759_v51 = vunpack.c.l.b16 %v5740_v8  ;;  %v5105_v34 = vor.u32 %v5103_v59, %v5101_v5  ;;  %v5638_v54 = vld [vmem:[#allocation4 + $0x10] sm:$0x3]  ;;  %v5463_v57 = vrot.slane %v5461_v0, 4 }
 0x606   : > { %5164 = vmatmul.bf16.vlgmr.msra.gmra.mxu1 %v5102_v39  ;;  %v5663_v15 = vunpack.c.l.b16 %v5638_v54  ;;  %v5762_v47 = vshrl.u32 %v5664_v2, 16  ;;  %v5765_v12 = vshll.u32 %v5664_v2, 16  ;;  %v5468_v17 = vrot.slane %v5466_v11, 3 }
 0x607   : > { %5923 = vmatpush.bf16.msra.mxu1 %v10817_v10  ;;  %v5760_v30 = vpack.c.b16 %v5759_v51, %v11069_v3  ;;  %v5471_v62 = vrot.slane %v5469_v53, 4  ;;  %v5666_v58 = vrot.slane %v5664_v2, 2  ;;  %v5464_v38 = vor.u32 %v5463_v57, %v5460_v56  ;;  %v13630_v53 = vld [vmem:[#allocation40_spill] sm:$0xff] }
 0x608   : > { %v5665_v36 = vpack.c.b16 %v5663_v15, %v11069_v3  ;;  %v5764_v31 = vrot.slane %v5762_v47, 2  ;;  %v5767_v41 = vrot.slane %v5765_v12, 3  ;;  %v5973_v47 = vmul.u32 43691, %v13630_v53 }
 0x609   : > { %v5770_v29 = vshrl.u32 %v5760_v30, 16  ;;  %v5773_v14 = vshll.u32 %v5760_v30, 16  ;;  %v5472_v60 = vor.u32 %v5471_v62, %v5468_v17  ;;  %v5871_v20 = vrot.slane %v5760_v30, 3 }
 0x60a   : > { %v5667_v63 = vrot.slane %v5665_v36, 2  ;;  %v5768_v49 = vor.u32 %v5767_v41, %v5764_v31  ;;  %v5974_v12 = vmul.u32 43690, %v13630_v53  ;;  %v13632_v41 = vmov 0  }
 0x60b   : > { %5924 = vmatpush.bf16.msra.mxu1 %v10816_v44  ;;  %v5772_v37 = vrot.slane %v5770_v29, 2  ;;  %v5775_v50 = vrot.slane %v5773_v14, 3  ;;  %v5473_v6 = vsel %vm5456_vm12, %v5464_v38, %v5472_v60  ;;  %v13634_v38 = vld [vmem:[#allocation44_spill] sm:$0xff] }
 0x60c   : > { %v5668_v42 = vsel %vm2394_vm5, %v5666_v58, %v5667_v63  ;;  %v5978_v56 = vshrl.u32 %v5974_v12, 16 }
 0x60d   : > { %v5776_v27 = vor.u32 %v5775_v50, %v5772_v37  ;;  %v5977_v37 = vshll.u32 %v5974_v12, 16 }
 0x60f   : > { %5925 = vmatpush.bf16.msra.mxu1 %v10815_v1  ;;  %v5777_v48 = vsel %vm2688_vm4, %v5768_v49, %v5776_v27  ;;  %vm5981_vm11 = vc.u32 %v5973_v47, %v5977_v37  ;;  %v5983_v17 = vadd.s32 %v5977_v37, %v5973_v47 }
 0x611   : > { %5622 = vmatmul.bf16.vlgmr.msrb.gmra.mxu2 %v5562_v4 }
 0x613   : > { %5926 = vmatpush.bf16.msra.mxu1 %v10814_v52 }
 0x614   : > { %5330 = vmatmul.bf16.gmra.mxu3 %v5265_v9  ;;  %v5849_v9 = vld [vmem:[#allocation4 + $0x4] sm:$0x8] }
 0x615   : > { %5428 = vmatmul.bf16.gmra.mxu0 %v5363_v45  ;;  %v5868_v40 = vunpack.c.l.b16 %v5849_v9 }
 0x616   : > { %5169 = vmatmul.bf16.gmra.mxu1 %v5105_v34 }
 0x617   : > { %5927 = vmatpush.bf16.msra.mxu1 %v10813_v43  ;;  %v5869_v45 = vpack.c.b16 %v11068_v7, %v5868_v40  ;;  %v6005_v40 = vmul.u32 43690, %v13634_v38 }
 0x619   : > { %v5870_v35 = vrot.slane %v5869_v45, 3 }
 0x61b   : > { %5928 = vmatpush.bf16.msra.mxu1 %v10812_v24  ;;  %v5872_v46 = vsel %vm2860_vm3, %v5870_v35, %v5871_v20  ;;  %v13631_v24 = vld [vmem:[#allocation41_spill] sm:$0xff] }
 0x61c   : > { %v5975_v21 = vmul.u32 43691, %v13631_v24  ;;  %v5976_v36 = vmul.u32 43690, %v13631_v24 }
 0x61e   : > { %v5979_v50 = vshll.u32 %v5975_v21, 16  ;;  %v5980_v58 = vshrl.u32 %v5975_v21, 16 }
 0x61f   : > { %5929 = vmatpush.bf16.msra.mxu1 %v10811_v13  ;;  %v5982_v13 = vsel %vm5981_vm11, 1, %v13632_v41 }
 0x620   : > { %vm5985_vm10 = vc.u32 %v5983_v17, %v5979_v50  ;;  %v13638_v17 = vld [vmem:[#allocation47_spill] sm:$0xff] }
 0x621   : > { %5627 = vmatmul.bf16.gmra.mxu2 %v5563_v28  ;;  %v5984_v28 = vadd.s32 %v5982_v13, %v5976_v36  ;;  %v5986_v57 = vsel %vm5985_vm10, 1, %v13632_v41  ;;  %v13636_v36 = vld [vmem:[#allocation46_spill] sm:$0xff] }
 0x622   : > { %v6032_v37 = vmul.u32 43690, %v13636_v36 }
 0x623   : > { %5930 = vmatpush.bf16.msra.mxu1 %v10810_v33  ;;  %v5988_v49 = vadd.s32 %v5986_v57, %v5984_v28 }
 0x624   : > { %5727 = vmatmul.bf16.vlgmr.msrb.gmra.mxu3 %v5668_v42  ;;  %v6035_v13 = vshll.u32 %v6032_v37, 16 }
 0x625   : > { %5836 = vmatmul.bf16.vlgmr.msrb.gmra.mxu0 %v5777_v48  ;;  %v5989_v9 = vadd.s32 %v5988_v49, %v5978_v56 }
 0x626   : > { %5532 = vmatmul.bf16.vlgmr.msrb.gmra.mxu1 %v5473_v6  ;;  %v6004_v6 = vmul.u32 43691, %v13634_v38 }
 0x634   : > { %5732 = vmatmul.bf16.gmra.mxu3 %v5667_v63 }
 0x635   : > { %5841 = vmatmul.bf16.gmra.mxu0 %v5776_v27 }
 0x636   : > { %5537 = vmatmul.bf16.gmra.mxu1 %v5472_v60  ;;  %v13633_v60 = vld [vmem:[#allocation43_spill] sm:$0xff] }
 0x637   : > { %v6002_v33 = vmul.u32 43691, %v13633_v60  ;;  %v6003_v42 = vmul.u32 43690, %v13633_v60 }
 0x639   : > { %v6006_v45 = vshll.u32 %v6003_v42, 16 }
 0x63b   : > { %vm6010_vm13 = vc.u32 %v6002_v33, %v6006_v45 }
 0x646   : > { %5931 = vmatmul.bf16.vlgmr.msra.gmra.mxu1 %v5872_v46  ;;  %v6008_v46 = vshll.u32 %v6004_v6, 16 }
 0x656   : > { %5936 = vmatmul.bf16.gmra.mxu1 %v5871_v20 }
 0x674   : > { %v5234_v32 = vpop.f32.mrf.mxu2 }
 0x67c   : > { %v5236_v18 = vpop.f32.mrf.mxu2 }
 0x682   : > { %v5424_v61 = vpop.f32.mrf.mxu0 }
 0x683   : > { %v5165_v5 = vpop.f32.mrf.mxu1 }
 0x684   : > { %v13276_v39 = vpop.f32.mrf.mxu2  ;;  %v5235_v10 = vadd.f32 %v5234_v32, %v5165_v5  ;;  %v5990_v32 = vadd.s32 %v5989_v9, %v5980_v58 }
 0x687   : > { %v5326_v44 = vpop.f32.mrf.mxu3 }
 0x688   : > { %v5335_v8 = vadd.f32 %v5326_v44, %v5235_v10  ;;  %v6011_v44 = vsel %vm6010_vm13, 1, %v13632_v41 }
 0x68a   : > { %v5426_v1 = vpop.f32.mrf.mxu0  ;;  %v5433_v4 = vadd.f32 %v5424_v61, %v5335_v8  ;;  %v5991_v8 = vshrl.u32 %v5990_v32, 2 }
 0x68b   : > { %v5167_v51 = vpop.f32.mrf.mxu1 }
 0x68c   : > { %v5241_v25 = vpop.f32.mrf.mxu2  ;;  %v5237_v62 = vadd.f32 %v5236_v18, %v5167_v51  ;;  %v6012_v18 = vadd.s32 %v6006_v45, %v6002_v33  ;;  %v6013_v51 = vadd.s32 %v6011_v44, %v6005_v40  ;;  %v10825_v40 = vld [vmem:[#allocation20 + $0x38] sm:$0xff] }
 0x68d   : > { %6318 = vmatpush.bf16.msra.mxu3 %v10825_v40  ;;  %v10830_v40 = vld [vmem:[#allocation20 + $0x60] sm:$0xff] }
 0x68e   : > { %vm6014_vm14 = vc.u32 %v6012_v18, %v6008_v46  ;;  %v6036_v46 = vshrl.u32 %v6032_v37, 16 }
 0x68f   : > { %v5328_v23 = vpop.f32.mrf.mxu3 }
 0x690   : > { %v5336_v63 = vadd.f32 %v5328_v23, %v5237_v62  ;;  %v6033_v62 = vmul.u32 43691, %v13638_v17 }
 0x692   : > { %v13278_v7 = vpop.f32.mrf.mxu0  ;;  %v5434_v20 = vadd.f32 %v5426_v1, %v5336_v63  ;;  %v6015_v1 = vsel %vm6014_vm14, 1, %v13632_v41  ;;  %v6034_v63 = vmul.u32 43690, %v13638_v17  ;;  %v6037_v57 = vshll.u32 %v6033_v62, 16 }
 0x693   : > { %v5170_v3 = vpop.f32.mrf.mxu1 }
 0x694   : > { %v5623_v52 = vpop.f32.mrf.mxu2  ;;  %v5240_v25 = vadd.f32 %v13276_v39, %v5170_v3  ;;  %v13310_v3 = vld [vmem:[%s13637_s30] ss:$0 sm:$0xff] }
 0x697   : > { %v5331_v59 = vpop.f32.mrf.mxu3 }
 0x69a   : > { %v5431_v19 = vpop.f32.mrf.mxu0 }
 0x69b   : > { %v5172_v30 = vpop.f32.mrf.mxu1  ;;  %v5992_v19 = vmul.u32 6, %v5991_v8 }
 0x69c   : > { %v5625_v34 = vpop.f32.mrf.mxu2  ;;  %v6009_v30 = vshrl.u32 %v6004_v6, 16 }
 0x69f   : > { %v5333_v54 = vpop.f32.mrf.mxu3 }
 0x6a0   : > { %v6017_v54 = vadd.s32 %v6015_v1, %v6013_v51 }
 0x6a2   : > { %v13280_v26 = vpop.f32.mrf.mxu0 }
 0x6a3   : > { %v5533_v2 = vpop.f32.mrf.mxu1 }
 0x6a4   : > { %v13282_v43 = vpop.f32.mrf.mxu2  ;;  %v5542_v48 = vadd.f32 %v5533_v2, %v5433_v4  ;;  %v6007_v4 = vshrl.u32 %v6003_v42, 16  ;;  %v5337_v2 = vadd.f32 %v5331_v59, %v5240_v25 }
 0x6a6   : > { %v5632_v61 = vadd.f32 %v5623_v52, %v5542_v48  ;;  %v13635_v52 = vld [vmem:[#allocation39_spill] sm:$0xff]  ;;  %v6018_v47 = vadd.s32 %v6017_v54, %v6007_v4  ;;  %v5435_v21 = vadd.f32 %v13278_v7, %v5337_v2 }
 0x6a7   : > { %v5728_v15 = vpop.f32.mrf.mxu3  ;;  %v10823_v54 = vld [vmem:[#allocation20 + $0x28] sm:$0xff] }
 0x6a8   : > { %v6019_v24 = vadd.s32 %v6018_v47, %v6009_v30  ;;  %v10865_v30 = vld [vmem:[#allocation20 + $0x178] sm:$0xff] }
 0x6aa   : > { %v13284_v29 = vpop.f32.mrf.mxu0  ;;  %v6020_v59 = vshrl.u32 %v6019_v24, 2 }
 0x6ab   : > { %v5535_v14 = vpop.f32.mrf.mxu1 }
 0x6ac   : > { %v5630_v11 = vpop.f32.mrf.mxu2  ;;  %v5543_v5 = vadd.f32 %v5535_v14, %v5434_v20  ;;  %v5993_v14 = vsub.s32 %v13635_v52, %v5992_v19  ;;  %v6021_v28 = vmul.u32 6, %v6020_v59  ;;  %v10849_v52 = vld [vmem:[#allocation20 + $0xf8] sm:$0xff] }
 0x6ad   : > { %v5737_v11 = vadd.f32 %v5728_v15, %v5632_v61  ;;  %v6031_v15 = vmul.u32 43691, %v13636_v36  ;;  %v13645_v36 = vld [vmem:[#allocation45_spill] sm:$0xff]  ;;  %6509 = vmatpush.bf16.msrb.mxu1 %v10849_v52  ;;  %v10835_v52 = vld [vmem:[#allocation20 + $0x88] sm:$0xff] }
 0x6ae   : > { %v5633_v53 = vadd.f32 %v5625_v34, %v5543_v5  ;;  %vm6054_vm15 = vcmp.ne.s32.totalorder %v5993_v14, 0  ;;  %vm6057_vm6 = vcmp.lt.s32.totalorder %v5993_v14, 0 }
 0x6af   : > { %v5730_v0 = vpop.f32.mrf.mxu3  ;;  %v5846_v39 = vadd.f32 %v13280_v26, %v5737_v11  ;;  %v13317_v26 = vld [vmem:[%s13639_s29] ss:$0 sm:$0xff]  ;;  %vm6039_vm7 = vc.u32 %v6031_v15, %v6035_v13  ;;  %v6041_v58 = vadd.s32 %v6035_v13, %v6031_v15  ;;  %vm13322_vm8 = vmand %vm6057_vm6, %vm6054_vm15  ;;  %s824_s29 = scalar_lea.vmem [#allocation23], %s11920_s5 }
 0x6b0   : > { %v5738_v50 = vadd.f32 %v5730_v0, %v5633_v53  ;;  %v6063_v0 = vadd.s32 6, %v5993_v14  ;;  %v6040_v42 = vsel %vm6039_vm7, 1, %v13632_v41  ;;  %v10841_v53 = vld [vmem:[#allocation20 + $0xb8] sm:$0xff]  ;;  %s8402_s20 = sshll.u32 %s824_s29, 4  ;;  %s8403_s20 = int_to_ptr.vmem [resolvable:$true] %s8402_s20 }
 0x6b1   : > { %v6042_v38 = vadd.s32 %v6040_v42, %v6034_v63  ;;  %vm6043_vm9 = vc.u32 %v6041_v58, %v6037_v57  ;;  %6410 = vmatpush.bf16.msra.mxu0 %v10841_v53  ;;  %v10839_v63 = vld [vmem:[#allocation20 + $0xa8] sm:$0xff] }
 0x6b2   : > { %v13290_v31 = vpop.f32.mrf.mxu0  ;;  %v5847_v48 = vadd.f32 %v13284_v29, %v5738_v50  ;;  %v6066_v45 = vsel %vm13322_vm8, %v6063_v0, %v5993_v14  ;;  %v6044_v32 = vsel %vm6043_vm9, 1, %v13632_v41  ;;  %v6038_v29 = vshrl.u32 %v6033_v62, 16  ;;  %v10822_v50 = vld [vmem:[#allocation20 + $0x20] sm:$0xff]  ;;  %v10831_v58 = vld [vmem:[#allocation20 + $0x68] sm:$0xff] }
 0x6b3   : > { %v5538_v27 = vpop.f32.mrf.mxu1  ;;  %v6046_v61 = vadd.s32 %v6044_v32, %v6042_v38  ;;  %vm6069_vm14 = vcmp.lt.s32.totalorder %v6066_v45, 4  ;;  %v10838_v38 = vld [vmem:[#allocation20 + $0xa0] sm:$0xff] }
 0x6b4   : > { %v5544_v7 = vadd.f32 %v5538_v27, %v5435_v21  ;;  %v13642_v27 = vld [vmem:[#allocation42_spill] sm:$0xff] }
 0x6b5   : > { %v6022_v33 = vsub.s32 %v13642_v27, %v6021_v28  ;;  %v10821_v28 = vld [vmem:[#allocation20 + $0x18] sm:$0xff] }
 0x6b6   : > { %v5634_v6 = vadd.f32 %v13282_v43, %v5544_v7 }
 0x6b7   : > { %v13298_v35 = vpop.f32.mrf.mxu3  ;;  %vm6055_vm2 = vcmp.ne.s32.totalorder %v6022_v33, 0  ;;  %vm6058_vm11 = vcmp.lt.s32.totalorder %v6022_v33, 0  ;;  %v6064_v20 = vadd.s32 6, %v6022_v33 }
 0x6b8   : > { %vm6061_vm13 = vmand %vm6058_vm11, %vm6055_vm2  ;;  %v5739_v8 = vadd.f32 %v13298_v35, %v5634_v6 }
 0x6b9   : > { %v6067_v51 = vsel %vm6061_vm13, %v6064_v20, %v6022_v33  ;;  %vm6112_vm13 = vcmask 1043456  }
 0x6ba   : > { %v5844_v10 = vpop.f32.mrf.mxu0  ;;  %vm13337_vm15 = vcmp.lt.s32.totalorder %v6067_v51, 4  ;;  %v5848_v11 = vadd.f32 %v13290_v31, %v5739_v8  ;;  %v10848_v31 = vld [vmem:[#allocation20 + $0xf0] sm:$0xff] }
 0x6bb   : > { %v5540_v23 = vpop.f32.mrf.mxu1  ;;  %v6047_v10 = vadd.s32 %v6046_v61, %v6036_v46  ;;  %6510 = vmatpush.bf16.msrb.mxu1 %v10848_v31  ;;  %v10837_v61 = vld [vmem:[#allocation20 + $0x98] sm:$0xff] }
 0x6bc   : > { %v10824_v23 = vld [vmem:[#allocation20 + $0x30] sm:$0xff] }
 0x6bd   : > { %v6048_v25 = vadd.s32 %v6047_v10, %v6038_v29  ;;  %6319 = vmatpush.bf16.msra.mxu3 %v10824_v23  ;;  %v10819_v29 = vld [vmem:[#allocation20 + $0x8] sm:$0xff]  ;;  %v10818_v23 = vld [vmem:[#allocation20] sm:$0xff] }
 0x6bf   : > { %v5735_v12 = vpop.f32.mrf.mxu3  ;;  %v6049_v19 = vshrl.u32 %v6048_v25, 2 }
 0x6c0   : > { %v10833_v12 = vld [vmem:[#allocation20 + $0x78] sm:$0xff] }
 0x6c1   : > { %v6050_v35 = vmul.u32 6, %v6049_v19  ;;  %6320 = vmatpush.bf16.msra.mxu3 %v10823_v54  ;;  %6249 = vmatpush.bf16.msra.mxu2 %v10833_v12  ;;  %v10844_v54 = vld [vmem:[#allocation20 + $0xd0] sm:$0xff] }
 0x6c3   : > { %v5932_v34 = vpop.f32.mrf.mxu1  ;;  %v6051_v37 = vsub.s32 %v13645_v36, %v6050_v35  ;;  %v10828_v35 = vld [vmem:[#allocation20 + $0x50] sm:$0xff] }
 0x6c4   : > { %v5941_v56 = vadd.f32 %v5932_v34, %v5846_v39  ;;  %v10840_v39 = vld [vmem:[#allocation20 + $0xb0] sm:$0xff] }
 0x6c5   : > { %v10832_v34 = vld [vmem:[#allocation20 + $0x70] sm:$0xff]  ;;  %vm6056_vm7 = vcmp.ne.s32.totalorder %v6051_v37, 0  ;;  %vm6059_vm8 = vcmp.lt.s32.totalorder %v6051_v37, 0  ;;  %v6065_v13 = vadd.s32 6, %v6051_v37  ;;  %6321 = vmatpush.bf16.msra.mxu3 %v10822_v50  ;;  %6411 = vmatpush.bf16.msra.mxu0 %v10840_v39  ;;  %v10834_v50 = vld [vmem:[#allocation20 + $0x80] sm:$0xff]  ;;  %v10863_v39 = vld [vmem:[#allocation20 + $0x168] sm:$0xff] }
 0x6c6   : > { %v5948_v49 = vmul.f32 %v13310_v3, %v5941_v56  ;;  %vm13346_vm9 = vmand %vm6059_vm8, %vm6056_vm7  ;;  %6250 = vmatpush.bf16.msra.mxu2 %v10832_v34 }
 0x6c7   : > { %v6068_v57 = vsel %vm13346_vm9, %v6065_v13, %v6051_v37  ;;  %v10881_v13 = vld [vmem:[#allocation20 + $0x1f8] sm:$0xff] }
 0x6c8   : > { %v5955_v9 = vadd.f32 %v13317_v26, %v5948_v49  ;;  %vm6071_vm11 = vcmp.lt.s32.totalorder %v6068_v57, 4  ;;  %v10880_v57 = vld [vmem:[#allocation20 + $0x1f0] sm:$0xff] }
 0x6c9   : > { %6322 = vmatpush.bf16.msra.mxu3 %v10821_v28  ;;  %6412 = vmatpush.bf16.msra.mxu0 %v10839_v63  ;;  %v10872_v63 = vld [vmem:[#allocation20 + $0x1b0] sm:$0xff] }
 0x6ca   : > { %vm5958_vm10 = vcmp.ge.f32.partialorder %v5955_v9, 0.0  ;;  %v5961_v18 = vmul.f32 0.2, %v5955_v9  ;;  %6251 = vmatpush.bf16.msra.mxu2 %v10831_v58 }
 0x6cb   : > { %v5934_v5 = vpop.f32.mrf.mxu1 }
 0x6cc   : > { %v5942_v43 = vadd.f32 %v5934_v5, %v5847_v48  ;;  %v5964_v44 = vsel %vm5958_vm10, %v5955_v9, %v5961_v18  ;;  %vm6092_vm10 = vsmask.f32 3328  ;;  %v10820_v48 = vld [vmem:[#allocation20 + $0x10] sm:$0xff]  ;;  %v10846_v9 = vld [vmem:[#allocation20 + $0xe0] sm:$0xff]  ;;  %v10845_v5 = vld [vmem:[#allocation20 + $0xd8] sm:$0xff] }
 0x6cd   : > { %v6078_v1 = vsel %vm6069_vm14, %v5964_v44, 0.0  ;;  %vm6113_vm14 = vmand %vm6112_vm13, %vm6092_vm10  ;;  %6323 = vmatpush.bf16.msra.mxu3 %v10820_v48  ;;  %6413 = vmatpush.bf16.msra.mxu0 %v10838_v38  ;;  %v10855_v48 = vld [vmem:[#allocation20 + $0x128] sm:$0xff] }
 0x6ce   : > { %v5949_v4 = vmul.f32 %v13310_v3, %v5942_v43  ;;  %v6081_v14 = vpack.c.bf16 %v6078_v1, %v6078_v1  ;;  %6252 = vmatpush.bf16.msra.mxu2 %v10830_v40  ;;  %v10829_v43 = vld [vmem:[#allocation20 + $0x58] sm:$0xff]  ;;  %v10836_v1 = vld [vmem:[#allocation20 + $0x90] sm:$0xff] }
 0x6d0   : > { %v5956_v41 = vadd.f32 %v13317_v26, %v5949_v4  ;;  %v6087_v7 = vunpack.c.l.b16 %v6081_v14  ;;  %v10864_v14 = vld [vmem:[#allocation20 + $0x170] sm:$0xff] }
 0x6d1   : > { %6324 = vmatpush.bf16.msra.mxu3 %v10819_v29  ;;  %6414 = vmatpush.bf16.msra.mxu0 %v10837_v61  ;;  %v10870_v29 = vld [vmem:[#allocation20 + $0x1a0] sm:$0xff] }
 0x6d2   : > { %vm5959_vm6 = vcmp.ge.f32.partialorder %v5956_v41, 0.0  ;;  %v5962_v2 = vmul.f32 0.2, %v5956_v41  ;;  %6253 = vmatpush.bf16.msra.mxu2 %v10829_v43 }
 0x6d3   : > { %v5937_v47 = vpop.f32.mrf.mxu1 }
 0x6d4   : > { %v5965_v24 = vsel %vm5959_vm6, %v5956_v41, %v5962_v2  ;;  %v5943_v21 = vadd.f32 %v5937_v47, %v5848_v11  ;;  %v10843_v47 = vld [vmem:[#allocation20 + $0xc8] sm:$0xff] }
 0x6d5   : > { %v6079_v59 = vsel %vm13337_vm15, %v5965_v24, 0.0  ;;  %vm6115_vm15 = vcmask 1047552   ;;  %6325 = vmatpush.bf16.msra.mxu3 %v10818_v23  ;;  %6415 = vmatpush.bf16.msra.mxu0 %v10836_v1  ;;  %v10827_v24 = vld [vmem:[#allocation20 + $0x48] sm:$0xff] }
 0x6d6   : > { %v6082_v15 = vpack.c.bf16 %v6079_v59, %v6079_v59  ;;  %v5950_v17 = vmul.f32 %v13310_v3, %v5943_v21  ;;  %v10847_v3 = vld [vmem:[#allocation20 + $0xe8] sm:$0xff]  ;;  %vm6116_vm6 = vmand %vm6115_vm15, %vm1786_vm1  ;;  %6254 = vmatpush.bf16.msra.mxu2 %v10828_v35  ;;  %v10842_v59 = vld [vmem:[#allocation20 + $0xc0] sm:$0xff] }
 0x6d7   : > { %6511 = vmatpush.bf16.msrb.mxu1 %v10847_v3  ;;  %v10856_v3 = vld [vmem:[#allocation20 + $0x130] sm:$0xff] }
 0x6d8   : > { %v6088_v56 = vunpack.c.l.b16 %v6082_v15  ;;  %v5957_v0 = vadd.f32 %v13317_v26, %v5950_v17  ;;  %v10826_v15 = vld [vmem:[#allocation20 + $0x40] sm:$0xff]  ;;  %v10873_v17 = vld [vmem:[#allocation20 + $0x1b8] sm:$0xff] }
 0x6d9   : > { %6708 = vmatpush.bf16.msrb.mxu3 %v10865_v30  ;;  %6416 = vmatpush.bf16.msra.mxu0 %v10835_v52  ;;  %v10869_v30 = vld [vmem:[#allocation20 + $0x198] sm:$0xff] }
 0x6da   : > { %v6090_v49 = vpack.c.b16 %v6088_v56, %v6087_v7  ;;  %vm5960_vm2 = vcmp.ge.f32.partialorder %v5957_v0, 0.0  ;;  %v5963_v60 = vmul.f32 0.2, %v5957_v0  ;;  %6255 = vmatpush.bf16.msra.mxu2 %v10827_v24  ;;  %v10857_v7 = vld [vmem:[#allocation20 + $0x138] sm:$0xff]  ;;  %v10862_v56 = vld [vmem:[#allocation20 + $0x160] sm:$0xff]  ;;  %v10876_v24 = vld [vmem:[#allocation20 + $0x1d0] sm:$0xff] }
 0x6db   : > { %v5939_v27 = vpop.f32.mrf.mxu1  ;;  %6512 = vmatpush.bf16.msrb.mxu1 %v10846_v9  ;;  %v10853_v52 = vld [vmem:[#allocation20 + $0x118] sm:$0xff] }
 0x6dc   : > { %v6094_v33 = vshrl.u32 %v6090_v49, 16  ;;  %v6097_v42 = vshll.u32 %v6090_v49, 16  ;;  %v5966_v26 = vsel %vm5960_vm2, %v5957_v0, %v5963_v60  ;;  %v10861_v27 = vld [vmem:[#allocation20 + $0x158] sm:$0xff] }
 0x6dd   : > { %v6080_v6 = vsel %vm6071_vm11, %v5966_v26, 0.0  ;;  %6709 = vmatpush.bf16.msrb.mxu3 %v10864_v14  ;;  %6417 = vmatpush.bf16.msra.mxu0 %v10834_v50  ;;  %v10879_v26 = vld [vmem:[#allocation20 + $0x1e8] sm:$0xff] }
 0x6de   : > { %v6096_v45 = vrot.slane %v6094_v33, 4  ;;  %v6099_v20 = vrot.slane %v6097_v42, 5  ;;  %v6083_v46 = vpack.c.bf16 %v6080_v6, %v6080_v6  ;;  %6256 = vmatpush.bf16.msra.mxu2 %v10826_v15  ;;  %v10871_v33 = vld [vmem:[#allocation20 + $0x1a8] sm:$0xff]  ;;  %v10850_v15 = vld [vmem:[#allocation20 + $0x100] sm:$0xff] }
 0x6df   : > { %6513 = vmatpush.bf16.msrb.mxu1 %v10845_v5  ;;  %v10851_v50 = vld [vmem:[#allocation20 + $0x108] sm:$0xff] }
 0x6e0   : > { %v6100_v32 = vor.u32 %v6099_v20, %v6096_v45  ;;  %v6089_v18 = vunpack.c.l.b16 %v6083_v46 }
 0x6e1   : > { %6710 = vmatpush.bf16.msrb.mxu3 %v10863_v39  ;;  %6813 = vmatpush.bf16.msrb.mxu0 %v10873_v17 }
 0x6e2   : > { %v6114_v10 = vsel %vm6113_vm14, 0, %v6100_v32  ;;  %v6091_v44 = vpack.c.b16 %v6089_v18, %v6089_v18  ;;  %6618 = vmatpush.bf16.msrb.mxu2 %v10857_v7  ;;  %v10860_v18 = vld [vmem:[#allocation20 + $0x150] sm:$0xff] }
 0x6e3   : > { %v6120_v8 = vunpack.c.l.b16 %v6114_v10  ;;  %v6121_v4 = vunpack.c.h.b16 %v6114_v10  ;;  %6514 = vmatpush.bf16.msrb.mxu1 %v10844_v54  ;;  %v10878_v10 = vld [vmem:[#allocation20 + $0x1e0] sm:$0xff] }
 0x6e4   : > { %v6102_v51 = vshrl.u32 %v6091_v44, 16  ;;  %v6105_v25 = vshll.u32 %v6091_v44, 16  ;;  %v10854_v44 = vld [vmem:[#allocation20 + $0x120] sm:$0xff] }
 0x6e5   : > { %v6124_v41 = vpack.c.b16 %v6120_v8, %v6120_v8  ;;  %v6125_v19 = vpack.c.b16 %v6121_v4, %v6121_v4  ;;  %6711 = vmatpush.bf16.msrb.mxu3 %v10862_v56  ;;  %6814 = vmatpush.bf16.msrb.mxu0 %v10872_v63 }
 0x6e6   : > { %v6104_v2 = vrot.slane %v6102_v51, 4  ;;  %v6107_v11 = vrot.slane %v6105_v25, 5  ;;  %6619 = vmatpush.bf16.msrb.mxu2 %v10856_v3 }
 0x6e7   : > { %6132 = vst [vmem:[#allocation5] sm:$0xf] %v6124_v41  ;;  %6515 = vmatpush.bf16.msrb.mxu1 %v10843_v47  ;;  %v10859_v41 = vld [vmem:[#allocation20 + $0x148] sm:$0xff]  ;;  %v10858_v47 = vld [vmem:[#allocation20 + $0x140] sm:$0xff] }
 0x6e8   : > { %6133 = vst [vmem:[#allocation5 + $0x4] sm:$0xf] %v6125_v19  ;;  %v6108_v53 = vor.u32 %v6107_v11, %v6104_v2 }
 0x6e9   : > { %6712 = vmatpush.bf16.msrb.mxu3 %v10861_v27  ;;  %6815 = vmatpush.bf16.msrb.mxu0 %v10871_v33  ;;  %v10888_v33 = vld [vmem:[#allocation20 + $0x230] sm:$0xff] }
 0x6ea   : > { %v6109_v12 = vsel %vm6092_vm10, %v6100_v32, %v6108_v53  ;;  %6620 = vmatpush.bf16.msrb.mxu2 %v10855_v48  ;;  %v10877_v53 = vld [vmem:[#allocation20 + $0x1d8] sm:$0xff] }
 0x6eb   : > { %v6117_v21 = vsel %vm6116_vm6, %v6109_v12, 0  ;;  %6516 = vmatpush.bf16.msrb.mxu1 %v10842_v59  ;;  %v10868_v12 = vld [vmem:[#allocation20 + $0x190] sm:$0xff]  ;;  %v6834_v59 = vld [vmem:[#allocation5 + $0x10] sm:$0x7] }
 0x6ec   : > { %v6122_v36 = vunpack.c.l.b16 %v6117_v21  ;;  %v6123_v37 = vunpack.c.h.b16 %v6117_v21  ;;  %v10852_v21 = vld [vmem:[#allocation20 + $0x110] sm:$0xff]  ;;  %v6853_v7 = vunpack.c.l.b16 %v6834_v59 }
 0x6ed   : > { %6713 = vmatpush.bf16.msrb.mxu3 %v10860_v18  ;;  %6816 = vmatpush.bf16.msrb.mxu0 %v10870_v29 }
 0x6ee   : > { %v6126_v31 = vpack.c.b16 %v6122_v36, %v6122_v36  ;;  %v6127_v34 = vpack.c.b16 %v6123_v37, %v6123_v37  ;;  %v6336_v0 = vld [vmem:[#allocation5] sm:$0xe]  ;;  %6621 = vmatpush.bf16.msrb.mxu2 %v10854_v44  ;;  %v10867_v36 = vld [vmem:[#allocation20 + $0x188] sm:$0xff] }
 0x6ef   : > { %v13356_v62 = vld [vmem:[#allocation5] sm:$0xff]   ;;  %6922 = vmatpush.bf16.msra.mxu1 %v10881_v13  ;;  %v6355_v49 = vunpack.c.l.b16 %v6336_v0  ;;  %v10875_v37 = vld [vmem:[#allocation20 + $0x1c8] sm:$0xff]  ;;  %v10889_v0 = vld [vmem:[#allocation20 + $0x238] sm:$0xff] }
 0x6f0   : > { %6134 = vst [vmem:[#allocation5 + $0x8] sm:$0xf] %v6126_v31  ;;  %6326 = vmatmul.bf16.vlgmr.msra.gmra.mxu3 %v13356_v62  ;;  %v6431_v28 = vld [vmem:[#allocation5] sm:$0x8]  ;;  %v13360_v58 = vunpack.c.h.b16 %v13356_v62  ;;  %v6187_v42 = vshll.u32 %v13356_v62, 16  ;;  %v6185_v8 = vshrl.u32 %v13356_v62, 16 }
 0x6f1   : > { %6135 = vst [vmem:[#allocation5 + $0xc] sm:$0xf] %v6127_v34  ;;  %v6452_v60 = vunpack.c.l.b16 %v6431_v28  ;;  %6714 = vmatpush.bf16.msrb.mxu3 %v10859_v41  ;;  %6817 = vmatpush.bf16.msrb.mxu0 %v10869_v30  ;;  %v10866_v31 = vld [vmem:[#allocation20 + $0x180] sm:$0xff]  ;;  %v6729_v17 = vld [vmem:[#allocation5 + $0x4] sm:$0xc] }
 0x6f2   : > { %v6356_v9 = vpack.c.b16 %v13360_v58, %v6355_v49  ;;  %v6189_v61 = vrot.slane %v6187_v42, 1  ;;  %6622 = vmatpush.bf16.msrb.mxu2 %v10853_v52  ;;  %v10874_v34 = vld [vmem:[#allocation20 + $0x1c0] sm:$0xff] }
 0x6f3   : > { %6923 = vmatpush.bf16.msra.mxu1 %v10880_v57  ;;  %v13367_v45 = vpack.c.b16 %v13360_v58, %v6452_v60  ;;  %v6754_v57 = vunpack.c.l.b16 %v6729_v17  ;;  %v6732_v49 = vld [vmem:[#allocation5 + $0x10] sm:$0x3]  ;;  %v10905_v17 = vld [vmem:[#allocation21 + $0x78] sm:$0xff] }
 0x6f4   : > { %v6357_v4 = vrot.slane %v6356_v9, 1  ;;  %v6190_v11 = vor.u32 %v6189_v61, %v6185_v8  ;;  %v6757_v42 = vunpack.c.l.b16 %v6732_v49  ;;  %v10886_v8 = vld [vmem:[#allocation20 + $0x220] sm:$0xff]  ;;  %v10920_v49 = vld [vmem:[#allocation21 + $0xf0] sm:$0xff] }
 0x6f5   : > { %v6456_v25 = vrot.slane %v13367_v45, 3  ;;  %6715 = vmatpush.bf16.msrb.mxu3 %v10858_v47  ;;  %6818 = vmatpush.bf16.msrb.mxu0 %v10868_v12  ;;  %v6555_v18 = vshll.u32 %v13367_v45, 16  ;;  %v10882_v52 = vld [vmem:[#allocation20 + $0x200] sm:$0xff] }
 0x6f6   : > { %6623 = vmatpush.bf16.msrb.mxu2 %v10852_v21 }
 0x6f7   : > { %6924 = vmatpush.bf16.msra.mxu1 %v10879_v26 }
 0x6f8   : > { %v13363_v38 = vld [vmem:[#allocation5 + $0x8] sm:$0xff]  }
 0x6f9   : > { %v6156_v6 = vld [vmem:[#allocation5 + $0xc] sm:$0x1]  ;;  %v13370_v20 = vunpack.c.l.b16 %v13363_v38  ;;  %6819 = vmatpush.bf16.msrb.mxu0 %v10867_v36  ;;  %v6549_v56 = vunpack.c.h.b16 %v13363_v38  ;;  %v6560_v9 = vshrl.u32 %v13363_v38, 16 }
 0x6fa   : > { %v6432_v40 = vld [vmem:[#allocation5 + $0xc] sm:$0x7]  ;;  %v6181_v46 = vunpack.c.l.b16 %v6156_v6  ;;  %6624 = vmatpush.bf16.msrb.mxu2 %v10851_v50 }
 0x6fb   : > { %v6453_v32 = vunpack.c.l.b16 %v6432_v40  ;;  %v6267_v19 = vpack.c.b16 %v13370_v20, %v13370_v20  ;;  %6925 = vmatpush.bf16.msra.mxu1 %v10878_v10  ;;  %v13388_v39 = vld [vmem:[#allocation5 + $0x8] sm:$0xff]   ;;  %v6656_v28 = vpack.c.b16 %v13370_v20, %v13360_v58  ;;  %v6563_v40 = vshll.u32 %v13363_v38, 16 }
 0x6fc   : > { %v13373_v5 = vpack.c.b16 %v6181_v46, %v13370_v20  ;;  %v11076_v62 = vunpack.c.l.b16 %v13388_v39  ;;  %v11077_v13 = vunpack.c.h.b16 %v13388_v39  ;;  %v6562_v10 = vrot.slane %v6560_v9, 3  ;;  %v10897_v50 = vld [vmem:[#allocation21 + $0x38] sm:$0xff] }
 0x6fd   : > { %v13376_v43 = vpack.c.b16 %v6453_v32, %v13370_v20  ;;  %6820 = vmatpush.bf16.msrb.mxu0 %v10866_v31  ;;  %v10887_v20 = vld [vmem:[#allocation20 + $0x228] sm:$0xff]  ;;  %v6552_v32 = vshrl.u32 %v13367_v45, 16  ;;  %v6565_v44 = vrot.slane %v6563_v40, 4  ;;  %v6657_v30 = vpack.c.b16 %v6549_v56, %v6549_v56  ;;  %7147 = vmatpush.bf16.msra.mxu3 %v10897_v50  ;;  %v10921_v39 = vld [vmem:[#allocation21 + $0xf8] sm:$0xff]  ;;  %v10904_v56 = vld [vmem:[#allocation21 + $0x70] sm:$0xff] }
 0x6fe   : > { %v6358_v51 = vrot.slane %v13373_v5, 1  ;;  %v6192_v1 = vshll.u32 %v13373_v5, 16  ;;  %v6196_v63 = vshrl.u32 %v13373_v5, 16  ;;  %6625 = vmatpush.bf16.msrb.mxu2 %v10850_v15  ;;  %v6758_v60 = vpack.c.b16 %v11076_v62, %v6754_v57  ;;  %v10896_v15 = vld [vmem:[#allocation21 + $0x30] sm:$0xff]  ;;  %v10914_v50 = vld [vmem:[#allocation21 + $0xc0] sm:$0xff] }
 0x6ff   : > { %v6457_v23 = vrot.slane %v13376_v43, 3  ;;  %6926 = vmatpush.bf16.msra.mxu1 %v10877_v53  ;;  %v6854_v27 = vpack.c.b16 %v6853_v7, %v11077_v13  ;;  %v6759_v46 = vpack.c.b16 %v6757_v42, %v11077_v13  ;;  %v6566_v41 = vor.u32 %v6565_v44, %v6562_v10  ;;  %v10883_v53 = vld [vmem:[#allocation20 + $0x208] sm:$0xff]  ;;  %v10913_v13 = vld [vmem:[#allocation21 + $0xb8] sm:$0xff] }
 0x700   : > { %v6359_v54 = vsel %vm2026_vm0, %v6357_v4, %v6358_v51  ;;  %v6194_v35 = vrot.slane %v6192_v1, 1  ;;  %6331 = vmatmul.bf16.gmra.mxu3 %v6267_v19  ;;  %v6856_v58 = vshrl.u32 %v6758_v60, 16  ;;  %v6859_v26 = vshll.u32 %v6758_v60, 16  ;;  %v10885_v19 = vld [vmem:[#allocation20 + $0x218] sm:$0xff]  ;;  %v10919_v42 = vld [vmem:[#allocation21 + $0xe8] sm:$0xff] }
 0x701   : > { %v6458_v2 = vsel %vm2860_vm3, %v6456_v25, %v6457_v23  ;;  %6418 = vmatmul.bf16.vlgmr.msra.gmra.mxu0 %v6359_v54  ;;  %v6864_v48 = vshrl.u32 %v6854_v27, 16  ;;  %v6867_v6 = vshll.u32 %v6854_v27, 16  ;;  %v6760_v4 = vrot.slane %v6758_v60, 2  ;;  %7148 = vmatpush.bf16.msra.mxu3 %v10896_v15  ;;  %v10903_v60 = vld [vmem:[#allocation21 + $0x68] sm:$0xff]  ;;  %v10917_v10 = vld [vmem:[#allocation21 + $0xd8] sm:$0xff] }
 0x702   : > { %6517 = vmatmul.bf16.vlgmr.msrb.gmra.mxu1 %v6458_v2  ;;  %v6195_v14 = vsel %vm1786_vm1, %v6190_v11, %v6194_v35  ;;  %v6198_v3 = vor.u32 %v6196_v63, %v6194_v35  ;;  %v6858_v29 = vrot.slane %v6856_v58, 2  ;;  %v6861_v61 = vrot.slane %v6859_v26, 3  ;;  %v10884_v35 = vld [vmem:[#allocation20 + $0x210] sm:$0xff]  ;;  %7233 = vmatpush.bf16.msra.mxu0 %v10905_v17  ;;  %v10902_v26 = vld [vmem:[#allocation21 + $0x60] sm:$0xff]  ;;  %v10953_v15 = vld [vmem:[#allocation21 + $0x1f8] sm:$0xff] }
 0x703   : > { %6257 = vmatmul.bf16.vlgmr.msra.gmra.mxu2 %v6195_v14  ;;  %6927 = vmatpush.bf16.msra.mxu1 %v10876_v24  ;;  %v6866_v5 = vrot.slane %v6864_v48, 2  ;;  %v6869_v43 = vrot.slane %v6867_v6, 3  ;;  %v6554_v25 = vrot.slane %v6552_v32, 3  ;;  %v6943_v14 = vld [vmem:[#allocation5 + $0x4] sm:$0x8]  ;;  %v6965_v21 = vrot.slane %v6854_v27, 3 }
 0x704   : > { %7017 = vmatpush.bf16.msra.mxu2 %v10889_v0  ;;  %v6862_v38 = vor.u32 %v6861_v61, %v6858_v29  ;;  %v6962_v47 = vunpack.c.l.b16 %v6943_v14  ;;  %v10912_v0 = vld [vmem:[#allocation21 + $0xb0] sm:$0xff]  ;;  %v10911_v27 = vld [vmem:[#allocation21 + $0xa8] sm:$0xff]  ;;  %v10910_v48 = vld [vmem:[#allocation21 + $0xa0] sm:$0xff] }
 0x705   : > { %v6870_v1 = vor.u32 %v6869_v43, %v6866_v5  ;;  %v10892_v32 = vld [vmem:[#allocation21 + $0x10] sm:$0xff]  ;;  %v10901_v29 = vld [vmem:[#allocation21 + $0x58] sm:$0xff]  ;;  %v10891_v43 = vld [vmem:[#allocation21 + $0x8] sm:$0xff] }
 0x706   : > { %v6963_v12 = vpack.c.b16 %v11076_v62, %v6962_v47  ;;  %v10895_v62 = vld [vmem:[#allocation21 + $0x28] sm:$0xff]  ;;  %7234 = vmatpush.bf16.msra.mxu0 %v10904_v56  ;;  %v10909_v61 = vld [vmem:[#allocation21 + $0x98] sm:$0xff]  ;;  %v10906_v14 = vld [vmem:[#allocation21 + $0x80] sm:$0xff] }
 0x707   : > { %6928 = vmatpush.bf16.msra.mxu1 %v10875_v37  ;;  %v6871_v2 = vsel %vm2688_vm4, %v6862_v38, %v6870_v1  ;;  %7149 = vmatpush.bf16.msra.mxu3 %v10895_v62  ;;  %v10937_v47 = vld [vmem:[#allocation21 + $0x178] sm:$0xff]  ;;  %v10936_v17 = vld [vmem:[#allocation21 + $0x170] sm:$0xff]  ;;  %v10926_v62 = vld [vmem:[#allocation21 + $0x120] sm:$0xff] }
 0x708   : > { %7018 = vmatpush.bf16.msra.mxu2 %v10888_v33  ;;  %v6964_v24 = vrot.slane %v6963_v12, 3  ;;  %v10893_v33 = vld [vmem:[#allocation21 + $0x18] sm:$0xff]  ;;  %v10935_v56 = vld [vmem:[#allocation21 + $0x168] sm:$0xff] }
 0x70a   : > { %v6966_v36 = vsel %vm2860_vm3, %v6964_v24, %v6965_v21  ;;  %7235 = vmatpush.bf16.msra.mxu0 %v10903_v60 }
 0x70b   : > { %6929 = vmatpush.bf16.msra.mxu1 %v10874_v34 }
 0x70c   : > { %7019 = vmatpush.bf16.msra.mxu2 %v10887_v20 }
 0x70e   : > { %7236 = vmatpush.bf16.msra.mxu0 %v10902_v26 }
 0x70f   : > { %7314 = vmatpush.bf16.msrb.mxu1 %v10913_v13  ;;  %v10944_v13 = vld [vmem:[#allocation21 + $0x1b0] sm:$0xff] }
 0x710   : > { %6716 = vmatmul.bf16.vlgmr.msrb.gmra.mxu3 %v6656_v28  ;;  %7020 = vmatpush.bf16.msra.mxu2 %v10886_v8  ;;  %v10900_v8 = vld [vmem:[#allocation21 + $0x50] sm:$0xff] }
 0x711   : > { %6423 = vmatmul.bf16.gmra.mxu0 %v6358_v51  ;;  %v6761_v51 = vrot.slane %v6759_v46, 2 }
 0x712   : > { %6522 = vmatmul.bf16.gmra.mxu1 %v6457_v23  ;;  %v6557_v23 = vrot.slane %v6555_v18, 4  ;;  %v10918_v18 = vld [vmem:[#allocation21 + $0xe0] sm:$0xff]  ;;  %7237 = vmatpush.bf16.msra.mxu0 %v10901_v29  ;;  %v10924_v29 = vld [vmem:[#allocation21 + $0x110] sm:$0xff] }
 0x713   : > { %6262 = vmatmul.bf16.gmra.mxu2 %v6198_v3  ;;  %v6762_v45 = vsel %vm2394_vm5, %v6760_v4, %v6761_v51  ;;  %7315 = vmatpush.bf16.msrb.mxu1 %v10912_v0  ;;  %v10894_v3 = vld [vmem:[#allocation21 + $0x20] sm:$0xff]  ;;  %v10908_v4 = vld [vmem:[#allocation21 + $0x90] sm:$0xff] }
 0x714   : > { %v6558_v54 = vor.u32 %v6557_v23, %v6554_v25  ;;  %7021 = vmatpush.bf16.msra.mxu2 %v10885_v19  ;;  %7150 = vmatpush.bf16.msra.mxu3 %v10894_v3  ;;  %v10916_v19 = vld [vmem:[#allocation21 + $0xd0] sm:$0xff] }
 0x716   : > { %v6567_v11 = vsel %vm5456_vm12, %v6558_v54, %v6566_v41  ;;  %7238 = vmatpush.bf16.msra.mxu0 %v10900_v8  ;;  %v10907_v54 = vld [vmem:[#allocation21 + $0x88] sm:$0xff] }
 0x717   : > { %7316 = vmatpush.bf16.msrb.mxu1 %v10911_v27 }
 0x718   : > { %7022 = vmatpush.bf16.msra.mxu2 %v10884_v35  ;;  %7151 = vmatpush.bf16.msra.mxu3 %v10893_v33 }
 0x71b   : > { %7317 = vmatpush.bf16.msrb.mxu1 %v10910_v48 }
 0x71c   : > { %7023 = vmatpush.bf16.msra.mxu2 %v10883_v53  ;;  %7152 = vmatpush.bf16.msra.mxu3 %v10892_v32  ;;  %v10928_v53 = vld [vmem:[#allocation21 + $0x130] sm:$0xff] }
 0x71f   : > { %7318 = vmatpush.bf16.msrb.mxu1 %v10909_v61  ;;  %v10950_v61 = vld [vmem:[#allocation21 + $0x1e0] sm:$0xff] }
 0x720   : > { %6721 = vmatmul.bf16.gmra.mxu3 %v6657_v30  ;;  %7024 = vmatpush.bf16.msra.mxu2 %v10882_v52  ;;  %v10929_v30 = vld [vmem:[#allocation21 + $0x138] sm:$0xff]  ;;  %v10898_v52 = vld [vmem:[#allocation21 + $0x40] sm:$0xff] }
 0x721   : > { %6821 = vmatmul.bf16.vlgmr.msrb.gmra.mxu0 %v6762_v45  ;;  %7153 = vmatpush.bf16.msra.mxu3 %v10891_v43  ;;  %v10899_v45 = vld [vmem:[#allocation21 + $0x48] sm:$0xff] }
 0x722   : > { %6930 = vmatmul.bf16.vlgmr.msra.gmra.mxu1 %v6871_v2  ;;  %7239 = vmatpush.bf16.msra.mxu0 %v10899_v45  ;;  %v10931_v45 = vld [vmem:[#allocation21 + $0x148] sm:$0xff] }
 0x723   : > { %6626 = vmatmul.bf16.vlgmr.msrb.gmra.mxu2 %v6567_v11  ;;  %7319 = vmatpush.bf16.msrb.mxu1 %v10908_v4  ;;  %v10915_v11 = vld [vmem:[#allocation21 + $0xc8] sm:$0xff] }
 0x724   : > { %7395 = vmatpush.bf16.msrb.mxu2 %v10921_v39 }
 0x726   : > { %7240 = vmatpush.bf16.msra.mxu0 %v10898_v52  ;;  %v10930_v52 = vld [vmem:[#allocation21 + $0x140] sm:$0xff] }
 0x727   : > { %7320 = vmatpush.bf16.msrb.mxu1 %v10907_v54 }
 0x728   : > { %7396 = vmatpush.bf16.msrb.mxu2 %v10920_v49 }
 0x72a   : > { %7557 = vmatpush.bf16.msrb.mxu0 %v10937_v47  ;;  %v11243_v47 = vld [vmem:[%s13649_s6] ss:$0 sm:$0xff] }
 0x72b   : > { %7321 = vmatpush.bf16.msrb.mxu1 %v10906_v14 }
 0x72c   : > { %7397 = vmatpush.bf16.msrb.mxu2 %v10919_v42 }
 0x72e   : > { %7558 = vmatpush.bf16.msrb.mxu0 %v10936_v17 }
 0x730   : > { %7398 = vmatpush.bf16.msrb.mxu2 %v10918_v18  ;;  %v10942_v18 = vld [vmem:[#allocation21 + $0x1a0] sm:$0xff] }
 0x731   : > { %6826 = vmatmul.bf16.gmra.mxu0 %v6761_v51 }
 0x732   : > { %6935 = vmatmul.bf16.gmra.mxu1 %v6870_v1  ;;  %7559 = vmatpush.bf16.msrb.mxu0 %v10935_v56 }
 0x733   : > { %6631 = vmatmul.bf16.gmra.mxu2 %v6566_v41  ;;  %v10890_v41 = vld [vmem:[#allocation21] sm:$0xff] }
 0x734   : > { %7399 = vmatpush.bf16.msrb.mxu2 %v10917_v10  ;;  %7154 = vmatpush.bf16.msra.mxu3 %v10890_v41  ;;  %v10948_v41 = vld [vmem:[#allocation21 + $0x1d0] sm:$0xff] }
 0x738   : > { %7400 = vmatpush.bf16.msrb.mxu2 %v10916_v19  ;;  %7476 = vmatpush.bf16.msrb.mxu3 %v10929_v30 }
 0x73c   : > { %7401 = vmatpush.bf16.msrb.mxu2 %v10915_v11  ;;  %7477 = vmatpush.bf16.msrb.mxu3 %v10928_v53  ;;  %v11242_v11 = vld [vmem:[%s13648_s14] ss:$0 sm:$0xff]  ;;  %s8392_s14 = scalar_lea.sflag [#allocation8], %s11920_s5 }
 0x740   : > { %7402 = vmatpush.bf16.msrb.mxu2 %v10914_v50 }
 0x743   : > { %7025 = vmatmul.bf16.vlgmr.msra.gmra.mxu2 %v6966_v36 }
 0x744   : > { %7722 = vmatpush.bf16.msra.mxu2 %v10953_v15 }
 0x753   : > { %7030 = vmatmul.bf16.gmra.mxu2 %v6965_v21  ;;  %v10945_v21 = vld [vmem:[#allocation21 + $0x1b8] sm:$0xff] }
 0x754   : > { %7636 = vmatpush.bf16.msra.mxu1 %v10945_v21 }
 0x758   : > { %7637 = vmatpush.bf16.msra.mxu1 %v10944_v13 }
 0x773   : > { %v13408_v37 = vpop.f32.mrf.mxu3 }
 0x77b   : > { %v6329_v59 = vpop.f32.mrf.mxu3 }
 0x77e   : > { %v13410_v31 = vpop.f32.mrf.mxu0 }
 0x77f   : > { %v13412_v34 = vpop.f32.mrf.mxu1 }
 0x783   : > { %v6332_v7 = vpop.f32.mrf.mxu3 }
 0x786   : > { %v13414_v28 = vpop.f32.mrf.mxu2  ;;  %v6421_v63 = vpop.f32.mrf.mxu0 }
 0x787   : > { %v6520_v57 = vpop.f32.mrf.mxu1  ;;  %v6328_v33 = vadd.f32 %v13408_v37, %v13414_v28  ;;  %v10933_v37 = vld [vmem:[#allocation21 + $0x158] sm:$0xff] }
 0x78b   : > { %v6334_v58 = vpop.f32.mrf.mxu3 }
 0x78c   : > { %v6428_v58 = vadd.f32 %v13410_v31, %v6328_v33  ;;  %v10941_v31 = vld [vmem:[#allocation21 + $0x198] sm:$0xff] }
 0x78e   : > { %v6260_v6 = vpop.f32.mrf.mxu2  ;;  %v6424_v9 = vpop.f32.mrf.mxu0 }
 0x78f   : > { %v6330_v40 = vadd.f32 %v6329_v59, %v6260_v6  ;;  %v6523_v20 = vpop.f32.mrf.mxu1  ;;  %v10927_v59 = vld [vmem:[#allocation21 + $0x128] sm:$0xff]  ;;  %v10925_v6 = vld [vmem:[#allocation21 + $0x118] sm:$0xff] }
 0x790   : > { %7478 = vmatpush.bf16.msrb.mxu3 %v10927_v59 }
 0x791   : > { %v6429_v46 = vadd.f32 %v6421_v63, %v6330_v40  ;;  %v10934_v40 = vld [vmem:[#allocation21 + $0x160] sm:$0xff] }
 0x792   : > { %7560 = vmatpush.bf16.msrb.mxu0 %v10934_v40 }
 0x793   : > { %v13416_v5 = vadd.f32 %v6520_v57, %v6429_v46  ;;  %v13418_v44 = vpop.f32.mrf.mxu3  ;;  %v10943_v57 = vld [vmem:[#allocation21 + $0x1a8] sm:$0xff] }
 0x794   : > { %7479 = vmatpush.bf16.msrb.mxu3 %v10926_v62  ;;  %7638 = vmatpush.bf16.msra.mxu1 %v10943_v57 }
 0x796   : > { %v6263_v51 = vpop.f32.mrf.mxu2  ;;  %v6426_v25 = vpop.f32.mrf.mxu0  ;;  %7561 = vmatpush.bf16.msrb.mxu0 %v10933_v37  ;;  %v10967_v37 = vld [vmem:[#allocation21 + $0x268] sm:$0xff] }
 0x797   : > { %v6333_v23 = vadd.f32 %v6332_v7, %v6263_v51  ;;  %v6525_v38 = vpop.f32.mrf.mxu1  ;;  %v10952_v7 = vld [vmem:[#allocation21 + $0x1f0] sm:$0xff]  ;;  %v10923_v51 = vld [vmem:[#allocation21 + $0x108] sm:$0xff]  ;;  %v10949_v25 = vld [vmem:[#allocation21 + $0x1d8] sm:$0xff] }
 0x798   : > { %7723 = vmatpush.bf16.msra.mxu2 %v10952_v7  ;;  %7480 = vmatpush.bf16.msrb.mxu3 %v10925_v6  ;;  %v10940_v38 = vld [vmem:[#allocation21 + $0x190] sm:$0xff]  ;;  %v10961_v7 = vld [vmem:[#allocation21 + $0x238] sm:$0xff]  ;;  %v10959_v6 = vld [vmem:[#allocation21 + $0x228] sm:$0xff] }
 0x799   : > { %v6430_v1 = vadd.f32 %v6424_v9, %v6333_v23  ;;  %v10951_v9 = vld [vmem:[#allocation21 + $0x1e8] sm:$0xff]  ;;  %7639 = vmatpush.bf16.msra.mxu1 %v10942_v18  ;;  %v10932_v23 = vld [vmem:[#allocation21 + $0x150] sm:$0xff] }
 0x79a   : > { %7562 = vmatpush.bf16.msrb.mxu0 %v10932_v23  ;;  %v10982_v23 = vld [vmem:[#allocation21 + $0x2e0] sm:$0xff] }
 0x79b   : > { %v6529_v2 = vadd.f32 %v6523_v20, %v6430_v1  ;;  %v13420_v35 = vpop.f32.mrf.mxu3  ;;  %v6527_v20 = vadd.f32 %v13412_v34, %v6428_v58  ;;  %v10922_v1 = vld [vmem:[#allocation21 + $0x100] sm:$0xff] }
 0x79c   : > { %7724 = vmatpush.bf16.msra.mxu2 %v10951_v9  ;;  %7481 = vmatpush.bf16.msrb.mxu3 %v10924_v29  ;;  %v10985_v9 = vld [vmem:[#allocation21 + $0x2f8] sm:$0xff]  ;;  %v10958_v29 = vld [vmem:[#allocation21 + $0x220] sm:$0xff] }
 0x79d   : > { %7640 = vmatpush.bf16.msra.mxu1 %v10941_v31  ;;  %v10975_v31 = vld [vmem:[#allocation21 + $0x2a8] sm:$0xff] }
 0x79e   : > { %v6265_v12 = vpop.f32.mrf.mxu2  ;;  %v13422_v24 = vpop.f32.mrf.mxu0  ;;  %7563 = vmatpush.bf16.msrb.mxu0 %v10931_v45  ;;  %v10981_v45 = vld [vmem:[#allocation21 + $0x2d8] sm:$0xff] }
 0x79f   : > { %v13424_v36 = vpop.f32.mrf.mxu1  ;;  %v10938_v12 = vld [vmem:[#allocation21 + $0x180] sm:$0xff] }
 0x7a0   : > { %7725 = vmatpush.bf16.msra.mxu2 %v10950_v61  ;;  %7482 = vmatpush.bf16.msrb.mxu3 %v10923_v51  ;;  %v10984_v61 = vld [vmem:[#allocation21 + $0x2f0] sm:$0xff]  ;;  %v10974_v51 = vld [vmem:[#allocation21 + $0x2a0] sm:$0xff] }
 0x7a1   : > { %7641 = vmatpush.bf16.msra.mxu1 %v10940_v38 }
 0x7a2   : > { %7564 = vmatpush.bf16.msrb.mxu0 %v10930_v52  ;;  %v10963_v52 = vld [vmem:[#allocation21 + $0x248] sm:$0xff] }
 0x7a3   : > { %v6722_v39 = vpop.f32.mrf.mxu3 }
 0x7a4   : > { %7726 = vmatpush.bf16.msra.mxu2 %v10949_v25  ;;  %7483 = vmatpush.bf16.msrb.mxu3 %v10922_v1  ;;  %v10956_v25 = vld [vmem:[#allocation21 + $0x210] sm:$0xff]  ;;  %v10965_v1 = vld [vmem:[#allocation21 + $0x258] sm:$0xff] }
 0x7a6   : > { %v6627_v0 = vpop.f32.mrf.mxu2  ;;  %v13426_v63 = vpop.f32.mrf.mxu0 }
 0x7a7   : > { %v13428_v3 = vpop.f32.mrf.mxu1  ;;  %v6636_v43 = vadd.f32 %v6627_v0, %v6527_v20 }
 0x7a8   : > { %7727 = vmatpush.bf16.msra.mxu2 %v10948_v41  ;;  %v10973_v41 = vld [vmem:[#allocation21 + $0x298] sm:$0xff] }
 0x7a9   : > { %v6726_v8 = vadd.f32 %v13418_v44, %v6636_v43  ;;  %v10939_v44 = vld [vmem:[#allocation21 + $0x188] sm:$0xff] }
 0x7aa   : > { %7642 = vmatpush.bf16.msra.mxu1 %v10939_v44 }
 0x7ab   : > { %v6724_v49 = vpop.f32.mrf.mxu3  ;;  %v6831_v30 = vadd.f32 %v13422_v24, %v6726_v8  ;;  %v10946_v24 = vld [vmem:[#allocation21 + $0x1c0] sm:$0xff]  ;;  %v10983_v8 = vld [vmem:[#allocation21 + $0x2e8] sm:$0xff] }
 0x7ac   : > { %v10960_v49 = vld [vmem:[#allocation21 + $0x230] sm:$0xff] }
 0x7ae   : > { %v6629_v60 = vpop.f32.mrf.mxu2  ;;  %v6827_v27 = vpop.f32.mrf.mxu0  ;;  %7643 = vmatpush.bf16.msra.mxu1 %v10938_v12 }
 0x7af   : > { %v6936_v42 = vpop.f32.mrf.mxu1  ;;  %v6637_v19 = vadd.f32 %v6629_v60, %v13416_v5  ;;  %v10947_v5 = vld [vmem:[#allocation21 + $0x1c8] sm:$0xff] }
 0x7b0   : > { %7728 = vmatpush.bf16.msra.mxu2 %v10947_v5  ;;  %v10993_v5 = vld [vmem:[#allocation21 + $0x338] sm:$0xff] }
 0x7b1   : > { %v6727_v54 = vadd.f32 %v13420_v35, %v6637_v19 }
 0x7b3   : > { %v6832_v21 = vadd.f32 %v13426_v63, %v6727_v54  ;;  %v10964_v54 = vld [vmem:[#allocation21 + $0x250] sm:$0xff] }
 0x7b4   : > { %7729 = vmatpush.bf16.msra.mxu2 %v10946_v24  ;;  %v10992_v24 = vld [vmem:[#allocation21 + $0x330] sm:$0xff] }
 0x7b5   : > { %v6941_v59 = vadd.f32 %v13428_v3, %v6832_v21  ;;  %v10969_v3 = vld [vmem:[#allocation21 + $0x278] sm:$0xff]  ;;  %v10970_v21 = vld [vmem:[#allocation21 + $0x280] sm:$0xff] }
 0x7b6   : > { %v6632_v26 = vpop.f32.mrf.mxu2  ;;  %v6829_v48 = vpop.f32.mrf.mxu0 }
 0x7b7   : > { %v6638_v46 = vadd.f32 %v6632_v26, %v6529_v2  ;;  %v6938_v32 = vpop.f32.mrf.mxu1  ;;  %v6940_v2 = vadd.f32 %v13424_v36, %v6831_v30  ;;  %v10955_v30 = vld [vmem:[#allocation21 + $0x208] sm:$0xff] }
 0x7b8   : > { %v10976_v32 = vld [vmem:[#allocation21 + $0x2b0] sm:$0xff] }
 0x7b9   : > { %v6728_v10 = vadd.f32 %v6722_v39, %v6638_v46  ;;  %v10968_v46 = vld [vmem:[#allocation21 + $0x270] sm:$0xff] }
 0x7bb   : > { %v6833_v28 = vadd.f32 %v6827_v27, %v6728_v10 }
 0x7bd   : > { %v6942_v34 = vadd.f32 %v6936_v42, %v6833_v28  ;;  %v10977_v42 = vld [vmem:[#allocation21 + $0x2b8] sm:$0xff] }
 0x7be   : > { %v6634_v4 = vpop.f32.mrf.mxu2  ;;  %v10957_v28 = vld [vmem:[#allocation21 + $0x218] sm:$0xff] }
 0x7c6   : > { %v7026_v53 = vpop.f32.mrf.mxu2 }
 0x7c7   : > { %v7035_v14 = vadd.f32 %v7026_v53, %v6940_v2  ;;  %v10972_v2 = vld [vmem:[#allocation21 + $0x290] sm:$0xff] }
 0x7c8   : > { %v10980_v53 = vld [vmem:[#allocation21 + $0x2d0] sm:$0xff] }
 0x7c9   : > { %v7042_v35 = vmul.f32 %v11242_v11, %v7035_v14  ;;  %v10971_v14 = vld [vmem:[#allocation21 + $0x288] sm:$0xff] }
 0x7cb   : > { %v7049_v36 = vadd.f32 %v11243_v47, %v7042_v35  ;;  %v10962_v35 = vld [vmem:[#allocation21 + $0x240] sm:$0xff] }
 0x7cd   : > { %v7067_v50 = vadd.f32 %v13237_v16, %v7049_v36  ;;  %v11001_v36 = vld [vmem:[#allocation21 + $0x378] sm:$0xff] }
 0x7ce   : > { %v7028_v15 = vpop.f32.mrf.mxu2 }
 0x7cf   : > { %vm7070_vm0 = vcmp.ge.f32.partialorder %v7067_v50, 0.0  ;;  %v7073_v17 = vmul.f32 0.2, %v7067_v50  ;;  %v7036_v13 = vadd.f32 %v7028_v15, %v6941_v59  ;;  %v10978_v59 = vld [vmem:[#allocation21 + $0x2c0] sm:$0xff]  ;;  %v10991_v15 = vld [vmem:[#allocation21 + $0x328] sm:$0xff] }
 0x7d1   : > { %v7076_v39 = vsel %vm7070_vm0, %v7067_v50, %v7073_v17  ;;  %v7043_v62 = vmul.f32 %v11242_v11, %v7036_v13  ;;  %v11009_v50 = vld [vmem:[#allocation21 + $0x3b8] sm:$0xff]  ;;  %v11000_v13 = vld [vmem:[#allocation21 + $0x370] sm:$0xff] }
 0x7d2   : > { %v7079_v56 = vpack.c.bf16 %v7076_v39, %v7076_v39  ;;  %v11017_v17 = vld [vmem:[#allocation21 + $0x3f8] sm:$0xff]  ;;  %v11008_v39 = vld [vmem:[#allocation21 + $0x3b0] sm:$0xff] }
 0x7d3   : > { %v7050_v0 = vadd.f32 %v11243_v47, %v7043_v62 }
 0x7d4   : > { %v7179_v57 = vunpack.c.l.b16 %v7079_v56  ;;  %7155 = vmatmul.bf16.vlgmr.msra.gmra.mxu3 %v7079_v56  ;;  %v10990_v56 = vld [vmem:[#allocation21 + $0x320] sm:$0xff] }
 0x7d5   : > { %v7068_v63 = vadd.f32 %v13257_v55, %v7050_v0  ;;  %7803 = vmatpush.bf16.msra.mxu3 %v10961_v7  ;;  %v11016_v0 = vld [vmem:[#allocation21 + $0x3f0] sm:$0xff] }
 0x7d6   : > { %v7180_v60 = vpack.c.b16 %v7179_v57, %v7179_v57  ;;  %v7031_v27 = vpop.f32.mrf.mxu2 }
 0x7d7   : > { %v7074_v16 = vmul.f32 0.2, %v7068_v63  ;;  %v7037_v33 = vadd.f32 %v7031_v27, %v6942_v34  ;;  %vm7071_vm1 = vcmp.ge.f32.partialorder %v7068_v63, 0.0  ;;  %v10989_v27 = vld [vmem:[#allocation21 + $0x318] sm:$0xff] }
 0x7d8   : > { %v7182_v58 = vshrl.u32 %v7180_v60, 16  ;;  %v7264_v26 = vrot.slane %v7180_v60, 1  ;;  %v7426_v4 = vrot.slane %v7180_v60, 3  ;;  %v11007_v60 = vld [vmem:[#allocation21 + $0x3a8] sm:$0xff] }
 0x7d9   : > { %v7044_v48 = vmul.f32 %v11242_v11, %v7037_v33  ;;  %7804 = vmatpush.bf16.msra.mxu3 %v10960_v49  ;;  %v7077_v20 = vsel %vm7071_vm1, %v7068_v63, %v7074_v16  ;;  %v10954_v11 = vld [vmem:[#allocation21 + $0x200] sm:$0xff]  ;;  %v10999_v49 = vld [vmem:[#allocation21 + $0x368] sm:$0xff] }
 0x7da   : > { %7241 = vmatmul.bf16.vlgmr.msra.gmra.mxu0 %v7182_v58  ;;  %7322 = vmatmul.bf16.vlgmr.msrb.gmra.mxu1 %v7264_v26  ;;  %v7345_v40 = vrot.slane %v7182_v58, 1  ;;  %v7080_v43 = vpack.c.bf16 %v7077_v20, %v7077_v20  ;;  %v7507_v19 = vrot.slane %v7182_v58, 3  ;;  %v11015_v16 = vld [vmem:[#allocation21 + $0x3e8] sm:$0xff]  ;;  %v10988_v58 = vld [vmem:[#allocation21 + $0x310] sm:$0xff]  ;;  %v11014_v26 = vld [vmem:[#allocation21 + $0x3e0] sm:$0xff] }
 0x7db   : > { %v7051_v55 = vadd.f32 %v11243_v47, %v7044_v48  ;;  %7884 = vmatpush.bf16.msra.mxu0 %v10969_v3  ;;  %7965 = vmatpush.bf16.msrb.mxu1 %v10977_v42  ;;  %v10979_v47 = vld [vmem:[#allocation21 + $0x2c8] sm:$0xff]  ;;  %v10998_v3 = vld [vmem:[#allocation21 + $0x360] sm:$0xff]  ;;  %v11013_v20 = vld [vmem:[#allocation21 + $0x3d8] sm:$0xff] }
 0x7dc   : > { %7403 = vmatmul.bf16.vlgmr.msrb.gmra.mxu2 %v7345_v40  ;;  %v7668_v34 = vunpack.c.l.b16 %v7080_v43  ;;  %v11006_v42 = vld [vmem:[#allocation21 + $0x3a0] sm:$0xff]  ;;  %v10987_v40 = vld [vmem:[#allocation21 + $0x308] sm:$0xff] }
 0x7dd   : > { %v13450_v18 = vadd.f32 %v13262_v22, %v7051_v55  ;;  %7805 = vmatpush.bf16.msra.mxu3 %v10959_v6  ;;  %8046 = vmatpush.bf16.msrb.mxu2 %v10985_v9  ;;  %v10966_v22 = vld [vmem:[#allocation21 + $0x260] sm:$0xff]  ;;  %v10997_v6 = vld [vmem:[#allocation21 + $0x358] sm:$0xff] }
 0x7de   : > { %v7033_v10 = vpop.f32.mrf.mxu2  ;;  %v7669_v38 = vpack.c.b16 %v7668_v34, %v7668_v34  ;;  %v11005_v9 = vld [vmem:[#allocation21 + $0x398] sm:$0xff] }
 0x7df   : > { %7885 = vmatpush.bf16.msra.mxu0 %v10968_v46  ;;  %7966 = vmatpush.bf16.msrb.mxu1 %v10976_v32  ;;  %v7075_v63 = vmul.f32 0.2, %v13450_v18  ;;  %vm7072_vm3 = vcmp.ge.f32.partialorder %v13450_v18, 0.0  ;;  %v10996_v46 = vld [vmem:[#allocation21 + $0x350] sm:$0xff]  ;;  %v11003_v10 = vld [vmem:[#allocation21 + $0x388] sm:$0xff] }
 0x7e0   : > { %v7671_v44 = vshrl.u32 %v7669_v38, 16  ;;  %v7753_v12 = vrot.slane %v7669_v38, 2  ;;  %v7915_v7 = vrot.slane %v7669_v38, 3  ;;  %v11004_v32 = vld [vmem:[#allocation21 + $0x390] sm:$0xff] }
 0x7e1   : > { %7806 = vmatpush.bf16.msra.mxu3 %v10958_v29  ;;  %8047 = vmatpush.bf16.msrb.mxu2 %v10984_v61  ;;  %v7078_v33 = vsel %vm7072_vm3, %v13450_v18, %v7075_v63  ;;  %v10986_v18 = vld [vmem:[#allocation21 + $0x300] sm:$0xff]  ;;  %v11012_v29 = vld [vmem:[#allocation21 + $0x3d0] sm:$0xff] }
 0x7e2   : > { %v7834_v62 = vrot.slane %v7671_v44, 2  ;;  %v7996_v57 = vrot.slane %v7671_v44, 3  ;;  %v7081_v48 = vpack.c.bf16 %v7078_v33, %v7078_v33 }
 0x7e3   : > { %7886 = vmatpush.bf16.msra.mxu0 %v10967_v37  ;;  %7967 = vmatpush.bf16.msrb.mxu1 %v10975_v31  ;;  %v11011_v37 = vld [vmem:[#allocation21 + $0x3c8] sm:$0xff] }
 0x7e4   : > { %7484 = vmatmul.bf16.vlgmr.msrb.gmra.mxu3 %v7426_v4  ;;  %v8078_v55 = vunpack.c.l.b16 %v7081_v48  ;;  %v11010_v4 = vld [vmem:[#allocation21 + $0x3c0] sm:$0xff] }
 0x7e5   : > { %7807 = vmatpush.bf16.msra.mxu3 %v10957_v28  ;;  %8048 = vmatpush.bf16.msrb.mxu2 %v10983_v8  ;;  %v10994_v28 = vld [vmem:[#allocation21 + $0x340] sm:$0xff] }
 0x7e6   : > { %v8079_v61 = vpack.c.b16 %v8078_v55, %v8078_v55  ;;  %v11002_v8 = vld [vmem:[#allocation21 + $0x380] sm:$0xff] }
 0x7e7   : > { %7887 = vmatpush.bf16.msra.mxu0 %v10966_v22  ;;  %7968 = vmatpush.bf16.msrb.mxu1 %v10974_v51 }
 0x7e8   : > { %v8080_v31 = vrot.slane %v8079_v61, 1  ;;  %v8162_v34 = vshrl.u32 %v8079_v61, 16  ;;  %v8245_v51 = vrot.slane %v8079_v61, 2 }
 0x7e9   : > { %7808 = vmatpush.bf16.msra.mxu3 %v10956_v25  ;;  %8049 = vmatpush.bf16.msrb.mxu2 %v10982_v23 }
 0x7ea   : > { %7565 = vmatmul.bf16.vlgmr.msrb.gmra.mxu0 %v7507_v19  ;;  %7644 = vmatmul.bf16.vlgmr.msra.gmra.mxu1 %v7080_v43  ;;  %v10995_v43 = vld [vmem:[#allocation21 + $0x348] sm:$0xff]  ;;  %v8164_v22 = vrot.slane %v8162_v34, 1  ;;  %v8326_v25 = vrot.slane %v8162_v34, 2 }
 0x7eb   : > { %7888 = vmatpush.bf16.msra.mxu0 %v10965_v1  ;;  %7969 = vmatpush.bf16.msrb.mxu1 %v10973_v41 }
 0x7ec   : > { %7730 = vmatmul.bf16.vlgmr.msra.gmra.mxu2 %v7671_v44 }
 0x7ed   : > { %7809 = vmatpush.bf16.msra.mxu3 %v10955_v30  ;;  %8050 = vmatpush.bf16.msrb.mxu2 %v10981_v45 }
 0x7ef   : > { %7889 = vmatpush.bf16.msra.mxu0 %v10964_v54  ;;  %7970 = vmatpush.bf16.msrb.mxu1 %v10972_v2 }
 0x7f1   : > { %7810 = vmatpush.bf16.msra.mxu3 %v10954_v11  ;;  %8051 = vmatpush.bf16.msrb.mxu2 %v10980_v53  ;;  %v7082_v53 = vld [vmem:[%s13650_s15] sm:$0x1] }
 0x7f3   : > { %7890 = vmatpush.bf16.msra.mxu0 %v10963_v52  ;;  %7971 = vmatpush.bf16.msrb.mxu1 %v10971_v14 }
 0x7f4   : > { %7811 = vmatmul.bf16.vlgmr.msra.gmra.mxu3 %v7753_v12 }
 0x7f5   : > { %8130 = vmatpush.bf16.msrb.mxu3 %v10993_v5  ;;  %8052 = vmatpush.bf16.msrb.mxu2 %v10979_v47 }
 0x7f7   : > { %7891 = vmatpush.bf16.msra.mxu0 %v10962_v35  ;;  %7972 = vmatpush.bf16.msrb.mxu1 %v10970_v21 }
 0x7f9   : > { %8131 = vmatpush.bf16.msrb.mxu3 %v10992_v24  ;;  %8053 = vmatpush.bf16.msrb.mxu2 %v10978_v59 }
 0x7fa   : > { %7892 = vmatmul.bf16.vlgmr.msra.gmra.mxu0 %v7834_v62  ;;  %7973 = vmatmul.bf16.vlgmr.msrb.gmra.mxu1 %v7915_v7 }
 0x7fb   : > { %8214 = vmatpush.bf16.msrb.mxu0 %v11001_v36  ;;  %8295 = vmatpush.bf16.msra.mxu1 %v11009_v50 }
 0x7fc   : > { %8054 = vmatmul.bf16.vlgmr.msrb.gmra.mxu2 %v7996_v57 }
 0x7fd   : > { %8132 = vmatpush.bf16.msrb.mxu3 %v10991_v15  ;;  %8376 = vmatpush.bf16.msra.mxu2 %v11017_v17 }
 0x7ff   : > { %8215 = vmatpush.bf16.msrb.mxu0 %v11000_v13  ;;  %8296 = vmatpush.bf16.msra.mxu1 %v11008_v39 }
 0x801   : > { %8133 = vmatpush.bf16.msrb.mxu3 %v10990_v56  ;;  %8377 = vmatpush.bf16.msra.mxu2 %v11016_v0 }
 0x803   : > { %8216 = vmatpush.bf16.msrb.mxu0 %v10999_v49  ;;  %8297 = vmatpush.bf16.msra.mxu1 %v11007_v60 }
 0x805   : > { %8134 = vmatpush.bf16.msrb.mxu3 %v10989_v27  ;;  %8378 = vmatpush.bf16.msra.mxu2 %v11015_v16 }
 0x807   : > { %8217 = vmatpush.bf16.msrb.mxu0 %v10998_v3  ;;  %8298 = vmatpush.bf16.msra.mxu1 %v11006_v42 }
 0x809   : > { %8135 = vmatpush.bf16.msrb.mxu3 %v10988_v58  ;;  %8379 = vmatpush.bf16.msra.mxu2 %v11014_v26 }
 0x80b   : > { %8218 = vmatpush.bf16.msrb.mxu0 %v10997_v6  ;;  %8299 = vmatpush.bf16.msra.mxu1 %v11005_v9 }
 0x80d   : > { %8136 = vmatpush.bf16.msrb.mxu3 %v10987_v40  ;;  %8380 = vmatpush.bf16.msra.mxu2 %v11013_v20 }
 0x80f   : > { %8219 = vmatpush.bf16.msrb.mxu0 %v10996_v46  ;;  %8300 = vmatpush.bf16.msra.mxu1 %v11004_v32 }
 0x811   : > { %8137 = vmatpush.bf16.msrb.mxu3 %v10986_v18  ;;  %8381 = vmatpush.bf16.msra.mxu2 %v11012_v29 }
 0x813   : > { %8220 = vmatpush.bf16.msrb.mxu0 %v10995_v43  ;;  %8301 = vmatpush.bf16.msra.mxu1 %v11003_v10 }
 0x814   : > { %8138 = vmatmul.bf16.vlgmr.msrb.gmra.mxu3 %v8080_v31 }
 0x815   : > { %8382 = vmatpush.bf16.msra.mxu2 %v11011_v37 }
 0x817   : > { %8221 = vmatpush.bf16.msrb.mxu0 %v10994_v28  ;;  %8302 = vmatpush.bf16.msra.mxu1 %v11002_v8 }
 0x819   : > { %8383 = vmatpush.bf16.msra.mxu2 %v11010_v4 }
 0x81a   : > { %8222 = vmatmul.bf16.vlgmr.msrb.gmra.mxu0 %v8164_v22  ;;  %8303 = vmatmul.bf16.vlgmr.msra.gmra.mxu1 %v8245_v51 }
 0x81c   : > { %8384 = vmatmul.bf16.vlgmr.msra.gmra.mxu2 %v8326_v25 }
 0x857   : > { %v7156_v23 = vpop.f32.mrf.mxu3  ;;  %v7242_v38 = vpop.f32.mrf.mxu0 }
 0x858   : > { %v7323_v1 = vpop.f32.mrf.mxu1  ;;  %v7160_v12 = vadd.f32 %v7156_v23, %v7082_v53 }
 0x85a   : > { %v7246_v24 = vadd.f32 %v7242_v38, %v7160_v12 }
 0x85c   : > { %v7327_v50 = vadd.f32 %v7323_v1, %v7246_v24 }
 0x85f   : > { %v7158_v41 = vpop.f32.mrf.mxu3  ;;  %v7244_v19 = vpop.f32.mrf.mxu0 }
 0x860   : > { %v7325_v30 = vpop.f32.mrf.mxu1  ;;  %v7404_v45 = vpop.f32.mrf.mxu2 }
 0x861   : > { %v7408_v15 = vadd.f32 %v7404_v45, %v7327_v50 }
 0x867   : > { %v7485_v44 = vpop.f32.mrf.mxu3  ;;  %v7566_v54 = vpop.f32.mrf.mxu0 }
 0x868   : > { %v7406_v2 = vpop.f32.mrf.mxu2  ;;  %v7645_v11 = vpop.f32.mrf.mxu1  ;;  %v7489_v17 = vadd.f32 %v7485_v44, %v7408_v15 }
 0x86a   : > { %v7570_v7 = vadd.f32 %v7566_v54, %v7489_v17 }
 0x86c   : > { %v7649_v0 = vadd.f32 %v7645_v11, %v7570_v7 }
 0x86f   : > { %v7487_v5 = vpop.f32.mrf.mxu3  ;;  %v7568_v52 = vpop.f32.mrf.mxu0 }
 0x870   : > { %v7647_v14 = vpop.f32.mrf.mxu1  ;;  %v7731_v47 = vpop.f32.mrf.mxu2 }
 0x871   : > { %v7735_v57 = vadd.f32 %v7731_v47, %v7649_v0 }
 0x877   : > { %v7812_v35 = vpop.f32.mrf.mxu3  ;;  %v7893_v36 = vpop.f32.mrf.mxu0 }
 0x878   : > { %v7733_v21 = vpop.f32.mrf.mxu2  ;;  %v7974_v59 = vpop.f32.mrf.mxu1  ;;  %v7816_v49 = vadd.f32 %v7812_v35, %v7735_v57 }
 0x87a   : > { %v7897_v60 = vadd.f32 %v7893_v36, %v7816_v49 }
 0x87c   : > { %v7978_v27 = vadd.f32 %v7974_v59, %v7897_v60 }
 0x87f   : > { %v7814_v13 = vpop.f32.mrf.mxu3  ;;  %v7895_v39 = vpop.f32.mrf.mxu0 }
 0x880   : > { %v8055_v62 = vpop.f32.mrf.mxu2  ;;  %v7976_v56 = vpop.f32.mrf.mxu1 }
 0x881   : > { %v8059_v16 = vadd.f32 %v8055_v62, %v7978_v27 }
 0x888   : > { %v8057_v63 = vpop.f32.mrf.mxu2 }
 0x897   : > { %v8139_v33 = vpop.f32.mrf.mxu3  ;;  %v8223_v3 = vpop.f32.mrf.mxu0 }
 0x898   : > { %v8143_v42 = vadd.f32 %v8139_v33, %v8059_v16  ;;  %v8304_v58 = vpop.f32.mrf.mxu1 }
 0x89a   : > { %v8227_v26 = vadd.f32 %v8223_v3, %v8143_v42 }
 0x89c   : > { %v8308_v48 = vadd.f32 %v8304_v58, %v8227_v26 }
 0x89f   : > { %v8141_v6 = vpop.f32.mrf.mxu3  ;;  %v8225_v9 = vpop.f32.mrf.mxu0 }
 0x8a0   : > { %v8306_v40 = vpop.f32.mrf.mxu1  ;;  %v8385_v20 = vpop.f32.mrf.mxu2 }
 0x8a1   : > { %v8389_v55 = vadd.f32 %v8385_v20, %v8308_v48 }
 0x8a3   : > { %8390 = vst [vmem:[%s824_s29] sm:$0x1] %v8389_v55 }
 0x8a4   : > { %11571 = shalt.err (!%p11568_p9)
}
 0x8a5   : > { %11130 = dma.vmem_to_hbm [thread:$0]  (%p11886_p13), %s8403_s20, 16, %s8405_s0, %s8392_s14  }
 0x8a8   : > { %v8387_v46 = vpop.f32.mrf.mxu2 }
 0x8a9 PF: > { %s8416_s5 = sand.u32 1, %s11618_s2   ;;  %p13652_p10 = scmp.ge.s32.totalorder %s11630_s27, 2 }
 0x8aa   : > { %s8417_s17 = scalar_lea.sflag [#allocation8], %s8416_s5 }
 0x8ab   : > { %p11165_p11 = pnand %p13652_p10, %p11891_p4 }
 0x8ad   : > { %p11166_p0 = pneg %p11165_p11 }
 0x8af   : > { %11613 = dma.done.wait (%p11166_p0), %s8417_s17, 16  }
 0x8b0   : > { %11615 = vsyncadd (%p11166_p0), %s8417_s17, 4294967280  ;;  %p39_p2 = scmp.ge.s32.totalorder %s11866_s1, 4   ;;  %s13653_s2 = smov %s11622_s25 }
 0x8b1   : > { %s13654_s25 = smov %s11626_s26  ;;  %s13655_s26 = smov %s11878_s18 }
 0x8b2   : > { %s13656_s27 = smov %s11866_s1  ;;  %41 = sbr.rel (!%p39_p2) target bundleno = 27 (0x1b), region = 232 }
 0x8b7   :  { %8422 = vsyncpa [#allocation7], 1 }
 0x8b8   :  { %8424 = vsyncpa [#allocation7 + $0x1], 1 }
 0x8b9   :  { %8425 = vsyncpa [#allocation10], 1 }
 0x8ba   :  { %8426 = vsyncpa [#allocation13], 1 }
 0x8bb   :  { %8427 = vsyncpa [#allocation16], 1 }
 0x8bc   :  { %8428 = vsyncpa [#allocation19], 1 }
 0x8bd   :  { %8429 = vsyncpa [#allocation22], 1 }
 0x8be   :  { %8430 = vsyncpa [#allocation8], 1 }
 0x8bf   :  { %8432 = vsyncpa [#allocation8 + $0x1], 1 }

</bundles_post_ra>
